<compile_context>
chip_gen: v5e
topology: v5e:2x2
jax: 0.10.0
libtpu: 0.0.40
codegen_flags: <defaults>
</compile_context>

<pallas_src>
import functools

import jax
import jax.numpy as jnp
from jax.experimental import pallas as pl
from jax.experimental.pallas import tpu as pltpu

FEATURE_DIM = 32
BN_EPS = 1e-5
LANE = 128                         # lane width; all dims padded to multiples of this
GROUP = 8                          # rows per BatchNorm batch (setsz / querysz)


def _pad128(d):
    return ((d + LANE - 1) // LANE) * LANE


# Linear layers that feed a BatchNorm (in, out), original (unpadded) dims:
#   encoder (3), decoder (3), classifier hidden (3)
LIN_DIMS = [(32, 512), (512, 256), (256, 128),       # encoder
            (128, 256), (256, 512), (512, 32),       # decoder
            (128, 64), (64, 32), (32, 10)]           # classifier hidden
FINAL_IN, FINAL_OUT = 10, 1                          # final Linear(10, 1)

PAD_IN = [_pad128(i) for (i, _) in LIN_DIMS] + [_pad128(FINAL_IN)]
PAD_OUT = [_pad128(o) for (_, o) in LIN_DIMS] + [_pad128(FINAL_OUT)]

# gamma / beta packed at 128-aligned offsets (slot width == padded layer width).
OFFS = []
_acc = 0
for _s in PAD_OUT[:-1]:
    OFFS.append(_acc)
    _acc += _s
VEC_TOTAL = _acc                                     # 2176

N_WEIGHTS = len(PAD_OUT)                             # 9 BN-linears + final linear = 10


def _devnet_kernel(group, x_ref, *rest):
    """Fused encoder/decoder/classifier forward for one grid block of rows."""
    w = rest[:N_WEIGHTS]                 # 10 bf16 weight refs, [pad_in, pad_out]
    vecs_ref = rest[N_WEIGHTS]           # [3, 2176] f32: gamma / beta / final bias
    ae_ref = rest[N_WEIGHTS + 1]         # [rows, 128] f32 (real lanes: 0:32)
    cls_ref = rest[N_WEIGHTS + 2]        # [rows, 128] f32 (real lane: 0)

    rows = x_ref.shape[0]
    ngrp = rows // group                 # BN groups (one per original forward call)
    inv_n = 1.0 / group

    def linear_bn(h, li):
        """Linear (bias cancels in BN) -> train-mode BatchNorm1d per 8-row group."""
        f = PAD_OUT[li]
        off = OFFS[li]
        z = jnp.dot(h, w[li][...], preferred_element_type=jnp.float32)   # [rows, f]
        zg = z.reshape(ngrp, group, f)
        # one-pass, independent statistics (no mean -> var serial dependency)
        s1 = jnp.sum(zg, axis=1, keepdims=True)
        s2 = jnp.sum(zg * zg, axis=1, keepdims=True)
        mean = s1 * inv_n
        var = jnp.maximum(s2 * inv_n - mean * mean, 0.0)      # biased, train-mode
        gamma = vecs_ref[0:1, off:off + f].reshape(1, 1, f)
        beta = vecs_ref[1:2, off:off + f].reshape(1, 1, f)
        scale = gamma * jax.lax.rsqrt(var + BN_EPS)
        shift = beta - mean * scale
        return (zg * scale + shift).reshape(rows, f)           # f32

    def relu_bf16(z):
        # Dropout(id) -> ReLU, then cast once for the next bf16 MXU matmul.
        return jnp.maximum(z, 0.0).astype(jnp.bfloat16)

    h = x_ref[...]                                   # [rows, 128] bf16 (padded input)

    # --- encoder: 3 x (Linear -> BN -> Dropout(id) -> ReLU) ---
    for li in range(3):
        h = relu_bf16(linear_bn(h, li))
    feat = h                                         # [rows, 128] bf16

    # --- decoder: 2 x (Linear -> BN -> Dropout(id) -> ReLU), last uses Sigmoid ---
    d = feat
    for li in range(3, 5):
        d = relu_bf16(linear_bn(d, li))
    ae_ref[...] = jax.nn.sigmoid(linear_bn(d, 5))    # padded lanes become 0.5, sliced off

    # --- classifier: 3 x (Linear -> BN -> Dropout(id) -> ReLU), then Linear(10,1) ---
    c = feat
    for li in range(6, 9):
        c = relu_bf16(linear_bn(c, li))
    cls_ref[...] = (jnp.dot(c, w[9][...], preferred_element_type=jnp.float32)
                    + vecs_ref[2:3, 0:LANE])         # lane-dense; only lane 0 is real


def make_params(key):
    """Deterministic parameter init (PyTorch-like uniform bounds), lane-padded.

    Returns (weights, vecs):
      weights : 10 bf16 arrays, pre-transposed to [in, out], zero-padded to
                multiples of 128 in both dims.
      vecs    : [3, 2176] f32 -- row0 = BN gammas (padded lanes 0), row1 = BN
                betas, row2 = final bias (lane 0).
    """
    keys = jax.random.split(key, len(LIN_DIMS) + 2)
    weights, gammas, betas = [], [], []

    for idx, ((din, dout), pin, pout) in enumerate(zip(LIN_DIMS, PAD_IN, PAD_OUT)):
        bound = 1.0 / float(din) ** 0.5
        w = jax.random.uniform(keys[idx], (din, dout), jnp.float32, -bound, bound)
        w = jnp.pad(w, ((0, pin - din), (0, pout - dout)))      # zero pad -> padded lanes stay 0
        weights.append(w.astype(jnp.bfloat16))
        # pre-BN bias is dropped: it cancels exactly in the BN mean subtraction
        gammas.append(jnp.concatenate([jnp.ones((dout,), jnp.float32),
                                       jnp.zeros((pout - dout,), jnp.float32)]))
        betas.append(jnp.zeros((pout,), jnp.float32))

    # final Linear(10, 1), zero-padded to [128, 128] for lane-dense matmul/store
    bound = 1.0 / float(FINAL_IN) ** 0.5
    w_out = jax.random.uniform(keys[-2], (FINAL_IN, FINAL_OUT), jnp.float32, -bound, bound)
    b_out = jax.random.uniform(keys[-1], (FINAL_OUT,), jnp.float32, -bound, bound)
    weights.append(jnp.pad(w_out, ((0, PAD_IN[-1] - FINAL_IN),
                                   (0, PAD_OUT[-1] - FINAL_OUT))).astype(jnp.bfloat16))

    vecs = jnp.stack([jnp.concatenate(gammas),
                      jnp.concatenate(betas),
                      jnp.pad(b_out, (0, VEC_TOTAL - FINAL_OUT))], axis=0)
    return weights, vecs


def _num_grid_blocks(num_groups):
    """1 fused step on single-TC chips (v5e/v6e); 2 steps on v7x (2 TCs)."""
    nb = 1
    try:
        kind = jax.devices()[0].device_kind.lower()
        if "v7" in kind:
            nb = 2
    except Exception:
        nb = 1
    while nb > 1 and (num_groups % nb != 0 or ((num_groups // nb) * GROUP) % 8 != 0):
        nb -= 1
    return nb


@functools.partial(jax.jit, static_argnames=("group", "num_blocks"))
def _devnet_forward_padded(x_pad, weights, vecs, *, group, num_blocks):
    rows, feat_pad = x_pad.shape
    rows_pb = rows // num_blocks

    kernel = functools.partial(_devnet_kernel, group)

    x_spec = pl.BlockSpec((rows_pb, feat_pad), lambda i: (i, 0))
    w_specs = [pl.BlockSpec(w.shape, lambda i: (0, 0)) for w in weights]  # resident in VMEM
    vecs_spec = pl.BlockSpec(vecs.shape, lambda i: (0, 0))
    ae_spec = pl.BlockSpec((rows_pb, LANE), lambda i: (i, 0))
    cls_spec = pl.BlockSpec((rows_pb, LANE), lambda i: (i, 0))

    flops = 2 * rows * sum(pi * po for pi, po in zip(PAD_IN, PAD_OUT))
    transcendentals = rows * LANE + (rows // group) * VEC_TOTAL           # sigmoid + rsqrt
    bytes_accessed = (sum(w.size * 2 for w in weights) + vecs.size * 4
                      + x_pad.size * 2 + 2 * rows * LANE * 4)

    return pl.pallas_call(
        kernel,
        out_shape=(jax.ShapeDtypeStruct((rows, LANE), jnp.float32),
                   jax.ShapeDtypeStruct((rows, LANE), jnp.float32)),
        grid=(num_blocks,),
        in_specs=[x_spec] + w_specs + [vecs_spec],
        out_specs=(ae_spec, cls_spec),
        compiler_params=pltpu.CompilerParams(
            dimension_semantics=("parallel",)),       # shards steps across v7x's 2 TCs
        cost_estimate=pl.CostEstimate(flops=int(flops),
                                      transcendentals=int(transcendentals),
                                      bytes_accessed=int(bytes_accessed)),
    )(x_pad, *weights, vecs)


def devnet_forward(x, weights, vecs):
    """Fused forward over a stack of independent 8-row batches.

    x: [T, N, FEATURE_DIM] -> (ae [T, N, FEATURE_DIM], cls [T, N, 1]).
    BatchNorm statistics are computed per leading-axis slice (per original call).
    """
    t, n, f = x.shape
    rows = t * n
    x_flat = x.reshape(rows, f)
    x_pad = jnp.pad(x_flat, ((0, 0), (0, LANE - f))).astype(jnp.bfloat16)
    nb = _num_grid_blocks(t)
    ae_pad, cls_pad = _devnet_forward_padded(x_pad, tuple(weights), vecs,
                                             group=n, num_blocks=nb)
    ae = ae_pad[:, :FEATURE_DIM].reshape(t, n, FEATURE_DIM)
    cls = cls_pad[:, :1].reshape(t, n, 1)
    return ae, cls


if __name__ == "__main__":
    key = jax.random.PRNGKey(0)
    kp, kx, kq = jax.random.split(key, 3)
    weights, vecs = make_params(kp)

    task_num, setsz, querysz = 2, 8, 8
    x_spt = jax.random.normal(kx, (task_num, setsz, FEATURE_DIM), jnp.float32)
    x_qry = jax.random.normal(kq, (task_num, querysz, FEATURE_DIM), jnp.float32)

    # One fused kernel launch for all (task, support/query) forwards.
    x_all = jnp.concatenate([x_spt, x_qry], axis=0)          # [2*task_num, 8, 32]
    ae_all, cls_all = devnet_forward(x_all, weights, vecs)
    jax.block_until_ready((ae_all, cls_all))

    results = []
    for i in range(task_num):
        ae_s, cls_s = ae_all[i], cls_all[i]                          # support forward
        ae_q, cls_q = ae_all[task_num + i], cls_all[task_num + i]    # query forward
        results.extend([ae_s, cls_s, ae_q, cls_q])
    jax.block_until_ready(results)

    assert results[0].shape == (setsz, FEATURE_DIM)
    assert results[1].shape == (setsz, 1)
    assert results[2].shape == (querysz, FEATURE_DIM)
    assert results[3].shape == (querysz, 1)
    assert all(bool(jnp.all(jnp.isfinite(r))) for r in results)
    # decoder output went through a sigmoid -> must lie in (0, 1)
    assert bool(jnp.all((results[0] > 0.0) & (results[0] < 1.0)))
    print("KERNEL_OK")
</pallas_src>

<mosaic_0001>
module attributes {stable_mosaic.version = 11 : i64} {
  func.func @_devnet_kernel(%arg0: i32, %arg1: memref<32x128xbf16, #tpu.memory_space<vmem>>, %arg2: memref<128x512xbf16, #tpu.memory_space<vmem>>, %arg3: memref<512x256xbf16, #tpu.memory_space<vmem>>, %arg4: memref<256x128xbf16, #tpu.memory_space<vmem>>, %arg5: memref<128x256xbf16, #tpu.memory_space<vmem>>, %arg6: memref<256x512xbf16, #tpu.memory_space<vmem>>, %arg7: memref<512x128xbf16, #tpu.memory_space<vmem>>, %arg8: memref<128x128xbf16, #tpu.memory_space<vmem>>, %arg9: memref<128x128xbf16, #tpu.memory_space<vmem>>, %arg10: memref<128x128xbf16, #tpu.memory_space<vmem>>, %arg11: memref<128x128xbf16, #tpu.memory_space<vmem>>, %arg12: memref<3x2176xf32, #tpu.memory_space<vmem>>, %arg13: memref<32x128xf32, #tpu.memory_space<vmem>>, %arg14: memref<32x128xf32, #tpu.memory_space<vmem>>) attributes {dimension_semantics = [#tpu.dimension_semantics<parallel>], iteration_bounds = array<i64: 1>, scalar_prefetch = 0 : i64, scratch_operands = 0 : i64, tpu.core_type = #tpu.core_type<tc>, window_params = [{transform_indices = @transform_0, window_bounds = array<i64: 32, 128>}, {pipeline_mode = #tpu.pipeline_mode<synchronous>, transform_indices = @transform_1, window_bounds = array<i64: 128, 512>}, {pipeline_mode = #tpu.pipeline_mode<synchronous>, transform_indices = @transform_2, window_bounds = array<i64: 512, 256>}, {pipeline_mode = #tpu.pipeline_mode<synchronous>, transform_indices = @transform_3, window_bounds = array<i64: 256, 128>}, {pipeline_mode = #tpu.pipeline_mode<synchronous>, transform_indices = @transform_4, window_bounds = array<i64: 128, 256>}, {pipeline_mode = #tpu.pipeline_mode<synchronous>, transform_indices = @transform_5, window_bounds = array<i64: 256, 512>}, {pipeline_mode = #tpu.pipeline_mode<synchronous>, transform_indices = @transform_6, window_bounds = array<i64: 512, 128>}, {pipeline_mode = #tpu.pipeline_mode<synchronous>, transform_indices = @transform_7, window_bounds = array<i64: 128, 128>}, {pipeline_mode = #tpu.pipeline_mode<synchronous>, transform_indices = @transform_8, window_bounds = array<i64: 128, 128>}, {pipeline_mode = #tpu.pipeline_mode<synchronous>, transform_indices = @transform_9, window_bounds = array<i64: 128, 128>}, {pipeline_mode = #tpu.pipeline_mode<synchronous>, transform_indices = @transform_10, window_bounds = array<i64: 128, 128>}, {pipeline_mode = #tpu.pipeline_mode<synchronous>, transform_indices = @transform_11, window_bounds = array<i64: 3, 2176>}, {transform_indices = @transform_12, window_bounds = array<i64: 32, 128>}, {transform_indices = @transform_13, window_bounds = array<i64: 32, 128>}]} {
    %c0 = arith.constant 0 : index
    %c0_0 = arith.constant 0 : index
    %0 = vector.load %arg1[%c0, %c0_0] : memref<32x128xbf16, #tpu.memory_space<vmem>>, vector<32x128xbf16>
    %c0_1 = arith.constant 0 : index
    %c0_2 = arith.constant 0 : index
    %1 = vector.load %arg2[%c0_1, %c0_2] : memref<128x512xbf16, #tpu.memory_space<vmem>>, vector<128x512xbf16>
    %cst = arith.constant dense<0.000000e+00> : vector<32x512xf32>
    %2 = tpu.matmul %0, %1, %cst {dimension_numbers = #tpu.dot_dimension_numbers<[1], [0], [0], [1], [0, 0, 1, 1], [], []>} : vector<32x128xbf16>, vector<128x512xbf16>, vector<32x512xf32> -> vector<32x512xf32>
    %3 = vector.shape_cast %2 : vector<32x512xf32> to vector<4x8x512xf32>
    %cst_3 = arith.constant dense<0.000000e+00> : vector<4x512xf32>
    %4 = vector.multi_reduction <add>, %3, %cst_3 [1] : vector<4x8x512xf32> to vector<4x512xf32>
    %5 = vector.shape_cast %4 : vector<4x512xf32> to vector<4x1x512xf32>
    %6 = arith.mulf %3, %3 : vector<4x8x512xf32>
    %cst_4 = arith.constant dense<0.000000e+00> : vector<4x512xf32>
    %7 = vector.multi_reduction <add>, %6, %cst_4 [1] : vector<4x8x512xf32> to vector<4x512xf32>
    %8 = vector.shape_cast %7 : vector<4x512xf32> to vector<4x1x512xf32>
    %cst_5 = arith.constant 1.250000e-01 : f32
    %9 = vector.broadcast %cst_5 : f32 to vector<4x1x512xf32>
    %10 = arith.mulf %5, %9 : vector<4x1x512xf32>
    %cst_6 = arith.constant 1.250000e-01 : f32
    %11 = vector.broadcast %cst_6 : f32 to vector<4x1x512xf32>
    %12 = arith.mulf %8, %11 : vector<4x1x512xf32>
    %13 = arith.mulf %10, %10 : vector<4x1x512xf32>
    %14 = arith.subf %12, %13 : vector<4x1x512xf32>
    %cst_7 = arith.constant 0.000000e+00 : f32
    %15 = vector.broadcast %cst_7 : f32 to vector<4x1x512xf32>
    %16 = arith.maximumf %14, %15 : vector<4x1x512xf32>
    %c0_8 = arith.constant 0 : index
    %c0_9 = arith.constant 0 : index
    %17 = vector.load %arg12[%c0_8, %c0_9] : memref<3x2176xf32, #tpu.memory_space<vmem>>, vector<1x512xf32>
    %18 = vector.shape_cast %17 : vector<1x512xf32> to vector<1x1x512xf32>
    %c1 = arith.constant 1 : index
    %c0_10 = arith.constant 0 : index
    %19 = vector.load %arg12[%c1, %c0_10] : memref<3x2176xf32, #tpu.memory_space<vmem>>, vector<1x512xf32>
    %20 = vector.shape_cast %19 : vector<1x512xf32> to vector<1x1x512xf32>
    %cst_11 = arith.constant 9.99999974E-6 : f32
    %21 = vector.broadcast %cst_11 : f32 to vector<4x1x512xf32>
    %22 = arith.addf %16, %21 : vector<4x1x512xf32>
    %23 = math.rsqrt %22 : vector<4x1x512xf32>
    %24 = vector.broadcast %18 : vector<1x1x512xf32> to vector<4x1x512xf32>
    %25 = arith.mulf %24, %23 : vector<4x1x512xf32>
    %26 = arith.mulf %10, %25 : vector<4x1x512xf32>
    %27 = vector.broadcast %20 : vector<1x1x512xf32> to vector<4x1x512xf32>
    %28 = arith.subf %27, %26 : vector<4x1x512xf32>
    %29 = vector.broadcast %25 : vector<4x1x512xf32> to vector<4x8x512xf32>
    %30 = arith.mulf %3, %29 : vector<4x8x512xf32>
    %31 = vector.broadcast %28 : vector<4x1x512xf32> to vector<4x8x512xf32>
    %32 = arith.addf %30, %31 : vector<4x8x512xf32>
    %33 = vector.shape_cast %32 : vector<4x8x512xf32> to vector<32x512xf32>
    %cst_12 = arith.constant 0.000000e+00 : f32
    %34 = vector.broadcast %cst_12 : f32 to vector<32x512xf32>
    %35 = arith.maximumf %33, %34 : vector<32x512xf32>
    %36 = arith.truncf %35 : vector<32x512xf32> to vector<32x512xbf16>
    %c0_13 = arith.constant 0 : index
    %c0_14 = arith.constant 0 : index
    %37 = vector.load %arg3[%c0_13, %c0_14] : memref<512x256xbf16, #tpu.memory_space<vmem>>, vector<512x256xbf16>
    %cst_15 = arith.constant dense<0.000000e+00> : vector<32x256xf32>
    %38 = tpu.matmul %36, %37, %cst_15 {dimension_numbers = #tpu.dot_dimension_numbers<[1], [0], [0], [1], [0, 0, 1, 1], [], []>} : vector<32x512xbf16>, vector<512x256xbf16>, vector<32x256xf32> -> vector<32x256xf32>
    %39 = vector.shape_cast %38 : vector<32x256xf32> to vector<4x8x256xf32>
    %cst_16 = arith.constant dense<0.000000e+00> : vector<4x256xf32>
    %40 = vector.multi_reduction <add>, %39, %cst_16 [1] : vector<4x8x256xf32> to vector<4x256xf32>
    %41 = vector.shape_cast %40 : vector<4x256xf32> to vector<4x1x256xf32>
    %42 = arith.mulf %39, %39 : vector<4x8x256xf32>
    %cst_17 = arith.constant dense<0.000000e+00> : vector<4x256xf32>
    %43 = vector.multi_reduction <add>, %42, %cst_17 [1] : vector<4x8x256xf32> to vector<4x256xf32>
    %44 = vector.shape_cast %43 : vector<4x256xf32> to vector<4x1x256xf32>
    %cst_18 = arith.constant 1.250000e-01 : f32
    %45 = vector.broadcast %cst_18 : f32 to vector<4x1x256xf32>
    %46 = arith.mulf %41, %45 : vector<4x1x256xf32>
    %cst_19 = arith.constant 1.250000e-01 : f32
    %47 = vector.broadcast %cst_19 : f32 to vector<4x1x256xf32>
    %48 = arith.mulf %44, %47 : vector<4x1x256xf32>
    %49 = arith.mulf %46, %46 : vector<4x1x256xf32>
    %50 = arith.subf %48, %49 : vector<4x1x256xf32>
    %cst_20 = arith.constant 0.000000e+00 : f32
    %51 = vector.broadcast %cst_20 : f32 to vector<4x1x256xf32>
    %52 = arith.maximumf %50, %51 : vector<4x1x256xf32>
    %c0_21 = arith.constant 0 : index
    %c512 = arith.constant 512 : index
    %53 = vector.load %arg12[%c0_21, %c512] : memref<3x2176xf32, #tpu.memory_space<vmem>>, vector<1x256xf32>
    %54 = vector.shape_cast %53 : vector<1x256xf32> to vector<1x1x256xf32>
    %c1_22 = arith.constant 1 : index
    %c512_23 = arith.constant 512 : index
    %55 = vector.load %arg12[%c1_22, %c512_23] : memref<3x2176xf32, #tpu.memory_space<vmem>>, vector<1x256xf32>
    %56 = vector.shape_cast %55 : vector<1x256xf32> to vector<1x1x256xf32>
    %cst_24 = arith.constant 9.99999974E-6 : f32
    %57 = vector.broadcast %cst_24 : f32 to vector<4x1x256xf32>
    %58 = arith.addf %52, %57 : vector<4x1x256xf32>
    %59 = math.rsqrt %58 : vector<4x1x256xf32>
    %60 = vector.broadcast %54 : vector<1x1x256xf32> to vector<4x1x256xf32>
    %61 = arith.mulf %60, %59 : vector<4x1x256xf32>
    %62 = arith.mulf %46, %61 : vector<4x1x256xf32>
    %63 = vector.broadcast %56 : vector<1x1x256xf32> to vector<4x1x256xf32>
    %64 = arith.subf %63, %62 : vector<4x1x256xf32>
    %65 = vector.broadcast %61 : vector<4x1x256xf32> to vector<4x8x256xf32>
    %66 = arith.mulf %39, %65 : vector<4x8x256xf32>
    %67 = vector.broadcast %64 : vector<4x1x256xf32> to vector<4x8x256xf32>
    %68 = arith.addf %66, %67 : vector<4x8x256xf32>
    %69 = vector.shape_cast %68 : vector<4x8x256xf32> to vector<32x256xf32>
    %cst_25 = arith.constant 0.000000e+00 : f32
    %70 = vector.broadcast %cst_25 : f32 to vector<32x256xf32>
    %71 = arith.maximumf %69, %70 : vector<32x256xf32>
    %72 = arith.truncf %71 : vector<32x256xf32> to vector<32x256xbf16>
    %c0_26 = arith.constant 0 : index
    %c0_27 = arith.constant 0 : index
    %73 = vector.load %arg4[%c0_26, %c0_27] : memref<256x128xbf16, #tpu.memory_space<vmem>>, vector<256x128xbf16>
    %cst_28 = arith.constant dense<0.000000e+00> : vector<32x128xf32>
    %74 = tpu.matmul %72, %73, %cst_28 {dimension_numbers = #tpu.dot_dimension_numbers<[1], [0], [0], [1], [0, 0, 1, 1], [], []>} : vector<32x256xbf16>, vector<256x128xbf16>, vector<32x128xf32> -> vector<32x128xf32>
    %75 = vector.shape_cast %74 : vector<32x128xf32> to vector<4x8x128xf32>
    %cst_29 = arith.constant dense<0.000000e+00> : vector<4x128xf32>
    %76 = vector.multi_reduction <add>, %75, %cst_29 [1] : vector<4x8x128xf32> to vector<4x128xf32>
    %77 = vector.shape_cast %76 : vector<4x128xf32> to vector<4x1x128xf32>
    %78 = arith.mulf %75, %75 : vector<4x8x128xf32>
    %cst_30 = arith.constant dense<0.000000e+00> : vector<4x128xf32>
    %79 = vector.multi_reduction <add>, %78, %cst_30 [1] : vector<4x8x128xf32> to vector<4x128xf32>
    %80 = vector.shape_cast %79 : vector<4x128xf32> to vector<4x1x128xf32>
    %cst_31 = arith.constant 1.250000e-01 : f32
    %81 = vector.broadcast %cst_31 : f32 to vector<4x1x128xf32>
    %82 = arith.mulf %77, %81 : vector<4x1x128xf32>
    %cst_32 = arith.constant 1.250000e-01 : f32
    %83 = vector.broadcast %cst_32 : f32 to vector<4x1x128xf32>
    %84 = arith.mulf %80, %83 : vector<4x1x128xf32>
    %85 = arith.mulf %82, %82 : vector<4x1x128xf32>
    %86 = arith.subf %84, %85 : vector<4x1x128xf32>
    %cst_33 = arith.constant 0.000000e+00 : f32
    %87 = vector.broadcast %cst_33 : f32 to vector<4x1x128xf32>
    %88 = arith.maximumf %86, %87 : vector<4x1x128xf32>
    %c0_34 = arith.constant 0 : index
    %c768 = arith.constant 768 : index
    %89 = vector.load %arg12[%c0_34, %c768] : memref<3x2176xf32, #tpu.memory_space<vmem>>, vector<1x128xf32>
    %90 = vector.shape_cast %89 : vector<1x128xf32> to vector<1x1x128xf32>
    %c1_35 = arith.constant 1 : index
    %c768_36 = arith.constant 768 : index
    %91 = vector.load %arg12[%c1_35, %c768_36] : memref<3x2176xf32, #tpu.memory_space<vmem>>, vector<1x128xf32>
    %92 = vector.shape_cast %91 : vector<1x128xf32> to vector<1x1x128xf32>
    %cst_37 = arith.constant 9.99999974E-6 : f32
    %93 = vector.broadcast %cst_37 : f32 to vector<4x1x128xf32>
    %94 = arith.addf %88, %93 : vector<4x1x128xf32>
    %95 = math.rsqrt %94 : vector<4x1x128xf32>
    %96 = vector.broadcast %90 : vector<1x1x128xf32> to vector<4x1x128xf32>
    %97 = arith.mulf %96, %95 : vector<4x1x128xf32>
    %98 = arith.mulf %82, %97 : vector<4x1x128xf32>
    %99 = vector.broadcast %92 : vector<1x1x128xf32> to vector<4x1x128xf32>
    %100 = arith.subf %99, %98 : vector<4x1x128xf32>
    %101 = vector.broadcast %97 : vector<4x1x128xf32> to vector<4x8x128xf32>
    %102 = arith.mulf %75, %101 : vector<4x8x128xf32>
    %103 = vector.broadcast %100 : vector<4x1x128xf32> to vector<4x8x128xf32>
    %104 = arith.addf %102, %103 : vector<4x8x128xf32>
    %105 = vector.shape_cast %104 : vector<4x8x128xf32> to vector<32x128xf32>
    %cst_38 = arith.constant 0.000000e+00 : f32
    %106 = vector.broadcast %cst_38 : f32 to vector<32x128xf32>
    %107 = arith.maximumf %105, %106 : vector<32x128xf32>
    %108 = arith.truncf %107 : vector<32x128xf32> to vector<32x128xbf16>
    %c0_39 = arith.constant 0 : index
    %c0_40 = arith.constant 0 : index
    %109 = vector.load %arg5[%c0_39, %c0_40] : memref<128x256xbf16, #tpu.memory_space<vmem>>, vector<128x256xbf16>
    %cst_41 = arith.constant dense<0.000000e+00> : vector<32x256xf32>
    %110 = tpu.matmul %108, %109, %cst_41 {dimension_numbers = #tpu.dot_dimension_numbers<[1], [0], [0], [1], [0, 0, 1, 1], [], []>} : vector<32x128xbf16>, vector<128x256xbf16>, vector<32x256xf32> -> vector<32x256xf32>
    %111 = vector.shape_cast %110 : vector<32x256xf32> to vector<4x8x256xf32>
    %cst_42 = arith.constant dense<0.000000e+00> : vector<4x256xf32>
    %112 = vector.multi_reduction <add>, %111, %cst_42 [1] : vector<4x8x256xf32> to vector<4x256xf32>
    %113 = vector.shape_cast %112 : vector<4x256xf32> to vector<4x1x256xf32>
    %114 = arith.mulf %111, %111 : vector<4x8x256xf32>
    %cst_43 = arith.constant dense<0.000000e+00> : vector<4x256xf32>
    %115 = vector.multi_reduction <add>, %114, %cst_43 [1] : vector<4x8x256xf32> to vector<4x256xf32>
    %116 = vector.shape_cast %115 : vector<4x256xf32> to vector<4x1x256xf32>
    %cst_44 = arith.constant 1.250000e-01 : f32
    %117 = vector.broadcast %cst_44 : f32 to vector<4x1x256xf32>
    %118 = arith.mulf %113, %117 : vector<4x1x256xf32>
    %cst_45 = arith.constant 1.250000e-01 : f32
    %119 = vector.broadcast %cst_45 : f32 to vector<4x1x256xf32>
    %120 = arith.mulf %116, %119 : vector<4x1x256xf32>
    %121 = arith.mulf %118, %118 : vector<4x1x256xf32>
    %122 = arith.subf %120, %121 : vector<4x1x256xf32>
    %cst_46 = arith.constant 0.000000e+00 : f32
    %123 = vector.broadcast %cst_46 : f32 to vector<4x1x256xf32>
    %124 = arith.maximumf %122, %123 : vector<4x1x256xf32>
    %c0_47 = arith.constant 0 : index
    %c896 = arith.constant 896 : index
    %125 = vector.load %arg12[%c0_47, %c896] : memref<3x2176xf32, #tpu.memory_space<vmem>>, vector<1x256xf32>
    %126 = vector.shape_cast %125 : vector<1x256xf32> to vector<1x1x256xf32>
    %c1_48 = arith.constant 1 : index
    %c896_49 = arith.constant 896 : index
    %127 = vector.load %arg12[%c1_48, %c896_49] : memref<3x2176xf32, #tpu.memory_space<vmem>>, vector<1x256xf32>
    %128 = vector.shape_cast %127 : vector<1x256xf32> to vector<1x1x256xf32>
    %cst_50 = arith.constant 9.99999974E-6 : f32
    %129 = vector.broadcast %cst_50 : f32 to vector<4x1x256xf32>
    %130 = arith.addf %124, %129 : vector<4x1x256xf32>
    %131 = math.rsqrt %130 : vector<4x1x256xf32>
    %132 = vector.broadcast %126 : vector<1x1x256xf32> to vector<4x1x256xf32>
    %133 = arith.mulf %132, %131 : vector<4x1x256xf32>
    %134 = arith.mulf %118, %133 : vector<4x1x256xf32>
    %135 = vector.broadcast %128 : vector<1x1x256xf32> to vector<4x1x256xf32>
    %136 = arith.subf %135, %134 : vector<4x1x256xf32>
    %137 = vector.broadcast %133 : vector<4x1x256xf32> to vector<4x8x256xf32>
    %138 = arith.mulf %111, %137 : vector<4x8x256xf32>
    %139 = vector.broadcast %136 : vector<4x1x256xf32> to vector<4x8x256xf32>
    %140 = arith.addf %138, %139 : vector<4x8x256xf32>
    %141 = vector.shape_cast %140 : vector<4x8x256xf32> to vector<32x256xf32>
    %cst_51 = arith.constant 0.000000e+00 : f32
    %142 = vector.broadcast %cst_51 : f32 to vector<32x256xf32>
    %143 = arith.maximumf %141, %142 : vector<32x256xf32>
    %144 = arith.truncf %143 : vector<32x256xf32> to vector<32x256xbf16>
    %c0_52 = arith.constant 0 : index
    %c0_53 = arith.constant 0 : index
    %145 = vector.load %arg6[%c0_52, %c0_53] : memref<256x512xbf16, #tpu.memory_space<vmem>>, vector<256x512xbf16>
    %cst_54 = arith.constant dense<0.000000e+00> : vector<32x512xf32>
    %146 = tpu.matmul %144, %145, %cst_54 {dimension_numbers = #tpu.dot_dimension_numbers<[1], [0], [0], [1], [0, 0, 1, 1], [], []>} : vector<32x256xbf16>, vector<256x512xbf16>, vector<32x512xf32> -> vector<32x512xf32>
    %147 = vector.shape_cast %146 : vector<32x512xf32> to vector<4x8x512xf32>
    %cst_55 = arith.constant dense<0.000000e+00> : vector<4x512xf32>
    %148 = vector.multi_reduction <add>, %147, %cst_55 [1] : vector<4x8x512xf32> to vector<4x512xf32>
    %149 = vector.shape_cast %148 : vector<4x512xf32> to vector<4x1x512xf32>
    %150 = arith.mulf %147, %147 : vector<4x8x512xf32>
    %cst_56 = arith.constant dense<0.000000e+00> : vector<4x512xf32>
    %151 = vector.multi_reduction <add>, %150, %cst_56 [1] : vector<4x8x512xf32> to vector<4x512xf32>
    %152 = vector.shape_cast %151 : vector<4x512xf32> to vector<4x1x512xf32>
    %cst_57 = arith.constant 1.250000e-01 : f32
    %153 = vector.broadcast %cst_57 : f32 to vector<4x1x512xf32>
    %154 = arith.mulf %149, %153 : vector<4x1x512xf32>
    %cst_58 = arith.constant 1.250000e-01 : f32
    %155 = vector.broadcast %cst_58 : f32 to vector<4x1x512xf32>
    %156 = arith.mulf %152, %155 : vector<4x1x512xf32>
    %157 = arith.mulf %154, %154 : vector<4x1x512xf32>
    %158 = arith.subf %156, %157 : vector<4x1x512xf32>
    %cst_59 = arith.constant 0.000000e+00 : f32
    %159 = vector.broadcast %cst_59 : f32 to vector<4x1x512xf32>
    %160 = arith.maximumf %158, %159 : vector<4x1x512xf32>
    %c0_60 = arith.constant 0 : index
    %c1152 = arith.constant 1152 : index
    %161 = vector.load %arg12[%c0_60, %c1152] : memref<3x2176xf32, #tpu.memory_space<vmem>>, vector<1x512xf32>
    %162 = vector.shape_cast %161 : vector<1x512xf32> to vector<1x1x512xf32>
    %c1_61 = arith.constant 1 : index
    %c1152_62 = arith.constant 1152 : index
    %163 = vector.load %arg12[%c1_61, %c1152_62] : memref<3x2176xf32, #tpu.memory_space<vmem>>, vector<1x512xf32>
    %164 = vector.shape_cast %163 : vector<1x512xf32> to vector<1x1x512xf32>
    %cst_63 = arith.constant 9.99999974E-6 : f32
    %165 = vector.broadcast %cst_63 : f32 to vector<4x1x512xf32>
    %166 = arith.addf %160, %165 : vector<4x1x512xf32>
    %167 = math.rsqrt %166 : vector<4x1x512xf32>
    %168 = vector.broadcast %162 : vector<1x1x512xf32> to vector<4x1x512xf32>
    %169 = arith.mulf %168, %167 : vector<4x1x512xf32>
    %170 = arith.mulf %154, %169 : vector<4x1x512xf32>
    %171 = vector.broadcast %164 : vector<1x1x512xf32> to vector<4x1x512xf32>
    %172 = arith.subf %171, %170 : vector<4x1x512xf32>
    %173 = vector.broadcast %169 : vector<4x1x512xf32> to vector<4x8x512xf32>
    %174 = arith.mulf %147, %173 : vector<4x8x512xf32>
    %175 = vector.broadcast %172 : vector<4x1x512xf32> to vector<4x8x512xf32>
    %176 = arith.addf %174, %175 : vector<4x8x512xf32>
    %177 = vector.shape_cast %176 : vector<4x8x512xf32> to vector<32x512xf32>
    %cst_64 = arith.constant 0.000000e+00 : f32
    %178 = vector.broadcast %cst_64 : f32 to vector<32x512xf32>
    %179 = arith.maximumf %177, %178 : vector<32x512xf32>
    %180 = arith.truncf %179 : vector<32x512xf32> to vector<32x512xbf16>
    %c0_65 = arith.constant 0 : index
    %c0_66 = arith.constant 0 : index
    %181 = vector.load %arg7[%c0_65, %c0_66] : memref<512x128xbf16, #tpu.memory_space<vmem>>, vector<512x128xbf16>
    %cst_67 = arith.constant dense<0.000000e+00> : vector<32x128xf32>
    %182 = tpu.matmul %180, %181, %cst_67 {dimension_numbers = #tpu.dot_dimension_numbers<[1], [0], [0], [1], [0, 0, 1, 1], [], []>} : vector<32x512xbf16>, vector<512x128xbf16>, vector<32x128xf32> -> vector<32x128xf32>
    %183 = vector.shape_cast %182 : vector<32x128xf32> to vector<4x8x128xf32>
    %cst_68 = arith.constant dense<0.000000e+00> : vector<4x128xf32>
    %184 = vector.multi_reduction <add>, %183, %cst_68 [1] : vector<4x8x128xf32> to vector<4x128xf32>
    %185 = vector.shape_cast %184 : vector<4x128xf32> to vector<4x1x128xf32>
    %186 = arith.mulf %183, %183 : vector<4x8x128xf32>
    %cst_69 = arith.constant dense<0.000000e+00> : vector<4x128xf32>
    %187 = vector.multi_reduction <add>, %186, %cst_69 [1] : vector<4x8x128xf32> to vector<4x128xf32>
    %188 = vector.shape_cast %187 : vector<4x128xf32> to vector<4x1x128xf32>
    %cst_70 = arith.constant 1.250000e-01 : f32
    %189 = vector.broadcast %cst_70 : f32 to vector<4x1x128xf32>
    %190 = arith.mulf %185, %189 : vector<4x1x128xf32>
    %cst_71 = arith.constant 1.250000e-01 : f32
    %191 = vector.broadcast %cst_71 : f32 to vector<4x1x128xf32>
    %192 = arith.mulf %188, %191 : vector<4x1x128xf32>
    %193 = arith.mulf %190, %190 : vector<4x1x128xf32>
    %194 = arith.subf %192, %193 : vector<4x1x128xf32>
    %cst_72 = arith.constant 0.000000e+00 : f32
    %195 = vector.broadcast %cst_72 : f32 to vector<4x1x128xf32>
    %196 = arith.maximumf %194, %195 : vector<4x1x128xf32>
    %c0_73 = arith.constant 0 : index
    %c1664 = arith.constant 1664 : index
    %197 = vector.load %arg12[%c0_73, %c1664] : memref<3x2176xf32, #tpu.memory_space<vmem>>, vector<1x128xf32>
    %198 = vector.shape_cast %197 : vector<1x128xf32> to vector<1x1x128xf32>
    %c1_74 = arith.constant 1 : index
    %c1664_75 = arith.constant 1664 : index
    %199 = vector.load %arg12[%c1_74, %c1664_75] : memref<3x2176xf32, #tpu.memory_space<vmem>>, vector<1x128xf32>
    %200 = vector.shape_cast %199 : vector<1x128xf32> to vector<1x1x128xf32>
    %cst_76 = arith.constant 9.99999974E-6 : f32
    %201 = vector.broadcast %cst_76 : f32 to vector<4x1x128xf32>
    %202 = arith.addf %196, %201 : vector<4x1x128xf32>
    %203 = math.rsqrt %202 : vector<4x1x128xf32>
    %204 = vector.broadcast %198 : vector<1x1x128xf32> to vector<4x1x128xf32>
    %205 = arith.mulf %204, %203 : vector<4x1x128xf32>
    %206 = arith.mulf %190, %205 : vector<4x1x128xf32>
    %207 = vector.broadcast %200 : vector<1x1x128xf32> to vector<4x1x128xf32>
    %208 = arith.subf %207, %206 : vector<4x1x128xf32>
    %209 = vector.broadcast %205 : vector<4x1x128xf32> to vector<4x8x128xf32>
    %210 = arith.mulf %183, %209 : vector<4x8x128xf32>
    %211 = vector.broadcast %208 : vector<4x1x128xf32> to vector<4x8x128xf32>
    %212 = arith.addf %210, %211 : vector<4x8x128xf32>
    %213 = vector.shape_cast %212 : vector<4x8x128xf32> to vector<32x128xf32>
    %214 = arith.negf %213 : vector<32x128xf32>
    %215 = math.exp %214 : vector<32x128xf32>
    %cst_77 = arith.constant 1.000000e+00 : f32
    %216 = vector.broadcast %cst_77 : f32 to vector<32x128xf32>
    %217 = arith.addf %216, %215 : vector<32x128xf32>
    %218 = arith.divf %216, %217 : vector<32x128xf32>
    %c0_78 = arith.constant 0 : index
    %c0_79 = arith.constant 0 : index
    %219 = vector.load %arg13[%c0_78, %c0_79] : memref<32x128xf32, #tpu.memory_space<vmem>>, vector<32x128xf32>
    tpu.vector_store %arg13[%c0_78, %c0_79], %218 {strides = array<i32>} : memref<32x128xf32, #tpu.memory_space<vmem>>, vector<32x128xf32>,
    %c0_80 = arith.constant 0 : index
    %c0_81 = arith.constant 0 : index
    %220 = vector.load %arg8[%c0_80, %c0_81] : memref<128x128xbf16, #tpu.memory_space<vmem>>, vector<128x128xbf16>
    %cst_82 = arith.constant dense<0.000000e+00> : vector<32x128xf32>
    %221 = tpu.matmul %108, %220, %cst_82 {dimension_numbers = #tpu.dot_dimension_numbers<[1], [0], [0], [1], [0, 0, 1, 1], [], []>} : vector<32x128xbf16>, vector<128x128xbf16>, vector<32x128xf32> -> vector<32x128xf32>
    %222 = vector.shape_cast %221 : vector<32x128xf32> to vector<4x8x128xf32>
    %cst_83 = arith.constant dense<0.000000e+00> : vector<4x128xf32>
    %223 = vector.multi_reduction <add>, %222, %cst_83 [1] : vector<4x8x128xf32> to vector<4x128xf32>
    %224 = vector.shape_cast %223 : vector<4x128xf32> to vector<4x1x128xf32>
    %225 = arith.mulf %222, %222 : vector<4x8x128xf32>
    %cst_84 = arith.constant dense<0.000000e+00> : vector<4x128xf32>
    %226 = vector.multi_reduction <add>, %225, %cst_84 [1] : vector<4x8x128xf32> to vector<4x128xf32>
    %227 = vector.shape_cast %226 : vector<4x128xf32> to vector<4x1x128xf32>
    %cst_85 = arith.constant 1.250000e-01 : f32
    %228 = vector.broadcast %cst_85 : f32 to vector<4x1x128xf32>
    %229 = arith.mulf %224, %228 : vector<4x1x128xf32>
    %cst_86 = arith.constant 1.250000e-01 : f32
    %230 = vector.broadcast %cst_86 : f32 to vector<4x1x128xf32>
    %231 = arith.mulf %227, %230 : vector<4x1x128xf32>
    %232 = arith.mulf %229, %229 : vector<4x1x128xf32>
    %233 = arith.subf %231, %232 : vector<4x1x128xf32>
    %cst_87 = arith.constant 0.000000e+00 : f32
    %234 = vector.broadcast %cst_87 : f32 to vector<4x1x128xf32>
    %235 = arith.maximumf %233, %234 : vector<4x1x128xf32>
    %c0_88 = arith.constant 0 : index
    %c1792 = arith.constant 1792 : index
    %236 = vector.load %arg12[%c0_88, %c1792] : memref<3x2176xf32, #tpu.memory_space<vmem>>, vector<1x128xf32>
    %237 = vector.shape_cast %236 : vector<1x128xf32> to vector<1x1x128xf32>
    %c1_89 = arith.constant 1 : index
    %c1792_90 = arith.constant 1792 : index
    %238 = vector.load %arg12[%c1_89, %c1792_90] : memref<3x2176xf32, #tpu.memory_space<vmem>>, vector<1x128xf32>
    %239 = vector.shape_cast %238 : vector<1x128xf32> to vector<1x1x128xf32>
    %cst_91 = arith.constant 9.99999974E-6 : f32
    %240 = vector.broadcast %cst_91 : f32 to vector<4x1x128xf32>
    %241 = arith.addf %235, %240 : vector<4x1x128xf32>
    %242 = math.rsqrt %241 : vector<4x1x128xf32>
    %243 = vector.broadcast %237 : vector<1x1x128xf32> to vector<4x1x128xf32>
    %244 = arith.mulf %243, %242 : vector<4x1x128xf32>
    %245 = arith.mulf %229, %244 : vector<4x1x128xf32>
    %246 = vector.broadcast %239 : vector<1x1x128xf32> to vector<4x1x128xf32>
    %247 = arith.subf %246, %245 : vector<4x1x128xf32>
    %248 = vector.broadcast %244 : vector<4x1x128xf32> to vector<4x8x128xf32>
    %249 = arith.mulf %222, %248 : vector<4x8x128xf32>
    %250 = vector.broadcast %247 : vector<4x1x128xf32> to vector<4x8x128xf32>
    %251 = arith.addf %249, %250 : vector<4x8x128xf32>
    %252 = vector.shape_cast %251 : vector<4x8x128xf32> to vector<32x128xf32>
    %cst_92 = arith.constant 0.000000e+00 : f32
    %253 = vector.broadcast %cst_92 : f32 to vector<32x128xf32>
    %254 = arith.maximumf %252, %253 : vector<32x128xf32>
    %255 = arith.truncf %254 : vector<32x128xf32> to vector<32x128xbf16>
    %c0_93 = arith.constant 0 : index
    %c0_94 = arith.constant 0 : index
    %256 = vector.load %arg9[%c0_93, %c0_94] : memref<128x128xbf16, #tpu.memory_space<vmem>>, vector<128x128xbf16>
    %cst_95 = arith.constant dense<0.000000e+00> : vector<32x128xf32>
    %257 = tpu.matmul %255, %256, %cst_95 {dimension_numbers = #tpu.dot_dimension_numbers<[1], [0], [0], [1], [0, 0, 1, 1], [], []>} : vector<32x128xbf16>, vector<128x128xbf16>, vector<32x128xf32> -> vector<32x128xf32>
    %258 = vector.shape_cast %257 : vector<32x128xf32> to vector<4x8x128xf32>
    %cst_96 = arith.constant dense<0.000000e+00> : vector<4x128xf32>
    %259 = vector.multi_reduction <add>, %258, %cst_96 [1] : vector<4x8x128xf32> to vector<4x128xf32>
    %260 = vector.shape_cast %259 : vector<4x128xf32> to vector<4x1x128xf32>
    %261 = arith.mulf %258, %258 : vector<4x8x128xf32>
    %cst_97 = arith.constant dense<0.000000e+00> : vector<4x128xf32>
    %262 = vector.multi_reduction <add>, %261, %cst_97 [1] : vector<4x8x128xf32> to vector<4x128xf32>
    %263 = vector.shape_cast %262 : vector<4x128xf32> to vector<4x1x128xf32>
    %cst_98 = arith.constant 1.250000e-01 : f32
    %264 = vector.broadcast %cst_98 : f32 to vector<4x1x128xf32>
    %265 = arith.mulf %260, %264 : vector<4x1x128xf32>
    %cst_99 = arith.constant 1.250000e-01 : f32
    %266 = vector.broadcast %cst_99 : f32 to vector<4x1x128xf32>
    %267 = arith.mulf %263, %266 : vector<4x1x128xf32>
    %268 = arith.mulf %265, %265 : vector<4x1x128xf32>
    %269 = arith.subf %267, %268 : vector<4x1x128xf32>
    %cst_100 = arith.constant 0.000000e+00 : f32
    %270 = vector.broadcast %cst_100 : f32 to vector<4x1x128xf32>
    %271 = arith.maximumf %269, %270 : vector<4x1x128xf32>
    %c0_101 = arith.constant 0 : index
    %c1920 = arith.constant 1920 : index
    %272 = vector.load %arg12[%c0_101, %c1920] : memref<3x2176xf32, #tpu.memory_space<vmem>>, vector<1x128xf32>
    %273 = vector.shape_cast %272 : vector<1x128xf32> to vector<1x1x128xf32>
    %c1_102 = arith.constant 1 : index
    %c1920_103 = arith.constant 1920 : index
    %274 = vector.load %arg12[%c1_102, %c1920_103] : memref<3x2176xf32, #tpu.memory_space<vmem>>, vector<1x128xf32>
    %275 = vector.shape_cast %274 : vector<1x128xf32> to vector<1x1x128xf32>
    %cst_104 = arith.constant 9.99999974E-6 : f32
    %276 = vector.broadcast %cst_104 : f32 to vector<4x1x128xf32>
    %277 = arith.addf %271, %276 : vector<4x1x128xf32>
    %278 = math.rsqrt %277 : vector<4x1x128xf32>
    %279 = vector.broadcast %273 : vector<1x1x128xf32> to vector<4x1x128xf32>
    %280 = arith.mulf %279, %278 : vector<4x1x128xf32>
    %281 = arith.mulf %265, %280 : vector<4x1x128xf32>
    %282 = vector.broadcast %275 : vector<1x1x128xf32> to vector<4x1x128xf32>
    %283 = arith.subf %282, %281 : vector<4x1x128xf32>
    %284 = vector.broadcast %280 : vector<4x1x128xf32> to vector<4x8x128xf32>
    %285 = arith.mulf %258, %284 : vector<4x8x128xf32>
    %286 = vector.broadcast %283 : vector<4x1x128xf32> to vector<4x8x128xf32>
    %287 = arith.addf %285, %286 : vector<4x8x128xf32>
    %288 = vector.shape_cast %287 : vector<4x8x128xf32> to vector<32x128xf32>
    %cst_105 = arith.constant 0.000000e+00 : f32
    %289 = vector.broadcast %cst_105 : f32 to vector<32x128xf32>
    %290 = arith.maximumf %288, %289 : vector<32x128xf32>
    %291 = arith.truncf %290 : vector<32x128xf32> to vector<32x128xbf16>
    %c0_106 = arith.constant 0 : index
    %c0_107 = arith.constant 0 : index
    %292 = vector.load %arg10[%c0_106, %c0_107] : memref<128x128xbf16, #tpu.memory_space<vmem>>, vector<128x128xbf16>
    %cst_108 = arith.constant dense<0.000000e+00> : vector<32x128xf32>
    %293 = tpu.matmul %291, %292, %cst_108 {dimension_numbers = #tpu.dot_dimension_numbers<[1], [0], [0], [1], [0, 0, 1, 1], [], []>} : vector<32x128xbf16>, vector<128x128xbf16>, vector<32x128xf32> -> vector<32x128xf32>
    %294 = vector.shape_cast %293 : vector<32x128xf32> to vector<4x8x128xf32>
    %cst_109 = arith.constant dense<0.000000e+00> : vector<4x128xf32>
    %295 = vector.multi_reduction <add>, %294, %cst_109 [1] : vector<4x8x128xf32> to vector<4x128xf32>
    %296 = vector.shape_cast %295 : vector<4x128xf32> to vector<4x1x128xf32>
    %297 = arith.mulf %294, %294 : vector<4x8x128xf32>
    %cst_110 = arith.constant dense<0.000000e+00> : vector<4x128xf32>
    %298 = vector.multi_reduction <add>, %297, %cst_110 [1] : vector<4x8x128xf32> to vector<4x128xf32>
    %299 = vector.shape_cast %298 : vector<4x128xf32> to vector<4x1x128xf32>
    %cst_111 = arith.constant 1.250000e-01 : f32
    %300 = vector.broadcast %cst_111 : f32 to vector<4x1x128xf32>
    %301 = arith.mulf %296, %300 : vector<4x1x128xf32>
    %cst_112 = arith.constant 1.250000e-01 : f32
    %302 = vector.broadcast %cst_112 : f32 to vector<4x1x128xf32>
    %303 = arith.mulf %299, %302 : vector<4x1x128xf32>
    %304 = arith.mulf %301, %301 : vector<4x1x128xf32>
    %305 = arith.subf %303, %304 : vector<4x1x128xf32>
    %cst_113 = arith.constant 0.000000e+00 : f32
    %306 = vector.broadcast %cst_113 : f32 to vector<4x1x128xf32>
    %307 = arith.maximumf %305, %306 : vector<4x1x128xf32>
    %c0_114 = arith.constant 0 : index
    %c2048 = arith.constant 2048 : index
    %308 = vector.load %arg12[%c0_114, %c2048] : memref<3x2176xf32, #tpu.memory_space<vmem>>, vector<1x128xf32>
    %309 = vector.shape_cast %308 : vector<1x128xf32> to vector<1x1x128xf32>
    %c1_115 = arith.constant 1 : index
    %c2048_116 = arith.constant 2048 : index
    %310 = vector.load %arg12[%c1_115, %c2048_116] : memref<3x2176xf32, #tpu.memory_space<vmem>>, vector<1x128xf32>
    %311 = vector.shape_cast %310 : vector<1x128xf32> to vector<1x1x128xf32>
    %cst_117 = arith.constant 9.99999974E-6 : f32
    %312 = vector.broadcast %cst_117 : f32 to vector<4x1x128xf32>
    %313 = arith.addf %307, %312 : vector<4x1x128xf32>
    %314 = math.rsqrt %313 : vector<4x1x128xf32>
    %315 = vector.broadcast %309 : vector<1x1x128xf32> to vector<4x1x128xf32>
    %316 = arith.mulf %315, %314 : vector<4x1x128xf32>
    %317 = arith.mulf %301, %316 : vector<4x1x128xf32>
    %318 = vector.broadcast %311 : vector<1x1x128xf32> to vector<4x1x128xf32>
    %319 = arith.subf %318, %317 : vector<4x1x128xf32>
    %320 = vector.broadcast %316 : vector<4x1x128xf32> to vector<4x8x128xf32>
    %321 = arith.mulf %294, %320 : vector<4x8x128xf32>
    %322 = vector.broadcast %319 : vector<4x1x128xf32> to vector<4x8x128xf32>
    %323 = arith.addf %321, %322 : vector<4x8x128xf32>
    %324 = vector.shape_cast %323 : vector<4x8x128xf32> to vector<32x128xf32>
    %cst_118 = arith.constant 0.000000e+00 : f32
    %325 = vector.broadcast %cst_118 : f32 to vector<32x128xf32>
    %326 = arith.maximumf %324, %325 : vector<32x128xf32>
    %327 = arith.truncf %326 : vector<32x128xf32> to vector<32x128xbf16>
    %c0_119 = arith.constant 0 : index
    %c0_120 = arith.constant 0 : index
    %328 = vector.load %arg11[%c0_119, %c0_120] : memref<128x128xbf16, #tpu.memory_space<vmem>>, vector<128x128xbf16>
    %cst_121 = arith.constant dense<0.000000e+00> : vector<32x128xf32>
    %329 = tpu.matmul %327, %328, %cst_121 {dimension_numbers = #tpu.dot_dimension_numbers<[1], [0], [0], [1], [0, 0, 1, 1], [], []>} : vector<32x128xbf16>, vector<128x128xbf16>, vector<32x128xf32> -> vector<32x128xf32>
    %c2 = arith.constant 2 : index
    %c0_122 = arith.constant 0 : index
    %330 = vector.load %arg12[%c2, %c0_122] : memref<3x2176xf32, #tpu.memory_space<vmem>>, vector<1x128xf32>
    %331 = vector.broadcast %330 : vector<1x128xf32> to vector<32x128xf32>
    %332 = arith.addf %329, %331 : vector<32x128xf32>
    %c0_123 = arith.constant 0 : index
    %c0_124 = arith.constant 0 : index
    %333 = vector.load %arg14[%c0_123, %c0_124] : memref<32x128xf32, #tpu.memory_space<vmem>>, vector<32x128xf32>
    tpu.vector_store %arg14[%c0_123, %c0_124], %332 {strides = array<i32>} : memref<32x128xf32, #tpu.memory_space<vmem>>, vector<32x128xf32>,
    return
  }
  func.func @transform_0(%arg0: i32) -> (i32, i32) {
    %c0_i32 = arith.constant 0 : i32
    %c0_i32_0 = arith.constant 0 : i32
    return %arg0, %c0_i32 : i32, i32
  }
  func.func @transform_1(%arg0: i32) -> (i32, i32) {
    %c0_i32 = arith.constant 0 : i32
    %c0_i32_0 = arith.constant 0 : i32
    %c0_i32_1 = arith.constant 0 : i32
    return %c0_i32, %c0_i32_0 : i32, i32
  }
  func.func @transform_2(%arg0: i32) -> (i32, i32) {
    %c0_i32 = arith.constant 0 : i32
    %c0_i32_0 = arith.constant 0 : i32
    %c0_i32_1 = arith.constant 0 : i32
    return %c0_i32, %c0_i32_0 : i32, i32
  }
  func.func @transform_3(%arg0: i32) -> (i32, i32) {
    %c0_i32 = arith.constant 0 : i32
    %c0_i32_0 = arith.constant 0 : i32
    %c0_i32_1 = arith.constant 0 : i32
    return %c0_i32, %c0_i32_0 : i32, i32
  }
  func.func @transform_4(%arg0: i32) -> (i32, i32) {
    %c0_i32 = arith.constant 0 : i32
    %c0_i32_0 = arith.constant 0 : i32
    %c0_i32_1 = arith.constant 0 : i32
    return %c0_i32, %c0_i32_0 : i32, i32
  }
  func.func @transform_5(%arg0: i32) -> (i32, i32) {
    %c0_i32 = arith.constant 0 : i32
    %c0_i32_0 = arith.constant 0 : i32
    %c0_i32_1 = arith.constant 0 : i32
    return %c0_i32, %c0_i32_0 : i32, i32
  }
  func.func @transform_6(%arg0: i32) -> (i32, i32) {
    %c0_i32 = arith.constant 0 : i32
    %c0_i32_0 = arith.constant 0 : i32
    %c0_i32_1 = arith.constant 0 : i32
    return %c0_i32, %c0_i32_0 : i32, i32
  }
  func.func @transform_7(%arg0: i32) -> (i32, i32) {
    %c0_i32 = arith.constant 0 : i32
    %c0_i32_0 = arith.constant 0 : i32
    %c0_i32_1 = arith.constant 0 : i32
    return %c0_i32, %c0_i32_0 : i32, i32
  }
  func.func @transform_8(%arg0: i32) -> (i32, i32) {
    %c0_i32 = arith.constant 0 : i32
    %c0_i32_0 = arith.constant 0 : i32
    %c0_i32_1 = arith.constant 0 : i32
    return %c0_i32, %c0_i32_0 : i32, i32
  }
  func.func @transform_9(%arg0: i32) -> (i32, i32) {
    %c0_i32 = arith.constant 0 : i32
    %c0_i32_0 = arith.constant 0 : i32
    %c0_i32_1 = arith.constant 0 : i32
    return %c0_i32, %c0_i32_0 : i32, i32
  }
  func.func @transform_10(%arg0: i32) -> (i32, i32) {
    %c0_i32 = arith.constant 0 : i32
    %c0_i32_0 = arith.constant 0 : i32
    %c0_i32_1 = arith.constant 0 : i32
    return %c0_i32, %c0_i32_0 : i32, i32
  }
  func.func @transform_11(%arg0: i32) -> (i32, i32) {
    %c0_i32 = arith.constant 0 : i32
    %c0_i32_0 = arith.constant 0 : i32
    %c0_i32_1 = arith.constant 0 : i32
    return %c0_i32, %c0_i32_0 : i32, i32
  }
  func.func @transform_12(%arg0: i32) -> (i32, i32) {
    %c0_i32 = arith.constant 0 : i32
    %c0_i32_0 = arith.constant 0 : i32
    return %arg0, %c0_i32 : i32, i32
  }
  func.func @transform_13(%arg0: i32) -> (i32, i32) {
    %c0_i32 = arith.constant 0 : i32
    %c0_i32_0 = arith.constant 0 : i32
    return %arg0, %c0_i32 : i32, i32
  }
}

</mosaic_0001>

<bundles_post_ra>
// kernel: _devnet_forward_padded.1
= control target key start
LH: loop header
LB: loop body
LE: loop exit
PB: predicated region body
PF: predicated region fallthrough
CT: control target
= control target key end

     0   :  { %19 = vsyncpa [#allocation3], 0  ;;  %s9701_s0 = inlined_call_operand.hbm [shape: bf16[32,128], index: 0, kind: input, shape index: {}]   ;;  %s9702_s1 = inlined_call_operand.hbm [shape: bf16[128,512], index: 1, kind: input, shape index: {}]   ;;  %s9703_s2 = inlined_call_operand.hbm [shape: bf16[512,256], index: 2, kind: input, shape index: {}]   ;;  %s9704_s3 = inlined_call_operand.hbm [shape: bf16[256,128], index: 3, kind: input, shape index: {}]   ;;  %s9705_s4 = inlined_call_operand.hbm [shape: bf16[128,256], index: 4, kind: input, shape index: {}]   ;;  %s9706_s5 = inlined_call_operand.hbm [shape: bf16[256,512], index: 5, kind: input, shape index: {}]   ;;  %s9707_s6 = inlined_call_operand.hbm [shape: bf16[512,128], index: 6, kind: input, shape index: {}]   ;;  %s9708_s7 = inlined_call_operand.hbm [shape: bf16[128,128], index: 7, kind: input, shape index: {}]   ;;  %s9709_s8 = inlined_call_operand.hbm [shape: bf16[128,128], index: 8, kind: input, shape index: {}]   ;;  %s9710_s9 = inlined_call_operand.hbm [shape: bf16[128,128], index: 9, kind: input, shape index: {}]   ;;  %s9711_s10 = inlined_call_operand.hbm [shape: bf16[128,128], index: 10, kind: input, shape index: {}]   ;;  %s9712_s11 = inlined_call_operand.hbm [shape: f32[3,2176], index: 11, kind: input, shape index: {}]   ;;  %s9713_s12 = inlined_call_operand.hbm [shape: f32[32,128], index: 12, kind: output, shape index: {0}]   ;;  %s9714_s13 = inlined_call_operand.hbm [shape: f32[32,128], index: 13, kind: output, shape index: {1}]  }
   0x1   :  { %20 = vsyncpa [#allocation6], 0 }
   0x2   :  { %21 = vsyncpa [#allocation9], 0 }
   0x3   :  { %22 = vsyncpa [#allocation12], 0 }
   0x4   :  { %23 = vsyncpa [#allocation15], 0 }
   0x5   :  { %24 = vsyncpa [#allocation18], 0 }
   0x6   :  { %25 = vsyncpa [#allocation21], 0 }
   0x7   :  { %26 = vsyncpa [#allocation4], 0  ;;  %s45_s27 = sshll.u32 %s9702_s1, 4  ;;  %s46_s27 = int_to_ptr.hbm [resolvable:$true] %s45_s27 }
   0x8   :  { %27 = vsyncpa [#allocation24], 0  ;;  %s7393_s28 = smov [#allocation5]   ;;  %s7394_s30 = smov 256  }
   0x9   :  { %s47_s29 = sshll.u32 %s7393_s28, 4  ;;  %s7395_s14 = smov 16   ;;  %s48_s29 = int_to_ptr.vmem [resolvable:$true] %s47_s29 }
   0xa   :  { %53 = dma.hbm_to_vmem [thread:$0]  %s46_s27, 4096, %s48_s29, [#allocation6], %s7394_s30, %s7394_s30, %s7395_s14  }
   0xb   :  { %s71_s17 = sshll.u32 %s9704_s3, 4  ;;  %s7396_s18 = smov [#allocation8]   ;;  %s72_s17 = int_to_ptr.hbm [resolvable:$true] %s71_s17 }
   0xc   :  { %s73_s19 = sshll.u32 %s7396_s18, 4  ;;  %s97_s22 = sshll.u32 %s9706_s5, 4  ;;  %s74_s19 = int_to_ptr.vmem [resolvable:$true] %s73_s19  ;;  %s98_s22 = int_to_ptr.hbm [resolvable:$true] %s97_s22 }
   0xd   :  { %s7397_s1 = smov 64   ;;  %s7398_s23 = smov 4  }
   0xe   :  { %79 = dma.hbm_to_vmem [thread:$0]  %s72_s17, 2048, %s74_s19, [#allocation9], %s7397_s1, %s7397_s1, %s7398_s23  }
   0xf   :  { %s123_s26 = sshll.u32 %s9708_s7, 4  ;;  %s7399_s3 = smov [#allocation11]   ;;  %s124_s26 = int_to_ptr.hbm [resolvable:$true] %s123_s26 }
  0x10   :  { %s99_s27 = sshll.u32 %s7399_s3, 4  ;;  %s7400_s28 = smov [#allocation14]   ;;  %s100_s27 = int_to_ptr.vmem [resolvable:$true] %s99_s27 }
  0x11   :  { %105 = dma.hbm_to_vmem [thread:$0]  %s98_s22, 8192, %s100_s27, [#allocation12], %s7394_s30, %s7394_s30, %s7395_s14  }
  0x12   :  { %s125_s29 = sshll.u32 %s7400_s28, 4  ;;  %s149_s16 = sshll.u32 %s9710_s9, 4  ;;  %s126_s29 = int_to_ptr.vmem [resolvable:$true] %s125_s29  ;;  %s150_s16 = int_to_ptr.hbm [resolvable:$true] %s149_s16 }
  0x13   :  { %131 = dma.hbm_to_vmem [thread:$0]  %s124_s26, 1024, %s126_s29, [#allocation15], %s7397_s1, %s7397_s1, %s7398_s23  }
  0x14   :  { %s32_s7 = sshll.u32 %s9701_s0, 4  ;;  %s7401_s19 = smov [#allocation17]   ;;  %s33_s7 = int_to_ptr.hbm [resolvable:$true] %s32_s7 }
  0x15   :  { %s151_s20 = sshll.u32 %s7401_s19, 4  ;;  %s7402_s30 = smov [#allocation2]   ;;  %s152_s20 = int_to_ptr.vmem [resolvable:$true] %s151_s20 }
  0x16   :  { %157 = dma.hbm_to_vmem [thread:$0]  %s150_s16, 1024, %s152_s20, [#allocation18], %s7397_s1, %s7397_s1, %s7398_s23  }
  0x17   :  { %s34_s9 = sshll.u32 %s7402_s30, 4  ;;  %s58_s22 = sshll.u32 %s9703_s2, 4  ;;  %s35_s9 = int_to_ptr.vmem [resolvable:$true] %s34_s9  ;;  %s59_s22 = int_to_ptr.hbm [resolvable:$true] %s58_s22 }
  0x18   :  { %40 = dma.hbm_to_vmem [thread:$0]  %s33_s7, 256, %s35_s9, [#allocation3], %s7397_s1, %s7397_s1, %s7398_s23  }
  0x19   :  { %s7403_s0 = smov [#allocation7]   ;;  %s84_s3 = sshll.u32 %s9705_s4, 4  ;;  %s85_s3 = int_to_ptr.hbm [resolvable:$true] %s84_s3 }
  0x1a   :  { %s60_s24 = sshll.u32 %s7403_s0, 4  ;;  %s7404_s27 = smov 128   ;;  %s61_s24 = int_to_ptr.vmem [resolvable:$true] %s60_s24 }
  0x1b   :  { %s7405_s28 = smov 8   ;;  %s7406_s2 = smov [#allocation10]  }
  0x1c   :  { %66 = dma.hbm_to_vmem [thread:$0]  %s59_s22, 8192, %s61_s24, [#allocation6], %s7404_s27, %s7404_s27, %s7405_s28  }
  0x1d   :  { %s86_s29 = sshll.u32 %s7406_s2, 4  ;;  %s110_s16 = sshll.u32 %s9707_s6, 4  ;;  %s87_s29 = int_to_ptr.vmem [resolvable:$true] %s86_s29  ;;  %s111_s16 = int_to_ptr.hbm [resolvable:$true] %s110_s16 }
  0x1e   :  { %92 = dma.hbm_to_vmem [thread:$0]  %s85_s3, 2048, %s87_s29, [#allocation9], %s7404_s27, %s7404_s27, %s7405_s28  }
  0x1f   :  { %s136_s18 = sshll.u32 %s9709_s8, 4  ;;  %s7407_s7 = smov [#allocation13]   ;;  %s137_s18 = int_to_ptr.hbm [resolvable:$true] %s136_s18 }
  0x20   :  { %s112_s19 = sshll.u32 %s7407_s7, 4  ;;  %s7408_s20 = smov [#allocation16]   ;;  %s113_s19 = int_to_ptr.vmem [resolvable:$true] %s112_s19 }
  0x21   :  { %118 = dma.hbm_to_vmem [thread:$0]  %s111_s16, 4096, %s113_s19, [#allocation12], %s7397_s1, %s7397_s1, %s7398_s23  }
  0x22   :  { %s138_s6 = sshll.u32 %s7408_s20, 4  ;;  %s162_s14 = sshll.u32 %s9711_s10, 4  ;;  %s139_s6 = int_to_ptr.vmem [resolvable:$true] %s138_s6  ;;  %s163_s14 = int_to_ptr.hbm [resolvable:$true] %s162_s14 }
  0x23   :  { %144 = dma.hbm_to_vmem [thread:$0]  %s137_s18, 1024, %s139_s6, [#allocation15], %s7397_s1, %s7397_s1, %s7398_s23  }
  0x24   :  { %s176_s22 = sshll.u32 %s9712_s11, 4  ;;  %s7409_s0 = smov [#allocation19]   ;;  %s177_s22 = int_to_ptr.hbm [resolvable:$true] %s176_s22 }
  0x25   :  { %s164_s24 = sshll.u32 %s7409_s0, 4  ;;  %s7410_s25 = smov [#allocation20]   ;;  %s165_s24 = int_to_ptr.vmem [resolvable:$true] %s164_s24 }
  0x26   :  { %170 = dma.hbm_to_vmem [thread:$0]  %s163_s14, 1024, %s165_s24, [#allocation18], %s7397_s1, %s7397_s1, %s7398_s23  }
  0x27   :  { %s178_s10 = sshll.u32 %s7410_s25, 4  ;;  %s179_s10 = int_to_ptr.vmem [resolvable:$true] %s178_s10 }
  0x28   :  { %181 = dma.hbm_to_vmem [thread:$0]  %s177_s22, 1088, %s179_s10, [#allocation21]  }
  0x29   :  { %7375 = dma.done.wait [#allocation3], 256  }
  0x2a   :  { %7376 = vsyncadd [#allocation3], 4294967040 }
  0x2b   :  { %7377 = dma.done.wait [#allocation6], 12288  }
  0x2c   :  { %7378 = vsyncadd [#allocation6], 4294955008 }
  0x2d   :  { %7379 = dma.done.wait [#allocation9], 4096  }
  0x2e   :  { %7380 = vsyncadd [#allocation9], 4294963200 }
  0x2f   :  { %7381 = dma.done.wait [#allocation12], 12288  }
  0x30   :  { %7382 = vsyncadd [#allocation12], 4294955008 }
  0x31   :  { %7383 = dma.done.wait [#allocation15], 2048  }
  0x32   :  { %7384 = vsyncadd [#allocation15], 4294965248 }
  0x33   :  { %7385 = dma.done.wait [#allocation18], 2048  }
  0x34   :  { %7386 = vsyncadd [#allocation18], 4294965248 }
  0x35   :  { %7387 = dma.done.wait [#allocation21], 1088  }
  0x36   :  { %7388 = vsyncadd [#allocation21], 4294966208  ;;  %v5693_v0 = vld [vmem:[#allocation5 + $0xe0] sm:$0xf]  ;;  %v6639_v1 = vld [vmem:[#allocation5 + $0xec] sm:$0xf0] }
  0x37   :  { %v6637_v2 = vld [vmem:[#allocation5 + $0xe4] sm:$0xf]  ;;  %v5694_v3 = vor.u32 %v6639_v1, %v5693_v0  ;;  %v5695_v4 = vld [vmem:[#allocation5 + $0xf0] sm:$0xf0]  ;;  %v5701_v5 = vld [vmem:[#allocation5 + $0xe8] sm:$0xf] }
  0x38   :  { %v6640_v6 = vld [vmem:[#allocation5 + $0xf4] sm:$0xf0]  ;;  %v5698_v7 = vor.u32 %v6637_v2, %v5695_v4  ;;  %v6638_v9 = vld [vmem:[#allocation5 + $0xec] sm:$0xf]  ;;  %v5703_v10 = vld [vmem:[#allocation5 + $0xf8] sm:$0xf0] }
  0x39   :  { %v5702_v8 = vor.u32 %v6640_v6, %v5701_v5  ;;  %v5677_v11 = vld [vmem:[#allocation5 + $0xc0] sm:$0xf]  ;;  %438 = vmatpush.bf16.msra.mxu0 %v5694_v3  ;;  %v5706_v12 = vor.u32 %v6638_v9, %v5703_v10  ;;  %v6635_v13 = vld [vmem:[#allocation5 + $0xcc] sm:$0xf0]  ;;  %v6633_v14 = vld [vmem:[#allocation5 + $0xc4] sm:$0xf] }
  0x3a   :  { %v5679_v15 = vld [vmem:[#allocation5 + $0xd0] sm:$0xf0]  ;;  %457 = vmatpush.bf16.msra.mxu1 %v5698_v7  ;;  %v5678_v16 = vor.u32 %v6635_v13, %v5677_v11  ;;  %v5685_v18 = vld [vmem:[#allocation5 + $0xc8] sm:$0xf]  ;;  %v6636_v19 = vld [vmem:[#allocation5 + $0xd4] sm:$0xf0] }
  0x3b   :  { %476 = vmatpush.bf16.msra.mxu2 %v5702_v8  ;;  %v5682_v17 = vor.u32 %v6633_v14, %v5679_v15  ;;  %v6634_v20 = vld [vmem:[#allocation5 + $0xcc] sm:$0xf]  ;;  %495 = vmatpush.bf16.msra.mxu3 %v5706_v12  ;;  %v5686_v21 = vor.u32 %v6636_v19, %v5685_v18  ;;  %v5687_v22 = vld [vmem:[#allocation5 + $0xd8] sm:$0xf0]  ;;  %v5661_v23 = vld [vmem:[#allocation5 + $0xa0] sm:$0xf] }
  0x3c   :  { %v6631_v24 = vld [vmem:[#allocation5 + $0xac] sm:$0xf0]  ;;  %v5690_v25 = vor.u32 %v6634_v20, %v5687_v22  ;;  %v6629_v26 = vld [vmem:[#allocation5 + $0xa4] sm:$0xf]  ;;  %v5663_v27 = vld [vmem:[#allocation5 + $0xb0] sm:$0xf0] }
  0x3d   :  { %v5669_v28 = vld [vmem:[#allocation5 + $0xa8] sm:$0xf]  ;;  %439 = vmatpush.bf16.msra.mxu0 %v5678_v16  ;;  %v5662_v29 = vor.u32 %v6631_v24, %v5661_v23  ;;  %v6632_v30 = vld [vmem:[#allocation5 + $0xb4] sm:$0xf0]  ;;  %v6630_v31 = vld [vmem:[#allocation5 + $0xac] sm:$0xf]  ;;  %v5666_v33 = vor.u32 %v6629_v26, %v5663_v27 }
  0x3e   :  { %v5671_v32 = vld [vmem:[#allocation5 + $0xb8] sm:$0xf0]  ;;  %458 = vmatpush.bf16.msra.mxu1 %v5682_v17  ;;  %v5670_v34 = vor.u32 %v6632_v30, %v5669_v28  ;;  %v5645_v35 = vld [vmem:[#allocation5 + $0x80] sm:$0xf]  ;;  %v6627_v36 = vld [vmem:[#allocation5 + $0x8c] sm:$0xf0] }
  0x3f   :  { %477 = vmatpush.bf16.msra.mxu2 %v5686_v21  ;;  %v6625_v37 = vld [vmem:[#allocation5 + $0x84] sm:$0xf]  ;;  %496 = vmatpush.bf16.msra.mxu3 %v5690_v25  ;;  %v5674_v38 = vor.u32 %v6630_v31, %v5671_v32  ;;  %v5647_v39 = vld [vmem:[#allocation5 + $0x90] sm:$0xf0]  ;;  %v5653_v40 = vld [vmem:[#allocation5 + $0x88] sm:$0xf]  ;;  %v5646_v44 = vor.u32 %v6627_v36, %v5645_v35 }
  0x40   :  { %v6628_v41 = vld [vmem:[#allocation5 + $0x94] sm:$0xf0]  ;;  %v6626_v42 = vld [vmem:[#allocation5 + $0x8c] sm:$0xf]  ;;  %v5655_v43 = vld [vmem:[#allocation5 + $0x98] sm:$0xf0]  ;;  %v5650_v45 = vor.u32 %v6625_v37, %v5647_v39 }
  0x41   :  { %440 = vmatpush.bf16.msra.mxu0 %v5662_v29  ;;  %v5654_v46 = vor.u32 %v6628_v41, %v5653_v40  ;;  %v5629_v47 = vld [vmem:[#allocation5 + $0x60] sm:$0xf]  ;;  %v6623_v48 = vld [vmem:[#allocation5 + $0x6c] sm:$0xf0]  ;;  %v6621_v49 = vld [vmem:[#allocation5 + $0x64] sm:$0xf]  ;;  %v5658_v50 = vor.u32 %v6626_v42, %v5655_v43 }
  0x42   :  { %459 = vmatpush.bf16.msra.mxu1 %v5666_v33  ;;  %v5631_v51 = vld [vmem:[#allocation5 + $0x70] sm:$0xf0]  ;;  %v5637_v52 = vld [vmem:[#allocation5 + $0x68] sm:$0xf]  ;;  %v6624_v53 = vld [vmem:[#allocation5 + $0x74] sm:$0xf0]  ;;  %v5630_v56 = vor.u32 %v6623_v48, %v5629_v47 }
  0x43   :  { %478 = vmatpush.bf16.msra.mxu2 %v5670_v34  ;;  %497 = vmatpush.bf16.msra.mxu3 %v5674_v38  ;;  %v6622_v54 = vld [vmem:[#allocation5 + $0x6c] sm:$0xf]  ;;  %v5639_v55 = vld [vmem:[#allocation5 + $0x78] sm:$0xf0]  ;;  %v5634_v57 = vor.u32 %v6621_v49, %v5631_v51  ;;  %v5638_v58 = vor.u32 %v6624_v53, %v5637_v52  ;;  %v5613_v59 = vld [vmem:[#allocation5 + $0x40] sm:$0xf] }
  0x44   :  { %v6619_v60 = vld [vmem:[#allocation5 + $0x4c] sm:$0xf0]  ;;  %v6617_v61 = vld [vmem:[#allocation5 + $0x44] sm:$0xf]  ;;  %v5642_v62 = vor.u32 %v6622_v54, %v5639_v55  ;;  %v5615_v63 = vld [vmem:[#allocation5 + $0x50] sm:$0xf0] }
  0x45   :  { %441 = vmatpush.bf16.msra.mxu0 %v5646_v44  ;;  %v5621_v0 = vld [vmem:[#allocation5 + $0x48] sm:$0xf]  ;;  %v6620_v1 = vld [vmem:[#allocation5 + $0x54] sm:$0xf0]  ;;  %v6618_v2 = vld [vmem:[#allocation5 + $0x4c] sm:$0xf]  ;;  %v5614_v4 = vor.u32 %v6619_v60, %v5613_v59  ;;  %v5618_v5 = vor.u32 %v6617_v61, %v5615_v63 }
  0x46   :  { %460 = vmatpush.bf16.msra.mxu1 %v5650_v45  ;;  %v5623_v3 = vld [vmem:[#allocation5 + $0x58] sm:$0xf0]  ;;  %v5622_v6 = vor.u32 %v6620_v1, %v5621_v0  ;;  %v5597_v7 = vld [vmem:[#allocation5 + $0x20] sm:$0xf]  ;;  %v6615_v8 = vld [vmem:[#allocation5 + $0x2c] sm:$0xf0] }
  0x47   :  { %479 = vmatpush.bf16.msra.mxu2 %v5654_v46  ;;  %498 = vmatpush.bf16.msra.mxu3 %v5658_v50  ;;  %v6613_v9 = vld [vmem:[#allocation5 + $0x24] sm:$0xf]  ;;  %v5626_v10 = vor.u32 %v6618_v2, %v5623_v3  ;;  %v5599_v11 = vld [vmem:[#allocation5 + $0x30] sm:$0xf0]  ;;  %v5605_v12 = vld [vmem:[#allocation5 + $0x28] sm:$0xf]  ;;  %v5598_v16 = vor.u32 %v6615_v8, %v5597_v7 }
  0x48   :  { %v6616_v13 = vld [vmem:[#allocation5 + $0x34] sm:$0xf0]  ;;  %v6614_v14 = vld [vmem:[#allocation5 + $0x2c] sm:$0xf]  ;;  %v5607_v15 = vld [vmem:[#allocation5 + $0x38] sm:$0xf0]  ;;  %v5602_v17 = vor.u32 %v6613_v9, %v5599_v11 }
  0x49   :  { %442 = vmatpush.bf16.msra.mxu0 %v5630_v56  ;;  %v5606_v18 = vor.u32 %v6616_v13, %v5605_v12  ;;  %v5581_v19 = vld [vmem:[#allocation5] sm:$0xf]  ;;  %v6611_v20 = vld [vmem:[#allocation5 + $0xc] sm:$0xf0]  ;;  %v6609_v21 = vld [vmem:[#allocation5 + $0x4] sm:$0xf]  ;;  %v5610_v22 = vor.u32 %v6614_v14, %v5607_v15 }
  0x4a   :  { %461 = vmatpush.bf16.msra.mxu1 %v5634_v57  ;;  %v5583_v23 = vld [vmem:[#allocation5 + $0x10] sm:$0xf0]  ;;  %v5589_v24 = vld [vmem:[#allocation5 + $0x8] sm:$0xf]  ;;  %v6612_v25 = vld [vmem:[#allocation5 + $0x14] sm:$0xf0]  ;;  %v5582_v28 = vor.u32 %v6611_v20, %v5581_v19 }
  0x4b   :  { %480 = vmatpush.bf16.msra.mxu2 %v5638_v58  ;;  %499 = vmatpush.bf16.msra.mxu3 %v5642_v62  ;;  %v6610_v26 = vld [vmem:[#allocation5 + $0xc] sm:$0xf]  ;;  %v5591_v27 = vld [vmem:[#allocation5 + $0x18] sm:$0xf0]  ;;  %v5586_v29 = vor.u32 %v6609_v21, %v5583_v23  ;;  %v5590_v30 = vor.u32 %v6612_v25, %v5589_v24  ;;  %v6607_v32 = vld [vmem:[#allocation2] sm:$0xff]  ;;  %vm1009_vm5 = vcmask 1040384  }
  0x4c   :  { %v5594_v31 = vor.u32 %v6610_v26, %v5591_v27  ;;  %v6608_v33 = vld [vmem:[#allocation2 + $0x8] sm:$0xff]  ;;  %vm1011_vm13 = vcmask 1042434   ;;  %vm1013_vm14 = vcmask 1041408   ;;  %s7411_s11 = smov [#allocation22]   ;;  %s5534_s3 = sshll.u32 %s9713_s12, 4  ;;  %s5535_s3 = int_to_ptr.hbm [resolvable:$true] %s5534_s3 }
  0x4d   :  { %443 = vmatpush.bf16.msra.mxu0 %v5614_v4  ;;  %s5532_s1 = sshll.u32 %s7411_s11, 4  ;;  %s7412_s2 = smov [#allocation23]   ;;  %s5533_s1 = int_to_ptr.vmem [resolvable:$true] %s5532_s1 }
  0x4e   :  { %462 = vmatpush.bf16.msra.mxu1 %v5618_v5  ;;  %s5545_s29 = sshll.u32 %s7412_s2, 4  ;;  %s5547_s15 = sshll.u32 %s9714_s13, 4  ;;  %s5546_s29 = int_to_ptr.vmem [resolvable:$true] %s5545_s29  ;;  %s5548_s15 = int_to_ptr.hbm [resolvable:$true] %s5547_s15 }
  0x4f   :  { %481 = vmatpush.bf16.msra.mxu2 %v5622_v6  ;;  %500 = vmatpush.bf16.msra.mxu3 %v5626_v10 }
  0x51   :  { %444 = vmatpush.bf16.msra.mxu0 %v5598_v16 }
  0x52   :  { %463 = vmatpush.bf16.msra.mxu1 %v5602_v17 }
  0x53   :  { %482 = vmatpush.bf16.msra.mxu2 %v5606_v18  ;;  %501 = vmatpush.bf16.msra.mxu3 %v5610_v22 }
  0x55   :  { %445 = vmatpush.bf16.msra.mxu0 %v5582_v28 }
  0x56   :  { %464 = vmatpush.bf16.msra.mxu1 %v5586_v29 }
  0x57   :  { %483 = vmatpush.bf16.msra.mxu2 %v5590_v30  ;;  %502 = vmatpush.bf16.msra.mxu3 %v5594_v31 }
  0x58   :  { %446 = vmatmul.bf16.vlgmr.msra.gmra.mxu0 %v6607_v32 }
  0x59   :  { %465 = vmatmul.bf16.vlgmr.msra.gmra.mxu1 %v6607_v32 }
  0x5a   :  { %484 = vmatmul.bf16.vlgmr.msra.gmra.mxu2 %v6607_v32  ;;  %503 = vmatmul.bf16.vlgmr.msra.gmra.mxu3 %v6607_v32 }
  0x68   :  { %451 = vmatmul.bf16.gmra.mxu0 %v6608_v33 }
  0x69   :  { %470 = vmatmul.bf16.gmra.mxu1 %v6608_v33 }
  0x6a   :  { %489 = vmatmul.bf16.gmra.mxu2 %v6608_v33  ;;  %508 = vmatmul.bf16.gmra.mxu3 %v6608_v33 }
  0xd5   :  { %v7546_v34 = vpop.f32.mrf.mxu0 }
  0xd6   :  { %v514_v35 = vrot.slane %v7546_v34, 4  ;;  %v610_v36 = vmul.f32 %v7546_v34, %v7546_v34  ;;  %v7551_v37 = vpop.f32.mrf.mxu1 }
  0xd7   :  { %v520_v38 = vrot.slane %v7551_v37, 4  ;;  %v611_v39 = vmul.f32 %v7551_v37, %v7551_v37 }
  0xd8   :  { %v515_v40 = vadd.f32 %v514_v35, %v7546_v34  ;;  %v626_v41 = vrot.slane %v610_v36, 4 }
  0xd9   :  { %v521_v42 = vadd.f32 %v520_v38, %v7551_v37  ;;  %v632_v43 = vrot.slane %v611_v39, 4 }
  0xda   :  { %v516_v44 = vrot.slane %v515_v40, 2  ;;  %v627_v45 = vadd.f32 %v626_v41, %v610_v36 }
  0xdb   :  { %v522_v46 = vrot.slane %v521_v42, 2  ;;  %v633_v47 = vadd.f32 %v632_v43, %v611_v39 }
  0xdc   :  { %v517_v48 = vadd.f32 %v516_v44, %v515_v40  ;;  %v628_v49 = vrot.slane %v627_v45, 2 }
  0xdd   :  { %v7558_v50 = vpop.f32.mrf.mxu2  ;;  %v523_v51 = vadd.f32 %v522_v46, %v521_v42  ;;  %v634_v52 = vrot.slane %v633_v47, 2  ;;  %v7563_v55 = vpop.f32.mrf.mxu3 }
  0xde   :  { %9750 = vst [vmem:[#allocation34_spill] sm:$0xff] %v7558_v50  ;;  %v526_v53 = vrot.slane %v7558_v50, 4  ;;  %v612_v54 = vmul.f32 %v7558_v50, %v7558_v50  ;;  %v518_v56 = vrot.slane %v517_v48, 1  ;;  %v629_v57 = vadd.f32 %v628_v49, %v627_v45  ;;  %v7578_v27 = vpop.f32.mrf.mxu0 }
  0xdf   :  { %v532_v58 = vrot.slane %v7563_v55, 4  ;;  %v613_v59 = vmul.f32 %v7563_v55, %v7563_v55  ;;  %v524_v60 = vrot.slane %v523_v51, 1  ;;  %v635_v61 = vadd.f32 %v634_v52, %v633_v47  ;;  %v7592_v47 = vpop.f32.mrf.mxu1 }
  0xe0   :  { %v527_v62 = vadd.f32 %v526_v53, %v7558_v50  ;;  %v638_v63 = vrot.slane %v612_v54, 4  ;;  %v519_v0 = vadd.f32 %v518_v56, %v517_v48  ;;  %v630_v1 = vrot.slane %v629_v57, 1 }
  0xe1   :  { %v533_v2 = vadd.f32 %v532_v58, %v7563_v55  ;;  %v644_v3 = vrot.slane %v613_v59, 4  ;;  %v525_v4 = vadd.f32 %v524_v60, %v523_v51  ;;  %v636_v5 = vrot.slane %v635_v61, 1 }
  0xe2   :  { %v528_v6 = vrot.slane %v527_v62, 2  ;;  %v639_v7 = vadd.f32 %v638_v63, %v612_v54  ;;  %v631_v8 = vadd.f32 %v630_v1, %v629_v57  ;;  %v7570_v9 = vmul.f32 0.125, %v519_v0 }
  0xe3   :  { %v534_v10 = vrot.slane %v533_v2, 2  ;;  %v645_v11 = vadd.f32 %v644_v3, %v613_v59  ;;  %v637_v12 = vadd.f32 %v636_v5, %v635_v61  ;;  %v7572_v13 = vmul.f32 0.125, %v525_v4 }
  0xe4   :  { %v529_v14 = vadd.f32 %v528_v6, %v527_v62  ;;  %v640_v15 = vrot.slane %v639_v7, 2  ;;  %v738_v16 = vmul.f32 0.125, %v631_v8  ;;  %v754_v17 = vmul.f32 %v7570_v9, %v7570_v9 }
  0xe5   :  { %v535_v18 = vadd.f32 %v534_v10, %v533_v2  ;;  %v646_v19 = vrot.slane %v645_v11, 2  ;;  %v739_v20 = vmul.f32 0.125, %v637_v12  ;;  %v755_v21 = vmul.f32 %v7572_v13, %v7572_v13  ;;  %v7596_v51 = vpop.f32.mrf.mxu2 }
  0xe6   :  { %v530_v22 = vrot.slane %v529_v14, 1  ;;  %v641_v23 = vadd.f32 %v640_v15, %v639_v7  ;;  %v770_v24 = vsub.f32 %v738_v16, %v754_v17  ;;  %v538_v39 = vrot.slane %v7578_v27, 4  ;;  %9751 = vst [vmem:[#allocation35_spill] sm:$0xff] %v7596_v51 }
  0xe7   :  { %v536_v25 = vrot.slane %v535_v18, 1  ;;  %v647_v26 = vadd.f32 %v646_v19, %v645_v11  ;;  %v771_v28 = vsub.f32 %v739_v20, %v755_v21  ;;  %v614_v43 = vmul.f32 %v7578_v27, %v7578_v27 }
  0xe8   :  { %v531_v29 = vadd.f32 %v530_v22, %v529_v14  ;;  %v642_v30 = vrot.slane %v641_v23, 1  ;;  %v786_v31 = vmax.f32 %v770_v24, 0.0  ;;  %v539_v46 = vadd.f32 %v538_v39, %v7578_v27 }
  0xe9   :  { %v537_v32 = vadd.f32 %v536_v25, %v535_v18  ;;  %v648_v33 = vrot.slane %v647_v26, 1  ;;  %v787_v35 = vmax.f32 %v771_v28, 0.0  ;;  %v650_v57 = vrot.slane %v614_v43, 4 }
  0xea   :  { %v643_v36 = vadd.f32 %v642_v30, %v641_v23  ;;  %v7580_v38 = vmul.f32 0.125, %v531_v29  ;;  %v7583_v40 = vadd.f32 1e-05, %v786_v31  ;;  %v540_v54 = vrot.slane %v539_v46, 2 }
  0xeb   :  { %v649_v41 = vadd.f32 %v648_v33, %v647_v26  ;;  %v7585_v42 = vmul.f32 0.125, %v537_v32  ;;  %v7599_v52 = vadd.f32 1e-05, %v787_v35  ;;  %v544_v58 = vrot.slane %v7592_v47, 4 }
  0xec   :  { %v740_v44 = vmul.f32 0.125, %v643_v36  ;;  %v756_v45 = vmul.f32 %v7580_v38, %v7580_v38  ;;  %6886 = vrsqrt.f32 %v7583_v40  ;;  %v615_v59 = vmul.f32 %v7592_v47, %v7592_v47 }
  0xed   :  { %v741_v48 = vmul.f32 0.125, %v649_v41  ;;  %v757_v49 = vmul.f32 %v7585_v42, %v7585_v42  ;;  %v541_v61 = vadd.f32 %v540_v54, %v539_v46  ;;  %v550_v62 = vrot.slane %v7596_v51, 4  ;;  %v7636_v46 = vpop.f32.mrf.mxu3 }
  0xee   :  { %v772_v53 = vsub.f32 %v740_v44, %v756_v45  ;;  %v616_v63 = vmul.f32 %v7596_v51, %v7596_v51  ;;  %v651_v1 = vadd.f32 %v650_v57, %v614_v43  ;;  %v545_v2 = vadd.f32 %v544_v58, %v7592_v47  ;;  %9752 = vst [vmem:[#allocation36_spill] sm:$0xff] %v7636_v46 }
  0xef   :  { %v773_v56 = vsub.f32 %v741_v48, %v757_v49  ;;  %v656_v3 = vrot.slane %v615_v59, 4  ;;  %6888 = vrsqrt.f32 %v7599_v52  ;;  %v551_v5 = vadd.f32 %v550_v62, %v7596_v51  ;;  %v6700_v51 = vld [vmem:[#allocation7 + $0x1d4] sm:$0xf0] }
  0xf0   :  { %v788_v60 = vmax.f32 %v772_v53, 0.0  ;;  %v652_v7 = vrot.slane %v651_v1, 2  ;;  %v546_v8 = vrot.slane %v545_v2, 2  ;;  %v542_v12 = vrot.slane %v541_v61, 1 }
  0xf1   :  { %v789_v0 = vmax.f32 %v773_v56, 0.0  ;;  %v657_v10 = vadd.f32 %v656_v3, %v615_v59  ;;  %v662_v14 = vrot.slane %v616_v63, 4  ;;  %v552_v18 = vrot.slane %v551_v5, 2 }
  0xf2   :  { %v7609_v4 = vadd.f32 1e-05, %v788_v60  ;;  %v7614_v11 = vpop.eup %6886  ;;  %v653_v15 = vadd.f32 %v652_v7, %v651_v1  ;;  %v547_v16 = vadd.f32 %v546_v8, %v545_v2  ;;  %v543_v20 = vadd.f32 %v542_v12, %v541_v61 }
  0xf3   :  { %v7612_v6 = vadd.f32 1e-05, %v789_v0  ;;  %v658_v17 = vrot.slane %v657_v10, 2  ;;  %v663_v24 = vadd.f32 %v662_v14, %v616_v63  ;;  %v553_v28 = vadd.f32 %v552_v18, %v551_v5  ;;  %v7650_v5 = vpop.f32.mrf.mxu0 }
  0xf4   :  { %6890 = vrsqrt.f32 %v7609_v4  ;;  %v654_v21 = vrot.slane %v653_v15, 1  ;;  %v548_v22 = vrot.slane %v547_v16, 1  ;;  %v7628_v35 = vmul.f32 0.125, %v543_v20  ;;  %9753 = vst [vmem:[#allocation37_spill] sm:$0xff] %v7650_v5 }
  0xf5   :  { %6892 = vrsqrt.f32 %v7612_v6  ;;  %v7618_v19 = vpop.eup %6888  ;;  %v659_v23 = vadd.f32 %v658_v17, %v657_v10  ;;  %v664_v43 = vrot.slane %v663_v24, 2  ;;  %v822_v44 = vmul.f32 %v7614_v11, %v7583_v40 }
  0xf6   :  { %v549_v26 = vadd.f32 %v548_v22, %v547_v16  ;;  %v832_v30 = vmul.f32 %v7618_v19, %v7599_v52  ;;  %v655_v33 = vadd.f32 %v654_v21, %v653_v15  ;;  %v554_v45 = vrot.slane %v553_v28, 1 }
  0xf7   :  { %v660_v31 = vrot.slane %v659_v23, 1  ;;  %v758_v57 = vmul.f32 %v7628_v35, %v7628_v35  ;;  %v665_v60 = vadd.f32 %v664_v43, %v663_v24  ;;  %v556_v61 = vrot.slane %v7636_v46, 4 }
  0xf8   :  { %v7632_v41 = vmul.f32 0.125, %v549_v26  ;;  %v833_v48 = vmul.f32 %v7618_v19, %v832_v30  ;;  %v742_v56 = vmul.f32 0.125, %v655_v33  ;;  %v555_v58 = vadd.f32 %v554_v45, %v553_v28 }
  0xf9   :  { %v661_v39 = vadd.f32 %v660_v31, %v659_v23  ;;  %v823_v62 = vmul.f32 %v7614_v11, %v822_v44  ;;  %v666_v2 = vrot.slane %v665_v60, 1  ;;  %v557_v3 = vadd.f32 %v556_v61, %v7636_v46 }
  0xfa   :  { %v7620_v25 = vpop.eup %6890  ;;  %v759_v53 = vmul.f32 %v7632_v41, %v7632_v41  ;;  %v7647_v63 = vmul.f32 0.125, %v555_v58  ;;  %v834_v0 = vmul.f32 0.5, %v833_v48  ;;  %v774_v8 = vsub.f32 %v742_v56, %v758_v57  ;;  %v7669_v56 = vpop.f32.mrf.mxu1 }
  0xfb   :  { %v7622_v29 = vpop.eup %6892  ;;  %v842_v32 = vmul.f32 %v7620_v25, %v7609_v4  ;;  %v743_v49 = vmul.f32 0.125, %v661_v39  ;;  %v667_v12 = vadd.f32 %v666_v2, %v665_v60  ;;  %v558_v15 = vrot.slane %v557_v3, 2  ;;  %9754 = vst [vmem:[#allocation38_spill] sm:$0xff] %v7669_v56 }
  0xfc   :  { %v852_v36 = vmul.f32 %v7622_v29, %v7612_v6  ;;  %v760_v14 = vmul.f32 %v7647_v63, %v7647_v63  ;;  %vm837_vm0 = vweird.f32 %v7599_v52  ;;  %v617_v16 = vmul.f32 %v7636_v46, %v7636_v46  ;;  %v5941_v46 = vld [vmem:[#allocation7 + $0x1d0] sm:$0xf] }
  0xfd   :  { %v843_v54 = vmul.f32 %v7620_v25, %v842_v32  ;;  %v775_v1 = vsub.f32 %v743_v49, %v759_v53  ;;  %v562_v17 = vrot.slane %v7650_v5, 4  ;;  %v824_v18 = vmul.f32 0.5, %v823_v62 }
  0xfe   :  { %v853_v59 = vmul.f32 %v7622_v29, %v852_v36  ;;  %v835_v20 = vsub.f32 1.5, %v834_v0  ;;  %v744_v22 = vmul.f32 0.125, %v667_v12  ;;  %v559_v24 = vadd.f32 %v558_v15, %v557_v3 }
  0xff   :  { %v844_v7 = vmul.f32 0.5, %v843_v54  ;;  %v791_v21 = vmax.f32 %v775_v1, 0.0  ;;  %v668_v26 = vrot.slane %v617_v16, 4  ;;  %v563_v28 = vadd.f32 %v562_v17, %v7650_v5 }
 0x100   :  { %v854_v10 = vmul.f32 0.5, %v853_v59  ;;  %vm847_vm1 = vweird.f32 %v7609_v4  ;;  %v790_v31 = vmax.f32 %v774_v8, 0.0  ;;  %v776_v32 = vsub.f32 %v744_v22, %v760_v14 }
 0x101   :  { %v845_v23 = vsub.f32 1.5, %v844_v7  ;;  %v560_v33 = vrot.slane %v559_v24, 1  ;;  %v669_v36 = vadd.f32 %v668_v26, %v617_v16  ;;  %v564_v39 = vrot.slane %v563_v28, 2 }
 0x102   :  { %v855_v30 = vsub.f32 1.5, %v854_v10  ;;  %v618_v43 = vmul.f32 %v7650_v5, %v7650_v5  ;;  %v825_v44 = vsub.f32 1.5, %v824_v18  ;;  %vm827_vm2 = vweird.f32 %v7583_v40 }
 0x103   :  { %vm838_vm3 = vweird.f32 %v7618_v19  ;;  %v7664_v45 = vadd.f32 1e-05, %v791_v21  ;;  %v792_v48 = vmax.f32 %v776_v32, 0.0  ;;  %v836_v49 = vmul.f32 %v7618_v19, %v835_v20  ;;  %v7718_v21 = vpop.f32.mrf.mxu2 }
 0x104   :  { %v846_v53 = vmul.f32 %v7620_v25, %v845_v23  ;;  %vm848_vm4 = vweird.f32 %v7620_v25  ;;  %v670_v54 = vrot.slane %v669_v36, 2  ;;  %v856_v57 = vmul.f32 %v7622_v29, %v855_v30  ;;  %vm7677_vm7 = vmor %vm837_vm0, %vm838_vm3  ;;  %9761 = vst [vmem:[#allocation39_spill] sm:$0xff] %v7718_v21 }
 0x105   :  { %vm858_vm6 = vweird.f32 %v7622_v29  ;;  %v7673_v58 = vadd.f32 1e-05, %v790_v31  ;;  %v561_v59 = vadd.f32 %v560_v33, %v559_v24  ;;  %v7681_v61 = vadd.f32 1e-05, %v792_v48  ;;  %vm7686_vm9 = vmor %vm847_vm1, %vm848_vm4 }
 0x106   :  { %v671_v62 = vadd.f32 %v670_v54, %v669_v36  ;;  %v565_v0 = vadd.f32 %v564_v39, %v563_v28  ;;  %v674_v1 = vrot.slane %v618_v43, 4  ;;  %vm828_vm8 = vweird.f32 %v7614_v11 }
 0x107   :  { %vm857_vm10 = vweird.f32 %v7612_v6  ;;  %6894 = vrsqrt.f32 %v7664_v45  ;;  %v568_v52 = vrot.slane %v7669_v56, 4  ;;  %v840_v3 = vsel %vm7677_vm7, %v7618_v19, %v836_v49  ;;  %vm7724_vm12 = vmor %vm827_vm2, %vm828_vm8 }
 0x108   :  { %v850_v7 = vsel %vm7686_vm9, %v7620_v25, %v846_v53  ;;  %vm7701_vm11 = vmor %vm857_vm10, %vm858_vm6  ;;  %6896 = vrsqrt.f32 %v7681_v61  ;;  %v672_v6 = vrot.slane %v671_v62, 1  ;;  %v826_v8 = vmul.f32 %v7614_v11, %v825_v44 }
 0x109   :  { %v860_v10 = vsel %vm7701_vm11, %v7622_v29, %v856_v57  ;;  %v7710_v19 = vmul.f32 0.125, %v561_v59  ;;  %v619_v25 = vmul.f32 %v7669_v56, %v7669_v56  ;;  %6898 = vrsqrt.f32 %v7673_v58 }
 0x10a   :  { %v673_v12 = vadd.f32 %v672_v6, %v671_v62  ;;  %v566_v14 = vrot.slane %v565_v0, 1  ;;  %v675_v15 = vadd.f32 %v674_v1, %v618_v43  ;;  %v997_v16 = vrot.slane %v840_v3, 7 }
 0x10b   :  { %v998_v17 = vrot.slane %v850_v7, 6  ;;  %v761_v18 = vmul.f32 %v7710_v19, %v7710_v19  ;;  %v569_v20 = vadd.f32 %v568_v52, %v7669_v56  ;;  %v999_v22 = vrot.slane %v860_v10, 5  ;;  %v7756_v10 = vpop.f32.mrf.mxu3 }
 0x10c   :  { %v745_v23 = vmul.f32 0.125, %v673_v12  ;;  %v567_v24 = vadd.f32 %v566_v14, %v565_v0  ;;  %v676_v26 = vrot.slane %v675_v15, 2  ;;  %v830_v30 = vsel %vm7724_vm12, %v7614_v11, %v826_v8  ;;  %9765 = vst [vmem:[#allocation41_spill] sm:$0xff] %v7756_v10 }
 0x10d   :  { %v7728_v28 = vpop.eup %6894  ;;  %v570_v31 = vrot.slane %v569_v20, 2  ;;  %v680_v32 = vrot.slane %v619_v25, 4  ;;  %v574_v43 = vrot.slane %v7718_v21, 4  ;;  %v1010_v44 = vsel %vm1009_vm5, %v830_v30, %v997_v16 }
 0x10e   :  { %v7733_v33 = vpop.eup %6896  ;;  %v777_v40 = vsub.f32 %v745_v23, %v761_v18  ;;  %v677_v36 = vadd.f32 %v676_v26, %v675_v15  ;;  %v7735_v39 = vmul.f32 0.125, %v567_v24  ;;  %v1012_v11 = vsel %vm1011_vm13, %v998_v17, %v999_v22 }
 0x10f   :  { %v571_v48 = vadd.f32 %v570_v31, %v569_v20  ;;  %v681_v49 = vadd.f32 %v680_v32, %v619_v25  ;;  %v7739_v53 = vpop.eup %6898  ;;  %v872_v54 = vmul.f32 %v7728_v28, %v7664_v45  ;;  %v882_v60 = vmul.f32 %v7733_v33, %v7681_v61  ;;  %v7758_v25 = vld [vmem:[#allocation20] ss:$4 sm:$0xf] }
 0x110   :  { %9764 = vst [vmem:[#allocation40_spill] sm:$0xff] %v7735_v39  ;;  %v793_v57 = vmax.f32 %v777_v40, 0.0  ;;  %v678_v59 = vrot.slane %v677_v36, 1  ;;  %v762_v62 = vmul.f32 %v7735_v39, %v7735_v39  ;;  %v575_v3 = vadd.f32 %v574_v43, %v7718_v21  ;;  %v6686_v39 = vld [vmem:[#allocation7 + $0x164] sm:$0xf0] }
 0x111   :  { %v572_v0 = vrot.slane %v571_v48, 1  ;;  %v682_v1 = vrot.slane %v681_v49, 2  ;;  %v620_v7 = vmul.f32 %v7718_v21, %v7718_v21  ;;  %v1014_v4 = vsel %vm1013_vm14, %v1010_v44, %v1012_v11  ;;  %9766 = vst [vmem:[#allocation42_spill] sm:$0xff] %v7758_v25 }
 0x112   :  { %v7748_v2 = vadd.f32 1e-05, %v793_v57  ;;  %v679_v52 = vadd.f32 %v678_v59, %v677_v36  ;;  %v862_v6 = vmul.f32 %v7739_v53, %v7673_v58  ;;  %v576_v15 = vrot.slane %v575_v3, 2 }
 0x113   :  { %v683_v8 = vadd.f32 %v682_v1, %v681_v49  ;;  %v573_v14 = vadd.f32 %v572_v0, %v571_v48  ;;  %v873_v16 = vmul.f32 %v7728_v28, %v872_v54  ;;  %v883_v17 = vmul.f32 %v7733_v33, %v882_v60 }
 0x114   :  { %6900 = vrsqrt.f32 %v7748_v2  ;;  %v746_v12 = vmul.f32 0.125, %v679_v52  ;;  %v686_v20 = vrot.slane %v620_v7, 4  ;;  %v577_v22 = vadd.f32 %v576_v15, %v575_v3 }
 0x115   :  { %v684_v18 = vrot.slane %v683_v8, 1  ;;  %v580_v23 = vrot.slane %v7756_v10, 4  ;;  %v621_v24 = vmul.f32 %v7756_v10, %v7756_v10  ;;  %v7767_v26 = vmul.f32 %v1014_v4, %v7758_v25 }
 0x116   :  { %v778_v29 = vsub.f32 %v746_v12, %v762_v62  ;;  %v687_v30 = vadd.f32 %v686_v20, %v620_v7  ;;  %v7769_v32 = vmul.f32 0.125, %v573_v14  ;;  %v578_v40 = vrot.slane %v577_v22, 1 }
 0x117   :  { %v685_v31 = vadd.f32 %v684_v18, %v683_v8  ;;  %v581_v36 = vadd.f32 %v580_v23, %v7756_v10  ;;  %v863_v43 = vmul.f32 %v7739_v53, %v862_v6  ;;  %v874_v44 = vmul.f32 0.5, %v873_v16  ;;  %v7787_v16 = vpop.f32.mrf.mxu0  ;;  %v5885_v10 = vld [vmem:[#allocation7 + $0x160] sm:$0xf] }
 0x118   :  { %9767 = vst [vmem:[#allocation43_spill] sm:$0xff] %v7769_v32  ;;  %v688_v48 = vrot.slane %v687_v30, 2  ;;  %v692_v49 = vrot.slane %v621_v24, 4  ;;  %v884_v54 = vmul.f32 0.5, %v883_v17  ;;  %v794_v57 = vmax.f32 %v778_v29, 0.0 }
 0x119   :  { %v579_v59 = vadd.f32 %v578_v40, %v577_v22  ;;  %v582_v60 = vrot.slane %v581_v36, 2  ;;  %v9715_v62 = vperm.slane %v7767_v26, 2  ;;  %v9716_v0 = vperm.slane %v7767_v26, 3  ;;  %9769 = vst [vmem:[#allocation45_spill] sm:$0xff] %v7787_v16  ;;  %v7791_v22 = vpop.f32.mrf.mxu1 }
 0x11a   :  { %v7773_v11 = vpop.eup %6900  ;;  %v689_v52 = vadd.f32 %v688_v48, %v687_v30  ;;  %vm877_vm15 = vweird.f32 %v7664_v45  ;;  %v747_v3 = vmul.f32 0.125, %v685_v31  ;;  %v763_v7 = vmul.f32 %v7769_v32, %v7769_v32  ;;  %9770 = vst [vmem:[#allocation46_spill] sm:$0xff] %v7791_v22  ;;  %v6654_v32 = vld [vmem:[#allocation7 + $0x64] sm:$0xf0] }
 0x11b   :  { %v892_v1 = vmul.f32 %v7773_v11, %v7748_v2  ;;  %v7782_v4 = vmul.f32 0.125, %v579_v59  ;;  %v583_v6 = vadd.f32 %v582_v60, %v581_v36  ;;  %v7784_v8 = vmul.f32 0.5, %v863_v43 }
 0x11c   :  { %v690_v14 = vrot.slane %v689_v52, 1  ;;  %v693_v15 = vadd.f32 %v692_v49, %v621_v24  ;;  %v875_v17 = vsub.f32 1.5, %v874_v44  ;;  %v885_v18 = vsub.f32 1.5, %v884_v54 }
 0x11d   :  { %9768 = vst [vmem:[#allocation44_spill] sm:$0xff] %v7782_v4  ;;  %v893_v12 = vmul.f32 %v7773_v11, %v892_v1  ;;  %v7789_v20 = vadd.f32 1e-05, %v794_v57  ;;  %v584_v29 = vrot.slane %v583_v6, 1  ;;  %v764_v31 = vmul.f32 %v7782_v4, %v7782_v4 }
 0x11e   :  { %v691_v30 = vadd.f32 %v690_v14, %v689_v52  ;;  %v694_v40 = vrot.slane %v693_v15, 2  ;;  %vm878_vm0 = vweird.f32 %v7728_v28  ;;  %v779_v36 = vsub.f32 %v747_v3, %v763_v7 }
 0x11f   :  { %v894_v23 = vmul.f32 0.5, %v893_v12  ;;  %v585_v43 = vadd.f32 %v584_v29, %v583_v6  ;;  %v586_v24 = vrot.slane %v7787_v16, 4  ;;  %vm887_vm1 = vweird.f32 %v7681_v61  ;;  %vm7816_vm7 = vmor %vm877_vm15, %vm878_vm0 }
 0x120   :  { %v748_v48 = vmul.f32 0.125, %v691_v30  ;;  %v592_v49 = vrot.slane %v7791_v22, 4  ;;  %v865_v54 = vsub.f32 1.5, %v7784_v8  ;;  %v876_v57 = vmul.f32 %v7728_v28, %v875_v17  ;;  %v7809_v8 = vpop.f32.mrf.mxu2 }
 0x121   :  { %v895_v44 = vsub.f32 1.5, %v894_v23  ;;  %v695_v59 = vadd.f32 %v694_v40, %v693_v15  ;;  %v7801_v60 = vmul.f32 0.125, %v585_v43  ;;  %vm868_vm2 = vweird.f32 %v7739_v53  ;;  %9772 = vst [vmem:[#allocation48_spill] sm:$0xff] %v7809_v8 }
 0x122   :  { %v886_v1 = vmul.f32 %v7733_v33, %v885_v18  ;;  %vm888_vm3 = vweird.f32 %v7733_v33  ;;  %6902 = vrsqrt.f32 %v7789_v20  ;;  %v780_v52 = vsub.f32 %v748_v48, %v764_v31 }
 0x123   :  { %9771 = vst [vmem:[#allocation47_spill] sm:$0xff] %v7801_v60  ;;  %vm898_vm4 = vweird.f32 %v7773_v11  ;;  %v795_v3 = vmax.f32 %v779_v36, 0.0  ;;  %v696_v7 = vrot.slane %v695_v59, 1  ;;  %v587_v6 = vadd.f32 %v586_v24, %v7787_v16  ;;  %vm7834_vm9 = vmor %vm887_vm1, %vm888_vm3 }
 0x124   :  { %vm867_vm6 = vweird.f32 %v7673_v58  ;;  %v896_v14 = vmul.f32 %v7773_v11, %v895_v44  ;;  %v796_v15 = vmax.f32 %v780_v52, 0.0  ;;  %v622_v17 = vmul.f32 %v7787_v16, %v7787_v16 }
 0x125   :  { %v593_v18 = vadd.f32 %v592_v49, %v7791_v22  ;;  %v880_v29 = vsel %vm7816_vm7, %v7728_v28, %v876_v57  ;;  %vm897_vm8 = vweird.f32 %v7748_v2  ;;  %v697_v23 = vadd.f32 %v696_v7, %v695_v59  ;;  %vm869_vm11 = vmor %vm867_vm6, %vm868_vm2 }
 0x126   :  { %v765_v45 = vmul.f32 %v7801_v60, %v7801_v60  ;;  %v7838_v31 = vadd.f32 1e-05, %v796_v15  ;;  %v623_v28 = vmul.f32 %v7791_v22, %v7791_v22  ;;  %v598_v2 = vrot.slane %v7809_v8, 4  ;;  %vm7853_vm10 = vmor %vm897_vm8, %vm898_vm4  ;;  %v5957_v22 = vld [vmem:[#allocation7 + $0x1f0] sm:$0xf] }
 0x127   :  { %v594_v40 = vrot.slane %v593_v18, 2  ;;  %v7846_v36 = vmul.f32 %v9715_v62, %v7580_v38  ;;  %v890_v61 = vsel %vm7834_vm9, %v7733_v33, %v886_v1  ;;  %v7857_v24 = vadd.f32 1e-05, %v795_v3  ;;  %v6670_v60 = vld [vmem:[#allocation7 + $0xe4] sm:$0xf0] }
 0x128   :  { %v749_v44 = vmul.f32 0.125, %v697_v23  ;;  %v7859_v48 = vpop.eup %6902  ;;  %v900_v38 = vsel %vm7853_vm10, %v7773_v11, %v896_v14  ;;  %6904 = vrsqrt.f32 %v7838_v31  ;;  %v588_v49 = vrot.slane %v587_v6, 2 }
 0x129   :  { %v698_v57 = vrot.slane %v622_v17, 4  ;;  %v7868_v33 = vmul.f32 %v9716_v0, %v7585_v42  ;;  %v866_v59 = vmul.f32 %v7739_v53, %v865_v54  ;;  %v1000_v1 = vrot.slane %v880_v29, 7  ;;  %v5765_v54 = vld [vmem:[#allocation7 + $0x70] sm:$0xf]  ;;  %v6656_v29 = vld [vmem:[#allocation7 + $0x74] sm:$0xf0] }
 0x12a   :  { %v781_v52 = vsub.f32 %v749_v44, %v765_v45  ;;  %v1001_v3 = vrot.slane %v890_v61, 6  ;;  %v595_v7 = vadd.f32 %v594_v40, %v593_v18  ;;  %v704_v12 = vrot.slane %v623_v28, 4  ;;  %v5829_v0 = vld [vmem:[#allocation7 + $0xf0] sm:$0xf] }
 0x12b   :  { %v599_v15 = vadd.f32 %v598_v2, %v7809_v8  ;;  %v1002_v23 = vrot.slane %v900_v38, 5  ;;  %v902_v11 = vmul.f32 %v7859_v48, %v7789_v20  ;;  %6906 = vrsqrt.f32 %v7857_v24 }
 0x12c   :  { %v797_v14 = vmax.f32 %v781_v52, 0.0  ;;  %v7875_v30 = vadd.f32 %v588_v49, %v587_v6  ;;  %v699_v42 = vadd.f32 %v698_v57, %v622_v17  ;;  %v705_v43 = vadd.f32 %v704_v12, %v623_v28  ;;  %v7894_v49 = vpop.f32.mrf.mxu3 }
 0x12d   :  { %v600_v62 = vrot.slane %v599_v15, 2  ;;  %v596_v45 = vrot.slane %v595_v7, 1  ;;  %v870_v6 = vsel %vm869_vm11, %v7739_v53, %v866_v59  ;;  %v624_v28 = vmul.f32 %v7809_v8, %v7809_v8  ;;  %9780 = vst [vmem:[#allocation50_spill] sm:$0xff] %v7894_v49 }
 0x12e   :  { %9779 = vst [vmem:[#allocation49_spill] sm:$0xff] %v7875_v30  ;;  %v7883_v18 = vadd.f32 1e-05, %v797_v14  ;;  %v7885_v40 = vpop.eup %6904  ;;  %v706_v2 = vrot.slane %v705_v43, 2  ;;  %v1015_v44 = vsel %vm1009_vm5, %v870_v6, %v1000_v1  ;;  %v1016_v38 = vsel %vm1011_vm13, %v1001_v3, %v1002_v23  ;;  %v5893_v14 = vld [vmem:[#allocation7 + $0x170] sm:$0xf] }
 0x12f   :  { %v601_v17 = vadd.f32 %v600_v62, %v599_v15  ;;  %v903_v58 = vmul.f32 %v7859_v48, %v902_v11  ;;  %v922_v57 = vmul.f32 %v7885_v40, %v7838_v31  ;;  %v700_v59 = vrot.slane %v699_v42, 2  ;;  %v6688_v3 = vld [vmem:[#allocation7 + $0x174] sm:$0xf0] }
 0x130   :  { %v707_v62 = vadd.f32 %v706_v2, %v705_v43  ;;  %6908 = vrsqrt.f32 %v7883_v18  ;;  %v597_v12 = vadd.f32 %v596_v45, %v595_v7  ;;  %v710_v1 = vrot.slane %v624_v28, 4  ;;  %v6672_v7 = vld [vmem:[#allocation7 + $0xf4] sm:$0xf0] }
 0x131   :  { %v7899_v52 = vpop.eup %6906  ;;  %v602_v15 = vrot.slane %v601_v17, 1  ;;  %v1017_v23 = vsel %vm1013_vm14, %v1015_v44, %v1016_v38  ;;  %v604_v6 = vrot.slane %v7894_v49, 4  ;;  %v7904_v61 = vmul.f32 0.5, %v903_v58 }
 0x132   :  { %v708_v11 = vrot.slane %v707_v62, 1  ;;  %v711_v43 = vadd.f32 %v710_v1, %v624_v28  ;;  %v625_v2 = vmul.f32 %v7894_v49, %v7894_v49  ;;  %v912_v45 = vmul.f32 %v7899_v52, %v7857_v24 }
 0x133   :  { %v603_v53 = vadd.f32 %v602_v15, %v601_v17  ;;  %v923_v8 = vmul.f32 %v7885_v40, %v922_v57  ;;  %v605_v44 = vadd.f32 %v604_v6, %v7894_v49  ;;  %v5894_v38 = vor.u32 %v6688_v3, %v5893_v14  ;;  %v6704_v15 = vld [vmem:[#allocation7 + $0x1f4] sm:$0xf0]  ;;  %v5757_v57 = vld [vmem:[#allocation7 + $0x60] sm:$0xf] }
 0x134   :  { %v7913_v16 = vmul.f32 %v1017_v23, %v7758_v25  ;;  %v7915_v58 = vmul.f32 0.125, %v597_v12  ;;  %v712_v17 = vrot.slane %v711_v43, 2  ;;  %v716_v28 = vrot.slane %v625_v2, 4  ;;  %v5821_v49 = vld [vmem:[#allocation7 + $0xe0] sm:$0xf] }
 0x135   :  { %v709_v1 = vadd.f32 %v708_v11, %v707_v62  ;;  %v606_v21 = vrot.slane %v605_v44, 2  ;;  %1646 = vmatpush.bf16.msrb.mxu2 %v5894_v38  ;;  %v5766_v56 = vor.u32 %v6656_v29, %v5765_v54  ;;  %v5830_v5 = vor.u32 %v6672_v7, %v5829_v0  ;;  %v5949_v29 = vld [vmem:[#allocation7 + $0x1e0] sm:$0xf]  ;;  %v6702_v7 = vld [vmem:[#allocation7 + $0x1e4] sm:$0xf0] }
 0x136   :  { %9781 = vst [vmem:[#allocation51_spill] sm:$0xff] %v7915_v58  ;;  %v7917_v6 = vpop.eup %6908  ;;  %v7920_v3 = vadd.f32 %v700_v59, %v699_v42  ;;  %v713_v12 = vadd.f32 %v712_v17, %v711_v43  ;;  %v7922_v23 = vmul.f32 0.125, %v603_v53  ;;  %v913_v62 = vmul.f32 %v7899_v52, %v912_v45  ;;  %v5877_v59 = vld [vmem:[#allocation7 + $0x150] sm:$0xf]  ;;  %v6684_v43 = vld [vmem:[#allocation7 + $0x154] sm:$0xf0] }
 0x137   :  { %v924_v11 = vmul.f32 0.5, %v923_v8  ;;  %v607_v54 = vadd.f32 %v606_v21, %v605_v44  ;;  %v717_v0 = vadd.f32 %v716_v28, %v625_v2  ;;  %1608 = vmatpush.bf16.msrb.mxu0 %v5766_v56  ;;  %v7928_v14 = vmul.f32 %v7915_v58, %v7915_v58  ;;  %1627 = vmatpush.bf16.msrb.mxu1 %v5830_v5  ;;  %v5749_v45 = vld [vmem:[#allocation7 + $0x50] sm:$0xf]  ;;  %v6652_v5 = vld [vmem:[#allocation7 + $0x54] sm:$0xf0] }
 0x138   :  { %9782 = vst [vmem:[#allocation52_spill] sm:$0xff] %v7922_v23  ;;  %v714_v42 = vrot.slane %v713_v12, 1  ;;  %v5958_v53 = vor.u32 %v6704_v15, %v5957_v22  ;;  %vm927_vm12 = vweird.f32 %v7838_v31  ;;  %v932_v21 = vmul.f32 %v7917_v6, %v7883_v18  ;;  %v5813_v22 = vld [vmem:[#allocation7 + $0xd0] sm:$0xf]  ;;  %v6668_v15 = vld [vmem:[#allocation7 + $0xd4] sm:$0xf0] }
 0x139   :  { %v751_v8 = vmul.f32 0.125, %v709_v1  ;;  %v608_v56 = vrot.slane %v607_v54, 1  ;;  %v718_v2 = vrot.slane %v717_v0, 2  ;;  %v768_v17 = vmul.f32 %v7922_v23, %v7922_v23  ;;  %v5869_v23 = vld [vmem:[#allocation7 + $0x140] sm:$0xf] }
 0x13a   :  { %v715_v44 = vadd.f32 %v714_v42, %v713_v12  ;;  %1665 = vmatpush.bf16.msrb.mxu3 %v5958_v53  ;;  %v5886_v28 = vor.u32 %v6686_v39, %v5885_v10  ;;  %v5758_v38 = vor.u32 %v6654_v32, %v5757_v57  ;;  %v925_v58 = vsub.f32 1.5, %v924_v11  ;;  %v6682_v53 = vld [vmem:[#allocation7 + $0x144] sm:$0xf0] }
 0x13b   :  { %v609_v4 = vadd.f32 %v608_v56, %v607_v54  ;;  %v719_v25 = vadd.f32 %v718_v2, %v717_v0  ;;  %v5822_v30 = vor.u32 %v6670_v60, %v5821_v49  ;;  %v7935_v1 = vmul.f32 0.5, %v913_v62  ;;  %v5741_v60 = vld [vmem:[#allocation7 + $0x40] sm:$0xf]  ;;  %v6650_v49 = vld [vmem:[#allocation7 + $0x44] sm:$0xf0] }
 0x13c   :  { %v752_v50 = vmul.f32 0.125, %v715_v44  ;;  %1647 = vmatpush.bf16.msrb.mxu2 %v5886_v28  ;;  %1609 = vmatpush.bf16.msrb.mxu0 %v5758_v38  ;;  %v5950_v12 = vor.u32 %v6702_v7, %v5949_v29  ;;  %v5878_v42 = vor.u32 %v6684_v43, %v5877_v59  ;;  %vm928_vm15 = vweird.f32 %v7885_v40  ;;  %v5805_v0 = vld [vmem:[#allocation7 + $0xc0] sm:$0xf]  ;;  %v6666_v29 = vld [vmem:[#allocation7 + $0xc4] sm:$0xf0] }
 0x13d   :  { %v783_v39 = vsub.f32 %v751_v8, %v7928_v14  ;;  %v720_v10 = vrot.slane %v719_v25, 1  ;;  %v7939_v32 = vmul.f32 0.125, %v609_v4  ;;  %1628 = vmatpush.bf16.msrb.mxu1 %v5822_v30  ;;  %v933_v57 = vmul.f32 %v7917_v6, %v932_v21  ;;  %v5933_v4 = vld [vmem:[#allocation7 + $0x1c0] sm:$0xf]  ;;  %v6698_v43 = vld [vmem:[#allocation7 + $0x1c4] sm:$0xf0]  ;;  %vm7956_vm0 = vmor %vm927_vm12, %vm928_vm15 }
 0x13e   :  { %v784_v62 = vsub.f32 %v752_v50, %v768_v17  ;;  %1666 = vmatpush.bf16.msrb.mxu3 %v5950_v12  ;;  %v5750_v11 = vor.u32 %v6652_v5, %v5749_v45  ;;  %v5814_v54 = vor.u32 %v6668_v15, %v5813_v22  ;;  %v926_v7 = vmul.f32 %v7885_v40, %v925_v58  ;;  %v5861_v30 = vld [vmem:[#allocation7 + $0x130] sm:$0xf]  ;;  %v6680_v2 = vld [vmem:[#allocation7 + $0x134] sm:$0xf0] }
 0x13f   :  { %v721_v38 = vadd.f32 %v720_v10, %v719_v25  ;;  %v769_v14 = vmul.f32 %v7939_v32, %v7939_v32  ;;  %v5942_v59 = vor.u32 %v6700_v51, %v5941_v46  ;;  %v702_v8 = vrot.slane %v7920_v3, 1  ;;  %v5733_v45 = vld [vmem:[#allocation7 + $0x30] sm:$0xf]  ;;  %v6648_v46 = vld [vmem:[#allocation7 + $0x34] sm:$0xf0] }
 0x140   :  { %v800_v56 = vmax.f32 %v784_v62, 0.0  ;;  %1648 = vmatpush.bf16.msrb.mxu2 %v5878_v42  ;;  %1610 = vmatpush.bf16.msrb.mxu0 %v5750_v11  ;;  %v5870_v50 = vor.u32 %v6682_v53, %v5869_v23  ;;  %v5742_v21 = vor.u32 %v6650_v49, %v5741_v60  ;;  %v9783_v58 = vperm.slane %v7913_v16, 3  ;;  %v5797_v28 = vld [vmem:[#allocation7 + $0xb0] sm:$0xf]  ;;  %v6664_v15 = vld [vmem:[#allocation7 + $0xb4] sm:$0xf0] }
 0x141   :  { %v799_v44 = vmax.f32 %v783_v39, 0.0  ;;  %v753_v17 = vmul.f32 0.125, %v721_v38  ;;  %1629 = vmatpush.bf16.msrb.mxu1 %v5814_v54  ;;  %v5806_v51 = vor.u32 %v6666_v29, %v5805_v0  ;;  %v915_v5 = vsub.f32 1.5, %v7935_v1  ;;  %v5925_v12 = vld [vmem:[#allocation7 + $0x1b0] sm:$0xf] }
 0x142   :  { %v7949_v25 = vmul.f32 %v9783_v58, %v7710_v19  ;;  %v934_v22 = vmul.f32 0.5, %v933_v57  ;;  %1667 = vmatpush.bf16.msrb.mxu3 %v5942_v59  ;;  %v5934_v19 = vor.u32 %v6698_v43, %v5933_v4  ;;  %v930_v42 = vsel %vm7956_vm0, %v7885_v40, %v926_v7  ;;  %v6696_v39 = vld [vmem:[#allocation7 + $0x1b4] sm:$0xf0]  ;;  %v5853_v1 = vld [vmem:[#allocation7 + $0x120] sm:$0xf] }
 0x143   :  { %v785_v53 = vsub.f32 %v753_v17, %v769_v14  ;;  %v6678_v10 = vld [vmem:[#allocation7 + $0x124] sm:$0xf0]  ;;  %vm918_vm1 = vweird.f32 %v7899_v52  ;;  %v7964_v31 = vadd.f32 1e-05, %v800_v56  ;;  %v5862_v60 = vor.u32 %v6680_v2, %v5861_v30  ;;  %v5725_v57 = vld [vmem:[#allocation7 + $0x20] sm:$0xf] }
 0x144   :  { %1649 = vmatpush.bf16.msrb.mxu2 %v5870_v50  ;;  %1611 = vmatpush.bf16.msrb.mxu0 %v5742_v21  ;;  %v5734_v49 = vor.u32 %v6648_v46, %v5733_v45  ;;  %v6646_v62 = vld [vmem:[#allocation7 + $0x24] sm:$0xf0]  ;;  %v1105_v11 = vrot.slane %v7949_v25, 5  ;;  %v7967_v54 = vadd.f32 1e-05, %v799_v44  ;;  %v5798_v40 = vor.u32 %v6664_v15, %v5797_v28 }
 0x145   :  { %v801_v0 = vmax.f32 %v785_v53, 0.0  ;;  %1630 = vmatpush.bf16.msrb.mxu1 %v5806_v51  ;;  %v5789_v29 = vld [vmem:[#allocation7 + $0xa0] sm:$0xf]  ;;  %vm917_vm2 = vweird.f32 %v7857_v24  ;;  %v7970_v7 = vrot.slane %v930_v42, 6  ;;  %v935_v38 = vsub.f32 1.5, %v934_v22 }
 0x146   :  { %1668 = vmatpush.bf16.msrb.mxu3 %v5934_v19  ;;  %v5926_v14 = vor.u32 %v6696_v39, %v5925_v12  ;;  %v6662_v59 = vld [vmem:[#allocation7 + $0xa4] sm:$0xf0]  ;;  %v5917_v4 = vld [vmem:[#allocation7 + $0x1a0] sm:$0xf]  ;;  %v7973_v43 = vmul.f32 %v7899_v52, %v915_v5  ;;  %vm7977_vm3 = vmor %vm917_vm2, %vm918_vm1  ;;  %6910 = vrsqrt.f32 %v7964_v31  ;;  %v5854_v21 = vor.u32 %v6678_v10, %v5853_v1 }
 0x147   :  { %v7981_v56 = vadd.f32 1e-05, %v801_v0  ;;  %v6694_v50 = vld [vmem:[#allocation7 + $0x1a4] sm:$0xf0]  ;;  %v5845_v24 = vld [vmem:[#allocation7 + $0x110] sm:$0xf]  ;;  %v5726_v2 = vor.u32 %v6646_v62, %v5725_v57  ;;  %v5790_v46 = vor.u32 %v6662_v59, %v5789_v29  ;;  %v7996_v12 = vmul.f32 %v7917_v6, %v935_v38 }
 0x148   :  { %1650 = vmatpush.bf16.msrb.mxu2 %v5862_v60  ;;  %1612 = vmatpush.bf16.msrb.mxu0 %v5734_v49  ;;  %v6676_v45 = vld [vmem:[#allocation7 + $0x114] sm:$0xf0]  ;;  %v5717_v58 = vld [vmem:[#allocation7 + $0x10] sm:$0xf]  ;;  %v9788_v17 = vperm.slane %v7767_v26, 3  ;;  %v9789_v22 = vrot.slane %v7868_v33, 5  ;;  %vm938_vm4 = vweird.f32 %v7917_v6  ;;  %vm937_vm6 = vweird.f32 %v7883_v18 }
 0x149   :  { %v6644_v44 = vld [vmem:[#allocation7 + $0x14] sm:$0xf0]  ;;  %6912 = vrsqrt.f32 %v7981_v56  ;;  %1631 = vmatpush.bf16.msrb.mxu1 %v5798_v40  ;;  %v5781_v28 = vld [vmem:[#allocation7 + $0x90] sm:$0xf]  ;;  %v9790_v19 = vrot.slane %v7846_v36, 6  ;;  %v9791_v1 = vsub.f32 1.5, %v7904_v61  ;;  %v920_v36 = vsel %vm7977_vm3, %v7899_v52, %v7973_v43  ;;  %vm8020_vm7 = vmor %vm937_vm6, %vm938_vm4 }
 0x14a   :  { %v7987_v51 = vmul.f32 %v9788_v17, %v7563_v55  ;;  %v6660_v5 = vld [vmem:[#allocation7 + $0x94] sm:$0xf0]  ;;  %v5909_v23 = vld [vmem:[#allocation7 + $0x190] sm:$0xf]  ;;  %1669 = vmatpush.bf16.msrb.mxu3 %v5926_v14  ;;  %v5918_v55 = vor.u32 %v6694_v50, %v5917_v4  ;;  %v7999_v53 = vld [vmem:[#allocation7 + $0x100] sm:$0xf]  ;;  %v5846_v10 = vor.u32 %v6676_v45, %v5845_v24  ;;  %v5718_v62 = vor.u32 %v6644_v44, %v5717_v58 }
 0x14b   :  { %v1113_v15 = vsel %vm1011_vm13, %v9790_v19, %v9789_v22  ;;  %v6692_v42 = vld [vmem:[#allocation7 + $0x194] sm:$0xf0]  ;;  %v8001_v39 = vld [vmem:[#allocation7 + $0x104] sm:$0xf0]  ;;  %v8006_v33 = vmul.f32 %v7859_v48, %v9791_v1  ;;  %v5709_v60 = vld [vmem:[#allocation7] sm:$0xf]  ;;  %6914 = vrsqrt.f32 %v7967_v54  ;;  %v5782_v18 = vor.u32 %v6660_v5, %v5781_v28 }
 0x14c   :  { %v6642_v49 = vld [vmem:[#allocation7 + $0x4] sm:$0xf0]  ;;  %v8013_v57 = vld [vmem:[#allocation7 + $0x80] sm:$0xf]  ;;  %1651 = vmatpush.bf16.msrb.mxu2 %v5854_v21  ;;  %1613 = vmatpush.bf16.msrb.mxu0 %v5726_v2  ;;  %v1036_v61 = vperm.slane %v7767_v26, 0  ;;  %v1040_v40 = vperm.slane %v7913_v16, 0  ;;  %v8029_v21 = vpop.eup %6910  ;;  %v940_v2 = vsel %vm8020_vm7, %v7917_v6, %v7996_v12  ;;  %v5910_v45 = vor.u32 %v6692_v42, %v5909_v23 }
 0x14d   :  { %v6658_v0 = vld [vmem:[#allocation7 + $0x84] sm:$0xf0]  ;;  %v1041_v29 = vperm.slane %v7913_v16, 1  ;;  %1632 = vmatpush.bf16.msrb.mxu1 %v5790_v46  ;;  %v5901_v14 = vld [vmem:[#allocation7 + $0x180] sm:$0xf]  ;;  %v1042_v4 = vperm.slane %v7913_v16, 2  ;;  %v5838_v58 = vor.u32 %v8001_v39, %v7999_v53  ;;  %v5710_v46 = vor.u32 %v6642_v49, %v5709_v60 }
 0x14e   :  { %v6690_v59 = vld [vmem:[#allocation7 + $0x184] sm:$0xf0]  ;;  %v9794_v50 = vperm.slane %v7767_v26, 1  ;;  %1670 = vmatpush.bf16.msrb.mxu3 %v5918_v55  ;;  %v1068_v28 = vmul.f32 %v1036_v61, %v7570_v9  ;;  %v5774_v22 = vor.u32 %v6658_v0, %v8013_v57  ;;  %v1072_v23 = vmul.f32 %v1040_v40, %v7628_v35  ;;  %v6687_v42 = vld [vmem:[#allocation7 + $0x174] sm:$0xf] }
 0x14f   :  { %v1073_v44 = vmul.f32 %v1041_v29, %v7632_v41  ;;  %v8038_v17 = vpop.eup %6912  ;;  %v5902_v6 = vor.u32 %v6690_v59, %v5901_v14  ;;  %v8043_v19 = vld [vmem:[#allocation20 + $0x1] ss:$4 sm:$0xf]  ;;  %v8048_v41 = vmul.f32 %v8029_v21, %v7964_v31  ;;  %v5895_v53 = vld [vmem:[#allocation7 + $0x178] sm:$0xf0]  ;;  %vm908_vm8 = vweird.f32 %v7859_v48 }
 0x150   :  { %v1069_v24 = vmul.f32 %v9794_v50, %v7572_v13  ;;  %v1074_v13 = vmul.f32 %v1042_v4, %v7647_v63  ;;  %1652 = vmatpush.bf16.msrb.mxu2 %v5846_v10  ;;  %1614 = vmatpush.bf16.msrb.mxu0 %v5718_v62  ;;  %v1132_v63 = vmul.f32 %v1036_v61, %v7546_v34  ;;  %v6655_v60 = vld [vmem:[#allocation7 + $0x74] sm:$0xf]  ;;  %vm907_vm9 = vweird.f32 %v7789_v20  ;;  %v6681_v52 = vld [vmem:[#allocation7 + $0x144] sm:$0xf] }
 0x151   :  { %v1103_v12 = vrot.slane %v1073_v44, 7  ;;  %1633 = vmatpush.bf16.msrb.mxu1 %v5782_v18  ;;  %v8055_v39 = vmul.f32 %v8038_v17, %v7981_v56  ;;  %v1136_v10 = vmul.f32 %v1040_v40, %v7578_v27  ;;  %v8060_v49 = vpop.eup %6914  ;;  %v9795_v62 = vmov %v9794_v50  ;;  %v6671_v38 = vld [vmem:[#allocation7 + $0xf4] sm:$0xf]  ;;  %v5831_v18 = vld [vmem:[#allocation7 + $0xf8] sm:$0xf0]  ;;  %vm8087_vm10 = vmor %vm907_vm9, %vm908_vm8 }
 0x152   :  { %v1100_v5 = vrot.slane %v1069_v24, 7  ;;  %v1104_v55 = vrot.slane %v1074_v13, 6  ;;  %1671 = vmatpush.bf16.msrb.mxu3 %v5910_v45  ;;  %v1133_v0 = vmul.f32 %v9795_v62, %v7551_v37  ;;  %v1137_v61 = vmul.f32 %v1041_v29, %v7592_v47  ;;  %v9798_v24 = vld [vmem:[#allocation35_spill] sm:$0xff]  ;;  %v6685_v13 = vld [vmem:[#allocation7 + $0x164] sm:$0xf] }
 0x153   :  { %v1115_v1 = vsel %vm1009_vm5, %v1072_v23, %v1103_v12  ;;  %v8071_v27 = vrot.slane %v940_v2, 5  ;;  %v9797_v40 = vperm.slane %v7767_v26, 2  ;;  %v5898_v59 = vor.u32 %v6687_v42, %v5895_v53  ;;  %v9799_v53 = vld [vmem:[#allocation36_spill] sm:$0xff] }
 0x154   :  { %v1112_v9 = vsel %vm1009_vm5, %v1068_v28, %v1100_v5  ;;  %v1116_v34 = vsel %vm1011_vm13, %v1104_v55, %v1105_v11  ;;  %1653 = vmatpush.bf16.msrb.mxu2 %v5838_v58  ;;  %1615 = vmatpush.bf16.msrb.mxu0 %v5710_v46  ;;  %v9796_v11 = vld [vmem:[#allocation34_spill] sm:$0xff]  ;;  %v1138_v45 = vmul.f32 %v1042_v4, %v9798_v24  ;;  %v6703_v46 = vld [vmem:[#allocation7 + $0x1f4] sm:$0xf]  ;;  %v5959_v28 = vld [vmem:[#allocation7 + $0x1f8] sm:$0xf0]  ;;  %vm968_vm11 = vweird.f32 %v8029_v21 }
 0x155   :  { %v1114_v35 = vsel %vm1013_vm14, %v1112_v9, %v1113_v15  ;;  %v5767_v15 = vld [vmem:[#allocation7 + $0x78] sm:$0xf0]  ;;  %v1117_v25 = vsel %vm1013_vm14, %v1115_v1, %v1116_v34  ;;  %v1134_v14 = vmul.f32 %v9797_v40, %v9796_v11  ;;  %1634 = vmatpush.bf16.msrb.mxu1 %v5774_v22  ;;  %v5834_v44 = vor.u32 %v6671_v38, %v5831_v18  ;;  %v5887_v22 = vld [vmem:[#allocation7 + $0x168] sm:$0xf0]  ;;  %v6653_v55 = vld [vmem:[#allocation7 + $0x64] sm:$0xf] }
 0x156   :  { %v1128_v57 = vsub.f32 %v8043_v19, %v1114_v35  ;;  %v1129_v37 = vsub.f32 %v8043_v19, %v1117_v25  ;;  %1672 = vmatpush.bf16.msrb.mxu3 %v5902_v6  ;;  %v5770_v58 = vor.u32 %v6655_v60, %v5767_v15  ;;  %v9800_v6 = vperm.slane %v7913_v16, 3  ;;  %v5759_v1 = vld [vmem:[#allocation7 + $0x68] sm:$0xf0]  ;;  %v6669_v60 = vld [vmem:[#allocation7 + $0xe4] sm:$0xf] }
 0x157   :  { %v6701_v38 = vld [vmem:[#allocation7 + $0x1e4] sm:$0xf]  ;;  %v5951_v40 = vld [vmem:[#allocation7 + $0x1e8] sm:$0xf0]  ;;  %v703_v43 = vadd.f32 %v702_v8, %v7920_v3  ;;  %v963_v3 = vmul.f32 %v8029_v21, %v8048_v41  ;;  %vm978_vm12 = vweird.f32 %v8038_v17  ;;  %vm967_vm15 = vweird.f32 %v7964_v31 }
 0x158   :  { %v1152_v47 = vperm.slane %v1128_v57, 0  ;;  %v1153_v29 = vperm.slane %v1128_v57, 1  ;;  %v1154_v50 = vperm.slane %v1128_v57, 2  ;;  %v1155_v2 = vperm.slane %v1128_v57, 3  ;;  %1722 = vmatpush.bf16.msra.mxu2 %v5898_v59  ;;  %1684 = vmatpush.bf16.msra.mxu0 %v5770_v58  ;;  %vm8148_vm0 = vmor %vm967_vm15, %vm968_vm11 }
 0x159   :  { %v1156_v5 = vperm.slane %v1129_v37, 0  ;;  %v1157_v23 = vperm.slane %v1129_v37, 1  ;;  %v1158_v9 = vperm.slane %v1129_v37, 2  ;;  %v1139_v35 = vmul.f32 %v9800_v6, %v9799_v53  ;;  %1703 = vmatpush.bf16.msra.mxu1 %v5834_v44  ;;  %v5751_v44 = vld [vmem:[#allocation7 + $0x58] sm:$0xf0] }
 0x15a   :  { %v1184_v26 = vadd.f32 %v1152_v47, %v1132_v63  ;;  %v1185_v12 = vadd.f32 %v1153_v29, %v1133_v0  ;;  %v1186_v42 = vadd.f32 %v1154_v50, %v1134_v14  ;;  %v1159_v4 = vperm.slane %v1129_v37, 3  ;;  %v5823_v63 = vld [vmem:[#allocation7 + $0xe8] sm:$0xf0]  ;;  %v6683_v14 = vld [vmem:[#allocation7 + $0x154] sm:$0xf] }
 0x15b   :  { %v1188_v34 = vadd.f32 %v1156_v5, %v1136_v10  ;;  %v1189_v62 = vadd.f32 %v1157_v23, %v1137_v61  ;;  %v1190_v0 = vadd.f32 %v1158_v9, %v1138_v45  ;;  %v1187_v25 = vadd.f32 %v1155_v2, %v7987_v51  ;;  %v5879_v29 = vld [vmem:[#allocation7 + $0x158] sm:$0xf0]  ;;  %v6651_v50 = vld [vmem:[#allocation7 + $0x54] sm:$0xf]  ;;  %v6649_v9 = vld [vmem:[#allocation7 + $0x44] sm:$0xf] }
 0x15c   :  { %v1200_v57 = vmax.f32 %v1184_v26, 0.0  ;;  %v1201_v15 = vmax.f32 %v1185_v12, 0.0  ;;  %v1202_v18 = vmax.f32 %v1186_v42, 0.0  ;;  %v1191_v11 = vadd.f32 %v1159_v4, %v1139_v35  ;;  %v5815_v5 = vld [vmem:[#allocation7 + $0xd8] sm:$0xf0] }
 0x15d   :  { %v1204_v16 = vmax.f32 %v1188_v34, 0.0  ;;  %v1205_v59 = vmax.f32 %v1189_v62, 0.0  ;;  %v5962_v37 = vor.u32 %v6703_v46, %v5959_v28  ;;  %v5890_v47 = vor.u32 %v6685_v13, %v5887_v22  ;;  %v6667_v13 = vld [vmem:[#allocation7 + $0xd4] sm:$0xf]  ;;  %v5943_v22 = vld [vmem:[#allocation7 + $0x1d8] sm:$0xf0] }
 0x15e   :  { %v1206_v24 = vmax.f32 %v1190_v0, 0.0  ;;  %v1203_v10 = vmax.f32 %v1187_v25, 0.0  ;;  %v1207_v58 = vmax.f32 %v1191_v11, 0.0  ;;  %v5762_v61 = vor.u32 %v6653_v55, %v5759_v1  ;;  %v6699_v12 = vld [vmem:[#allocation7 + $0x1d4] sm:$0xf]  ;;  %v9803_v1 = vld [vmem:[#allocation49_spill] sm:$0xff] }
 0x15f   :  { %v1003_v45 = vrot.slane %v920_v36, 7  ;;  %v8096_v2 = vpack.c.bf16 %v1204_v16, %v1200_v57  ;;  %v8098_v46 = vpack.c.bf16 %v1205_v59, %v1201_v15  ;;  %1741 = vmatpush.bf16.msra.mxu3 %v5962_v37  ;;  %1723 = vmatpush.bf16.msra.mxu2 %v5890_v47  ;;  %v5826_v28 = vor.u32 %v6669_v60, %v5823_v63  ;;  %v5871_v55 = vld [vmem:[#allocation7 + $0x148] sm:$0xf0]  ;;  %v6665_v4 = vld [vmem:[#allocation7 + $0xc4] sm:$0xf] }
 0x160   :  { %v8100_v20 = vpack.c.bf16 %v1206_v24, %v1202_v18  ;;  %v8102_v26 = vpack.c.bf16 %v1207_v58, %v1203_v10  ;;  %1685 = vmatpush.bf16.msra.mxu0 %v5762_v61  ;;  %v5954_v23 = vor.u32 %v6701_v38, %v5951_v40  ;;  %v5882_v30 = vor.u32 %v6683_v14, %v5879_v29  ;;  %v5743_v42 = vld [vmem:[#allocation7 + $0x48] sm:$0xf0]  ;;  %v6697_v34 = vld [vmem:[#allocation7 + $0x1c4] sm:$0xf] }
 0x161   :  { %1616 = vmatmul.bf16.vlgmr.msrb.gmra.mxu0 %v8096_v2  ;;  %1635 = vmatmul.bf16.vlgmr.msrb.gmra.mxu1 %v8098_v46  ;;  %v5754_v36 = vor.u32 %v6651_v50, %v5751_v44  ;;  %v910_v53 = vsel %vm8087_vm10, %v7859_v48, %v8006_v33  ;;  %v1019_v6 = vsel %vm1011_vm13, %v7970_v7, %v8071_v27  ;;  %v9804_v60 = vrot.slane %v9803_v1, 1  ;;  %v5807_v27 = vld [vmem:[#allocation7 + $0xc8] sm:$0xf0]  ;;  %v9805_v59 = vld [vmem:[#allocation42_spill] sm:$0xff] }
 0x162   :  { %1654 = vmatmul.bf16.vlgmr.msrb.gmra.mxu2 %v8100_v20  ;;  %1673 = vmatmul.bf16.vlgmr.msrb.gmra.mxu3 %v8102_v26  ;;  %v5818_v8 = vor.u32 %v6667_v13, %v5815_v5  ;;  %v5946_v35 = vor.u32 %v6699_v12, %v5943_v22  ;;  %v973_v33 = vmul.f32 %v8038_v17, %v8055_v39  ;;  %v5935_v57 = vld [vmem:[#allocation7 + $0x1c8] sm:$0xf0]  ;;  %v750_v15 = vmul.f32 0.125, %v703_v43  ;;  %v9806_v13 = vld [vmem:[#allocation44_spill] sm:$0xff] }
 0x163   :  { %1704 = vmatpush.bf16.msra.mxu1 %v5826_v28  ;;  %1742 = vmatpush.bf16.msra.mxu3 %v5954_v23  ;;  %v591_v48 = vadd.f32 %v9804_v60, %v9803_v1  ;;  %v5874_v7 = vor.u32 %v6681_v52, %v5871_v55  ;;  %v5746_v41 = vor.u32 %v6649_v9, %v5743_v42  ;;  %v964_v11 = vmul.f32 0.5, %v963_v3  ;;  %v9810_v22 = vld [vmem:[#allocation43_spill] sm:$0xff]  ;;  %v6647_v1 = vld [vmem:[#allocation7 + $0x34] sm:$0xf]  ;;  %v5847_v23 = vld [vmem:[#allocation7 + $0x118] sm:$0xf0] }
 0x164   :  { %1724 = vmatpush.bf16.msra.mxu2 %v5882_v30  ;;  %1686 = vmatpush.bf16.msra.mxu0 %v5754_v36  ;;  %v1018_v62 = vsel %vm1009_vm5, %v910_v53, %v1003_v45  ;;  %v952_v63 = vmul.f32 %v8060_v49, %v7967_v54  ;;  %v5810_v39 = vor.u32 %v6665_v4, %v5807_v27  ;;  %v974_v40 = vmul.f32 0.5, %v973_v33  ;;  %v9809_v30 = vld [vmem:[#allocation47_spill] sm:$0xff]  ;;  %v5863_v4 = vld [vmem:[#allocation7 + $0x138] sm:$0xf0]  ;;  %v6663_v33 = vld [vmem:[#allocation7 + $0xb4] sm:$0xf] }
 0x165   :  { %v8128_v38 = vmul.f32 0.125, %v591_v48  ;;  %v1020_v0 = vsel %vm1013_vm14, %v1018_v62, %v1019_v6  ;;  %v5938_v18 = vor.u32 %v6697_v34, %v5935_v57  ;;  %v965_v29 = vsub.f32 1.5, %v964_v11  ;;  %v5735_v48 = vld [vmem:[#allocation7 + $0x38] sm:$0xf0]  ;;  %v9813_v27 = vld [vmem:[#allocation40_spill] sm:$0xff] }
 0x166   :  { %v953_v14 = vmul.f32 %v8060_v49, %v952_v63  ;;  %v8135_v37 = vmul.f32 %v1020_v0, %v9805_v59  ;;  %v975_v50 = vsub.f32 1.5, %v974_v40  ;;  %vm977_vm1 = vweird.f32 %v7981_v56  ;;  %v5927_v63 = vld [vmem:[#allocation7 + $0x1b8] sm:$0xf0]  ;;  %v6691_v6 = vld [vmem:[#allocation7 + $0x194] sm:$0xf] }
 0x167   :  { %1705 = vmatpush.bf16.msra.mxu1 %v5818_v8  ;;  %1743 = vmatpush.bf16.msra.mxu3 %v5946_v35  ;;  %v766_v25 = vmul.f32 %v8128_v38, %v8128_v38  ;;  %v966_v51 = vmul.f32 %v8029_v21, %v965_v29  ;;  %vm979_vm2 = vmor %vm977_vm1, %vm978_vm12  ;;  %vm958_vm3 = vweird.f32 %v8060_v49  ;;  %vm957_vm4 = vweird.f32 %v7967_v54  ;;  %v6679_v35 = vld [vmem:[#allocation7 + $0x134] sm:$0xf]  ;;  %v6661_v29 = vld [vmem:[#allocation7 + $0xa4] sm:$0xf] }
 0x168   :  { %1725 = vmatpush.bf16.msra.mxu2 %v5874_v7  ;;  %1687 = vmatpush.bf16.msra.mxu0 %v5746_v41  ;;  %v954_v24 = vmul.f32 0.5, %v953_v14  ;;  %v1046_v58 = vperm.slane %v8135_v37, 2  ;;  %v1047_v61 = vperm.slane %v8135_v37, 3  ;;  %v1045_v44 = vperm.slane %v8135_v37, 1  ;;  %vm8170_vm6 = vmor %vm957_vm4, %vm958_vm3  ;;  %v5799_v7 = vld [vmem:[#allocation7 + $0xb8] sm:$0xf0] }
 0x169   :  { %v782_v16 = vsub.f32 %v750_v15, %v766_v25  ;;  %v976_v45 = vmul.f32 %v8038_v17, %v975_v50  ;;  %v970_v31 = vsel %vm8148_vm0, %v8029_v21, %v966_v51  ;;  %v1044_v42 = vperm.slane %v8135_v37, 0  ;;  %v6695_v15 = vld [vmem:[#allocation7 + $0x1b4] sm:$0xf]  ;;  %v6645_v25 = vld [vmem:[#allocation7 + $0x24] sm:$0xf] }
 0x16a   :  { %v955_v28 = vsub.f32 1.5, %v954_v24  ;;  %v1078_v5 = vmul.f32 %v1046_v58, %v9806_v13  ;;  %v1079_v12 = vmul.f32 %v1047_v61, %v9809_v30  ;;  %v1077_v52 = vmul.f32 %v1045_v44, %v9810_v22  ;;  %v5791_v24 = vld [vmem:[#allocation7 + $0xa8] sm:$0xf0]  ;;  %v6643_v30 = vld [vmem:[#allocation7 + $0x14] sm:$0xf] }
 0x16b   :  { %1706 = vmatpush.bf16.msra.mxu1 %v5810_v39  ;;  %1744 = vmatpush.bf16.msra.mxu3 %v5938_v18  ;;  %v798_v47 = vmax.f32 %v782_v16, 0.0  ;;  %v980_v43 = vsel %vm979_vm2, %v8038_v17, %v976_v45  ;;  %v1007_v3 = vrot.slane %v970_v31, 6  ;;  %v5866_v60 = vor.u32 %v6679_v35, %v5863_v4  ;;  %v6677_v18 = vld [vmem:[#allocation7 + $0x124] sm:$0xf]  ;;  %v5919_v51 = vld [vmem:[#allocation7 + $0x1a8] sm:$0xf0] }
 0x16c   :  { %v956_v56 = vmul.f32 %v8060_v49, %v955_v28  ;;  %v1107_v55 = vrot.slane %v1078_v5, 6  ;;  %v1108_v53 = vrot.slane %v1079_v12, 5  ;;  %v1008_v21 = vrot.slane %v980_v43, 5  ;;  %v6675_v5 = vld [vmem:[#allocation7 + $0x114] sm:$0xf] }
 0x16d   :  { %v817_v10 = vadd.f32 1e-05, %v798_v47  ;;  %v1106_v8 = vrot.slane %v1077_v52, 7  ;;  %v1076_v34 = vmul.f32 %v1044_v42, %v9813_v27  ;;  %v5738_v57 = vor.u32 %v6647_v1, %v5735_v48  ;;  %1726 = vmatpush.bf16.msra.mxu2 %v5866_v60  ;;  %v5727_v47 = vld [vmem:[#allocation7 + $0x28] sm:$0xf0] }
 0x16e   :  { %v960_v54 = vsel %vm8170_vm6, %v8060_v49, %v956_v56  ;;  %v5802_v62 = vor.u32 %v6663_v33, %v5799_v7  ;;  %v1119_v0 = vsel %vm1011_vm13, %v1107_v55, %v1108_v53  ;;  %v5930_v39 = vor.u32 %v6695_v15, %v5927_v63  ;;  %v5855_v49 = vld [vmem:[#allocation7 + $0x128] sm:$0xf0]  ;;  %v5719_v31 = vld [vmem:[#allocation7 + $0x18] sm:$0xf0]  ;;  %v6659_v43 = vld [vmem:[#allocation7 + $0x94] sm:$0xf] }
 0x16f   :  { %6916 = vrsqrt.f32 %v817_v10  ;;  %vm947_vm8 = vweird.f32 %v817_v10  ;;  %v1006_v14 = vrot.slane %v960_v54, 7  ;;  %v1118_v16 = vsel %vm1009_vm5, %v1076_v34, %v1106_v8  ;;  %1688 = vmatpush.bf16.msra.mxu0 %v5738_v57  ;;  %v5783_v56 = vld [vmem:[#allocation7 + $0x98] sm:$0xf0]  ;;  %v5839_v35 = vld [vmem:[#allocation7 + $0x108] sm:$0xf0] }
 0x170   :  { %1707 = vmatpush.bf16.msra.mxu1 %v5802_v62  ;;  %v5858_v59 = vor.u32 %v6677_v18, %v5855_v49  ;;  %1745 = vmatpush.bf16.msra.mxu3 %v5930_v39  ;;  %v5730_v50 = vor.u32 %v6645_v25, %v5727_v47  ;;  %v5794_v28 = vor.u32 %v6661_v29, %v5791_v24  ;;  %v5911_v8 = vld [vmem:[#allocation7 + $0x198] sm:$0xf0]  ;;  %v6641_v4 = vld [vmem:[#allocation7 + $0x4] sm:$0xf]  ;;  %v5711_v1 = vld [vmem:[#allocation7 + $0x8] sm:$0xf0] }
 0x171   :  { %v1022_v12 = vsel %vm1011_vm13, %v1007_v3, %v1008_v21  ;;  %v1120_v22 = vsel %vm1013_vm14, %v1118_v16, %v1119_v0  ;;  %v5850_v52 = vor.u32 %v6675_v5, %v5847_v23  ;;  %v5786_v53 = vor.u32 %v6659_v43, %v5783_v56  ;;  %v6657_v60 = vld [vmem:[#allocation7 + $0x84] sm:$0xf]  ;;  %v5775_v48 = vld [vmem:[#allocation7 + $0x88] sm:$0xf0] }
 0x172   :  { %1727 = vmatpush.bf16.msra.mxu2 %v5858_v59  ;;  %v5914_v21 = vor.u32 %v6691_v6, %v5911_v8  ;;  %v6689_v33 = vld [vmem:[#allocation7 + $0x184] sm:$0xf]  ;;  %v5903_v34 = vld [vmem:[#allocation7 + $0x188] sm:$0xf0]  ;;  %v5714_v57 = vor.u32 %v6641_v4, %v5711_v1  ;;  %v5778_v62 = vor.u32 %v6657_v60, %v5775_v48  ;;  %v9824_v8 = vld [vmem:[#allocation48_spill] sm:$0xff] }
 0x173   :  { %1689 = vmatpush.bf16.msra.mxu0 %v5730_v50  ;;  %v5906_v15 = vor.u32 %v6689_v33, %v5903_v34  ;;  %v9816_v49 = vld [vmem:[#allocation51_spill] sm:$0xff] }
 0x174   :  { %1708 = vmatpush.bf16.msra.mxu1 %v5794_v28 }
 0x175   :  { %v8164_v36 = vpop.eup %6916 }
 0x176   :  { %v942_v9 = vmul.f32 %v8164_v36, %v817_v10  ;;  %vm948_vm7 = vweird.f32 %v8164_v36  ;;  %v6693_v10 = vld [vmem:[#allocation7 + $0x1a4] sm:$0xf]  ;;  %1728 = vmatpush.bf16.msra.mxu2 %v5850_v52 }
 0x177   :  { %vm8185_vm9 = vmor %vm947_vm8, %vm948_vm7  ;;  %v5922_v13 = vor.u32 %v6693_v10, %v5919_v51 }
 0x178   :  { %v943_v17 = vmul.f32 %v8164_v36, %v942_v9  ;;  %v5722_v9 = vor.u32 %v6643_v30, %v5719_v31  ;;  %1709 = vmatpush.bf16.msra.mxu1 %v5786_v53  ;;  %v9820_v30 = vld [vmem:[#allocation38_spill] sm:$0xff] }
 0x179   :  { %1746 = vmatpush.bf16.msra.mxu3 %v5922_v13  ;;  %v9819_v13 = vld [vmem:[#allocation37_spill] sm:$0xff]  ;;  %v9823_v53 = vld [vmem:[#allocation46_spill] sm:$0xff] }
 0x17a   :  { %v944_v41 = vmul.f32 0.5, %v943_v17  ;;  %v6673_v17 = vld [vmem:[#allocation7 + $0x104] sm:$0xf]  ;;  %1690 = vmatpush.bf16.msra.mxu0 %v5722_v9 }
 0x17b   :  { %v5842_v27 = vor.u32 %v6673_v17, %v5839_v35 }
 0x17c   :  { %v945_v11 = vsub.f32 1.5, %v944_v41  ;;  %v1130_v41 = vsub.f32 %v8043_v19, %v1120_v22  ;;  %1710 = vmatpush.bf16.msra.mxu1 %v5778_v62 }
 0x17d   :  { %1747 = vmatpush.bf16.msra.mxu3 %v5914_v21  ;;  %1729 = vmatpush.bf16.msra.mxu2 %v5842_v27 }
 0x17e   :  { %v946_v45 = vmul.f32 %v8164_v36, %v945_v11  ;;  %v9817_v11 = vld [vmem:[#allocation52_spill] sm:$0xff]  ;;  %v1160_v16 = vperm.slane %v1130_v41, 0  ;;  %v1161_v59 = vperm.slane %v1130_v41, 1  ;;  %v1162_v47 = vperm.slane %v1130_v41, 2  ;;  %1691 = vmatpush.bf16.msra.mxu0 %v5714_v57 }
 0x17f   :  { %v1163_v29 = vperm.slane %v1130_v41, 3 }
 0x180   :  { %v950_v55 = vsel %vm8185_vm9, %v8164_v36, %v946_v45  ;;  %v7038_v36 = vld [vmem:[#allocation20] ss:$4 sm:$0xf] }
 0x181   :  { %v1021_v3 = vsel %vm1009_vm5, %v950_v55, %v1006_v14  ;;  %1748 = vmatpush.bf16.msra.mxu3 %v5906_v15  ;;  %v9818_v45 = vld [vmem:[#allocation41_spill] sm:$0xff] }
 0x182   :  { %v1023_v54 = vsel %vm1013_vm14, %v1021_v3, %v1022_v12  ;;  %v1143_v28 = vmul.f32 %v1047_v61, %v9818_v45  ;;  %v9821_v12 = vld [vmem:[#allocation39_spill] sm:$0xff]  ;;  %v9822_v55 = vld [vmem:[#allocation45_spill] sm:$0xff]  ;;  %v9825_v3 = vld [vmem:[#allocation50_spill] sm:$0xff] }
 0x183   :  { %v1031_v7 = vmul.f32 %v7038_v36, %v1023_v54  ;;  %v1142_v22 = vmul.f32 %v1046_v58, %v9821_v12 }
 0x185   :  { %v1048_v63 = vperm.slane %v1031_v7, 0  ;;  %v1049_v0 = vperm.slane %v1031_v7, 1  ;;  %v1050_v39 = vperm.slane %v1031_v7, 2  ;;  %v1051_v18 = vperm.slane %v1031_v7, 3 }
 0x186   :  { %v1194_v56 = vadd.f32 %v1162_v47, %v1142_v22 }
 0x187   :  { %v1081_v25 = vmul.f32 %v1049_v0, %v9816_v49  ;;  %v1082_v40 = vmul.f32 %v1050_v39, %v9817_v11  ;;  %v1083_v14 = vmul.f32 %v1051_v18, %v7939_v32  ;;  %v1080_v50 = vmul.f32 %v1048_v63, %v8128_v38 }
 0x188   :  { %v1140_v32 = vmul.f32 %v1044_v42, %v9819_v13  ;;  %v1141_v38 = vmul.f32 %v1045_v44, %v9820_v30  ;;  %v1195_v42 = vadd.f32 %v1163_v29, %v1143_v28  ;;  %v1144_v9 = vmul.f32 %v1048_v63, %v9822_v55 }
 0x189   :  { %v1109_v24 = vrot.slane %v1081_v25, 7  ;;  %v1110_v10 = vrot.slane %v1082_v40, 6  ;;  %v1111_v51 = vrot.slane %v1083_v14, 5  ;;  %v1145_v6 = vmul.f32 %v1049_v0, %v9823_v53 }
 0x18a   :  { %v1192_v31 = vadd.f32 %v1160_v16, %v1140_v32  ;;  %v1193_v43 = vadd.f32 %v1161_v59, %v1141_v38  ;;  %v1146_v17 = vmul.f32 %v1050_v39, %v9824_v8  ;;  %v1147_v44 = vmul.f32 %v1051_v18, %v9825_v3 }
 0x18b   :  { %v1121_v5 = vsel %vm1009_vm5, %v1080_v50, %v1109_v24  ;;  %v1122_v23 = vsel %vm1011_vm13, %v1110_v10, %v1111_v51  ;;  %v1210_v33 = vmax.f32 %v1194_v56, 0.0  ;;  %v1211_v36 = vmax.f32 %v1195_v42, 0.0 }
 0x18c   :  { %v1123_v52 = vsel %vm1013_vm14, %v1121_v5, %v1122_v23  ;;  %v1209_v48 = vmax.f32 %v1193_v43, 0.0 }
 0x18d   :  { %v1131_v61 = vsub.f32 %v8043_v19, %v1123_v52  ;;  %v1208_v19 = vmax.f32 %v1192_v31, 0.0 }
 0x18f   :  { %v1164_v21 = vperm.slane %v1131_v61, 0  ;;  %v1165_v35 = vperm.slane %v1131_v61, 1  ;;  %v1166_v37 = vperm.slane %v1131_v61, 2  ;;  %v1167_v58 = vperm.slane %v1131_v61, 3 }
 0x191   :  { %v1196_v4 = vadd.f32 %v1164_v21, %v1144_v9  ;;  %v1197_v1 = vadd.f32 %v1165_v35, %v1145_v6  ;;  %v1198_v54 = vadd.f32 %v1166_v37, %v1146_v17  ;;  %v1199_v60 = vadd.f32 %v1167_v58, %v1147_v44 }
 0x193   :  { %v1212_v7 = vmax.f32 %v1196_v4, 0.0  ;;  %v1213_v41 = vmax.f32 %v1197_v1, 0.0  ;;  %v1214_v27 = vmax.f32 %v1198_v54, 0.0  ;;  %v1215_v34 = vmax.f32 %v1199_v60, 0.0 }
 0x195   :  { %v1220_v57 = vpack.c.bf16 %v1212_v7, %v1208_v19  ;;  %v1221_v62 = vpack.c.bf16 %v1213_v41, %v1209_v48  ;;  %v1222_v15 = vpack.c.bf16 %v1214_v27, %v1210_v33  ;;  %v1223_v63 = vpack.c.bf16 %v1215_v34, %v1211_v36 }
 0x197   :  { %1621 = vmatmul.bf16.gmra.mxu0 %v1220_v57  ;;  %1640 = vmatmul.bf16.gmra.mxu1 %v1221_v62 }
 0x198   :  { %1659 = vmatmul.bf16.gmra.mxu2 %v1222_v15  ;;  %1678 = vmatmul.bf16.gmra.mxu3 %v1223_v63 }
 0x1a7   :  { %1692 = vmatmul.bf16.vlgmr.msra.gmra.mxu0 %v8096_v2  ;;  %1711 = vmatmul.bf16.vlgmr.msra.gmra.mxu1 %v8098_v46 }
 0x1a8   :  { %1730 = vmatmul.bf16.vlgmr.msra.gmra.mxu2 %v8100_v20  ;;  %1749 = vmatmul.bf16.vlgmr.msra.gmra.mxu3 %v8102_v26 }
 0x1b7   :  { %1697 = vmatmul.bf16.gmra.mxu0 %v1220_v57  ;;  %1716 = vmatmul.bf16.gmra.mxu1 %v1221_v62 }
 0x1b8   :  { %1735 = vmatmul.bf16.gmra.mxu2 %v1222_v15  ;;  %1754 = vmatmul.bf16.gmra.mxu3 %v1223_v63 }
 0x1de   :  { %v1617_v0 = vpop.f32.mrf.mxu0  ;;  %v1636_v39 = vpop.f32.mrf.mxu1 }
 0x1df   :  { %v1637_v49 = vadd.f32 %v1636_v39, %v1617_v0 }
 0x1e5   :  { %v1655_v18 = vpop.f32.mrf.mxu2  ;;  %v1674_v11 = vpop.f32.mrf.mxu3 }
 0x1e6   :  { %v1656_v25 = vadd.f32 %v1655_v18, %v1637_v49  ;;  %v1619_v14 = vpop.f32.mrf.mxu0  ;;  %v1638_v2 = vpop.f32.mrf.mxu1 }
 0x1e7   :  { %v1639_v26 = vadd.f32 %v1638_v2, %v1619_v14 }
 0x1e8   :  { %v8227_v40 = vadd.f32 %v1674_v11, %v1656_v25 }
 0x1ea   :  { %v1760_v46 = vrot.slane %v8227_v40, 4  ;;  %v1808_v20 = vmul.f32 %v8227_v40, %v8227_v40 }
 0x1ec   :  { %v1761_v47 = vadd.f32 %v1760_v46, %v8227_v40  ;;  %v1816_v29 = vrot.slane %v1808_v20, 4 }
 0x1ed   :  { %v1657_v16 = vpop.f32.mrf.mxu2  ;;  %v1676_v50 = vpop.f32.mrf.mxu3 }
 0x1ee   :  { %v1658_v59 = vadd.f32 %v1657_v16, %v1639_v26  ;;  %v1762_v10 = vrot.slane %v1761_v47, 2  ;;  %v1817_v51 = vadd.f32 %v1816_v29, %v1808_v20 }
 0x1f0   :  { %v8233_v24 = vadd.f32 %v1676_v50, %v1658_v59  ;;  %v1763_v5 = vadd.f32 %v1762_v10, %v1761_v47  ;;  %v1818_v23 = vrot.slane %v1817_v51, 2 }
 0x1f2   :  { %v1772_v13 = vrot.slane %v8233_v24, 4  ;;  %v1810_v32 = vmul.f32 %v8233_v24, %v8233_v24  ;;  %v1764_v22 = vrot.slane %v1763_v5, 1  ;;  %v1819_v52 = vadd.f32 %v1818_v23, %v1817_v51 }
 0x1f4   :  { %v1773_v30 = vadd.f32 %v1772_v13, %v8233_v24  ;;  %v1828_v38 = vrot.slane %v1810_v32, 4  ;;  %v1765_v6 = vadd.f32 %v1764_v22, %v1763_v5  ;;  %v1820_v8 = vrot.slane %v1819_v52, 1 }
 0x1f6   :  { %v1774_v55 = vrot.slane %v1773_v30, 2  ;;  %v1829_v9 = vadd.f32 %v1828_v38, %v1810_v32  ;;  %v1821_v4 = vadd.f32 %v1820_v8, %v1819_v52  ;;  %v8245_v1 = vmul.f32 0.125, %v1765_v6 }
 0x1f8   :  { %v1775_v44 = vadd.f32 %v1774_v55, %v1773_v30  ;;  %v1830_v21 = vrot.slane %v1829_v9, 2  ;;  %v1872_v57 = vmul.f32 0.125, %v1821_v4  ;;  %v1880_v62 = vmul.f32 %v8245_v1, %v8245_v1 }
 0x1fa   :  { %v1776_v36 = vrot.slane %v1775_v44, 1  ;;  %v1831_v7 = vadd.f32 %v1830_v21, %v1829_v9  ;;  %v1888_v11 = vsub.f32 %v1872_v57, %v1880_v62 }
 0x1fc   :  { %v1777_v0 = vadd.f32 %v1776_v36, %v1775_v44  ;;  %v1832_v39 = vrot.slane %v1831_v7, 1 }
 0x1fe   :  { %v1833_v47 = vadd.f32 %v1832_v39, %v1831_v7  ;;  %v8255_v29 = vmul.f32 0.125, %v1777_v0 }
 0x200   :  { %v1874_v23 = vmul.f32 0.125, %v1833_v47  ;;  %v1882_v30 = vmul.f32 %v8255_v29, %v8255_v29 }
 0x214   :  { %v1622_v45 = vpop.f32.mrf.mxu0  ;;  %v1641_v28 = vpop.f32.mrf.mxu1 }
 0x215   :  { %v1642_v12 = vadd.f32 %v1641_v28, %v1622_v45  ;;  %v1896_v45 = vmax.f32 %v1888_v11, 0.0 }
 0x21b   :  { %v1660_v31 = vpop.f32.mrf.mxu2  ;;  %v1679_v61 = vpop.f32.mrf.mxu3 }
 0x21c   :  { %v1661_v43 = vadd.f32 %v1660_v31, %v1642_v12  ;;  %v1624_v56 = vpop.f32.mrf.mxu0  ;;  %v1643_v42 = vpop.f32.mrf.mxu1 }
 0x21d   :  { %v1644_v58 = vadd.f32 %v1643_v42, %v1624_v56 }
 0x21e   :  { %v8239_v53 = vadd.f32 %v1679_v61, %v1661_v43  ;;  %v8265_v61 = vadd.f32 1e-05, %v1896_v45 }
 0x220   :  { %v1784_v17 = vrot.slane %v8239_v53, 4  ;;  %v1812_v3 = vmul.f32 %v8239_v53, %v8239_v53  ;;  %6918 = vrsqrt.f32 %v8265_v61  ;;  %vm1922_vm0 = vweird.f32 %v8265_v61 }
 0x222   :  { %v1785_v35 = vadd.f32 %v1784_v17, %v8239_v53  ;;  %v1840_v37 = vrot.slane %v1812_v3, 4  ;;  %v1890_v17 = vsub.f32 %v1874_v23, %v1882_v30 }
 0x223   :  { %v1662_v54 = vpop.f32.mrf.mxu2  ;;  %v1681_v60 = vpop.f32.mrf.mxu3 }
 0x224   :  { %v1663_v19 = vadd.f32 %v1662_v54, %v1644_v58  ;;  %v1693_v48 = vpop.f32.mrf.mxu0  ;;  %v1712_v33 = vpop.f32.mrf.mxu1  ;;  %v1786_v41 = vrot.slane %v1785_v35, 2  ;;  %v1841_v27 = vadd.f32 %v1840_v37, %v1812_v3  ;;  %v1898_v7 = vmax.f32 %v1890_v17, 0.0 }
 0x225   :  { %v1713_v25 = vadd.f32 %v1712_v33, %v1693_v48 }
 0x226   :  { %v8247_v34 = vadd.f32 %v1681_v60, %v1663_v19  ;;  %v1787_v18 = vadd.f32 %v1786_v41, %v1785_v35  ;;  %v1842_v49 = vrot.slane %v1841_v27, 2 }
 0x228   :  { %v1796_v15 = vrot.slane %v8247_v34, 4  ;;  %v1814_v63 = vmul.f32 %v8247_v34, %v8247_v34  ;;  %v1788_v50 = vrot.slane %v1787_v18, 1  ;;  %v1843_v10 = vadd.f32 %v1842_v49, %v1841_v27 }
 0x22a   :  { %v1797_v14 = vadd.f32 %v1796_v15, %v8247_v34  ;;  %v1852_v2 = vrot.slane %v1814_v63, 4  ;;  %v1844_v38 = vrot.slane %v1843_v10, 1  ;;  %v1789_v12 = vadd.f32 %v1788_v50, %v1787_v18 }
 0x22b   :  { %v1731_v16 = vpop.f32.mrf.mxu2  ;;  %v1750_v46 = vpop.f32.mrf.mxu3 }
 0x22c   :  { %v1732_v20 = vadd.f32 %v1731_v16, %v1713_v25  ;;  %v1695_v26 = vpop.f32.mrf.mxu0  ;;  %v1714_v59 = vpop.f32.mrf.mxu1  ;;  %v1798_v28 = vrot.slane %v1797_v14, 2  ;;  %v1853_v13 = vadd.f32 %v1852_v2, %v1814_v63  ;;  %v1845_v3 = vadd.f32 %v1844_v38, %v1843_v10 }
 0x22d   :  { %v1715_v31 = vadd.f32 %v1714_v59, %v1695_v26  ;;  %v8267_v35 = vmul.f32 0.125, %v1789_v12  ;;  %v8280_v26 = vpop.eup %6918  ;;  %v8282_v59 = vadd.f32 1e-05, %v1898_v7  ;;  %v6718_v7 = vld [vmem:[#allocation8 + $0x68] sm:$0xff] }
 0x22e   :  { %v8257_v51 = vadd.f32 %v1750_v46, %v1732_v20  ;;  %v1799_v43 = vadd.f32 %v1798_v28, %v1797_v14  ;;  %v1854_v56 = vrot.slane %v1853_v13, 2  ;;  %v1876_v41 = vmul.f32 0.125, %v1845_v3  ;;  %v6712_v46 = vld [vmem:[#allocation8 + $0x38] sm:$0xff] }
 0x22f   :  { %v1884_v27 = vmul.f32 %v8267_v35, %v8267_v35  ;;  %v6720_v20 = vld [vmem:[#allocation8 + $0x78] sm:$0xff]  ;;  %2248 = vmatpush.bf16.msrb.mxu0 %v6712_v46  ;;  %v1917_v12 = vmul.f32 %v8280_v26, %v8265_v61  ;;  %6920 = vrsqrt.f32 %v8282_v59  ;;  %vm1923_vm10 = vweird.f32 %v8280_v26 }
 0x230   :  { %v1766_v32 = vrot.slane %v8257_v51, 4  ;;  %v1809_v5 = vmul.f32 %v8257_v51, %v8257_v51  ;;  %v1800_v54 = vrot.slane %v1799_v43, 1  ;;  %v1855_v60 = vadd.f32 %v1854_v56, %v1853_v13  ;;  %2267 = vmatpush.bf16.msrb.mxu1 %v6720_v20  ;;  %v6719_v56 = vld [vmem:[#allocation8 + $0x70] sm:$0xff]  ;;  %vm1924_vm1 = vmor %vm1922_vm0, %vm1923_vm10 }
 0x231   :  { %v1892_v50 = vsub.f32 %v1876_v41, %v1884_v27  ;;  %vm1942_vm7 = vweird.f32 %v8282_v59 }
 0x232   :  { %v1767_v22 = vadd.f32 %v1766_v32, %v8257_v51  ;;  %v1822_v52 = vrot.slane %v1809_v5, 4  ;;  %v1856_v0 = vrot.slane %v1855_v60, 1  ;;  %v1801_v49 = vadd.f32 %v1800_v54, %v1799_v43  ;;  %v6711_v43 = vld [vmem:[#allocation8 + $0x30] sm:$0xff] }
 0x233   :  { %v1733_v42 = vpop.f32.mrf.mxu2  ;;  %v1752_v55 = vpop.f32.mrf.mxu3  ;;  %2249 = vmatpush.bf16.msrb.mxu0 %v6711_v43 }
 0x234   :  { %v1768_v9 = vrot.slane %v1767_v22, 2  ;;  %v1823_v6 = vadd.f32 %v1822_v52, %v1809_v5  ;;  %v1734_v8 = vadd.f32 %v1733_v42, %v1715_v31  ;;  %v1698_v44 = vpop.f32.mrf.mxu0  ;;  %v1717_v21 = vpop.f32.mrf.mxu1  ;;  %v1857_v32 = vadd.f32 %v1856_v0, %v1855_v60  ;;  %2268 = vmatpush.bf16.msrb.mxu1 %v6719_v56 }
 0x235   :  { %v1718_v39 = vadd.f32 %v1717_v21, %v1698_v44  ;;  %v8288_v38 = vmul.f32 0.125, %v1801_v49  ;;  %v8307_v0 = vpop.eup %6920 }
 0x236   :  { %v1769_v37 = vadd.f32 %v1768_v9, %v1767_v22  ;;  %v1824_v58 = vrot.slane %v1823_v6, 2  ;;  %v8269_v4 = vadd.f32 %v1752_v55, %v1734_v8  ;;  %v1900_v9 = vmax.f32 %v1892_v50, 0.0 }
 0x237   :  { %v1878_v44 = vmul.f32 0.125, %v1857_v32  ;;  %v1886_v54 = vmul.f32 %v8288_v38, %v8288_v38  ;;  %v6716_v32 = vld [vmem:[#allocation8 + $0x58] sm:$0xff]  ;;  %vm1943_vm3 = vweird.f32 %v8307_v0 }
 0x238   :  { %v1770_v19 = vrot.slane %v1769_v37, 1  ;;  %v1825_v48 = vadd.f32 %v1824_v58, %v1823_v6  ;;  %v1778_v33 = vrot.slane %v8269_v4, 4  ;;  %v1811_v36 = vmul.f32 %v8269_v4, %v8269_v4  ;;  %2269 = vmatpush.bf16.msrb.mxu1 %v6718_v7  ;;  %vm1944_vm8 = vmor %vm1942_vm7, %vm1943_vm3 }
 0x239   :  { %v8311_v46 = vadd.f32 1e-05, %v1900_v9 }
 0x23a   :  { %v1771_v57 = vadd.f32 %v1770_v19, %v1769_v37  ;;  %v1826_v62 = vrot.slane %v1825_v48, 1  ;;  %v1779_v15 = vadd.f32 %v1778_v33, %v8269_v4  ;;  %v1834_v63 = vrot.slane %v1811_v36, 4 }
 0x23b   :  { %v1736_v18 = vpop.f32.mrf.mxu2  ;;  %v1755_v16 = vpop.f32.mrf.mxu3 }
 0x23c   :  { %v1827_v25 = vadd.f32 %v1826_v62, %v1825_v48  ;;  %v8278_v11 = vmul.f32 0.125, %v1771_v57  ;;  %v1780_v14 = vrot.slane %v1779_v15, 2  ;;  %v1835_v2 = vadd.f32 %v1834_v63, %v1811_v36  ;;  %v1700_v23 = vpop.f32.mrf.mxu0  ;;  %v1719_v30 = vpop.f32.mrf.mxu1  ;;  %v6710_v36 = vld [vmem:[#allocation8 + $0x28] sm:$0xff] }
 0x23d   :  { %v1737_v47 = vadd.f32 %v1736_v18, %v1718_v39  ;;  %v1720_v3 = vadd.f32 %v1719_v30, %v1700_v23  ;;  %v1918_v57 = vmul.f32 %v8280_v26, %v1917_v12  ;;  %2250 = vmatpush.bf16.msrb.mxu0 %v6710_v36 }
 0x23e   :  { %v1873_v10 = vmul.f32 0.125, %v1827_v25  ;;  %v1881_v45 = vmul.f32 %v8278_v11, %v8278_v11  ;;  %v1781_v28 = vadd.f32 %v1780_v14, %v1779_v15  ;;  %v1836_v13 = vrot.slane %v1835_v2, 2  ;;  %v6709_v14 = vld [vmem:[#allocation8 + $0x20] sm:$0xff] }
 0x23f   :  { %v8286_v5 = vadd.f32 %v1755_v16, %v1737_v47  ;;  %v1894_v16 = vsub.f32 %v1878_v44, %v1886_v54 }
 0x240   :  { %v1889_v22 = vsub.f32 %v1873_v10, %v1881_v45  ;;  %v1782_v52 = vrot.slane %v1781_v28, 1  ;;  %v1837_v31 = vadd.f32 %v1836_v13, %v1835_v2  ;;  %v6717_v2 = vld [vmem:[#allocation8 + $0x60] sm:$0xff]  ;;  %v1919_v45 = vmul.f32 0.5, %v1918_v57  ;;  %v6708_v13 = vld [vmem:[#allocation8 + $0x18] sm:$0xff] }
 0x241   :  { %v1790_v42 = vrot.slane %v8286_v5, 4  ;;  %v1813_v55 = vmul.f32 %v8286_v5, %v8286_v5  ;;  %2251 = vmatpush.bf16.msrb.mxu0 %v6709_v14  ;;  %2270 = vmatpush.bf16.msrb.mxu1 %v6717_v2  ;;  %v1902_v56 = vmax.f32 %v1894_v16, 0.0 }
 0x242   :  { %v1897_v6 = vmax.f32 %v1889_v22, 0.0  ;;  %v1783_v8 = vadd.f32 %v1782_v52, %v1781_v28  ;;  %v1838_v17 = vrot.slane %v1837_v31, 1  ;;  %v1920_v44 = vsub.f32 1.5, %v1919_v45 }
 0x243   :  { %v1791_v21 = vadd.f32 %v1790_v42, %v8286_v5  ;;  %v1846_v37 = vrot.slane %v1813_v55, 4  ;;  %v1738_v58 = vpop.f32.mrf.mxu2  ;;  %v1757_v63 = vpop.f32.mrf.mxu3  ;;  %v8329_v36 = vadd.f32 1e-05, %v1902_v56 }
 0x244   :  { %v8299_v60 = vadd.f32 1e-05, %v1897_v6  ;;  %v1839_v19 = vadd.f32 %v1838_v17, %v1837_v31  ;;  %v8301_v48 = vmul.f32 0.125, %v1783_v8  ;;  %v1739_v33 = vadd.f32 %v1738_v58, %v1720_v3  ;;  %v6707_v17 = vld [vmem:[#allocation8 + $0x10] sm:$0xff] }
 0x245   :  { %v1792_v41 = vrot.slane %v1791_v21, 2  ;;  %v1847_v27 = vadd.f32 %v1846_v37, %v1813_v55  ;;  %v1937_v31 = vmul.f32 %v8307_v0, %v8282_v59  ;;  %2252 = vmatpush.bf16.msrb.mxu0 %v6708_v13  ;;  %2271 = vmatpush.bf16.msrb.mxu1 %v6716_v32  ;;  %v6715_v3 = vld [vmem:[#allocation8 + $0x50] sm:$0xff]  ;;  %v6705_v13 = vld [vmem:[#allocation8] sm:$0xff] }
 0x246   :  { %6922 = vrsqrt.f32 %v8299_v60  ;;  %v1875_v62 = vmul.f32 0.125, %v1839_v19  ;;  %v1883_v15 = vmul.f32 %v8301_v48, %v8301_v48  ;;  %v8309_v49 = vadd.f32 %v1757_v63, %v1739_v33  ;;  %v6713_v32 = vld [vmem:[#allocation8 + $0x40] sm:$0xff] }
 0x247   :  { %v1793_v39 = vadd.f32 %v1792_v41, %v1791_v21  ;;  %v1848_v18 = vrot.slane %v1847_v27, 2  ;;  %6924 = vrsqrt.f32 %v8311_v46  ;;  %v1938_v54 = vmul.f32 %v8307_v0, %v1937_v31 }
 0x248   :  { %v1891_v25 = vsub.f32 %v1875_v62, %v1883_v15  ;;  %v1802_v50 = vrot.slane %v8309_v49, 4  ;;  %v1815_v10 = vmul.f32 %v8309_v49, %v8309_v49  ;;  %v6706_v62 = vld [vmem:[#allocation8 + $0x8] sm:$0xff]  ;;  %vm1932_vm12 = vweird.f32 %v8299_v60 }
 0x249   :  { %v1794_v20 = vrot.slane %v1793_v39, 1  ;;  %v1849_v47 = vadd.f32 %v1848_v18, %v1847_v27  ;;  %2253 = vmatpush.bf16.msrb.mxu0 %v6707_v17  ;;  %2272 = vmatpush.bf16.msrb.mxu1 %v6715_v3  ;;  %v6714_v15 = vld [vmem:[#allocation8 + $0x48] sm:$0xff]  ;;  %v1939_v2 = vmul.f32 0.5, %v1938_v54 }
 0x24a   :  { %v1899_v28 = vmax.f32 %v1891_v25, 0.0  ;;  %v1803_v12 = vadd.f32 %v1802_v50, %v8309_v49  ;;  %v1858_v22 = vrot.slane %v1815_v10, 4 }
 0x24b   :  { %v1795_v23 = vadd.f32 %v1794_v20, %v1793_v39  ;;  %v1850_v30 = vrot.slane %v1849_v47, 1  ;;  %v1921_v39 = vmul.f32 %v8280_v26, %v1920_v44  ;;  %v1940_v31 = vsub.f32 1.5, %v1939_v2 }
 0x24c   :  { %v6923_v52 = vpop.eup %6922  ;;  %v8319_v43 = vadd.f32 1e-05, %v1899_v28  ;;  %v1804_v6 = vrot.slane %v1803_v12, 2  ;;  %v1859_v8 = vadd.f32 %v1858_v22, %v1815_v10 }
 0x24d   :  { %v1927_v42 = vmul.f32 %v6923_v52, %v8299_v60  ;;  %v1851_v55 = vadd.f32 %v1850_v30, %v1849_v47  ;;  %v8322_v9 = vmul.f32 0.125, %v1795_v23  ;;  %v8332_v63 = vpop.eup %6924  ;;  %vm1933_vm11 = vweird.f32 %v6923_v52  ;;  %2254 = vmatpush.bf16.msrb.mxu0 %v6706_v62  ;;  %2273 = vmatpush.bf16.msrb.mxu1 %v6714_v15  ;;  %v8346_v60 = vld [vmem:[#allocation20 + $0x10] ss:$4 sm:$0x3] }
 0x24e   :  { %6926 = vrsqrt.f32 %v8319_v43  ;;  %v1805_v19 = vadd.f32 %v1804_v6, %v1803_v12  ;;  %v1860_v33 = vrot.slane %v1859_v8, 2  ;;  %vm1934_vm15 = vmor %vm1932_vm12, %vm1933_vm11  ;;  %v1957_v23 = vmul.f32 %v8332_v63, %v8311_v46 }
 0x24f   :  { %v1928_v21 = vmul.f32 %v6923_v52, %v1927_v42  ;;  %v1877_v37 = vmul.f32 0.125, %v1851_v55  ;;  %v1885_v58 = vmul.f32 %v8322_v9, %v8322_v9  ;;  %6928 = vrsqrt.f32 %v8329_v36 }
 0x250   :  { %v1806_v27 = vrot.slane %v1805_v19, 1  ;;  %v1861_v57 = vadd.f32 %v1860_v33, %v1859_v8  ;;  %v1925_v55 = vsel %vm1924_vm1, %v8280_v26, %v1921_v39  ;;  %v1958_v17 = vmul.f32 %v8332_v63, %v1957_v23 }
 0x251   :  { %v1929_v7 = vmul.f32 0.5, %v1928_v21  ;;  %v1893_v41 = vsub.f32 %v1877_v37, %v1885_v58  ;;  %2255 = vmatpush.bf16.msrb.mxu0 %v6705_v13  ;;  %2274 = vmatpush.bf16.msrb.mxu1 %v6713_v32  ;;  %v1941_v21 = vmul.f32 %v8307_v0, %v1940_v31  ;;  %vm1952_vm4 = vweird.f32 %v8319_v43 }
 0x252   :  { %v1807_v16 = vadd.f32 %v1806_v27, %v1805_v19  ;;  %v1862_v20 = vrot.slane %v1861_v57, 1  ;;  %vm1963_vm10 = vweird.f32 %v8332_v63 }
 0x253   :  { %v1930_v18 = vsub.f32 1.5, %v1929_v7  ;;  %v1901_v25 = vmax.f32 %v1893_v41, 0.0  ;;  %v1959_v41 = vmul.f32 0.5, %v1958_v17 }
 0x254   :  { %v6927_v14 = vpop.eup %6926  ;;  %v1863_v45 = vadd.f32 %v1862_v20, %v1861_v57  ;;  %v8340_v28 = vmul.f32 0.125, %v1807_v16 }
 0x255   :  { %v1931_v47 = vmul.f32 %v6923_v52, %v1930_v18  ;;  %v1947_v50 = vmul.f32 %v6927_v14, %v8319_v43  ;;  %v8338_v10 = vadd.f32 1e-05, %v1901_v25  ;;  %v8353_v8 = vpop.eup %6928  ;;  %vm1953_vm2 = vweird.f32 %v6927_v14  ;;  %v8372_v25 = vld [vmem:[#allocation20 + $0x11] ss:$4 sm:$0x3] }
 0x256   :  { %v1879_v56 = vmul.f32 0.125, %v1863_v45  ;;  %v1887_v42 = vmul.f32 %v8340_v28, %v8340_v28  ;;  %vm1954_vm6 = vmor %vm1952_vm4, %vm1953_vm2  ;;  %v1977_v27 = vmul.f32 %v8353_v8, %v8329_v36  ;;  %v1945_v18 = vsel %vm1944_vm8, %v8307_v0, %v1941_v21 }
 0x257   :  { %v1935_v30 = vsel %vm1934_vm15, %v6923_v52, %v1931_v47  ;;  %v1948_v12 = vmul.f32 %v6927_v14, %v1947_v50  ;;  %6930 = vrsqrt.f32 %v8338_v10  ;;  %vm1972_vm11 = vweird.f32 %v8338_v10 }
 0x258   :  { %v2004_v22 = vrot.slane %v1935_v30, 7  ;;  %v1895_v52 = vsub.f32 %v1879_v56, %v1887_v42  ;;  %v1978_v59 = vmul.f32 %v8353_v8, %v1977_v27  ;;  %vm1962_vm15 = vweird.f32 %v8311_v46 }
 0x259   :  { %v1949_v6 = vmul.f32 0.5, %v1948_v12  ;;  %vm1964_vm0 = vmor %vm1962_vm15, %vm1963_vm10  ;;  %vm1983_vm2 = vweird.f32 %v8353_v8  ;;  %vm1982_vm4 = vweird.f32 %v8329_v36 }
 0x25a   :  { %v2008_v61 = vsel %vm1009_vm5, %v1925_v55, %v2004_v22  ;;  %v1903_v37 = vmax.f32 %v1895_v52, 0.0  ;;  %v1979_v30 = vmul.f32 0.5, %v1978_v59  ;;  %vm1984_vm7 = vmor %vm1982_vm4, %vm1983_vm2 }
 0x25b   :  { %v2016_v3 = vmul.f32 %v2008_v61, %v8346_v60  ;;  %v1950_v44 = vsub.f32 1.5, %v1949_v6 }
 0x25c   :  { %v8362_v7 = vadd.f32 1e-05, %v1903_v37  ;;  %v1980_v17 = vsub.f32 1.5, %v1979_v30 }
 0x25d   :  { %v6931_v26 = vpop.eup %6930  ;;  %v2025_v58 = vperm.slane %v2016_v3, 1  ;;  %v1951_v54 = vmul.f32 %v6927_v14, %v1950_v44  ;;  %v2024_v19 = vperm.slane %v2016_v3, 0 }
 0x25e   :  { %v1967_v33 = vmul.f32 %v6931_v26, %v8338_v10  ;;  %6932 = vrsqrt.f32 %v8362_v7  ;;  %vm1973_vm9 = vweird.f32 %v6931_v26  ;;  %vm1992_vm3 = vweird.f32 %v8362_v7 }
 0x25f   :  { %v2041_v57 = vmul.f32 %v2025_v58, %v8278_v11  ;;  %v1955_v62 = vsel %vm1954_vm6, %v6927_v14, %v1951_v54  ;;  %v2040_v2 = vmul.f32 %v2024_v19, %v8245_v1  ;;  %v1960_v11 = vsub.f32 1.5, %v1959_v41  ;;  %vm1974_vm12 = vmor %vm1972_vm11, %vm1973_vm9 }
 0x260   :  { %v2005_v15 = vrot.slane %v1955_v62, 7  ;;  %v1968_v43 = vmul.f32 %v6931_v26, %v1967_v33  ;;  %v2073_v10 = vmul.f32 %v2025_v58, %v8257_v51  ;;  %v2072_v44 = vmul.f32 %v2024_v19, %v8227_v40 }
 0x261   :  { %v2056_v39 = vrot.slane %v2041_v57, 7  ;;  %v1961_v1 = vmul.f32 %v8332_v63, %v1960_v11  ;;  %v1981_v40 = vmul.f32 %v8353_v8, %v1980_v17 }
 0x262   :  { %v2009_v16 = vsel %vm1009_vm5, %v1945_v18, %v2005_v15  ;;  %v1969_v20 = vmul.f32 0.5, %v1968_v43 }
 0x263   :  { %v2017_v14 = vmul.f32 %v2009_v16, %v8346_v60  ;;  %v2060_v47 = vsel %vm1009_vm5, %v2040_v2, %v2056_v39  ;;  %v1985_v59 = vsel %vm1984_vm7, %v8353_v8, %v1981_v40 }
 0x264   :  { %v2068_v50 = vsub.f32 %v8372_v25, %v2060_v47  ;;  %v1970_v45 = vsub.f32 1.5, %v1969_v20  ;;  %v6933_v32 = vpop.eup %6932 }
 0x265   :  { %v2027_v13 = vperm.slane %v2017_v14, 1  ;;  %v2026_v0 = vperm.slane %v2017_v14, 0  ;;  %v1987_v22 = vmul.f32 %v6933_v32, %v8362_v7  ;;  %vm1993_vm1 = vweird.f32 %v6933_v32 }
 0x266   :  { %v1971_v23 = vmul.f32 %v6931_v26, %v1970_v45  ;;  %v2084_v31 = vperm.slane %v2068_v50, 0  ;;  %v2085_v56 = vperm.slane %v2068_v50, 1  ;;  %vm1994_vm6 = vmor %vm1992_vm3, %vm1993_vm1 }
 0x267   :  { %v2043_v12 = vmul.f32 %v2027_v13, %v8301_v48  ;;  %v2042_v6 = vmul.f32 %v2026_v0, %v8255_v29  ;;  %v1988_v61 = vmul.f32 %v6933_v32, %v1987_v22  ;;  %v1965_v48 = vsel %vm1964_vm0, %v8332_v63, %v1961_v1 }
 0x268   :  { %v1975_v42 = vsel %vm1974_vm12, %v6931_v26, %v1971_v23  ;;  %v2075_v37 = vmul.f32 %v2027_v13, %v8269_v4  ;;  %v2074_v26 = vmul.f32 %v2026_v0, %v8233_v24  ;;  %v2100_v33 = vadd.f32 %v2084_v31, %v2072_v44 }
 0x269   :  { %v2057_v55 = vrot.slane %v2043_v12, 7  ;;  %v2006_v52 = vrot.slane %v1975_v42, 7  ;;  %v1989_v21 = vmul.f32 0.5, %v1988_v61  ;;  %v2101_v51 = vadd.f32 %v2085_v56, %v2073_v10 }
 0x26a   :  { %v2108_v15 = vmax.f32 %v2100_v33, 0.0 }
 0x26b   :  { %v2061_v3 = vsel %vm1009_vm5, %v2042_v6, %v2057_v55  ;;  %v2010_v46 = vsel %vm1009_vm5, %v1965_v48, %v2006_v52  ;;  %v1990_v58 = vsub.f32 1.5, %v1989_v21  ;;  %v2109_v43 = vmax.f32 %v2101_v51, 0.0  ;;  %v6736_v51 = vld [vmem:[#allocation10 + $0x74] sm:$0xf0] }
 0x26c   :  { %v2069_v29 = vsub.f32 %v8372_v25, %v2061_v3  ;;  %v2018_v54 = vmul.f32 %v2010_v46, %v8346_v60  ;;  %v6735_v46 = vld [vmem:[#allocation10 + $0x74] sm:$0xf] }
 0x26d   :  { %v1991_v19 = vmul.f32 %v6933_v32, %v1990_v58 }
 0x26e   :  { %v2086_v63 = vperm.slane %v2069_v29, 0  ;;  %v2087_v41 = vperm.slane %v2069_v29, 1  ;;  %v2028_v27 = vperm.slane %v2018_v54, 0  ;;  %v2029_v57 = vperm.slane %v2018_v54, 1  ;;  %v6085_v29 = vld [vmem:[#allocation10 + $0x70] sm:$0xf] }
 0x26f   :  { %v1995_v39 = vsel %vm1994_vm6, %v6933_v32, %v1991_v19  ;;  %v6733_v19 = vld [vmem:[#allocation10 + $0x64] sm:$0xf] }
 0x270   :  { %v2102_v4 = vadd.f32 %v2086_v63, %v2074_v26  ;;  %v2103_v62 = vadd.f32 %v2087_v41, %v2075_v37  ;;  %v2045_v24 = vmul.f32 %v2029_v57, %v8322_v9  ;;  %v2044_v18 = vmul.f32 %v2028_v27, %v8267_v35  ;;  %v6087_v37 = vld [vmem:[#allocation10 + $0x78] sm:$0xf0] }
 0x271   :  { %v2007_v11 = vrot.slane %v1995_v39, 7  ;;  %v2076_v30 = vmul.f32 %v2028_v27, %v8239_v53  ;;  %v6090_v33 = vor.u32 %v6735_v46, %v6087_v37  ;;  %v6086_v41 = vor.u32 %v6736_v51, %v6085_v29  ;;  %v6728_v29 = vld [vmem:[#allocation10 + $0x34] sm:$0xf0]  ;;  %v6725_v51 = vld [vmem:[#allocation10 + $0x24] sm:$0xf] }
 0x272   :  { %v2110_v2 = vmax.f32 %v2102_v4, 0.0  ;;  %v2111_v16 = vmax.f32 %v2103_v62, 0.0  ;;  %v2058_v20 = vrot.slane %v2045_v24, 7  ;;  %v6079_v4 = vld [vmem:[#allocation10 + $0x68] sm:$0xf0] }
 0x273   :  { %v2011_v47 = vsel %vm1009_vm5, %v1985_v59, %v2007_v11  ;;  %2553 = vmatpush.bf16.msrb.mxu3 %v6090_v33  ;;  %2534 = vmatpush.bf16.msrb.mxu2 %v6086_v41  ;;  %v6077_v62 = vld [vmem:[#allocation10 + $0x60] sm:$0xf] }
 0x274   :  { %v2116_v7 = vpack.c.bf16 %v2110_v2, %v2108_v15  ;;  %v2117_v14 = vpack.c.bf16 %v2111_v16, %v2109_v43  ;;  %v2062_v36 = vsel %vm1009_vm5, %v2044_v18, %v2058_v20  ;;  %v2019_v9 = vmul.f32 %v2011_v47, %v8346_v60  ;;  %v6734_v18 = vld [vmem:[#allocation10 + $0x64] sm:$0xf0]  ;;  %v6071_v47 = vld [vmem:[#allocation10 + $0x58] sm:$0xf0] }
 0x275   :  { %v2070_v35 = vsub.f32 %v8372_v25, %v2062_v36  ;;  %v2077_v60 = vmul.f32 %v2029_v57, %v8286_v5  ;;  %v6082_v2 = vor.u32 %v6733_v19, %v6079_v4  ;;  %v6078_v16 = vor.u32 %v6734_v18, %v6077_v62  ;;  %v6069_v36 = vld [vmem:[#allocation10 + $0x50] sm:$0xf] }
 0x276   :  { %2256 = vmatmul.bf16.vlgmr.msrb.gmra.mxu0 %v2116_v7  ;;  %2275 = vmatmul.bf16.vlgmr.msrb.gmra.mxu1 %v2117_v14  ;;  %v2030_v50 = vperm.slane %v2019_v9, 0  ;;  %v2031_v45 = vperm.slane %v2019_v9, 1  ;;  %v6731_v14 = vld [vmem:[#allocation10 + $0x54] sm:$0xf] }
 0x277   :  { %v2088_v8 = vperm.slane %v2070_v35, 0  ;;  %v2089_v1 = vperm.slane %v2070_v35, 1  ;;  %2554 = vmatpush.bf16.msrb.mxu3 %v6082_v2  ;;  %2535 = vmatpush.bf16.msrb.mxu2 %v6078_v16  ;;  %v6039_v16 = vld [vmem:[#allocation10 + $0x18] sm:$0xf0] }
 0x278   :  { %v2047_v13 = vmul.f32 %v2031_v45, %v8340_v28  ;;  %v2046_v0 = vmul.f32 %v2030_v50, %v8288_v38  ;;  %v2078_v22 = vmul.f32 %v2030_v50, %v8247_v34  ;;  %v2079_v42 = vmul.f32 %v2031_v45, %v8309_v49 }
 0x279   :  { %v2104_v31 = vadd.f32 %v2088_v8, %v2076_v30  ;;  %v2105_v55 = vadd.f32 %v2089_v1, %v2077_v60 }
 0x27a   :  { %v2059_v32 = vrot.slane %v2047_v13, 7  ;;  %v6732_v13 = vld [vmem:[#allocation10 + $0x54] sm:$0xf0] }
 0x27b   :  { %v2112_v61 = vmax.f32 %v2104_v31, 0.0  ;;  %v2113_v10 = vmax.f32 %v2105_v55, 0.0  ;;  %v6063_v31 = vld [vmem:[#allocation10 + $0x48] sm:$0xf0] }
 0x27c   :  { %v2063_v23 = vsel %vm1009_vm5, %v2046_v0, %v2059_v32  ;;  %v6074_v0 = vor.u32 %v6731_v14, %v6071_v47  ;;  %v6070_v32 = vor.u32 %v6732_v13, %v6069_v36 }
 0x27d   :  { %v2071_v12 = vsub.f32 %v8372_v25, %v2063_v23 }
 0x27e   :  { %2555 = vmatpush.bf16.msrb.mxu3 %v6074_v0  ;;  %2536 = vmatpush.bf16.msrb.mxu2 %v6070_v32  ;;  %v6031_v32 = vld [vmem:[#allocation10 + $0x8] sm:$0xf0] }
 0x27f   :  { %v2090_v56 = vperm.slane %v2071_v12, 0  ;;  %v2091_v28 = vperm.slane %v2071_v12, 1 }
 0x281   :  { %v2106_v38 = vadd.f32 %v2090_v56, %v2078_v22  ;;  %v2107_v6 = vadd.f32 %v2091_v28, %v2079_v42  ;;  %v6729_v22 = vld [vmem:[#allocation10 + $0x44] sm:$0xf]  ;;  %v6061_v56 = vld [vmem:[#allocation10 + $0x40] sm:$0xf] }
 0x283   :  { %v2114_v52 = vmax.f32 %v2106_v38, 0.0  ;;  %v2115_v48 = vmax.f32 %v2107_v6, 0.0  ;;  %v6730_v6 = vld [vmem:[#allocation10 + $0x44] sm:$0xf0] }
 0x285   :  { %v2118_v17 = vpack.c.bf16 %v2114_v52, %v2112_v61  ;;  %v2119_v53 = vpack.c.bf16 %v2115_v48, %v2113_v10  ;;  %v6066_v61 = vor.u32 %v6729_v22, %v6063_v31  ;;  %v6062_v52 = vor.u32 %v6730_v6, %v6061_v56 }
 0x287   :  { %2261 = vmatmul.bf16.gmra.mxu0 %v2118_v17  ;;  %2280 = vmatmul.bf16.gmra.mxu1 %v2119_v53 }
 0x288   :  { %2556 = vmatpush.bf16.msrb.mxu3 %v6066_v61  ;;  %2537 = vmatpush.bf16.msrb.mxu2 %v6062_v52 }
 0x2f3   :  { %v2257_v25 = vpop.f32.mrf.mxu0  ;;  %v2276_v5 = vpop.f32.mrf.mxu1 }
 0x2f4   :  { %v8417_v3 = vadd.f32 %v2276_v5, %v2257_v25  ;;  %v6727_v5 = vld [vmem:[#allocation10 + $0x34] sm:$0xf] }
 0x2f6   :  { %v2286_v34 = vrot.slane %v8417_v3, 4  ;;  %v2310_v49 = vmul.f32 %v8417_v3, %v8417_v3 }
 0x2f8   :  { %v2287_v44 = vadd.f32 %v2286_v34, %v8417_v3  ;;  %v2314_v21 = vrot.slane %v2310_v49, 4  ;;  %v6055_v34 = vld [vmem:[#allocation10 + $0x38] sm:$0xf0] }
 0x2fa   :  { %v2288_v26 = vrot.slane %v2287_v44, 2  ;;  %v2315_v54 = vadd.f32 %v2314_v21, %v2310_v49  ;;  %v6053_v49 = vld [vmem:[#allocation10 + $0x30] sm:$0xf] }
 0x2fb   :  { %v2259_v58 = vpop.f32.mrf.mxu0  ;;  %v2278_v63 = vpop.f32.mrf.mxu1  ;;  %v6054_v33 = vor.u32 %v6728_v29, %v6053_v49 }
 0x2fc   :  { %v2289_v27 = vadd.f32 %v2288_v26, %v2287_v44  ;;  %v2316_v57 = vrot.slane %v2315_v54, 2  ;;  %v8423_v40 = vadd.f32 %v2278_v63, %v2259_v58  ;;  %v6047_v58 = vld [vmem:[#allocation10 + $0x28] sm:$0xf0] }
 0x2fd   :  { %2538 = vmatpush.bf16.msrb.mxu2 %v6054_v33  ;;  %v8457_v33 = vld [vmem:[#allocation20 + $0x18] sm:$0x1] }
 0x2fe   :  { %v2290_v24 = vrot.slane %v2289_v27, 1  ;;  %v2317_v15 = vadd.f32 %v2316_v57, %v2315_v54  ;;  %v2292_v43 = vrot.slane %v8423_v40, 4  ;;  %v2311_v39 = vmul.f32 %v8423_v40, %v8423_v40  ;;  %v6726_v57 = vld [vmem:[#allocation10 + $0x24] sm:$0xf0] }
 0x2ff   :  { %v6058_v54 = vor.u32 %v6727_v5, %v6055_v34 }
 0x300   :  { %v2291_v11 = vadd.f32 %v2290_v24, %v2289_v27  ;;  %v2318_v20 = vrot.slane %v2317_v15, 1  ;;  %v2293_v59 = vadd.f32 %v2292_v43, %v8423_v40  ;;  %v2320_v7 = vrot.slane %v2311_v39, 4  ;;  %v6045_v27 = vld [vmem:[#allocation10 + $0x20] sm:$0xf] }
 0x301   :  { %2557 = vmatpush.bf16.msrb.mxu3 %v6058_v54  ;;  %v6046_v43 = vor.u32 %v6726_v57, %v6045_v27 }
 0x302   :  { %v2319_v9 = vadd.f32 %v2318_v20, %v2317_v15  ;;  %v8429_v50 = vmul.f32 0.125, %v2291_v11  ;;  %v2294_v45 = vrot.slane %v2293_v59, 2  ;;  %v2321_v35 = vadd.f32 %v2320_v7, %v2311_v39  ;;  %v6723_v39 = vld [vmem:[#allocation10 + $0x14] sm:$0xf]  ;;  %v6037_v11 = vld [vmem:[#allocation10 + $0x10] sm:$0xf] }
 0x303   :  { %v6050_v15 = vor.u32 %v6725_v51, %v6047_v58  ;;  %v6724_v20 = vld [vmem:[#allocation10 + $0x14] sm:$0xf0]  ;;  %2539 = vmatpush.bf16.msrb.mxu2 %v6046_v43  ;;  %v6042_v13 = vor.u32 %v6723_v39, %v6039_v16 }
 0x304   :  { %v2342_v8 = vmul.f32 0.125, %v2319_v9  ;;  %v2346_v1 = vmul.f32 %v8429_v50, %v8429_v50  ;;  %v2295_v23 = vadd.f32 %v2294_v45, %v2293_v59  ;;  %v2322_v30 = vrot.slane %v2321_v35, 2  ;;  %v2262_v12 = vpop.f32.mrf.mxu0  ;;  %v2281_v60 = vpop.f32.mrf.mxu1  ;;  %v6721_v9 = vld [vmem:[#allocation10 + $0x4] sm:$0xf]  ;;  %v2359_v39 = vld [vmem:[#allocation20 + $0x19] sm:$0x1] }
 0x305   :  { %v8433_v38 = vadd.f32 %v2281_v60, %v2262_v12  ;;  %2558 = vmatpush.bf16.msrb.mxu3 %v6050_v15  ;;  %v6038_v0 = vor.u32 %v6724_v20, %v6037_v11  ;;  %v6722_v60 = vld [vmem:[#allocation10 + $0x4] sm:$0xf0] }
 0x306   :  { %v2350_v42 = vsub.f32 %v2342_v8, %v2346_v1  ;;  %v2296_v28 = vrot.slane %v2295_v23, 1  ;;  %v2323_v55 = vadd.f32 %v2322_v30, %v2321_v35  ;;  %v6029_v8 = vld [vmem:[#allocation10] sm:$0xf] }
 0x307   :  { %v2298_v53 = vrot.slane %v8433_v38, 4  ;;  %v2312_v25 = vmul.f32 %v8433_v38, %v8433_v38  ;;  %2540 = vmatpush.bf16.msrb.mxu2 %v6038_v0  ;;  %v6030_v52 = vor.u32 %v6722_v60, %v6029_v8 }
 0x308   :  { %v2354_v10 = vmax.f32 %v2350_v42, 0.0  ;;  %v2297_v48 = vadd.f32 %v2296_v28, %v2295_v23  ;;  %v2324_v17 = vrot.slane %v2323_v55, 1 }
 0x309   :  { %v2299_v37 = vadd.f32 %v2298_v53, %v8433_v38  ;;  %v2326_v26 = vrot.slane %v2312_v25, 4  ;;  %2559 = vmatpush.bf16.msrb.mxu3 %v6042_v13 }
 0x30a   :  { %v8438_v44 = vadd.f32 1e-05, %v2354_v10  ;;  %v2325_v21 = vadd.f32 %v2324_v17, %v2323_v55  ;;  %v8440_v46 = vmul.f32 0.125, %v2297_v48  ;;  %v6034_v55 = vor.u32 %v6721_v9, %v6031_v32 }
 0x30b   :  { %v2300_v19 = vrot.slane %v2299_v37, 2  ;;  %v2327_v4 = vadd.f32 %v2326_v26, %v2312_v25  ;;  %2541 = vmatpush.bf16.msrb.mxu2 %v6030_v52 }
 0x30c   :  { %6934 = vrsqrt.f32 %v8438_v44  ;;  %v2343_v63 = vmul.f32 0.125, %v2325_v21  ;;  %v2347_v41 = vmul.f32 %v8440_v46, %v8440_v46  ;;  %v2264_v62 = vpop.f32.mrf.mxu0  ;;  %v2283_v24 = vpop.f32.mrf.mxu1  ;;  %vm2370_vm9 = vweird.f32 %v8438_v44 }
 0x30d   :  { %v8446_v2 = vadd.f32 %v2283_v24, %v2264_v62  ;;  %v2301_v59 = vadd.f32 %v2300_v19, %v2299_v37  ;;  %v2328_v7 = vrot.slane %v2327_v4, 2  ;;  %2560 = vmatpush.bf16.msrb.mxu3 %v6034_v55 }
 0x30e   :  { %v2351_v18 = vsub.f32 %v2343_v63, %v2347_v41 }
 0x30f   :  { %v2304_v47 = vrot.slane %v8446_v2, 4  ;;  %v2313_v36 = vmul.f32 %v8446_v2, %v8446_v2  ;;  %v2302_v45 = vrot.slane %v2301_v59, 1  ;;  %v2329_v35 = vadd.f32 %v2328_v7, %v2327_v4 }
 0x310   :  { %v2355_v14 = vmax.f32 %v2351_v18, 0.0 }
 0x311   :  { %v2305_v30 = vadd.f32 %v2304_v47, %v8446_v2  ;;  %v2332_v12 = vrot.slane %v2313_v36, 4  ;;  %v2303_v31 = vadd.f32 %v2302_v45, %v2301_v59  ;;  %v2330_v56 = vrot.slane %v2329_v35, 1 }
 0x312   :  { %v6935_v1 = vpop.eup %6934  ;;  %v2361_v23 = vadd.f32 1e-05, %v2355_v14 }
 0x313   :  { %v2365_v22 = vmul.f32 %v6935_v1, %v8438_v44  ;;  %v2306_v42 = vrot.slane %v2305_v30, 2  ;;  %v2333_v28 = vadd.f32 %v2332_v12, %v2313_v36  ;;  %v2331_v61 = vadd.f32 %v2330_v56, %v2329_v35 }
 0x314   :  { %6936 = vrsqrt.f32 %v2361_v23  ;;  %v8453_v10 = vmul.f32 0.125, %v2303_v31  ;;  %vm2371_vm8 = vweird.f32 %v6935_v1  ;;  %vm2380_vm12 = vweird.f32 %v2361_v23 }
 0x315   :  { %v2366_v6 = vmul.f32 %v6935_v1, %v2365_v22  ;;  %v2307_v48 = vadd.f32 %v2306_v42, %v2305_v30  ;;  %v2334_v17 = vrot.slane %v2333_v28, 2  ;;  %v2344_v25 = vmul.f32 0.125, %v2331_v61  ;;  %vm2372_vm10 = vmor %vm2370_vm9, %vm2371_vm8 }
 0x316   :  { %v2348_v5 = vmul.f32 %v8453_v10, %v8453_v10 }
 0x317   :  { %v2367_v53 = vmul.f32 0.5, %v2366_v6  ;;  %v2308_v34 = vrot.slane %v2307_v48, 1  ;;  %v2335_v49 = vadd.f32 %v2334_v17, %v2333_v28 }
 0x318   :  { %v2352_v37 = vsub.f32 %v2344_v25, %v2348_v5 }
 0x319   :  { %v2368_v21 = vsub.f32 1.5, %v2367_v53  ;;  %v2309_v26 = vadd.f32 %v2308_v34, %v2307_v48  ;;  %v2336_v54 = vrot.slane %v2335_v49, 1 }
 0x31a   :  { %v6937_v29 = vpop.eup %6936  ;;  %v2356_v63 = vmax.f32 %v2352_v37, 0.0 }
 0x31b   :  { %v2369_v51 = vmul.f32 %v6935_v1, %v2368_v21  ;;  %v2375_v58 = vmul.f32 %v6937_v29, %v2361_v23  ;;  %v2337_v41 = vadd.f32 %v2336_v54, %v2335_v49  ;;  %v8460_v27 = vmul.f32 0.125, %v2309_v26 }
 0x31c   :  { %v2362_v4 = vadd.f32 1e-05, %v2356_v63  ;;  %vm2381_vm11 = vweird.f32 %v6937_v29 }
 0x31d   :  { %v2373_v57 = vsel %vm2372_vm10, %v6935_v1, %v2369_v51  ;;  %v2376_v19 = vmul.f32 %v6937_v29, %v2375_v58  ;;  %v2345_v24 = vmul.f32 0.125, %v2337_v41  ;;  %v2349_v15 = vmul.f32 %v8460_v27, %v8460_v27  ;;  %vm2382_vm15 = vmor %vm2380_vm12, %vm2381_vm11 }
 0x31e   :  { %v2404_v62 = vmul.f32 %v2373_v57, %v8457_v33  ;;  %6938 = vrsqrt.f32 %v2362_v4  ;;  %vm2390_vm1 = vweird.f32 %v2362_v4 }
 0x31f   :  { %v2377_v43 = vmul.f32 0.5, %v2376_v19  ;;  %v2353_v18 = vsub.f32 %v2345_v24, %v2349_v15 }
 0x320   :  { %v2408_v44 = vmul.f32 %v2404_v62, %v8429_v50  ;;  %v2416_v47 = vperm.slane %v2404_v62, 0 }
 0x321   :  { %v2378_v16 = vsub.f32 1.5, %v2377_v43  ;;  %v2357_v11 = vmax.f32 %v2353_v18, 0.0 }
 0x322   :  { %v2412_v59 = vsub.f32 %v2359_v39, %v2408_v44  ;;  %v2420_v32 = vmul.f32 %v2416_v47, %v8417_v3 }
 0x323   :  { %v2379_v20 = vmul.f32 %v6937_v29, %v2378_v16  ;;  %v2363_v7 = vadd.f32 1e-05, %v2357_v11 }
 0x324   :  { %v6939_v14 = vpop.eup %6938  ;;  %v2424_v35 = vperm.slane %v2412_v59, 0 }
 0x325   :  { %v2383_v36 = vsel %vm2382_vm15, %v6937_v29, %v2379_v20  ;;  %v2385_v45 = vmul.f32 %v6939_v14, %v2362_v4  ;;  %6940 = vrsqrt.f32 %v2363_v7  ;;  %vm2391_vm0 = vweird.f32 %v6939_v14 }
 0x326   :  { %v2405_v9 = vmul.f32 %v2383_v36, %v8457_v33  ;;  %v2428_v23 = vadd.f32 %v2424_v35, %v2420_v32  ;;  %vm2392_vm2 = vmor %vm2390_vm1, %vm2391_vm0  ;;  %vm2400_vm4 = vweird.f32 %v2363_v7 }
 0x327   :  { %v2386_v0 = vmul.f32 %v6939_v14, %v2385_v45 }
 0x328   :  { %v2417_v13 = vperm.slane %v2405_v9, 0  ;;  %v2409_v50 = vmul.f32 %v2405_v9, %v8440_v46  ;;  %v2432_v28 = vmax.f32 %v2428_v23, 0.0 }
 0x329   :  { %v2387_v1 = vmul.f32 0.5, %v2386_v0 }
 0x32a   :  { %v2413_v8 = vsub.f32 %v2359_v39, %v2409_v50  ;;  %v2421_v30 = vmul.f32 %v2417_v13, %v8423_v40 }
 0x32b   :  { %v2388_v60 = vsub.f32 1.5, %v2387_v1  ;;  %v6941_v22 = vpop.eup %6940 }
 0x32c   :  { %v2425_v12 = vperm.slane %v2413_v8, 0  ;;  %v2395_v42 = vmul.f32 %v6941_v22, %v2363_v7  ;;  %vm2401_vm3 = vweird.f32 %v6941_v22 }
 0x32d   :  { %v2389_v56 = vmul.f32 %v6939_v14, %v2388_v60  ;;  %vm2402_vm6 = vmor %vm2400_vm4, %vm2401_vm3 }
 0x32e   :  { %v2429_v31 = vadd.f32 %v2425_v12, %v2421_v30  ;;  %v2396_v6 = vmul.f32 %v6941_v22, %v2395_v42 }
 0x32f   :  { %v2393_v46 = vsel %vm2392_vm2, %v6939_v14, %v2389_v56 }
 0x330   :  { %v2433_v55 = vmax.f32 %v2429_v31, 0.0  ;;  %v2406_v3 = vmul.f32 %v2393_v46, %v8457_v33  ;;  %v2397_v52 = vmul.f32 0.5, %v2396_v6 }
 0x332   :  { %v8471_v61 = vpack.c.bf16 %v2433_v55, %v2432_v28  ;;  %v2410_v40 = vmul.f32 %v2406_v3, %v8453_v10  ;;  %v2398_v48 = vsub.f32 1.5, %v2397_v52  ;;  %v2418_v34 = vperm.slane %v2406_v3, 0 }
 0x334   :  { %9826 = vst [vmem:[#allocation34_spill] sm:$0xff] %v8471_v61  ;;  %2542 = vmatmul.bf16.vlgmr.msrb.gmra.mxu2 %v8471_v61  ;;  %2561 = vmatmul.bf16.vlgmr.msrb.gmra.mxu3 %v8471_v61  ;;  %v2399_v17 = vmul.f32 %v6941_v22, %v2398_v48  ;;  %v2414_v53 = vsub.f32 %v2359_v39, %v2410_v40 }
 0x335   :  { %v2422_v10 = vmul.f32 %v2418_v34, %v8433_v38 }
 0x336   :  { %v2403_v25 = vsel %vm2402_vm6, %v6941_v22, %v2399_v17  ;;  %v2426_v37 = vperm.slane %v2414_v53, 0 }
 0x337   :  { %v2407_v5 = vmul.f32 %v2403_v25, %v8457_v33 }
 0x338   :  { %v2430_v51 = vadd.f32 %v2426_v37, %v2422_v10 }
 0x339   :  { %v2411_v49 = vmul.f32 %v2407_v5, %v8460_v27  ;;  %v2419_v21 = vperm.slane %v2407_v5, 0 }
 0x33a   :  { %v2434_v63 = vmax.f32 %v2430_v51, 0.0 }
 0x33b   :  { %v2415_v29 = vsub.f32 %v2359_v39, %v2411_v49  ;;  %v2423_v26 = vmul.f32 %v2419_v21, %v8446_v2 }
 0x33d   :  { %v2427_v54 = vperm.slane %v2415_v29, 0 }
 0x33f   :  { %v2431_v58 = vadd.f32 %v2427_v54, %v2423_v26 }
 0x341   :  { %v2435_v41 = vmax.f32 %v2431_v58, 0.0 }
 0x343   :  { %v8480_v57 = vpack.c.bf16 %v2435_v41, %v2434_v63 }
 0x345   :  { %9827 = vst [vmem:[#allocation35_spill] sm:$0xff] %v8480_v57  ;;  %2547 = vmatmul.bf16.gmra.mxu2 %v8480_v57  ;;  %2566 = vmatmul.bf16.gmra.mxu3 %v8480_v57 }
 0x3b7   :  { %v8484_v33 = vpop.f32.mrf.mxu2  ;;  %v8486_v27 = vpop.f32.mrf.mxu3 }
 0x3b8   :  { %v2572_v19 = vrot.slane %v8484_v33, 4  ;;  %v2620_v38 = vmul.f32 %v8484_v33, %v8484_v33  ;;  %v2578_v2 = vrot.slane %v8486_v27, 4  ;;  %v2621_v4 = vmul.f32 %v8486_v27, %v8486_v27 }
 0x3ba   :  { %v2573_v62 = vadd.f32 %v2572_v19, %v8484_v33  ;;  %v2628_v24 = vrot.slane %v2620_v38, 4  ;;  %v2579_v15 = vadd.f32 %v2578_v2, %v8486_v27  ;;  %v2634_v43 = vrot.slane %v2621_v4, 4 }
 0x3bc   :  { %v2574_v39 = vrot.slane %v2573_v62, 2  ;;  %v2629_v44 = vadd.f32 %v2628_v24, %v2620_v38  ;;  %v2580_v18 = vrot.slane %v2579_v15, 2  ;;  %v2635_v16 = vadd.f32 %v2634_v43, %v2621_v4 }
 0x3be   :  { %v2575_v11 = vadd.f32 %v2574_v39, %v2573_v62  ;;  %v2630_v20 = vrot.slane %v2629_v44, 2  ;;  %v2581_v59 = vadd.f32 %v2580_v18, %v2579_v15  ;;  %v2636_v7 = vrot.slane %v2635_v16, 2 }
 0x3bf   :  { %v8496_v14 = vpop.f32.mrf.mxu2  ;;  %v8498_v47 = vpop.f32.mrf.mxu3 }
 0x3c0   :  { %v2576_v36 = vrot.slane %v2575_v11, 1  ;;  %v2631_v9 = vadd.f32 %v2630_v20, %v2629_v44  ;;  %v2582_v45 = vrot.slane %v2581_v59, 1  ;;  %v2637_v35 = vadd.f32 %v2636_v7, %v2635_v16 }
 0x3c1   :  { %v2584_v13 = vrot.slane %v8496_v14, 4  ;;  %v2622_v50 = vmul.f32 %v8496_v14, %v8496_v14  ;;  %v2590_v0 = vrot.slane %v8498_v47, 4  ;;  %v2623_v32 = vmul.f32 %v8498_v47, %v8498_v47 }
 0x3c2   :  { %v2577_v8 = vadd.f32 %v2576_v36, %v2575_v11  ;;  %v2632_v1 = vrot.slane %v2631_v9, 1  ;;  %v2583_v23 = vadd.f32 %v2582_v45, %v2581_v59  ;;  %v2638_v30 = vrot.slane %v2637_v35, 1 }
 0x3c3   :  { %v2585_v12 = vadd.f32 %v2584_v13, %v8496_v14  ;;  %v2640_v60 = vrot.slane %v2622_v50, 4  ;;  %v2591_v22 = vadd.f32 %v2590_v0, %v8498_v47  ;;  %v2646_v31 = vrot.slane %v2623_v32, 4 }
 0x3c4   :  { %v2633_v56 = vadd.f32 %v2632_v1, %v2631_v9  ;;  %v8508_v42 = vmul.f32 0.125, %v2577_v8  ;;  %v2639_v28 = vadd.f32 %v2638_v30, %v2637_v35  ;;  %v8510_v55 = vmul.f32 0.125, %v2583_v23 }
 0x3c5   :  { %v2586_v46 = vrot.slane %v2585_v12, 2  ;;  %v2641_v6 = vadd.f32 %v2640_v60, %v2622_v50  ;;  %v2592_v3 = vrot.slane %v2591_v22, 2  ;;  %v2647_v52 = vadd.f32 %v2646_v31, %v2623_v32 }
 0x3c6   :  { %v2684_v40 = vmul.f32 0.125, %v2633_v56  ;;  %v2692_v48 = vmul.f32 %v8508_v42, %v8508_v42  ;;  %v2685_v17 = vmul.f32 0.125, %v2639_v28  ;;  %v2693_v53 = vmul.f32 %v8510_v55, %v8510_v55 }
 0x3c7   :  { %v2587_v25 = vadd.f32 %v2586_v46, %v2585_v12  ;;  %v2642_v5 = vrot.slane %v2641_v6, 2  ;;  %v2593_v34 = vadd.f32 %v2592_v3, %v2591_v22  ;;  %v2648_v49 = vrot.slane %v2647_v52, 2 }
 0x3c8   :  { %v2700_v21 = vsub.f32 %v2684_v40, %v2692_v48  ;;  %v2701_v37 = vsub.f32 %v2685_v17, %v2693_v53  ;;  %v8516_v63 = vpop.f32.mrf.mxu2  ;;  %v8529_v16 = vpop.f32.mrf.mxu3 }
 0x3c9   :  { %v2588_v29 = vrot.slane %v2587_v25, 1  ;;  %v2643_v10 = vadd.f32 %v2642_v5, %v2641_v6  ;;  %v2594_v26 = vrot.slane %v2593_v34, 1  ;;  %v2649_v54 = vadd.f32 %v2648_v49, %v2647_v52 }
 0x3ca   :  { %v2708_v51 = vmax.f32 %v2700_v21, 0.0  ;;  %v2709_v58 = vmax.f32 %v2701_v37, 0.0  ;;  %v2596_v24 = vrot.slane %v8516_v63, 4  ;;  %v2624_v15 = vmul.f32 %v8516_v63, %v8516_v63 }
 0x3cb   :  { %v2589_v41 = vadd.f32 %v2588_v29, %v2587_v25  ;;  %v2644_v19 = vrot.slane %v2643_v10, 1  ;;  %v2595_v38 = vadd.f32 %v2594_v26, %v2593_v34  ;;  %v2650_v2 = vrot.slane %v2649_v54, 1 }
 0x3cc   :  { %v8518_v4 = vadd.f32 1e-05, %v2708_v51  ;;  %v8520_v62 = vadd.f32 1e-05, %v2709_v58  ;;  %v2597_v11 = vadd.f32 %v2596_v24, %v8516_v63  ;;  %v2652_v45 = vrot.slane %v2624_v15, 4 }
 0x3cd   :  { %v2645_v43 = vadd.f32 %v2644_v19, %v2643_v10  ;;  %v8525_v39 = vmul.f32 0.125, %v2589_v41  ;;  %v2651_v44 = vadd.f32 %v2650_v2, %v2649_v54  ;;  %v8527_v18 = vmul.f32 0.125, %v2595_v38 }
 0x3ce   :  { %6942 = vrsqrt.f32 %v8518_v4  ;;  %v2598_v9 = vrot.slane %v2597_v11, 2  ;;  %v2602_v35 = vrot.slane %v8529_v16, 4  ;;  %v2625_v50 = vmul.f32 %v8529_v16, %v8529_v16 }
 0x3cf   :  { %6944 = vrsqrt.f32 %v8520_v62  ;;  %v2686_v20 = vmul.f32 0.125, %v2645_v43  ;;  %v2694_v59 = vmul.f32 %v8525_v39, %v8525_v39  ;;  %v2687_v7 = vmul.f32 0.125, %v2651_v44 }
 0x3d0   :  { %v2695_v36 = vmul.f32 %v8527_v18, %v8527_v18  ;;  %v2599_v32 = vadd.f32 %v2598_v9, %v2597_v11  ;;  %v2653_v8 = vadd.f32 %v2652_v45, %v2624_v15  ;;  %v2603_v1 = vadd.f32 %v2602_v35, %v8529_v16  ;;  %v8542_v23 = vpop.f32.mrf.mxu2  ;;  %v8567_v44 = vpop.f32.mrf.mxu3 }
 0x3d1   :  { %v2702_v13 = vsub.f32 %v2686_v20, %v2694_v59  ;;  %v2658_v12 = vrot.slane %v2625_v50, 4  ;;  %v2608_v28 = vrot.slane %v8542_v23, 4  ;;  %v2626_v25 = vmul.f32 %v8542_v23, %v8542_v23 }
 0x3d2   :  { %v2703_v0 = vsub.f32 %v2687_v7, %v2695_v36  ;;  %v2600_v31 = vrot.slane %v2599_v32, 1  ;;  %v2654_v56 = vrot.slane %v2653_v8, 2  ;;  %v2604_v52 = vrot.slane %v2603_v1, 2 }
 0x3d3   :  { %v2710_v30 = vmax.f32 %v2702_v13, 0.0  ;;  %v2659_v40 = vadd.f32 %v2658_v12, %v2625_v50  ;;  %vm2734_vm7 = vweird.f32 %v8518_v4  ;;  %v2609_v58 = vadd.f32 %v2608_v28, %v8542_v23 }
 0x3d4   :  { %v8544_v60 = vpop.eup %6942  ;;  %v2711_v22 = vmax.f32 %v2703_v0, 0.0  ;;  %v2601_v53 = vadd.f32 %v2600_v31, %v2599_v32  ;;  %v2655_v34 = vadd.f32 %v2654_v56, %v2653_v8  ;;  %v2605_v10 = vadd.f32 %v2604_v52, %v2603_v1 }
 0x3d5   :  { %v6945_v46 = vpop.eup %6944  ;;  %v2729_v6 = vmul.f32 %v8544_v60, %v8518_v4  ;;  %v8549_v3 = vadd.f32 1e-05, %v2710_v30  ;;  %vm2735_vm8 = vweird.f32 %v8544_v60  ;;  %v2660_v26 = vrot.slane %v2659_v40, 2 }
 0x3d6   :  { %v2739_v48 = vmul.f32 %v6945_v46, %v8520_v62  ;;  %v8552_v17 = vadd.f32 1e-05, %v2711_v22  ;;  %v8561_v21 = vmul.f32 0.125, %v2601_v53  ;;  %v2656_v29 = vrot.slane %v2655_v34, 1  ;;  %vm8576_vm11 = vmor %vm2734_vm7, %vm2735_vm8 }
 0x3d7   :  { %v2730_v5 = vmul.f32 %v8544_v60, %v2729_v6  ;;  %6946 = vrsqrt.f32 %v8549_v3  ;;  %v2664_v41 = vrot.slane %v2626_v25, 4  ;;  %v2606_v2 = vrot.slane %v2605_v10, 1  ;;  %v8595_v53 = vld [vmem:[#allocation20 + $0x1c] ss:$4 sm:$0x3] }
 0x3d8   :  { %v2740_v49 = vmul.f32 %v6945_v46, %v2739_v48  ;;  %6948 = vrsqrt.f32 %v8552_v17  ;;  %v2696_v51 = vmul.f32 %v8561_v21, %v8561_v21  ;;  %v2657_v38 = vadd.f32 %v2656_v29, %v2655_v34 }
 0x3d9   :  { %v2731_v37 = vmul.f32 0.5, %v2730_v5  ;;  %v2661_v24 = vadd.f32 %v2660_v26, %v2659_v40  ;;  %vm2744_vm9 = vweird.f32 %v8520_v62  ;;  %vm2745_vm10 = vweird.f32 %v6945_v46 }
 0x3da   :  { %v2741_v54 = vmul.f32 0.5, %v2740_v49  ;;  %v2610_v43 = vrot.slane %v2609_v58, 2  ;;  %v2688_v59 = vmul.f32 0.125, %v2657_v38  ;;  %v2607_v7 = vadd.f32 %v2606_v2, %v2605_v10  ;;  %vm2746_vm12 = vmor %vm2744_vm9, %vm2745_vm10  ;;  %v6765_v2 = vld [vmem:[#allocation11 + $0xe4] sm:$0xf] }
 0x3db   :  { %v2732_v19 = vsub.f32 1.5, %v2731_v37  ;;  %v2662_v36 = vrot.slane %v2661_v24, 1  ;;  %v2665_v0 = vadd.f32 %v2664_v41, %v2626_v25  ;;  %v2614_v1 = vrot.slane %v8567_v44, 4 }
 0x3dc   :  { %v2742_v15 = vsub.f32 1.5, %v2741_v54  ;;  %v2611_v50 = vadd.f32 %v2610_v43, %v2609_v58  ;;  %v2704_v8 = vsub.f32 %v2688_v59, %v2696_v51  ;;  %v8591_v31 = vmul.f32 0.125, %v2607_v7 }
 0x3dd   :  { %v8569_v11 = vpop.eup %6946  ;;  %v2733_v20 = vmul.f32 %v8544_v60, %v2732_v19  ;;  %v2663_v22 = vadd.f32 %v2662_v36, %v2661_v24  ;;  %v2666_v48 = vrot.slane %v2665_v0, 2  ;;  %vm2764_vm1 = vweird.f32 %v8552_v17  ;;  %v6207_v24 = vld [vmem:[#allocation11 + $0xf0] sm:$0xf0] }
 0x3de   :  { %v6949_v9 = vpop.eup %6948  ;;  %v2743_v35 = vmul.f32 %v6945_v46, %v2742_v15  ;;  %v2749_v13 = vmul.f32 %v8569_v11, %v8549_v3  ;;  %v2712_v6 = vmax.f32 %v2704_v8, 0.0  ;;  %v2612_v52 = vrot.slane %v2611_v50, 1  ;;  %v6767_v8 = vld [vmem:[#allocation11 + $0xec] sm:$0xf0] }
 0x3df   :  { %v2737_v32 = vsel %vm8576_vm11, %v8544_v60, %v2733_v20  ;;  %v2759_v4 = vmul.f32 %v6949_v9, %v8552_v17  ;;  %v2689_v40 = vmul.f32 0.125, %v2663_v22  ;;  %v2697_v62 = vmul.f32 %v8591_v31, %v8591_v31 }
 0x3e0   :  { %v2747_v30 = vsel %vm2746_vm12, %v6945_v46, %v2743_v35  ;;  %v2750_v12 = vmul.f32 %v8569_v11, %v2749_v13  ;;  %v8598_v5 = vadd.f32 1e-05, %v2712_v6  ;;  %v2613_v34 = vadd.f32 %v2612_v52, %v2611_v50  ;;  %v6335_v13 = vld [vmem:[#allocation11 + $0x1f0] sm:$0xf0]  ;;  %v6799_v6 = vld [vmem:[#allocation11 + $0x1ec] sm:$0xf0] }
 0x3e1   :  { %v2816_v56 = vrot.slane %v2747_v30, 7  ;;  %v2760_v28 = vmul.f32 %v6949_v9, %v2759_v4  ;;  %v2705_v37 = vsub.f32 %v2689_v40, %v2697_v62  ;;  %v2667_v29 = vadd.f32 %v2666_v48, %v2665_v0  ;;  %v6205_v4 = vld [vmem:[#allocation11 + $0xe0] sm:$0xf] }
 0x3e2   :  { %v2751_v60 = vmul.f32 0.5, %v2750_v12  ;;  %vm2765_vm15 = vweird.f32 %v6949_v9  ;;  %6950 = vrsqrt.f32 %v8598_v5  ;;  %v8601_v26 = vmul.f32 0.125, %v2613_v34 }
 0x3e3   :  { %v2820_v25 = vsel %vm1009_vm5, %v2737_v32, %v2816_v56  ;;  %v2761_v46 = vmul.f32 0.5, %v2760_v28  ;;  %vm2755_vm0 = vweird.f32 %v8569_v11  ;;  %v2713_v51 = vmax.f32 %v2705_v37, 0.0  ;;  %vm2766_vm3 = vmor %vm2764_vm1, %vm2765_vm15  ;;  %v6333_v28 = vld [vmem:[#allocation11 + $0x1e0] sm:$0xf]  ;;  %v6761_v37 = vld [vmem:[#allocation11 + $0xc4] sm:$0xf] }
 0x3e4   :  { %v2752_v49 = vsub.f32 1.5, %v2751_v60  ;;  %v8604_v54 = vmul.f32 %v2820_v25, %v8595_v53  ;;  %v2668_v19 = vrot.slane %v2667_v29, 1  ;;  %v2615_v38 = vadd.f32 %v2614_v1, %v8567_v44 }
 0x3e5   :  { %v2762_v10 = vsub.f32 1.5, %v2761_v46  ;;  %vm2754_vm2 = vweird.f32 %v8549_v3  ;;  %v2698_v15 = vmul.f32 %v8601_v26, %v8601_v26  ;;  %v8613_v20 = vadd.f32 1e-05, %v2713_v51  ;;  %v6797_v3 = vld [vmem:[#allocation11 + $0x1e4] sm:$0xf] }
 0x3e6   :  { %v2753_v58 = vmul.f32 %v8569_v11, %v2752_v49  ;;  %v2669_v59 = vadd.f32 %v2668_v19, %v2667_v29  ;;  %v2616_v17 = vrot.slane %v2615_v38, 2  ;;  %v2837_v7 = vperm.slane %v8604_v54, 1  ;;  %vm2756_vm4 = vmor %vm2754_vm2, %vm2755_vm0  ;;  %v6191_v29 = vld [vmem:[#allocation11 + $0xd0] sm:$0xf0] }
 0x3e7   :  { %v2763_v41 = vmul.f32 %v6949_v9, %v2762_v10  ;;  %v2627_v45 = vmul.f32 %v8567_v44, %v8567_v44  ;;  %v6210_v35 = vor.u32 %v6765_v2, %v6207_v24  ;;  %6952 = vrsqrt.f32 %v8613_v20  ;;  %v6763_v2 = vld [vmem:[#allocation11 + $0xcc] sm:$0xf0]  ;;  %v6317_v24 = vld [vmem:[#allocation11 + $0x1c0] sm:$0xf] }
 0x3e8   :  { %v8620_v50 = vpop.eup %6950  ;;  %v2690_v0 = vmul.f32 0.125, %v2669_v59  ;;  %v2617_v32 = vadd.f32 %v2616_v17, %v2615_v38  ;;  %v6338_v60 = vor.u32 %v6797_v3, %v6335_v13  ;;  %v6206_v40 = vor.u32 %v6767_v8, %v6205_v4  ;;  %v6189_v38 = vld [vmem:[#allocation11 + $0xc0] sm:$0xf] }
 0x3e9   :  { %v2767_v43 = vsel %vm2766_vm3, %v6949_v9, %v2763_v41  ;;  %v2757_v9 = vsel %vm2756_vm4, %v8569_v11, %v2753_v58  ;;  %v2769_v30 = vmul.f32 %v8620_v50, %v8598_v5  ;;  %3354 = vmatpush.bf16.msra.mxu2 %v6210_v35  ;;  %v2670_v52 = vrot.slane %v2627_v45, 4  ;;  %v6793_v58 = vld [vmem:[#allocation11 + $0x1c4] sm:$0xf]  ;;  %v6319_v41 = vld [vmem:[#allocation11 + $0x1d0] sm:$0xf0] }
 0x3ea   :  { %v2817_v36 = vrot.slane %v2767_v43, 7  ;;  %v2706_v22 = vsub.f32 %v2690_v0, %v2698_v15  ;;  %v2618_v56 = vrot.slane %v2617_v32, 1  ;;  %v2836_v62 = vperm.slane %v8604_v54, 0  ;;  %3373 = vmatpush.bf16.msra.mxu3 %v6338_v60  ;;  %3316 = vmatpush.bf16.msra.mxu0 %v6206_v40  ;;  %v6795_v15 = vld [vmem:[#allocation11 + $0x1cc] sm:$0xf0] }
 0x3eb   :  { %v2770_v11 = vmul.f32 %v8620_v50, %v2769_v30  ;;  %v8635_v48 = vmul.f32 %v2837_v7, %v8510_v55  ;;  %v2671_v34 = vadd.f32 %v2670_v52, %v2627_v45  ;;  %v6334_v49 = vor.u32 %v6799_v6, %v6333_v28  ;;  %v6757_v43 = vld [vmem:[#allocation11 + $0xa4] sm:$0xf]  ;;  %v6303_v0 = vld [vmem:[#allocation11 + $0x1b0] sm:$0xf0]  ;;  %v6759_v30 = vld [vmem:[#allocation11 + $0xac] sm:$0xf0] }
 0x3ec   :  { %v2821_v1 = vsel %vm1009_vm5, %v2757_v9, %v2817_v36  ;;  %v2619_v46 = vadd.f32 %v2618_v56, %v2617_v32  ;;  %v2714_v51 = vmax.f32 %v2706_v22, 0.0  ;;  %v2852_v59 = vmul.f32 %v2836_v62, %v8508_v42  ;;  %v6175_v36 = vld [vmem:[#allocation11 + $0xb0] sm:$0xf0]  ;;  %v6789_v45 = vld [vmem:[#allocation11 + $0x1a4] sm:$0xf] }
 0x3ed   :  { %v8628_v12 = vmul.f32 %v2821_v1, %v8595_v53  ;;  %v8638_v10 = vpop.eup %6952  ;;  %v8640_v19 = vmul.f32 0.5, %v2770_v11  ;;  %3335 = vmatpush.bf16.msra.mxu1 %v6334_v49  ;;  %v2672_v17 = vrot.slane %v2671_v34, 2  ;;  %v2868_v35 = vrot.slane %v8635_v48, 7  ;;  %v6173_v32 = vld [vmem:[#allocation11 + $0xa0] sm:$0xf] }
 0x3ee   :  { %v2779_v55 = vmul.f32 %v8638_v10, %v8613_v20  ;;  %v8652_v9 = vmul.f32 0.125, %v2619_v46  ;;  %v8655_v8 = vadd.f32 1e-05, %v2714_v51  ;;  %v6194_v1 = vor.u32 %v6761_v37, %v6191_v29  ;;  %v6791_v6 = vld [vmem:[#allocation11 + $0x1ac] sm:$0xf0] }
 0x3ef   :  { %v2839_v25 = vperm.slane %v8628_v12, 1  ;;  %v2838_v4 = vperm.slane %v8628_v12, 0  ;;  %v2673_v42 = vadd.f32 %v2672_v17, %v2671_v34  ;;  %v2772_v22 = vsub.f32 1.5, %v8640_v19  ;;  %v6753_v37 = vld [vmem:[#allocation11 + $0x84] sm:$0xf] }
 0x3f0   :  { %v2780_v13 = vmul.f32 %v8638_v10, %v2779_v55  ;;  %vm2785_vm6 = vweird.f32 %v8638_v10  ;;  %v6322_v28 = vor.u32 %v6793_v58, %v6319_v41  ;;  %3355 = vmatpush.bf16.msra.mxu2 %v6194_v1  ;;  %v6190_v52 = vor.u32 %v6763_v2, %v6189_v38  ;;  %v6159_v29 = vld [vmem:[#allocation11 + $0x90] sm:$0xf0]  ;;  %v6785_v19 = vld [vmem:[#allocation11 + $0x184] sm:$0xf]  ;;  %v6157_v38 = vld [vmem:[#allocation11 + $0x80] sm:$0xf] }
 0x3f1   :  { %v2855_v3 = vmul.f32 %v2839_v25, %v8527_v18  ;;  %v6301_v18 = vld [vmem:[#allocation11 + $0x1a0] sm:$0xf]  ;;  %v2674_v11 = vrot.slane %v2673_v42, 1  ;;  %v6318_v60 = vor.u32 %v6795_v15, %v6317_v24  ;;  %v6178_v40 = vor.u32 %v6757_v43, %v6175_v36  ;;  %v6287_v55 = vld [vmem:[#allocation11 + $0x190] sm:$0xf0] }
 0x3f2   :  { %v2781_v56 = vmul.f32 0.5, %v2780_v13  ;;  %v2699_v34 = vmul.f32 %v8652_v9, %v8652_v9  ;;  %3374 = vmatpush.bf16.msra.mxu3 %v6322_v28  ;;  %v6306_v49 = vor.u32 %v6789_v45, %v6303_v0  ;;  %6954 = vrsqrt.f32 %v8655_v8  ;;  %3317 = vmatpush.bf16.msra.mxu0 %v6190_v52  ;;  %v6755_v15 = vld [vmem:[#allocation11 + $0x8c] sm:$0xf0]  ;;  %v6285_v43 = vld [vmem:[#allocation11 + $0x180] sm:$0xf] }
 0x3f3   :  { %v2869_v48 = vrot.slane %v2855_v3, 7  ;;  %v2675_v51 = vadd.f32 %v2674_v11, %v2673_v42  ;;  %3336 = vmatpush.bf16.msra.mxu1 %v6318_v60  ;;  %v6174_v58 = vor.u32 %v6759_v30, %v6173_v32  ;;  %v6302_v41 = vor.u32 %v6791_v6, %v6301_v18  ;;  %v6787_v17 = vld [vmem:[#allocation11 + $0x18c] sm:$0xf0]  ;;  %v8667_v36 = vld [vmem:[#allocation20 + $0x1d] ss:$4 sm:$0x3] }
 0x3f4   :  { %v2782_v46 = vsub.f32 1.5, %v2781_v56  ;;  %v2854_v2 = vmul.f32 %v2838_v4, %v8525_v39  ;;  %vm2784_vm7 = vweird.f32 %v8613_v20  ;;  %v2872_v45 = vsel %vm1009_vm5, %v2852_v59, %v2868_v35  ;;  %3356 = vmatpush.bf16.msra.mxu2 %v6178_v40  ;;  %v6749_v0 = vld [vmem:[#allocation11 + $0x64] sm:$0xf]  ;;  %v6143_v42 = vld [vmem:[#allocation11 + $0x70] sm:$0xf0] }
 0x3f5   :  { %vm2775_vm8 = vweird.f32 %v8620_v50  ;;  %vm8673_vm9 = vmor %vm2784_vm7, %vm2785_vm6  ;;  %v2691_v39 = vmul.f32 0.125, %v2675_v51  ;;  %v6162_v13 = vor.u32 %v6753_v37, %v6159_v29  ;;  %v2773_v32 = vmul.f32 %v8620_v50, %v2772_v22  ;;  %v6781_v1 = vld [vmem:[#allocation11 + $0x164] sm:$0xf]  ;;  %v6271_v30 = vld [vmem:[#allocation11 + $0x170] sm:$0xf0] }
 0x3f6   :  { %v2783_v24 = vmul.f32 %v8638_v10, %v2782_v46  ;;  %v2873_v20 = vsel %vm1009_vm5, %v2854_v2, %v2869_v48  ;;  %3375 = vmatpush.bf16.msra.mxu3 %v6306_v49  ;;  %v6290_v35 = vor.u32 %v6785_v19, %v6287_v55  ;;  %3318 = vmatpush.bf16.msra.mxu0 %v6174_v58  ;;  %v6141_v6 = vld [vmem:[#allocation11 + $0x60] sm:$0xf]  ;;  %v6751_v11 = vld [vmem:[#allocation11 + $0x6c] sm:$0xf0]  ;;  %vm2774_vm10 = vweird.f32 %v8598_v5  ;;  %v6745_v40 = vld [vmem:[#allocation11 + $0x44] sm:$0xf] }
 0x3f7   :  { %v2707_v56 = vsub.f32 %v2691_v39, %v2699_v34  ;;  %3337 = vmatpush.bf16.msra.mxu1 %v6302_v41  ;;  %v6158_v28 = vor.u32 %v6755_v15, %v6157_v38  ;;  %v6286_v18 = vor.u32 %v6787_v17, %v6285_v43  ;;  %v6269_v52 = vld [vmem:[#allocation11 + $0x160] sm:$0xf]  ;;  %v6783_v60 = vld [vmem:[#allocation11 + $0x16c] sm:$0xf0]  ;;  %v2881_v46 = vsub.f32 %v8667_v36, %v2873_v20  ;;  %vm8691_vm11 = vmor %vm2774_vm10, %vm2775_vm8 }
 0x3f8   :  { %v2787_v59 = vsel %vm8673_vm9, %v8638_v10, %v2783_v24  ;;  %v8683_v48 = vpop.eup %6954  ;;  %v8686_v10 = vsub.f32 %v8667_v36, %v2872_v45  ;;  %3357 = vmatpush.bf16.msra.mxu2 %v6162_v13  ;;  %v6146_v37 = vor.u32 %v6749_v0, %v6143_v42  ;;  %v6127_v5 = vld [vmem:[#allocation11 + $0x50] sm:$0xf0]  ;;  %v6777_v29 = vld [vmem:[#allocation11 + $0x144] sm:$0xf]  ;;  %v6274_v51 = vor.u32 %v6781_v1, %v6271_v30  ;;  %v6125_v41 = vld [vmem:[#allocation11 + $0x40] sm:$0xf] }
 0x3f9   :  { %v2818_v22 = vrot.slane %v2787_v59, 7  ;;  %v2715_v49 = vmax.f32 %v2707_v56, 0.0  ;;  %v6255_v58 = vld [vmem:[#allocation11 + $0x150] sm:$0xf0]  ;;  %v6747_v19 = vld [vmem:[#allocation11 + $0x4c] sm:$0xf0]  ;;  %v2777_v55 = vsel %vm8691_vm11, %v8620_v50, %v2773_v32  ;;  %v6142_v2 = vor.u32 %v6751_v11, %v6141_v6 }
 0x3fa   :  { %3376 = vmatpush.bf16.msra.mxu3 %v6290_v35  ;;  %3319 = vmatpush.bf16.msra.mxu0 %v6158_v28  ;;  %v6270_v24 = vor.u32 %v6783_v60, %v6269_v52  ;;  %v6253_v15 = vld [vmem:[#allocation11 + $0x140] sm:$0xf]  ;;  %v6779_v43 = vld [vmem:[#allocation11 + $0x14c] sm:$0xf0]  ;;  %v2789_v45 = vmul.f32 %v8683_v48, %v8655_v8  ;;  %v2897_v3 = vperm.slane %v8686_v10, 1  ;;  %v2899_v39 = vperm.slane %v2881_v46, 1 }
 0x3fb   :  { %v8698_v38 = vadd.f32 1e-05, %v2715_v49  ;;  %3338 = vmatpush.bf16.msra.mxu1 %v6286_v18  ;;  %v2822_v17 = vsel %vm1009_vm5, %v2777_v55, %v2818_v22  ;;  %v6130_v50 = vor.u32 %v6745_v40, %v6127_v5  ;;  %v2887_v13 = vmul.f32 %v2839_v25, %v8498_v47  ;;  %v6741_v59 = vld [vmem:[#allocation11 + $0x24] sm:$0xf]  ;;  %v6111_v35 = vld [vmem:[#allocation11 + $0x30] sm:$0xf0] }
 0x3fc   :  { %3358 = vmatpush.bf16.msra.mxu2 %v6146_v37  ;;  %v6258_v0 = vor.u32 %v6777_v29, %v6255_v58  ;;  %v6126_v20 = vor.u32 %v6747_v19, %v6125_v41  ;;  %v6254_v32 = vor.u32 %v6779_v43, %v6253_v15  ;;  %v6773_v42 = vld [vmem:[#allocation11 + $0x124] sm:$0xf]  ;;  %v8709_v1 = vmul.f32 %v2822_v17, %v8595_v53  ;;  %v6239_v30 = vld [vmem:[#allocation11 + $0x130] sm:$0xf0]  ;;  %v6109_v56 = vld [vmem:[#allocation11 + $0x20] sm:$0xf] }
 0x3fd   :  { %6956 = vrsqrt.f32 %v8698_v38  ;;  %v2886_v28 = vmul.f32 %v2838_v4, %v8496_v14  ;;  %v2896_v47 = vperm.slane %v8686_v10, 0  ;;  %v2898_v25 = vperm.slane %v2881_v46, 0  ;;  %v6743_v6 = vld [vmem:[#allocation11 + $0x2c] sm:$0xf0]  ;;  %v6237_v11 = vld [vmem:[#allocation11 + $0x120] sm:$0xf] }
 0x3fe   :  { %3377 = vmatpush.bf16.msra.mxu3 %v6274_v51  ;;  %3320 = vmatpush.bf16.msra.mxu0 %v6142_v2  ;;  %v2790_v18 = vmul.f32 %v8683_v48, %v2789_v45  ;;  %v6775_v52 = vld [vmem:[#allocation11 + $0x12c] sm:$0xf0]  ;;  %v2884_v22 = vmul.f32 %v2836_v62, %v8484_v33  ;;  %v2885_v60 = vmul.f32 %v2837_v7, %v8486_v27  ;;  %v6737_v14 = vld [vmem:[#allocation11 + $0x4] sm:$0xf]  ;;  %v6095_v4 = vld [vmem:[#allocation11 + $0x10] sm:$0xf0]  ;;  %vm2795_vm15 = vweird.f32 %v8683_v48 }
 0x3ff   :  { %3339 = vmatpush.bf16.msra.mxu1 %v6270_v24  ;;  %v2915_v40 = vadd.f32 %v2899_v39, %v2887_v13  ;;  %v6114_v12 = vor.u32 %v6741_v59, %v6111_v35  ;;  %v6769_v10 = vld [vmem:[#allocation11 + $0x104] sm:$0xf]  ;;  %v2914_v46 = vadd.f32 %v2898_v25, %v2886_v28  ;;  %v6242_v34 = vor.u32 %v6773_v42, %v6239_v30  ;;  %v6223_v49 = vld [vmem:[#allocation11 + $0x110] sm:$0xf0]  ;;  %v6093_v37 = vld [vmem:[#allocation11] sm:$0xf] }
 0x400   :  { %3359 = vmatpush.bf16.msra.mxu2 %v6130_v50  ;;  %v6739_v5 = vld [vmem:[#allocation11 + $0xc] sm:$0xf0]  ;;  %v2912_v29 = vadd.f32 %v2896_v47, %v2884_v22  ;;  %v2913_v33 = vadd.f32 %v2897_v3, %v2885_v60  ;;  %v2841_v62 = vperm.slane %v8709_v1, 1  ;;  %v6110_v27 = vor.u32 %v6743_v6, %v6109_v56  ;;  %v6766_v7 = vld [vmem:[#allocation11 + $0xec] sm:$0xf] }
 0x401   :  { %v6238_v54 = vor.u32 %v6775_v52, %v6237_v11  ;;  %v6215_v58 = vld [vmem:[#allocation11 + $0xf8] sm:$0xf0]  ;;  %v2791_v41 = vmul.f32 0.5, %v2790_v18  ;;  %v6221_v55 = vld [vmem:[#allocation11 + $0x100] sm:$0xf]  ;;  %v2922_v24 = vmax.f32 %v2914_v46, 0.0  ;;  %v6098_v43 = vor.u32 %v6737_v14, %v6095_v4 }
 0x402   :  { %3378 = vmatpush.bf16.msra.mxu3 %v6258_v0  ;;  %3321 = vmatpush.bf16.msra.mxu0 %v6126_v20  ;;  %v6771_v2 = vld [vmem:[#allocation11 + $0x10c] sm:$0xf0]  ;;  %v2923_v15 = vmax.f32 %v2915_v40, 0.0  ;;  %v6798_v17 = vld [vmem:[#allocation11 + $0x1ec] sm:$0xf]  ;;  %v6226_v39 = vor.u32 %v6769_v10, %v6223_v49  ;;  %v2920_v50 = vmax.f32 %v2912_v29, 0.0  ;;  %v6218_v13 = vor.u32 %v6766_v7, %v6215_v58 }
 0x403   :  { %v8722_v51 = vpop.eup %6956  ;;  %3340 = vmatpush.bf16.msra.mxu1 %v6254_v32  ;;  %v6343_v45 = vld [vmem:[#allocation11 + $0x1f8] sm:$0xf0]  ;;  %v6213_v0 = vld [vmem:[#allocation11 + $0xe8] sm:$0xf]  ;;  %v6768_v20 = vld [vmem:[#allocation11 + $0xf4] sm:$0xf0]  ;;  %v2857_v59 = vmul.f32 %v2841_v62, %v8591_v31  ;;  %v6094_v35 = vor.u32 %v6739_v5, %v6093_v37  ;;  %v6222_v42 = vor.u32 %v6771_v2, %v6221_v55  ;;  %vm2804_vm0 = vweird.f32 %v8698_v38 }
 0x404   :  { %v2799_v19 = vmul.f32 %v8722_v51, %v8698_v38  ;;  %3360 = vmatpush.bf16.msra.mxu2 %v6114_v12  ;;  %v2921_v32 = vmax.f32 %v2913_v33, 0.0  ;;  %v6341_v30 = vld [vmem:[#allocation11 + $0x1e8] sm:$0xf]  ;;  %v6800_v56 = vld [vmem:[#allocation11 + $0x1f4] sm:$0xf0]  ;;  %v2792_v28 = vsub.f32 1.5, %v2791_v41  ;;  %v8731_v25 = vpack.c.bf16 %v2922_v24, %v2920_v50 }
 0x405   :  { %v6346_v18 = vor.u32 %v6798_v17, %v6343_v45  ;;  %v6762_v6 = vld [vmem:[#allocation11 + $0xcc] sm:$0xf]  ;;  %v6199_v11 = vld [vmem:[#allocation11 + $0xd8] sm:$0xf0]  ;;  %v2840_v52 = vperm.slane %v8709_v1, 0  ;;  %v6214_v60 = vor.u32 %v6768_v20, %v6213_v0  ;;  %vm2805_vm12 = vweird.f32 %v8722_v51 }
 0x406   :  { %v2800_v3 = vmul.f32 %v8722_v51, %v2799_v19  ;;  %3379 = vmatpush.bf16.msra.mxu3 %v6242_v34  ;;  %3322 = vmatpush.bf16.msra.mxu0 %v6110_v27  ;;  %v8734_v22 = vpack.c.bf16 %v2923_v15, %v2921_v32  ;;  %v6794_v31 = vld [vmem:[#allocation11 + $0x1cc] sm:$0xf]  ;;  %v6327_v40 = vld [vmem:[#allocation11 + $0x1d8] sm:$0xf0]  ;;  %v6197_v14 = vld [vmem:[#allocation11 + $0xc8] sm:$0xf]  ;;  %v6342_v46 = vor.u32 %v6800_v56, %v6341_v30  ;;  %vm2794_vm2 = vweird.f32 %v8655_v8 }
 0x407   :  { %3341 = vmatpush.bf16.msra.mxu1 %v6238_v54  ;;  %v6764_v4 = vld [vmem:[#allocation11 + $0xd4] sm:$0xf0]  ;;  %v2870_v10 = vrot.slane %v2857_v59, 7  ;;  %v6202_v34 = vor.u32 %v6762_v6, %v6199_v11  ;;  %v6325_v49 = vld [vmem:[#allocation11 + $0x1c8] sm:$0xf]  ;;  %v2793_v37 = vmul.f32 %v8683_v48, %v2792_v28  ;;  %v6330_v29 = vor.u32 %v6794_v31, %v6327_v40  ;;  %vm2806_vm1 = vmor %vm2804_vm0, %vm2805_vm12 }
 0x408   :  { %v2801_v47 = vmul.f32 0.5, %v2800_v3  ;;  %3361 = vmatpush.bf16.msra.mxu2 %v6098_v43  ;;  %v6796_v33 = vld [vmem:[#allocation11 + $0x1d4] sm:$0xf0]  ;;  %v6758_v27 = vld [vmem:[#allocation11 + $0xac] sm:$0xf]  ;;  %v2856_v7 = vmul.f32 %v2840_v52, %v8561_v21  ;;  %v6198_v58 = vor.u32 %v6764_v4, %v6197_v14  ;;  %vm2796_vm3 = vmor %vm2794_vm2, %vm2795_vm15 }
 0x409   :  { %v6183_v54 = vld [vmem:[#allocation11 + $0xb8] sm:$0xf0]  ;;  %v6790_v41 = vld [vmem:[#allocation11 + $0x1ac] sm:$0xf]  ;;  %v6181_v55 = vld [vmem:[#allocation11 + $0xa8] sm:$0xf]  ;;  %v6326_v15 = vor.u32 %v6796_v33, %v6325_v49  ;;  %v2797_v8 = vsel %vm2796_vm3, %v8683_v48, %v2793_v37 }
 0x40a   :  { %v2802_v12 = vsub.f32 1.5, %v2801_v47  ;;  %3380 = vmatpush.bf16.msra.mxu3 %v6226_v39  ;;  %3323 = vmatpush.bf16.msra.mxu0 %v6094_v35  ;;  %v6311_v38 = vld [vmem:[#allocation11 + $0x1b8] sm:$0xf0]  ;;  %v6760_v2 = vld [vmem:[#allocation11 + $0xb4] sm:$0xf0]  ;;  %v2874_v21 = vsel %vm1009_vm5, %v2856_v7, %v2870_v10  ;;  %v6186_v43 = vor.u32 %v6758_v27, %v6183_v54 }
 0x40b   :  { %3342 = vmatpush.bf16.msra.mxu1 %v6222_v42  ;;  %3362 = vmatmul.bf16.vlgmr.msra.gmra.mxu2 %v8731_v25  ;;  %v6309_v17 = vld [vmem:[#allocation11 + $0x1a8] sm:$0xf]  ;;  %v6792_v45 = vld [vmem:[#allocation11 + $0x1b4] sm:$0xf0]  ;;  %v6754_v3 = vld [vmem:[#allocation11 + $0x8c] sm:$0xf]  ;;  %v2882_v32 = vsub.f32 %v8667_v36, %v2874_v21 }
 0x40c   :  { %3430 = vmatpush.bf16.msrb.mxu2 %v6218_v13  ;;  %v2803_v5 = vmul.f32 %v8722_v51, %v2802_v12  ;;  %v6167_v39 = vld [vmem:[#allocation11 + $0x98] sm:$0xf0]  ;;  %v6182_v13 = vor.u32 %v6760_v2, %v6181_v55  ;;  %v6786_v0 = vld [vmem:[#allocation11 + $0x18c] sm:$0xf]  ;;  %v6165_v35 = vld [vmem:[#allocation11 + $0x88] sm:$0xf]  ;;  %v6310_v48 = vor.u32 %v6792_v45, %v6309_v17 }
 0x40d   :  { %3381 = vmatmul.bf16.vlgmr.msra.gmra.mxu3 %v8734_v22  ;;  %3324 = vmatmul.bf16.vlgmr.msra.gmra.mxu0 %v8731_v25  ;;  %v6295_v20 = vld [vmem:[#allocation11 + $0x198] sm:$0xf0]  ;;  %v6756_v42 = vld [vmem:[#allocation11 + $0x94] sm:$0xf0]  ;;  %v6170_v30 = vor.u32 %v6754_v3, %v6167_v39  ;;  %v6293_v56 = vld [vmem:[#allocation11 + $0x188] sm:$0xf] }
 0x40e   :  { %3449 = vmatpush.bf16.msrb.mxu3 %v6346_v18  ;;  %3392 = vmatpush.bf16.msrb.mxu0 %v6214_v60  ;;  %v2807_v19 = vsel %vm2806_vm1, %v8722_v51, %v2803_v5  ;;  %v6314_v51 = vor.u32 %v6790_v41, %v6311_v38  ;;  %v6788_v28 = vld [vmem:[#allocation11 + $0x194] sm:$0xf0]  ;;  %v6298_v6 = vor.u32 %v6786_v0, %v6295_v20  ;;  %v6750_v11 = vld [vmem:[#allocation11 + $0x6c] sm:$0xf]  ;;  %v6151_v60 = vld [vmem:[#allocation11 + $0x78] sm:$0xf0] }
 0x40f   :  { %3343 = vmatmul.bf16.vlgmr.msra.gmra.mxu1 %v8734_v22  ;;  %v2819_v24 = vrot.slane %v2807_v19, 7  ;;  %v6166_v31 = vor.u32 %v6756_v42, %v6165_v35  ;;  %v6782_v40 = vld [vmem:[#allocation11 + $0x16c] sm:$0xf]  ;;  %v6279_v12 = vld [vmem:[#allocation11 + $0x178] sm:$0xf0]  ;;  %v2901_v14 = vperm.slane %v2882_v32, 1  ;;  %v6294_v49 = vor.u32 %v6788_v28, %v6293_v56 }
 0x410   :  { %3411 = vmatpush.bf16.msrb.mxu1 %v6342_v46  ;;  %3431 = vmatpush.bf16.msrb.mxu2 %v6202_v34  ;;  %v2900_v4 = vperm.slane %v2882_v32, 0  ;;  %v6149_v10 = vld [vmem:[#allocation11 + $0x68] sm:$0xf]  ;;  %v6752_v46 = vld [vmem:[#allocation11 + $0x74] sm:$0xf0]  ;;  %v2889_v34 = vmul.f32 %v2841_v62, %v8529_v16  ;;  %v6154_v37 = vor.u32 %v6750_v11, %v6151_v60  ;;  %v6282_v7 = vor.u32 %v6782_v40, %v6279_v12 }
 0x411   :  { %v2823_v50 = vsel %vm1009_vm5, %v2797_v8, %v2819_v24  ;;  %v6277_v5 = vld [vmem:[#allocation11 + $0x168] sm:$0xf]  ;;  %v6746_v33 = vld [vmem:[#allocation11 + $0x4c] sm:$0xf]  ;;  %v6150_v16 = vor.u32 %v6752_v46, %v6149_v10  ;;  %v6263_v62 = vld [vmem:[#allocation11 + $0x158] sm:$0xf0] }
 0x412   :  { %3450 = vmatpush.bf16.msrb.mxu3 %v6330_v29  ;;  %3393 = vmatpush.bf16.msrb.mxu0 %v6198_v58  ;;  %v2831_v59 = vmul.f32 %v2823_v50, %v8595_v53  ;;  %v6784_v29 = vld [vmem:[#allocation11 + $0x174] sm:$0xf0]  ;;  %v6135_v58 = vld [vmem:[#allocation11 + $0x58] sm:$0xf0]  ;;  %v6778_v41 = vld [vmem:[#allocation11 + $0x14c] sm:$0xf]  ;;  %v2917_v55 = vadd.f32 %v2901_v14, %v2889_v34 }
 0x413   :  { %v6133_v38 = vld [vmem:[#allocation11 + $0x48] sm:$0xf]  ;;  %v6748_v19 = vld [vmem:[#allocation11 + $0x54] sm:$0xf0]  ;;  %v6278_v24 = vor.u32 %v6784_v29, %v6277_v5  ;;  %v6742_v17 = vld [vmem:[#allocation11 + $0x2c] sm:$0xf] }
 0x414   :  { %3412 = vmatpush.bf16.msrb.mxu1 %v6326_v15  ;;  %3432 = vmatpush.bf16.msrb.mxu2 %v6186_v43  ;;  %v2842_v47 = vperm.slane %v2831_v59, 0  ;;  %v2843_v18 = vperm.slane %v2831_v59, 1  ;;  %v6138_v15 = vor.u32 %v6746_v33, %v6135_v58  ;;  %v6261_v1 = vld [vmem:[#allocation11 + $0x148] sm:$0xf]  ;;  %v6134_v43 = vor.u32 %v6748_v19, %v6133_v38  ;;  %v6119_v8 = vld [vmem:[#allocation11 + $0x38] sm:$0xf0] }
 0x415   :  { %v6774_v50 = vld [vmem:[#allocation11 + $0x12c] sm:$0xf]  ;;  %v6122_v35 = vor.u32 %v6742_v17, %v6119_v8  ;;  %v6117_v42 = vld [vmem:[#allocation11 + $0x28] sm:$0xf]  ;;  %v6776_v56 = vld [vmem:[#allocation11 + $0x134] sm:$0xf0] }
 0x416   :  { %3451 = vmatpush.bf16.msrb.mxu3 %v6314_v51  ;;  %3394 = vmatpush.bf16.msrb.mxu0 %v6182_v13  ;;  %v2859_v53 = vmul.f32 %v2843_v18, %v8652_v9  ;;  %v2858_v27 = vmul.f32 %v2842_v47, %v8601_v26  ;;  %v2888_v9 = vmul.f32 %v2840_v52, %v8516_v63  ;;  %v6780_v63 = vld [vmem:[#allocation11 + $0x154] sm:$0xf0]  ;;  %v2925_v13 = vmax.f32 %v2917_v55, 0.0  ;;  %v6738_v28 = vld [vmem:[#allocation11 + $0xc] sm:$0xf] }
 0x417   :  { %v6266_v52 = vor.u32 %v6778_v41, %v6263_v62  ;;  %v2891_v51 = vmul.f32 %v2843_v18, %v8567_v44  ;;  %v2890_v3 = vmul.f32 %v2842_v47, %v8542_v23  ;;  %v6262_v20 = vor.u32 %v6780_v63, %v6261_v1  ;;  %v6103_v23 = vld [vmem:[#allocation11 + $0x18] sm:$0xf0]  ;;  %v6101_v14 = vld [vmem:[#allocation11 + $0x8] sm:$0xf]  ;;  %v6740_v10 = vld [vmem:[#allocation11 + $0x14] sm:$0xf0] }
 0x418   :  { %3413 = vmatpush.bf16.msrb.mxu1 %v6310_v48  ;;  %3433 = vmatpush.bf16.msrb.mxu2 %v6170_v30  ;;  %v2871_v54 = vrot.slane %v2859_v53, 7  ;;  %v2916_v21 = vadd.f32 %v2900_v4, %v2888_v9  ;;  %v6744_v48 = vld [vmem:[#allocation11 + $0x34] sm:$0xf0]  ;;  %v6245_v30 = vld [vmem:[#allocation11 + $0x128] sm:$0xf]  ;;  %v6106_v53 = vor.u32 %v6738_v28, %v6103_v23 }
 0x419   :  { %v6231_v11 = vld [vmem:[#allocation11 + $0x118] sm:$0xf0]  ;;  %v6118_v60 = vor.u32 %v6744_v48, %v6117_v42  ;;  %v6246_v12 = vor.u32 %v6776_v56, %v6245_v30  ;;  %v6229_v46 = vld [vmem:[#allocation11 + $0x108] sm:$0xf]  ;;  %v6772_v34 = vld [vmem:[#allocation11 + $0x114] sm:$0xf0] }
 0x41a   :  { %3452 = vmatpush.bf16.msrb.mxu3 %v6298_v6  ;;  %3395 = vmatpush.bf16.msrb.mxu0 %v6166_v31  ;;  %v2875_v2 = vsel %vm1009_vm5, %v2858_v27, %v2871_v54  ;;  %v2924_v0 = vmax.f32 %v2916_v21, 0.0  ;;  %v6770_v6 = vld [vmem:[#allocation11 + $0x10c] sm:$0xf] }
 0x41b   :  { %v2883_v26 = vsub.f32 %v8667_v36, %v2875_v2  ;;  %v6247_v36 = vld [vmem:[#allocation11 + $0x138] sm:$0xf0]  ;;  %v6234_v4 = vor.u32 %v6770_v6, %v6231_v11 }
 0x41c   :  { %3414 = vmatpush.bf16.msrb.mxu1 %v6294_v49  ;;  %3434 = vmatpush.bf16.msrb.mxu2 %v6154_v37  ;;  %v6250_v44 = vor.u32 %v6774_v50, %v6247_v36  ;;  %v6102_v49 = vor.u32 %v6740_v10, %v6101_v14  ;;  %v6230_v37 = vor.u32 %v6772_v34, %v6229_v46 }
 0x41d   :  { %v2903_v45 = vperm.slane %v2883_v26, 1  ;;  %v2902_v39 = vperm.slane %v2883_v26, 0 }
 0x41e   :  { %3453 = vmatpush.bf16.msrb.mxu3 %v6282_v7  ;;  %3396 = vmatpush.bf16.msrb.mxu0 %v6150_v16 }
 0x41f   :  { %v2919_v32 = vadd.f32 %v2903_v45, %v2891_v51  ;;  %v2918_v59 = vadd.f32 %v2902_v39, %v2890_v3 }
 0x420   :  { %3415 = vmatpush.bf16.msrb.mxu1 %v6278_v24  ;;  %3435 = vmatpush.bf16.msrb.mxu2 %v6138_v15 }
 0x421   :  { %v2927_v47 = vmax.f32 %v2919_v32, 0.0  ;;  %v2926_v18 = vmax.f32 %v2918_v59, 0.0 }
 0x422   :  { %3454 = vmatpush.bf16.msrb.mxu3 %v6266_v52  ;;  %3397 = vmatpush.bf16.msrb.mxu0 %v6134_v43 }
 0x423   :  { %v2930_v31 = vpack.c.bf16 %v2926_v18, %v2924_v0  ;;  %v2931_v40 = vpack.c.bf16 %v2927_v47, %v2925_v13 }
 0x424   :  { %3416 = vmatpush.bf16.msrb.mxu1 %v6262_v20  ;;  %3436 = vmatpush.bf16.msrb.mxu2 %v6122_v35 }
 0x425   :  { %3329 = vmatmul.bf16.gmra.mxu0 %v2930_v31  ;;  %3348 = vmatmul.bf16.gmra.mxu1 %v2931_v40 }
 0x426   :  { %3455 = vmatpush.bf16.msrb.mxu3 %v6250_v44  ;;  %3367 = vmatmul.bf16.gmra.mxu2 %v2930_v31 }
 0x427   :  { %3386 = vmatmul.bf16.gmra.mxu3 %v2931_v40  ;;  %3398 = vmatpush.bf16.msrb.mxu0 %v6118_v60 }
 0x428   :  { %3417 = vmatpush.bf16.msrb.mxu1 %v6246_v12  ;;  %3437 = vmatpush.bf16.msrb.mxu2 %v6106_v53 }
 0x42a   :  { %3456 = vmatpush.bf16.msrb.mxu3 %v6234_v4 }
 0x42b   :  { %3399 = vmatpush.bf16.msrb.mxu0 %v6102_v49 }
 0x42c   :  { %3418 = vmatpush.bf16.msrb.mxu1 %v6230_v37 }
 0x435   :  { %3400 = vmatmul.bf16.vlgmr.msrb.gmra.mxu0 %v8731_v25  ;;  %3419 = vmatmul.bf16.vlgmr.msrb.gmra.mxu1 %v8734_v22 }
 0x436   :  { %3438 = vmatmul.bf16.vlgmr.msrb.gmra.mxu2 %v8731_v25 }
 0x437   :  { %3457 = vmatmul.bf16.vlgmr.msrb.gmra.mxu3 %v8734_v22 }
 0x445   :  { %3405 = vmatmul.bf16.gmra.mxu0 %v2930_v31  ;;  %3424 = vmatmul.bf16.gmra.mxu1 %v2931_v40 }
 0x446   :  { %3443 = vmatmul.bf16.gmra.mxu2 %v2930_v31 }
 0x447   :  { %3462 = vmatmul.bf16.gmra.mxu3 %v2931_v40 }
 0x48a   :  { %v3325_v5 = vpop.f32.mrf.mxu0 }
 0x48c   :  { %v3344_v29 = vpop.f32.mrf.mxu1 }
 0x48d   :  { %v8775_v33 = vadd.f32 %v3344_v29, %v3325_v5 }
 0x48e   :  { %v3363_v9 = vpop.f32.mrf.mxu2 }
 0x48f   :  { %v3468_v27 = vrot.slane %v8775_v33, 4  ;;  %v3564_v54 = vmul.f32 %v8775_v33, %v8775_v33 }
 0x490   :  { %v3382_v25 = vpop.f32.mrf.mxu3 }
 0x491   :  { %v3469_v7 = vadd.f32 %v3468_v27, %v8775_v33  ;;  %v3580_v58 = vrot.slane %v3564_v54, 4  ;;  %v8781_v41 = vadd.f32 %v3382_v25, %v3363_v9 }
 0x492   :  { %v3327_v19 = vpop.f32.mrf.mxu0 }
 0x493   :  { %v3470_v22 = vrot.slane %v3469_v7, 2  ;;  %v3581_v16 = vadd.f32 %v3580_v58, %v3564_v54  ;;  %v3474_v62 = vrot.slane %v8781_v41, 4  ;;  %v3565_v38 = vmul.f32 %v8781_v41, %v8781_v41 }
 0x494   :  { %v3346_v55 = vpop.f32.mrf.mxu1 }
 0x495   :  { %v3471_v2 = vadd.f32 %v3470_v22, %v3469_v7  ;;  %v3582_v21 = vrot.slane %v3581_v16, 2  ;;  %v8786_v26 = vadd.f32 %v3346_v55, %v3327_v19  ;;  %v3475_v24 = vadd.f32 %v3474_v62, %v8781_v41 }
 0x496   :  { %v3586_v15 = vrot.slane %v3565_v38, 4  ;;  %v3365_v51 = vpop.f32.mrf.mxu2 }
 0x497   :  { %v3472_v1 = vrot.slane %v3471_v2, 1  ;;  %v3583_v63 = vadd.f32 %v3582_v21, %v3581_v16  ;;  %v3492_v52 = vrot.slane %v8786_v26, 4  ;;  %v3568_v43 = vmul.f32 %v8786_v26, %v8786_v26 }
 0x498   :  { %v3476_v17 = vrot.slane %v3475_v24, 2  ;;  %v3587_v8 = vadd.f32 %v3586_v15, %v3565_v38  ;;  %v3384_v36 = vpop.f32.mrf.mxu3 }
 0x499   :  { %v3473_v45 = vadd.f32 %v3472_v1, %v3471_v2  ;;  %v3584_v3 = vrot.slane %v3583_v63, 1  ;;  %v3493_v39 = vadd.f32 %v3492_v52, %v8786_v26  ;;  %v3604_v50 = vrot.slane %v3568_v43, 4 }
 0x49a   :  { %v3477_v13 = vadd.f32 %v3476_v17, %v3475_v24  ;;  %v3588_v0 = vrot.slane %v3587_v8, 2  ;;  %v8793_v20 = vadd.f32 %v3384_v36, %v3365_v51 }
 0x49b   :  { %v3585_v32 = vadd.f32 %v3584_v3, %v3583_v63  ;;  %v8795_v59 = vmul.f32 0.125, %v3473_v45  ;;  %v3494_v35 = vrot.slane %v3493_v39, 2  ;;  %v3605_v42 = vadd.f32 %v3604_v50, %v3568_v43 }
 0x49c   :  { %v3478_v48 = vrot.slane %v3477_v13, 1  ;;  %v3589_v30 = vadd.f32 %v3588_v0, %v3587_v8  ;;  %v3498_v44 = vrot.slane %v8793_v20, 4  ;;  %v3569_v56 = vmul.f32 %v8793_v20, %v8793_v20 }
 0x49d   :  { %v3495_v28 = vadd.f32 %v3494_v35, %v3493_v39  ;;  %v3606_v23 = vrot.slane %v3605_v42, 2  ;;  %v3692_v60 = vmul.f32 0.125, %v3585_v32  ;;  %v3708_v31 = vmul.f32 %v8795_v59, %v8795_v59 }
 0x49e   :  { %v3479_v47 = vadd.f32 %v3478_v48, %v3477_v13  ;;  %v3590_v18 = vrot.slane %v3589_v30, 1  ;;  %v3499_v6 = vadd.f32 %v3498_v44, %v8793_v20  ;;  %v3610_v11 = vrot.slane %v3569_v56, 4 }
 0x49f   :  { %v3496_v40 = vrot.slane %v3495_v28, 1  ;;  %v3607_v12 = vadd.f32 %v3606_v23, %v3605_v42  ;;  %v3724_v27 = vsub.f32 %v3692_v60, %v3708_v31 }
 0x4a0   :  { %v3591_v14 = vadd.f32 %v3590_v18, %v3589_v30  ;;  %v8803_v53 = vmul.f32 0.125, %v3479_v47  ;;  %v3500_v4 = vrot.slane %v3499_v6, 2  ;;  %v3611_v10 = vadd.f32 %v3610_v11, %v3569_v56 }
 0x4a1   :  { %v3497_v46 = vadd.f32 %v3496_v40, %v3495_v28  ;;  %v3608_v34 = vrot.slane %v3607_v12, 1  ;;  %v3740_v15 = vmax.f32 %v3724_v27, 0.0 }
 0x4a2   :  { %v3693_v49 = vmul.f32 0.125, %v3591_v14  ;;  %v3709_v37 = vmul.f32 %v8803_v53, %v8803_v53  ;;  %v3501_v5 = vadd.f32 %v3500_v4, %v3499_v6  ;;  %v3612_v29 = vrot.slane %v3611_v10, 2  ;;  %v3330_v7 = vpop.f32.mrf.mxu0  ;;  %v3349_v58 = vpop.f32.mrf.mxu1 }
 0x4a3   :  { %v3609_v54 = vadd.f32 %v3608_v34, %v3607_v12  ;;  %v8807_v9 = vmul.f32 0.125, %v3497_v46  ;;  %v8809_v62 = vadd.f32 %v3349_v58, %v3330_v7  ;;  %v8826_v42 = vadd.f32 1e-05, %v3740_v15 }
 0x4a4   :  { %v3725_v25 = vsub.f32 %v3693_v49, %v3709_v37  ;;  %v3502_v22 = vrot.slane %v3501_v5, 1  ;;  %v3613_v16 = vadd.f32 %v3612_v29, %v3611_v10 }
 0x4a5   :  { %v3696_v38 = vmul.f32 0.125, %v3609_v54  ;;  %v3712_v19 = vmul.f32 %v8807_v9, %v8807_v9  ;;  %v3516_v24 = vrot.slane %v8809_v62, 4  ;;  %v3572_v1 = vmul.f32 %v8809_v62, %v8809_v62 }
 0x4a6   :  { %v3741_v55 = vmax.f32 %v3725_v25, 0.0  ;;  %v3503_v2 = vadd.f32 %v3502_v22, %v3501_v5  ;;  %v3614_v21 = vrot.slane %v3613_v16, 1  ;;  %vm3782_vm15 = vweird.f32 %v8826_v42 }
 0x4a7   :  { %v3517_v17 = vadd.f32 %v3516_v24, %v8809_v62  ;;  %v3728_v8 = vsub.f32 %v3696_v38, %v3712_v19  ;;  %v3628_v51 = vrot.slane %v3572_v1, 4 }
 0x4a8   :  { %v8816_v63 = vadd.f32 1e-05, %v3741_v55  ;;  %v3615_v52 = vadd.f32 %v3614_v21, %v3613_v16  ;;  %v8818_v43 = vmul.f32 0.125, %v3503_v2 }
 0x4a9   :  { %v3368_v39 = vpop.f32.mrf.mxu2  ;;  %v3518_v36 = vrot.slane %v3517_v17, 2  ;;  %v3629_v13 = vadd.f32 %v3628_v51, %v3572_v1  ;;  %v3744_v30 = vmax.f32 %v3728_v8, 0.0 }
 0x4aa   :  { %6958 = vrsqrt.f32 %v8816_v63  ;;  %v3697_v45 = vmul.f32 0.125, %v3615_v52  ;;  %v3713_v3 = vmul.f32 %v8818_v43, %v8818_v43  ;;  %v3387_v50 = vpop.f32.mrf.mxu3  ;;  %v3332_v32 = vpop.f32.mrf.mxu0  ;;  %vm3792_vm6 = vweird.f32 %v8816_v63 }
 0x4ab   :  { %v8824_v0 = vadd.f32 %v3387_v50, %v3368_v39  ;;  %v3351_v35 = vpop.f32.mrf.mxu1  ;;  %v3519_v44 = vadd.f32 %v3518_v36, %v3517_v17  ;;  %v3630_v56 = vrot.slane %v3629_v13, 2  ;;  %6960 = vrsqrt.f32 %v8826_v42 }
 0x4ac   :  { %v3729_v48 = vsub.f32 %v3697_v45, %v3713_v3  ;;  %v8831_v18 = vadd.f32 %v3351_v35, %v3332_v32  ;;  %v8837_v12 = vadd.f32 1e-05, %v3744_v30 }
 0x4ad   :  { %v3522_v23 = vrot.slane %v8824_v0, 4  ;;  %v3573_v47 = vmul.f32 %v8824_v0, %v8824_v0  ;;  %v3520_v6 = vrot.slane %v3519_v44, 1  ;;  %v3631_v11 = vadd.f32 %v3630_v56, %v3629_v13 }
 0x4ae   :  { %v3745_v28 = vmax.f32 %v3729_v48, 0.0  ;;  %9834 = vst [vmem:[#allocation36_spill] sm:$0xff] %v8831_v18  ;;  %v3540_v34 = vrot.slane %v8831_v18, 4  ;;  %v3576_v49 = vmul.f32 %v8831_v18, %v8831_v18  ;;  %6962 = vrsqrt.f32 %v8837_v12 }
 0x4af   :  { %v3523_v31 = vadd.f32 %v3522_v23, %v8824_v0  ;;  %v3634_v40 = vrot.slane %v3573_v47, 4  ;;  %v3521_v14 = vadd.f32 %v3520_v6, %v3519_v44  ;;  %v3632_v4 = vrot.slane %v3631_v11, 1 }
 0x4b0   :  { %v8833_v60 = vpop.eup %6958  ;;  %v8839_v10 = vadd.f32 1e-05, %v3745_v28  ;;  %v3541_v38 = vadd.f32 %v3540_v34, %v8831_v18  ;;  %v3652_v19 = vrot.slane %v3576_v49, 4 }
 0x4b1   :  { %v3524_v46 = vrot.slane %v3523_v31, 2  ;;  %v3787_v37 = vmul.f32 %v8833_v60, %v8816_v63  ;;  %v3633_v5 = vadd.f32 %v3632_v4, %v3631_v11  ;;  %v8846_v29 = vmul.f32 0.125, %v3521_v14  ;;  %v8851_v22 = vpop.eup %6960  ;;  %v3370_v24 = vpop.f32.mrf.mxu2 }
 0x4b2   :  { %v3635_v27 = vadd.f32 %v3634_v40, %v3573_v47  ;;  %6964 = vrsqrt.f32 %v8839_v10  ;;  %v3389_v15 = vpop.f32.mrf.mxu3  ;;  %v3777_v52 = vmul.f32 %v8851_v22, %v8826_v42  ;;  %v3542_v8 = vrot.slane %v3541_v38, 2  ;;  %v3401_v30 = vpop.f32.mrf.mxu0 }
 0x4b3   :  { %v3525_v54 = vadd.f32 %v3524_v46, %v3523_v31  ;;  %v3700_v7 = vmul.f32 0.125, %v3633_v5  ;;  %v3716_v58 = vmul.f32 %v8846_v29, %v8846_v29  ;;  %v3788_v55 = vmul.f32 %v8833_v60, %v3787_v37  ;;  %v3420_v44 = vpop.f32.mrf.mxu1 }
 0x4b4   :  { %v3636_v25 = vrot.slane %v3635_v27, 2  ;;  %v3653_v51 = vadd.f32 %v3652_v19, %v3576_v49  ;;  %v8860_v39 = vadd.f32 %v3389_v15, %v3370_v24  ;;  %v8862_v50 = vpop.eup %6962  ;;  %v3778_v56 = vmul.f32 %v8851_v22, %v3777_v52 }
 0x4b5   :  { %v3526_v16 = vrot.slane %v3525_v54, 1  ;;  %v3732_v2 = vsub.f32 %v3700_v7, %v3716_v58  ;;  %v3789_v36 = vmul.f32 0.5, %v3788_v55  ;;  %v3543_v28 = vadd.f32 %v3542_v8, %v3541_v38 }
 0x4b6   :  { %v3637_v21 = vadd.f32 %v3636_v25, %v3635_v27  ;;  %9835 = vst [vmem:[#allocation49_spill] sm:$0xff] %v8860_v39  ;;  %v3654_v23 = vrot.slane %v3653_v51, 2  ;;  %v3817_v47 = vmul.f32 %v8862_v50, %v8837_v12  ;;  %v3546_v11 = vrot.slane %v8860_v39, 4 }
 0x4b7   :  { %v3527_v1 = vadd.f32 %v3526_v16, %v3525_v54  ;;  %v3748_v17 = vmax.f32 %v3732_v2, 0.0  ;;  %v3577_v31 = vmul.f32 %v8860_v39, %v8860_v39  ;;  %v3790_v40 = vsub.f32 1.5, %v3789_v36 }
 0x4b8   :  { %v3638_v45 = vrot.slane %v3637_v21, 1  ;;  %v8864_v13 = vpop.eup %6964  ;;  %v8878_v4 = vadd.f32 %v3420_v44, %v3401_v30  ;;  %v3547_v34 = vadd.f32 %v3546_v11, %v8860_v39  ;;  %v3544_v37 = vrot.slane %v3543_v28, 1 }
 0x4b9   :  { %v8858_v3 = vmul.f32 0.125, %v3527_v1  ;;  %v8866_v32 = vadd.f32 1e-05, %v3748_v17  ;;  %v3827_v14 = vmul.f32 %v8864_v13, %v8839_v10  ;;  %v3658_v49 = vrot.slane %v3577_v31, 4  ;;  %v3439_v7 = vpop.f32.mrf.mxu2 }
 0x4ba   :  { %v3639_v35 = vadd.f32 %v3638_v45, %v3637_v21  ;;  %v3655_v5 = vadd.f32 %v3654_v23, %v3653_v51  ;;  %v3480_v27 = vrot.slane %v8878_v4, 4  ;;  %v3566_v54 = vmul.f32 %v8878_v4, %v8878_v4  ;;  %v3458_v58 = vpop.f32.mrf.mxu3 }
 0x4bb   :  { %v3717_v48 = vmul.f32 %v8858_v3, %v8858_v3  ;;  %6966 = vrsqrt.f32 %v8866_v32  ;;  %v3779_v25 = vmul.f32 0.5, %v3778_v56  ;;  %vm3793_vm4 = vweird.f32 %v8833_v60 }
 0x4bc   :  { %v3701_v6 = vmul.f32 0.125, %v3639_v35  ;;  %v3818_v16 = vmul.f32 %v8862_v50, %v3817_v47  ;;  %v3791_v19 = vmul.f32 %v8833_v60, %v3790_v40  ;;  %v3659_v55 = vadd.f32 %v3658_v49, %v3577_v31  ;;  %vm8899_vm7 = vmor %vm3792_vm6, %vm3793_vm4 }
 0x4bd   :  { %v3481_v2 = vadd.f32 %v3480_v27, %v8878_v4  ;;  %v3592_v21 = vrot.slane %v3566_v54, 4  ;;  %v3548_v15 = vrot.slane %v3547_v34, 2  ;;  %v8892_v1 = vadd.f32 %v3458_v58, %v3439_v7 }
 0x4be   :  { %v3733_v46 = vsub.f32 %v3701_v6, %v3717_v48  ;;  %v3828_v52 = vmul.f32 %v8864_v13, %v3827_v14  ;;  %v3545_v17 = vadd.f32 %v3544_v37, %v3543_v28  ;;  %v3656_v8 = vrot.slane %v3655_v5, 1 }
 0x4bf   :  { %v3482_v51 = vrot.slane %v3481_v2, 2  ;;  %v3780_v36 = vsub.f32 1.5, %v3779_v25  ;;  %v3593_v63 = vadd.f32 %v3592_v21, %v3566_v54  ;;  %v3795_v48 = vsel %vm8899_vm7, %v8833_v60, %v3791_v19 }
 0x4c0   :  { %v3749_v38 = vmax.f32 %v3733_v46, 0.0  ;;  %v3819_v30 = vmul.f32 0.5, %v3818_v16  ;;  %v3660_v44 = vrot.slane %v3659_v55, 2  ;;  %v3549_v28 = vadd.f32 %v3548_v15, %v3547_v34  ;;  %v3403_v15 = vpop.f32.mrf.mxu0 }
 0x4c1   :  { %v8895_v45 = vpop.eup %6966  ;;  %v3483_v56 = vadd.f32 %v3482_v51, %v3481_v2  ;;  %v3594_v23 = vrot.slane %v3593_v63, 2  ;;  %v3486_v47 = vrot.slane %v8892_v1, 4  ;;  %v3567_v6 = vmul.f32 %v8892_v1, %v8892_v1 }
 0x4c2   :  { %v8890_v24 = vadd.f32 1e-05, %v3749_v38  ;;  %v3829_v11 = vmul.f32 0.5, %v3828_v52  ;;  %v3657_v31 = vadd.f32 %v3656_v8, %v3655_v5  ;;  %v8910_v40 = vmul.f32 0.125, %v3545_v17  ;;  %v3422_v52 = vpop.f32.mrf.mxu1 }
 0x4c3   :  { %v3484_v14 = vrot.slane %v3483_v56, 1  ;;  %v3857_v46 = vmul.f32 %v8895_v45, %v8866_v32  ;;  %v3595_v49 = vadd.f32 %v3594_v23, %v3593_v63  ;;  %v3487_v60 = vadd.f32 %v3486_v47, %v8892_v1 }
 0x4c4   :  { %6968 = vrsqrt.f32 %v8890_v24  ;;  %9838 = vst [vmem:[#allocation42_spill] sm:$0xff] %v8910_v40  ;;  %v3598_v37 = vrot.slane %v3567_v6, 4  ;;  %v8916_v34 = vmul.f32 %v8851_v22, %v3780_v36  ;;  %vm3833_vm8 = vweird.f32 %v8864_v13 }
 0x4c5   :  { %v3661_v27 = vadd.f32 %v3660_v44, %v3659_v55  ;;  %v3485_v54 = vadd.f32 %v3484_v14, %v3483_v56  ;;  %vm3832_vm9 = vweird.f32 %v8839_v10  ;;  %v3550_v5 = vrot.slane %v3549_v28, 1 }
 0x4c6   :  { %v3596_v58 = vrot.slane %v3595_v49, 1  ;;  %v3488_v25 = vrot.slane %v3487_v60, 2  ;;  %v3599_v16 = vadd.f32 %v3598_v37, %v3567_v6  ;;  %v8922_v38 = vrot.slane %v3795_v48, 7  ;;  %vm8950_vm10 = vmor %vm3832_vm9, %vm3833_vm8 }
 0x4c7   :  { %v3820_v19 = vsub.f32 1.5, %v3819_v30  ;;  %v3830_v2 = vsub.f32 1.5, %v3829_v11  ;;  %v3858_v55 = vmul.f32 %v8895_v45, %v3857_v46  ;;  %v3704_v17 = vmul.f32 0.125, %v3657_v31 }
 0x4c8   :  { %v3720_v8 = vmul.f32 %v8910_v40, %v8910_v40  ;;  %v3597_v51 = vadd.f32 %v3596_v58, %v3595_v49  ;;  %v3662_v36 = vrot.slane %v3661_v27, 1  ;;  %v8929_v35 = vmul.f32 0.125, %v3485_v54 }
 0x4c9   :  { %v3489_v63 = vadd.f32 %v3488_v25, %v3487_v60  ;;  %v3600_v48 = vrot.slane %v3599_v16, 2  ;;  %v3551_v44 = vadd.f32 %v3550_v5, %v3549_v28  ;;  %v8932_v23 = vadd.f32 %v3422_v52, %v3403_v15  ;;  %v3441_v52 = vpop.f32.mrf.mxu2 }
 0x4ca   :  { %v8919_v7 = vpop.eup %6968  ;;  %v3694_v56 = vmul.f32 0.125, %v3597_v51  ;;  %v8935_v47 = vmul.f32 %v8862_v50, %v3820_v19  ;;  %v3710_v6 = vmul.f32 %v8929_v35, %v8929_v35  ;;  %v3831_v14 = vmul.f32 %v8864_v13, %v3830_v2 }
 0x4cb   :  { %v3867_v21 = vmul.f32 %v8919_v7, %v8890_v24  ;;  %v3490_v11 = vrot.slane %v3489_v63, 1  ;;  %v3601_v31 = vadd.f32 %v3600_v48, %v3599_v16  ;;  %v3859_v46 = vmul.f32 0.5, %v3858_v55  ;;  %v3460_v55 = vpop.f32.mrf.mxu3 }
 0x4cc   :  { %v3736_v49 = vsub.f32 %v3704_v17, %v3720_v8  ;;  %v3504_v60 = vrot.slane %v8932_v23, 4  ;;  %v3663_v37 = vadd.f32 %v3662_v36, %v3661_v27  ;;  %v3726_v54 = vsub.f32 %v3694_v56, %v3710_v6 }
 0x4cd   :  { %v3868_v30 = vmul.f32 %v8919_v7, %v3867_v21  ;;  %v3491_v28 = vadd.f32 %v3490_v11, %v3489_v63  ;;  %v3602_v5 = vrot.slane %v3601_v31, 1  ;;  %v8941_v25 = vmul.f32 0.125, %v3551_v44 }
 0x4ce   :  { %v3505_v19 = vadd.f32 %v3504_v60, %v8932_v23  ;;  %v3570_v21 = vmul.f32 %v8932_v23, %v8932_v23  ;;  %vm3862_vm11 = vweird.f32 %v8866_v32  ;;  %v3742_v27 = vmax.f32 %v3726_v54, 0.0  ;;  %v3425_v54 = vpop.f32.mrf.mxu1 }
 0x4cf   :  { %v3869_v58 = vmul.f32 0.5, %v3868_v30  ;;  %9839 = vst [vmem:[#allocation44_spill] sm:$0xff] %v8941_v25  ;;  %v3603_v2 = vadd.f32 %v3602_v5, %v3601_v31  ;;  %v8955_v15 = vmul.f32 0.125, %v3491_v28  ;;  %v3835_v17 = vsel %vm8950_vm10, %v8864_v13, %v3831_v14 }
 0x4d0   :  { %v3860_v8 = vsub.f32 1.5, %v3859_v46  ;;  %v3752_v51 = vmax.f32 %v3736_v49, 0.0  ;;  %v3506_v36 = vrot.slane %v3505_v19, 2  ;;  %vm3783_vm12 = vweird.f32 %v8851_v22 }
 0x4d1   :  { %v3705_v10 = vmul.f32 0.125, %v3663_v37  ;;  %v8961_v63 = vadd.f32 1e-05, %v3742_v27  ;;  %v3695_v48 = vmul.f32 0.125, %v3603_v2  ;;  %v3711_v30 = vmul.f32 %v8955_v15, %v8955_v15  ;;  %v3406_v37 = vpop.f32.mrf.mxu0  ;;  %vm9026_vm6 = vmor %vm3782_vm15, %vm3783_vm12 }
 0x4d2   :  { %v3870_v44 = vsub.f32 1.5, %v3869_v58  ;;  %v3721_v56 = vmul.f32 %v8941_v25, %v8941_v25  ;;  %v3507_v6 = vadd.f32 %v3506_v36, %v3505_v19  ;;  %v3616_v11 = vrot.slane %v3570_v21, 4 }
 0x4d3   :  { %vm3863_vm0 = vweird.f32 %v8895_v45  ;;  %6970 = vrsqrt.f32 %v8961_v63  ;;  %v3727_v13 = vsub.f32 %v3695_v48, %v3711_v30  ;;  %v8970_v31 = vadd.f32 %v3460_v55, %v3441_v52 }
 0x4d4   :  { %v8973_v14 = vmul.f32 %v8895_v45, %v3860_v8  ;;  %v8975_v46 = vadd.f32 1e-05, %v3752_v51  ;;  %v3508_v49 = vrot.slane %v3507_v6, 1  ;;  %v3617_v60 = vadd.f32 %v3616_v11, %v3570_v21  ;;  %vm8992_vm3 = vmor %vm3862_vm11, %vm3863_vm0 }
 0x4d5   :  { %vm3873_vm1 = vweird.f32 %v8919_v7  ;;  %v3743_v28 = vmax.f32 %v3727_v13, 0.0  ;;  %v3510_v5 = vrot.slane %v8970_v31, 4  ;;  %v3571_v58 = vmul.f32 %v8970_v31, %v8970_v31 }
 0x4d6   :  { %9842 = vst [vmem:[#allocation47_spill] sm:$0xff] %v8975_v46  ;;  %v3871_v19 = vmul.f32 %v8919_v7, %v3870_v44  ;;  %v3737_v16 = vsub.f32 %v3705_v10, %v3721_v56  ;;  %v3509_v27 = vadd.f32 %v3508_v49, %v3507_v6  ;;  %v3618_v2 = vrot.slane %v3617_v60, 2  ;;  %v3444_v56 = vpop.f32.mrf.mxu2  ;;  %v3463_v6 = vpop.f32.mrf.mxu3 }
 0x4d7   :  { %vm3872_vm2 = vweird.f32 %v8890_v24  ;;  %v8983_v52 = vadd.f32 1e-05, %v3743_v28  ;;  %v3511_v21 = vadd.f32 %v3510_v5, %v8970_v31  ;;  %v8986_v55 = vadd.f32 %v3425_v54, %v3406_v37 }
 0x4d8   :  { %6972 = vrsqrt.f32 %v8975_v46  ;;  %v3619_v51 = vadd.f32 %v3618_v2, %v3617_v60  ;;  %v8997_v36 = vmul.f32 0.125, %v3509_v27  ;;  %v3622_v24 = vrot.slane %v3571_v58, 4  ;;  %vm9009_vm4 = vmor %vm3872_vm2, %vm3873_vm1 }
 0x4d9   :  { %v8999_v10 = vpop.eup %6970  ;;  %v9001_v48 = vrot.slane %v3835_v17, 7  ;;  %6974 = vrsqrt.f32 %v8983_v52  ;;  %v3512_v44 = vrot.slane %v3511_v21, 2  ;;  %v3875_v17 = vsel %vm9009_vm4, %v8919_v7, %v3871_v19 }
 0x4da   :  { %v3753_v11 = vmax.f32 %v3737_v16, 0.0  ;;  %v3797_v13 = vmul.f32 %v8999_v10, %v8961_v63  ;;  %v3620_v49 = vrot.slane %v3619_v51, 1  ;;  %v3714_v60 = vmul.f32 %v8997_v36, %v8997_v36 }
 0x4db   :  { %v3513_v37 = vadd.f32 %v3512_v44, %v3511_v21  ;;  %v3623_v54 = vadd.f32 %v3622_v24, %v3571_v58  ;;  %v3528_v28 = vrot.slane %v8986_v55, 4  ;;  %v3574_v16 = vmul.f32 %v8986_v55, %v8986_v55 }
 0x4dc   :  { %v3798_v7 = vmul.f32 %v8999_v10, %v3797_v13  ;;  %v3621_v19 = vadd.f32 %v3620_v49, %v3619_v51  ;;  %v9033_v27 = vadd.f32 %v3463_v6, %v3444_v56  ;;  %v3958_v32 = vrot.slane %v3875_v17, 7 }
 0x4dd   :  { %v3514_v2 = vrot.slane %v3513_v37, 1  ;;  %v3624_v21 = vrot.slane %v3623_v54, 2  ;;  %v3529_v42 = vadd.f32 %v3528_v28, %v8986_v55  ;;  %v9042_v44 = vadd.f32 1e-05, %v3753_v11 }
 0x4de   :  { %9849 = vst [vmem:[#allocation43_spill] sm:$0xff] %v9033_v27  ;;  %v9040_v24 = vpop.eup %6972  ;;  %v3799_v51 = vmul.f32 0.5, %v3798_v7  ;;  %v3698_v13 = vmul.f32 0.125, %v3621_v19  ;;  %v3640_v57 = vrot.slane %v3574_v16, 4  ;;  %v3534_v18 = vrot.slane %v9033_v27, 4  ;;  %v3446_v5 = vpop.f32.mrf.mxu2 }
 0x4df   :  { %v6975_v49 = vpop.eup %6974  ;;  %v3515_v30 = vadd.f32 %v3514_v2, %v3513_v37  ;;  %v3625_v56 = vadd.f32 %v3624_v21, %v3623_v54  ;;  %v3530_v6 = vrot.slane %v3529_v42, 2  ;;  %vm3802_vm7 = vweird.f32 %v8961_v63 }
 0x4e0   :  { %v3800_v61 = vsub.f32 1.5, %v3799_v51  ;;  %v3807_v39 = vmul.f32 %v6975_v49, %v8983_v52  ;;  %v3730_v58 = vsub.f32 %v3698_v13, %v3714_v60  ;;  %vm3803_vm8 = vweird.f32 %v8999_v10 }
 0x4e1   :  { %v3626_v28 = vrot.slane %v3625_v56, 1  ;;  %v9047_v40 = vmul.f32 0.125, %v3515_v30  ;;  %v3531_v17 = vadd.f32 %v3530_v6, %v3529_v42  ;;  %vm3823_vm9 = vweird.f32 %v8862_v50  ;;  %vm9061_vm12 = vmor %vm3802_vm7, %vm3803_vm8 }
 0x4e2   :  { %v3801_v11 = vmul.f32 %v8999_v10, %v3800_v61  ;;  %v3808_v37 = vmul.f32 %v6975_v49, %v3807_v39  ;;  %v3746_v54 = vmax.f32 %v3730_v58, 0.0  ;;  %v3641_v2 = vadd.f32 %v3640_v57, %v3574_v16  ;;  %v3408_v57 = vpop.f32.mrf.mxu0  ;;  %v3427_v16 = vpop.f32.mrf.mxu1 }
 0x4e3   :  { %v3627_v7 = vadd.f32 %v3626_v28, %v3625_v56  ;;  %v3715_v60 = vmul.f32 %v9047_v40, %v9047_v40  ;;  %v3532_v19 = vrot.slane %v3531_v17, 1  ;;  %vm3812_vm10 = vweird.f32 %v8983_v52  ;;  %v9094_v52 = vld [vmem:[#allocation20 + $0x24] ss:$4 sm:$0xf] }
 0x4e4   :  { %v3809_v21 = vmul.f32 0.5, %v3808_v37  ;;  %v9055_v30 = vadd.f32 1e-05, %v3746_v54  ;;  %v3535_v42 = vadd.f32 %v3534_v18, %v9033_v27  ;;  %vm3822_vm11 = vweird.f32 %v8837_v12 }
 0x4e5   :  { %vm3813_vm15 = vweird.f32 %v6975_v49  ;;  %v3699_v39 = vmul.f32 0.125, %v3627_v7  ;;  %v3533_v58 = vadd.f32 %v3532_v19, %v3531_v17  ;;  %v3642_v51 = vrot.slane %v3641_v2, 2  ;;  %vm9117_vm1 = vmor %vm3822_vm11, %vm3823_vm9 }
 0x4e6   :  { %v3805_v13 = vsel %vm9061_vm12, %v8999_v10, %v3801_v11  ;;  %v3810_v56 = vsub.f32 1.5, %v3809_v21  ;;  %6976 = vrsqrt.f32 %v9055_v30  ;;  %v3536_v18 = vrot.slane %v3535_v42, 2  ;;  %vm3814_vm0 = vmor %vm3812_vm10, %vm3813_vm15 }
 0x4e7   :  { %v3731_v6 = vsub.f32 %v3699_v39, %v3715_v60  ;;  %v3643_v63 = vadd.f32 %v3642_v51, %v3641_v2  ;;  %v9069_v28 = vmul.f32 0.125, %v3533_v58  ;;  %v3575_v37 = vmul.f32 %v9033_v27, %v9033_v27  ;;  %v6831_v27 = vld [vmem:[#allocation13 + $0xf0] sm:$0xff] }
 0x4e8   :  { %v3811_v54 = vmul.f32 %v6975_v49, %v3810_v56  ;;  %v3537_v17 = vadd.f32 %v3536_v18, %v3535_v42  ;;  %v9852_v7 = vsel %vm8992_vm3, %v8895_v45, %v8973_v14  ;;  %v9081_v11 = vadd.f32 %v3427_v16, %v3408_v57 }
 0x4e9   :  { %v9079_v10 = vsel %vm1009_vm5, %v9852_v7, %v3958_v32  ;;  %v3953_v19 = vrot.slane %v3805_v13, 6  ;;  %v3747_v60 = vmax.f32 %v3731_v6, 0.0  ;;  %v3644_v2 = vrot.slane %v3643_v63, 1 }
 0x4ea   :  { %9853 = vst [vmem:[#allocation40_spill] sm:$0xff] %v9081_v11  ;;  %v3646_v21 = vrot.slane %v3575_v37, 4  ;;  %v3815_v61 = vsel %vm3814_vm0, %v6975_v49, %v3811_v54  ;;  %v3538_v42 = vrot.slane %v3537_v17, 1  ;;  %v3552_v8 = vrot.slane %v9081_v11, 4 }
 0x4eb   :  { %v3578_v45 = vmul.f32 %v9081_v11, %v9081_v11  ;;  %v3954_v14 = vrot.slane %v3815_v61, 5  ;;  %v9089_v32 = vadd.f32 1e-05, %v3747_v60  ;;  %v3645_v39 = vadd.f32 %v3644_v2, %v3643_v63  ;;  %v3465_v63 = vpop.f32.mrf.mxu3 }
 0x4ec   :  { %v3647_v58 = vadd.f32 %v3646_v21, %v3575_v37  ;;  %v9091_v51 = vpop.eup %6976  ;;  %6978 = vrsqrt.f32 %v9042_v44  ;;  %v9854_v49 = vsel %vm9026_vm6, %v8851_v22, %v8916_v34  ;;  %v3718_v16 = vmul.f32 %v9069_v28, %v9069_v28 }
 0x4ed   :  { %v3964_v57 = vsel %vm1009_vm5, %v9854_v49, %v8922_v38  ;;  %v3539_v13 = vadd.f32 %v3538_v42, %v3537_v17  ;;  %v9107_v56 = vmul.f32 %v9040_v24, %v8975_v46  ;;  %v3965_v18 = vsel %vm1011_vm13, %v3953_v19, %v3954_v14  ;;  %v6808_v49 = vld [vmem:[#allocation13 + $0x38] sm:$0xff] }
 0x4ee   :  { %v3837_v6 = vmul.f32 %v9091_v51, %v9055_v30  ;;  %6980 = vrsqrt.f32 %v9089_v32  ;;  %v3966_v34 = vsel %vm1013_vm14, %v3964_v57, %v3965_v18  ;;  %v3702_v38 = vmul.f32 0.125, %v3645_v39  ;;  %v6816_v57 = vld [vmem:[#allocation13 + $0x78] sm:$0xff]  ;;  %4432 = vmatpush.bf16.msra.mxu0 %v6808_v49 }
 0x4ef   :  { %v3648_v37 = vrot.slane %v3647_v58, 2  ;;  %v3553_v54 = vadd.f32 %v3552_v8, %v9081_v11  ;;  %v9124_v17 = vmul.f32 %v3966_v34, %v9094_v52  ;;  %v3664_v19 = vrot.slane %v3578_v45, 4  ;;  %4451 = vmatpush.bf16.msra.mxu1 %v6816_v57 }
 0x4f0   :  { %v3838_v7 = vmul.f32 %v9091_v51, %v3837_v6  ;;  %v3734_v60 = vsub.f32 %v3702_v38, %v3718_v16  ;;  %v9131_v21 = vmul.f32 0.125, %v3539_v13  ;;  %v9133_v61 = vadd.f32 %v3465_v63, %v3446_v5  ;;  %v6824_v5 = vld [vmem:[#allocation13 + $0xb8] sm:$0xff] }
 0x4f1   :  { %v3649_v2 = vadd.f32 %v3648_v37, %v3647_v58  ;;  %v9747_v42 = vperm.slane %v9124_v17, 0  ;;  %v9744_v8 = vperm.slane %v9124_v17, 1  ;;  %v9745_v14 = vperm.slane %v9124_v17, 2  ;;  %v6832_v63 = vld [vmem:[#allocation13 + $0xf8] sm:$0xff]  ;;  %4470 = vmatpush.bf16.msra.mxu2 %v6824_v5 }
 0x4f2   :  { %v9748_v39 = vperm.slane %v9124_v17, 3  ;;  %v9139_v18 = vpop.eup %6978  ;;  %v3839_v6 = vmul.f32 0.5, %v3838_v7  ;;  %vm3842_vm2 = vweird.f32 %v9055_v30  ;;  %v3750_v58 = vmax.f32 %v3734_v60, 0.0  ;;  %v9153_v60 = vld [vmem:[#allocation20 + $0x25] ss:$4 sm:$0xf]  ;;  %4489 = vmatpush.bf16.msra.mxu3 %v6832_v63 }
 0x4f3   :  { %v3650_v16 = vrot.slane %v3649_v2, 1  ;;  %v3554_v13 = vrot.slane %v3553_v54, 2  ;;  %v4021_v38 = vmul.f32 %v9744_v8, %v8803_v53  ;;  %v4022_v37 = vmul.f32 %v9745_v14, %v8929_v35 }
 0x4f4   :  { %v9142_v34 = vpop.eup %6980  ;;  %v4023_v7 = vmul.f32 %v9748_v39, %v8955_v15  ;;  %v3665_v12 = vadd.f32 %v3664_v19, %v3578_v45  ;;  %v4020_v11 = vmul.f32 %v9747_v42, %v8795_v59  ;;  %v3840_v25 = vsub.f32 1.5, %v3839_v6  ;;  %v6807_v45 = vld [vmem:[#allocation13 + $0x30] sm:$0xff] }
 0x4f5   :  { %v3847_v53 = vmul.f32 %v9142_v34, %v9089_v32  ;;  %v3558_v8 = vrot.slane %v9133_v61, 4  ;;  %v4052_v35 = vrot.slane %v4021_v38, 7  ;;  %v4053_v14 = vrot.slane %v4022_v37, 6  ;;  %v6815_v42 = vld [vmem:[#allocation13 + $0x70] sm:$0xff]  ;;  %4433 = vmatpush.bf16.msra.mxu0 %v6807_v45  ;;  %v6822_v38 = vld [vmem:[#allocation13 + $0xa8] sm:$0xff] }
 0x4f6   :  { %v4054_v46 = vrot.slane %v4023_v7, 5  ;;  %v9161_v15 = vadd.f32 1e-05, %v3750_v58  ;;  %v3651_v49 = vadd.f32 %v3650_v16, %v3649_v2  ;;  %v3719_v59 = vmul.f32 %v9131_v21, %v9131_v21  ;;  %v6823_v39 = vld [vmem:[#allocation13 + $0xb0] sm:$0xff]  ;;  %4452 = vmatpush.bf16.msra.mxu1 %v6815_v42  ;;  %4490 = vmatpush.bf16.msra.mxu3 %v6831_v27  ;;  %v6830_v42 = vld [vmem:[#allocation13 + $0xe8] sm:$0xff] }
 0x4f7   :  { %v3848_v19 = vmul.f32 %v9142_v34, %v3847_v53  ;;  %v3555_v6 = vadd.f32 %v3554_v13, %v3553_v54  ;;  %v4064_v57 = vsel %vm1009_vm5, %v4020_v11, %v4052_v35  ;;  %vm3843_vm3 = vweird.f32 %v9091_v51  ;;  %4471 = vmatpush.bf16.msra.mxu2 %v6823_v39  ;;  %v6814_v13 = vld [vmem:[#allocation13 + $0x68] sm:$0xff] }
 0x4f8   :  { %v4065_v5 = vsel %vm1011_vm13, %v4053_v14, %v4054_v46  ;;  %6982 = vrsqrt.f32 %v9161_v15  ;;  %v3841_v2 = vmul.f32 %v9091_v51, %v3840_v25  ;;  %v3703_v63 = vmul.f32 0.125, %v3651_v49  ;;  %v6806_v14 = vld [vmem:[#allocation13 + $0x28] sm:$0xff]  ;;  %vm9183_vm6 = vmor %vm3842_vm2, %vm3843_vm3 }
 0x4f9   :  { %v4066_v58 = vsel %vm1013_vm14, %v4064_v57, %v4065_v5  ;;  %v3849_v16 = vmul.f32 0.5, %v3848_v19  ;;  %vm3853_vm4 = vweird.f32 %v9142_v34  ;;  %v3556_v11 = vrot.slane %v3555_v6, 1  ;;  %4434 = vmatpush.bf16.msra.mxu0 %v6806_v14  ;;  %v6821_v57 = vld [vmem:[#allocation13 + $0xa0] sm:$0xff] }
 0x4fa   :  { %v9173_v54 = vsub.f32 %v9153_v60, %v4066_v58  ;;  %v3666_v46 = vrot.slane %v3665_v12, 2  ;;  %v3735_v7 = vsub.f32 %v3703_v63, %v3719_v59  ;;  %v3559_v53 = vadd.f32 %v3558_v8, %v9133_v61  ;;  %4453 = vmatpush.bf16.msra.mxu1 %v6814_v13  ;;  %4491 = vmatpush.bf16.msra.mxu3 %v6830_v42  ;;  %v6805_v59 = vld [vmem:[#allocation13 + $0x20] sm:$0xff] }
 0x4fb   :  { %v3850_v37 = vsub.f32 1.5, %v3849_v16  ;;  %v3579_v25 = vmul.f32 %v9133_v61, %v9133_v61  ;;  %vm3852_vm7 = vweird.f32 %v9089_v32  ;;  %v9859_v27 = vsel %vm9117_vm1, %v8862_v50, %v8935_v47  ;;  %4472 = vmatpush.bf16.msra.mxu2 %v6822_v38  ;;  %v6829_v63 = vld [vmem:[#allocation13 + $0xe0] sm:$0xff] }
 0x4fc   :  { %v3967_v8 = vsel %vm1009_vm5, %v9859_v27, %v9001_v48  ;;  %v3557_v35 = vadd.f32 %v3556_v11, %v3555_v6  ;;  %v3667_v45 = vadd.f32 %v3666_v46, %v3665_v12  ;;  %v3845_v30 = vsel %vm9183_vm6, %v9091_v51, %v3841_v2  ;;  %vm9201_vm8 = vmor %vm3852_vm7, %vm3853_vm4  ;;  %v6813_v6 = vld [vmem:[#allocation13 + $0x60] sm:$0xff] }
 0x4fd   :  { %v3851_v19 = vmul.f32 %v9142_v34, %v3850_v37  ;;  %v3751_v22 = vmax.f32 %v3735_v7, 0.0  ;;  %v3560_v49 = vrot.slane %v3559_v53, 2  ;;  %v9209_v47 = vmul.f32 %v9139_v18, %v9042_v44  ;;  %4435 = vmatpush.bf16.msra.mxu0 %v6805_v59 }
 0x4fe   :  { %v9205_v50 = vpop.eup %6982  ;;  %v3668_v48 = vrot.slane %v3667_v45, 1  ;;  %v9211_v51 = vmul.f32 0.125, %v3557_v35  ;;  %v3670_v12 = vrot.slane %v3579_v25, 4  ;;  %v4107_v5 = vperm.slane %v9173_v54, 3  ;;  %4454 = vmatpush.bf16.msra.mxu1 %v6813_v6  ;;  %4492 = vmatpush.bf16.msra.mxu3 %v6829_v63  ;;  %v6804_v35 = vld [vmem:[#allocation13 + $0x18] sm:$0xff] }
 0x4ff   :  { %v3855_v58 = vsel %vm9201_vm8, %v9142_v34, %v3851_v19  ;;  %v3877_v2 = vmul.f32 %v9205_v50, %v9161_v15  ;;  %v9219_v16 = vadd.f32 1e-05, %v3751_v22  ;;  %v3956_v11 = vrot.slane %v3845_v30, 6  ;;  %4473 = vmatpush.bf16.msra.mxu2 %v6821_v57  ;;  %v6820_v30 = vld [vmem:[#allocation13 + $0x98] sm:$0xff] }
 0x500   :  { %v3957_v46 = vrot.slane %v3855_v58, 5  ;;  %v3669_v14 = vadd.f32 %v3668_v48, %v3667_v45  ;;  %v3722_v13 = vmul.f32 %v9211_v51, %v9211_v51  ;;  %v9862_v38 = vperm.slane %v9124_v17, 3  ;;  %v6812_v45 = vld [vmem:[#allocation13 + $0x58] sm:$0xff] }
 0x501   :  { %v3878_v7 = vmul.f32 %v9205_v50, %v3877_v2  ;;  %6984 = vrsqrt.f32 %v9219_v16  ;;  %v3561_v34 = vadd.f32 %v3560_v49, %v3559_v53  ;;  %vm3882_vm9 = vweird.f32 %v9161_v15  ;;  %v6828_v48 = vld [vmem:[#allocation13 + $0xd8] sm:$0xff]  ;;  %4436 = vmatpush.bf16.msra.mxu0 %v6804_v35 }
 0x502   :  { %v4087_v37 = vmul.f32 %v9862_v38, %v8892_v1  ;;  %v3968_v42 = vsel %vm1011_vm13, %v3956_v11, %v3957_v46  ;;  %v3706_v39 = vmul.f32 0.125, %v3669_v14  ;;  %v3671_v27 = vadd.f32 %v3670_v12, %v3579_v25  ;;  %4455 = vmatpush.bf16.msra.mxu1 %v6812_v45  ;;  %4493 = vmatpush.bf16.msra.mxu3 %v6828_v48  ;;  %v6803_v11 = vld [vmem:[#allocation13 + $0x10] sm:$0xff]  ;;  %v6802_v48 = vld [vmem:[#allocation13 + $0x8] sm:$0xff] }
 0x503   :  { %v3969_v1 = vsel %vm1013_vm14, %v3967_v8, %v3968_v42  ;;  %v3879_v32 = vmul.f32 0.5, %v3878_v7  ;;  %v3562_v22 = vrot.slane %v3561_v34, 1  ;;  %v9863_v25 = vperm.slane %v9124_v17, 0  ;;  %4474 = vmatpush.bf16.msra.mxu2 %v6820_v30  ;;  %v6811_v46 = vld [vmem:[#allocation13 + $0x50] sm:$0xff] }
 0x504   :  { %v9230_v19 = vadd.f32 %v4107_v5, %v4087_v37  ;;  %v9234_v53 = vmul.f32 %v3969_v1, %v9094_v52  ;;  %v3738_v49 = vsub.f32 %v3706_v39, %v3722_v13  ;;  %v3672_v59 = vrot.slane %v3671_v27, 2  ;;  %v6819_v37 = vld [vmem:[#allocation13 + $0x90] sm:$0xff] }
 0x505   :  { %v4084_v12 = vmul.f32 %v9863_v25, %v8775_v33  ;;  %v3880_v6 = vsub.f32 1.5, %v3879_v32  ;;  %vm3883_vm10 = vweird.f32 %v9205_v50  ;;  %v3563_v57 = vadd.f32 %v3562_v22, %v3561_v34  ;;  %v6827_v7 = vld [vmem:[#allocation13 + $0xd0] sm:$0xff]  ;;  %4437 = vmatpush.bf16.msra.mxu0 %v6803_v11 }
 0x506   :  { %v4104_v8 = vperm.slane %v9173_v54, 0  ;;  %v3992_v5 = vperm.slane %v9234_v53, 0  ;;  %v3993_v58 = vperm.slane %v9234_v53, 1  ;;  %v3994_v2 = vperm.slane %v9234_v53, 2  ;;  %4456 = vmatpush.bf16.msra.mxu1 %v6811_v46  ;;  %4494 = vmatpush.bf16.msra.mxu3 %v6827_v7  ;;  %vm9272_vm12 = vmor %vm3882_vm9, %vm3883_vm10 }
 0x507   :  { %v3995_v63 = vperm.slane %v9234_v53, 3  ;;  %v9245_v33 = vpop.eup %6984  ;;  %v4155_v14 = vmax.f32 %v9230_v19, 0.0  ;;  %v3754_v13 = vmax.f32 %v3738_v49, 0.0  ;;  %v3673_v38 = vadd.f32 %v3672_v59, %v3671_v27  ;;  %4475 = vmatpush.bf16.msra.mxu2 %v6819_v37  ;;  %v6810_v49 = vld [vmem:[#allocation13 + $0x48] sm:$0xff] }
 0x508   :  { %v9864_v34 = vperm.slane %v9124_v17, 1  ;;  %v4025_v39 = vmul.f32 %v3993_v58, %v8818_v43  ;;  %v4026_v35 = vmul.f32 %v3994_v2, %v8997_v36  ;;  %v9257_v30 = vmul.f32 %v9205_v50, %v3880_v6 }
 0x509   :  { %v4027_v45 = vmul.f32 %v3995_v63, %v9047_v40  ;;  %v3887_v27 = vmul.f32 %v9245_v33, %v9219_v16  ;;  %vm3892_vm11 = vweird.f32 %v9219_v16  ;;  %v9262_v1 = vmul.f32 0.125, %v3563_v57  ;;  %v6826_v57 = vld [vmem:[#allocation13 + $0xc8] sm:$0xff]  ;;  %4438 = vmatpush.bf16.msra.mxu0 %v6802_v48 }
 0x50a   :  { %v4085_v42 = vmul.f32 %v9864_v34, %v8781_v41  ;;  %v9264_v41 = vadd.f32 %v4104_v8, %v4084_v12  ;;  %v4105_v43 = vperm.slane %v9173_v54, 1  ;;  %v4024_v36 = vmul.f32 %v3992_v5, %v8807_v9  ;;  %v6818_v9 = vld [vmem:[#allocation13 + $0x88] sm:$0xff]  ;;  %4457 = vmatpush.bf16.msra.mxu1 %v6810_v49  ;;  %4495 = vmatpush.bf16.msra.mxu3 %v6826_v57 }
 0x50b   :  { %v4055_v40 = vrot.slane %v4025_v39, 7  ;;  %v4056_v32 = vrot.slane %v4026_v35, 6  ;;  %v4057_v22 = vrot.slane %v4027_v45, 5  ;;  %v3888_v25 = vmul.f32 %v9245_v33, %v3887_v27  ;;  %4476 = vmatpush.bf16.msra.mxu2 %v6818_v9  ;;  %v6809_v39 = vld [vmem:[#allocation13 + $0x40] sm:$0xff] }
 0x50c   :  { %v9277_v12 = vadd.f32 1e-05, %v3754_v13  ;;  %v3674_v6 = vrot.slane %v3673_v38, 1  ;;  %v9867_v8 = vperm.slane %v9124_v17, 2  ;;  %v4091_v15 = vmul.f32 %v3995_v63, %v8970_v31  ;;  %v6801_v63 = vld [vmem:[#allocation13] sm:$0xff] }
 0x50d   :  { %v4067_v46 = vsel %vm1009_vm5, %v4024_v36, %v4055_v40  ;;  %v4068_v37 = vsel %vm1011_vm13, %v4056_v32, %v4057_v22  ;;  %v3885_v7 = vsel %vm9272_vm12, %v9205_v50, %v9257_v30  ;;  %v3889_v34 = vmul.f32 0.5, %v3888_v25  ;;  %v6817_v50 = vld [vmem:[#allocation13 + $0x80] sm:$0xff]  ;;  %4439 = vmatpush.bf16.msra.mxu0 %v6801_v63 }
 0x50e   :  { %v4086_v11 = vmul.f32 %v9867_v8, %v8878_v4  ;;  %v4069_v13 = vsel %vm1013_vm14, %v4067_v46, %v4068_v37  ;;  %vm3893_vm15 = vweird.f32 %v9245_v33  ;;  %6986 = vrsqrt.f32 %v9277_v12  ;;  %v6825_v30 = vld [vmem:[#allocation13 + $0xc0] sm:$0xff]  ;;  %4458 = vmatpush.bf16.msra.mxu1 %v6809_v39 }
 0x50f   :  { %v4081_v4 = vsub.f32 %v9153_v60, %v4069_v13  ;;  %v3675_v17 = vadd.f32 %v3674_v6, %v3673_v38  ;;  %v3723_v31 = vmul.f32 %v9262_v1, %v9262_v1  ;;  %v4088_v35 = vmul.f32 %v3992_v5, %v8786_v26  ;;  %4477 = vmatpush.bf16.msra.mxu2 %v6817_v50  ;;  %vm3894_vm0 = vmor %vm3892_vm11, %vm3893_vm15  ;;  %v6839_v13 = vld [vmem:[#allocation14 + $0x30] sm:$0xff] }
 0x510   :  { %v3890_v45 = vsub.f32 1.5, %v3889_v34  ;;  %v4089_v27 = vmul.f32 %v3993_v58, %v8793_v20  ;;  %v4137_v36 = vadd.f32 %v4105_v43, %v4085_v42  ;;  %v4106_v40 = vperm.slane %v9173_v54, 2  ;;  %4496 = vmatpush.bf16.msra.mxu3 %v6825_v30  ;;  %v6840_v42 = vld [vmem:[#allocation14 + $0x38] sm:$0xff] }
 0x511   :  { %v4111_v32 = vperm.slane %v4081_v4, 3  ;;  %v3707_v22 = vmul.f32 0.125, %v3675_v17  ;;  %v4108_v38 = vperm.slane %v4081_v4, 0  ;;  %v4109_v48 = vperm.slane %v4081_v4, 1  ;;  %4798 = vmatpush.bf16.msrb.mxu0 %v6840_v42 }
 0x512   :  { %v3891_v49 = vmul.f32 %v9245_v33, %v3890_v45  ;;  %v4090_v26 = vmul.f32 %v3994_v2, %v8932_v23  ;;  %v4110_v5 = vperm.slane %v4081_v4, 2  ;;  %v4138_v59 = vadd.f32 %v4106_v40, %v4086_v11 }
 0x513   :  { %v4143_v25 = vadd.f32 %v4111_v32, %v4091_v15  ;;  %v3739_v20 = vsub.f32 %v3707_v22, %v3723_v31  ;;  %v4140_v54 = vadd.f32 %v4108_v38, %v4088_v35  ;;  %v4141_v58 = vadd.f32 %v4109_v48, %v4089_v27  ;;  %v6837_v32 = vld [vmem:[#allocation14 + $0x20] sm:$0xff] }
 0x514   :  { %v9306_v43 = vpop.eup %6986  ;;  %v3959_v6 = vrot.slane %v3885_v7, 6  ;;  %v3895_v9 = vsel %vm3894_vm0, %v9245_v33, %v3891_v49  ;;  %v4152_v23 = vmax.f32 %v9264_v41, 0.0  ;;  %v4142_v53 = vadd.f32 %v4110_v5, %v4090_v26 }
 0x515   :  { %v4159_v2 = vmax.f32 %v4143_v25, 0.0  ;;  %v3960_v57 = vrot.slane %v3895_v9, 5  ;;  %v3917_v8 = vmul.f32 %v9306_v43, %v9277_v12  ;;  %v4153_v16 = vmax.f32 %v4137_v36, 0.0  ;;  %4799 = vmatpush.bf16.msrb.mxu0 %v6839_v13  ;;  %v6836_v9 = vld [vmem:[#allocation14 + $0x18] sm:$0xff] }
 0x516   :  { %v3755_v11 = vmax.f32 %v3739_v20, 0.0  ;;  %v4156_v46 = vmax.f32 %v4140_v54, 0.0  ;;  %v4157_v37 = vmax.f32 %v4141_v58, 0.0  ;;  %v4158_v15 = vmax.f32 %v4142_v53, 0.0 }
 0x517   :  { %v3908_v7 = vmul.f32 %v9139_v18, %v9209_v47  ;;  %v3971_v33 = vsel %vm1011_vm13, %v3959_v6, %v3960_v57  ;;  %v4154_v34 = vmax.f32 %v4138_v59, 0.0  ;;  %v4171_v41 = vpack.c.bf16 %v4159_v2, %v4155_v14  ;;  %v6838_v47 = vld [vmem:[#allocation14 + $0x28] sm:$0xff] }
 0x518   :  { %v3972_v4 = vsel %vm1013_vm14, %v9079_v10, %v3971_v33  ;;  %v9319_v17 = vadd.f32 1e-05, %v3755_v11  ;;  %v4168_v31 = vpack.c.bf16 %v4156_v46, %v4152_v23  ;;  %v4169_v63 = vpack.c.bf16 %v4157_v37, %v4153_v16  ;;  %v9868_v57 = vld [vmem:[#allocation43_spill] sm:$0xff] }
 0x519   :  { %v3982_v39 = vmul.f32 %v3972_v4, %v9094_v52  ;;  %v3918_v50 = vmul.f32 %v9306_v43, %v3917_v8  ;;  %v4170_v35 = vpack.c.bf16 %v4158_v15, %v4154_v34  ;;  %4497 = vmatmul.bf16.vlgmr.msra.gmra.mxu3 %v4171_v41  ;;  %v3909_v19 = vmul.f32 0.5, %v3908_v7  ;;  %4800 = vmatpush.bf16.msrb.mxu0 %v6838_v47  ;;  %v6835_v15 = vld [vmem:[#allocation14 + $0x10] sm:$0xff] }
 0x51a   :  { %6988 = vrsqrt.f32 %v9319_v17  ;;  %4440 = vmatmul.bf16.vlgmr.msra.gmra.mxu0 %v4168_v31  ;;  %4459 = vmatmul.bf16.vlgmr.msra.gmra.mxu1 %v4169_v63  ;;  %v3898_v30 = vmul.f32 %v9040_v24, %v9107_v56  ;;  %vm3903_vm1 = vweird.f32 %v9040_v24  ;;  %vm3913_vm2 = vweird.f32 %v9139_v18 }
 0x51b   :  { %v3999_v14 = vperm.slane %v3982_v39, 3  ;;  %4478 = vmatmul.bf16.vlgmr.msra.gmra.mxu2 %v4170_v35  ;;  %v3996_v10 = vperm.slane %v3982_v39, 0  ;;  %v3997_v45 = vperm.slane %v3982_v39, 1  ;;  %v3998_v27 = vperm.slane %v3982_v39, 2  ;;  %v6834_v39 = vld [vmem:[#allocation14 + $0x8] sm:$0xff] }
 0x51c   :  { %v3919_v40 = vmul.f32 0.5, %v3918_v50  ;;  %v3910_v5 = vsub.f32 1.5, %v3909_v19  ;;  %v3899_v20 = vmul.f32 0.5, %v3898_v30  ;;  %vm3912_vm3 = vweird.f32 %v9042_v44  ;;  %v9873_v50 = vld [vmem:[#allocation47_spill] sm:$0xff] }
 0x51d   :  { %v4031_v36 = vmul.f32 %v3999_v14, %v9131_v21  ;;  %v4028_v22 = vmul.f32 %v3996_v10, %v8846_v29  ;;  %v4029_v38 = vmul.f32 %v3997_v45, %v8858_v3  ;;  %v4030_v48 = vmul.f32 %v3998_v27, %v9069_v28  ;;  %4801 = vmatpush.bf16.msrb.mxu0 %v6837_v32  ;;  %vm9345_vm6 = vmor %vm3912_vm3, %vm3913_vm2 }
 0x51e   :  { %v4092_v49 = vmul.f32 %v3996_v10, %v8809_v62  ;;  %v4093_v26 = vmul.f32 %v3997_v45, %v8824_v0  ;;  %v3920_v21 = vsub.f32 1.5, %v3919_v40  ;;  %v3911_v62 = vmul.f32 %v9139_v18, %v3910_v5 }
 0x51f   :  { %v4060_v59 = vrot.slane %v4031_v36, 5  ;;  %v4058_v25 = vrot.slane %v4029_v38, 7  ;;  %v4059_v54 = vrot.slane %v4030_v48, 6  ;;  %v3900_v42 = vsub.f32 1.5, %v3899_v20  ;;  %v9874_v38 = vld [vmem:[#allocation44_spill] sm:$0xff] }
 0x520   :  { %v6989_v56 = vpop.eup %6988  ;;  %vm3923_vm4 = vweird.f32 %v9306_v43  ;;  %v3921_v23 = vmul.f32 %v9306_v43, %v3920_v21  ;;  %v4094_v2 = vmul.f32 %v3998_v27, %v8986_v55  ;;  %v4095_v8 = vmul.f32 %v3999_v14, %v9868_v57  ;;  %v9876_v21 = vld [vmem:[#allocation36_spill] sm:$0xff]  ;;  %v9879_v55 = vld [vmem:[#allocation34_spill] sm:$0xff] }
 0x521   :  { %v3927_v58 = vmul.f32 %v6989_v56, %v9319_v17  ;;  %v4070_v29 = vsel %vm1009_vm5, %v4028_v22, %v4058_v25  ;;  %v4071_v3 = vsel %vm1011_vm13, %v4059_v54, %v4060_v59  ;;  %4802 = vmatpush.bf16.msrb.mxu0 %v6836_v9  ;;  %v3915_v13 = vsel %vm9345_vm6, %v9139_v18, %v3911_v62 }
 0x522   :  { %v4072_v28 = vsel %vm1013_vm14, %v4070_v29, %v4071_v3  ;;  %vm3922_vm7 = vweird.f32 %v9277_v12  ;;  %vm3933_vm8 = vweird.f32 %v6989_v56  ;;  %v3901_v31 = vmul.f32 %v9040_v24, %v3900_v42  ;;  %v9878_v3 = vld [vmem:[#allocation40_spill] sm:$0xff] }
 0x523   :  { %v3928_v0 = vmul.f32 %v6989_v56, %v3927_v58  ;;  %v4082_v6 = vsub.f32 %v9153_v60, %v4072_v28  ;;  %vm9355_vm9 = vmor %vm3922_vm7, %vm3923_vm4  ;;  %vm3932_vm10 = vweird.f32 %v9319_v17  ;;  %v3961_v12 = vrot.slane %v3915_v13, 7  ;;  %v6833_v17 = vld [vmem:[#allocation14] sm:$0xff] }
 0x524   :  { %v3925_v18 = vsel %vm9355_vm9, %v9306_v43, %v3921_v23  ;;  %vm3934_vm11 = vmor %vm3932_vm10, %vm3933_vm8  ;;  %vm3902_vm12 = vweird.f32 %v9873_v50 }
 0x525   :  { %v3929_v53 = vmul.f32 0.5, %v3928_v0  ;;  %v4112_v11 = vperm.slane %v4082_v6, 0  ;;  %v4113_v46 = vperm.slane %v4082_v6, 1  ;;  %v4114_v37 = vperm.slane %v4082_v6, 2  ;;  %4803 = vmatpush.bf16.msrb.mxu0 %v6835_v15  ;;  %vm3904_vm15 = vmor %vm3902_vm12, %vm3903_vm1 }
 0x526   :  { %v4115_v44 = vperm.slane %v4082_v6, 3  ;;  %v3962_v47 = vrot.slane %v3925_v18, 6  ;;  %v3905_v14 = vsel %vm3904_vm15, %v9040_v24, %v3901_v31  ;;  %v9880_v31 = vld [vmem:[#allocation35_spill] sm:$0xff] }
 0x527   :  { %v3930_v7 = vsub.f32 1.5, %v3929_v53  ;;  %v4144_v33 = vadd.f32 %v4112_v11, %v4092_v49  ;;  %v4145_v34 = vadd.f32 %v4113_v46, %v4093_v26  ;;  %v4146_v41 = vadd.f32 %v4114_v37, %v4094_v2  ;;  %v9875_v26 = vld [vmem:[#allocation42_spill] sm:$0xff] }
 0x528   :  { %v4147_v4 = vadd.f32 %v4115_v44, %v4095_v8  ;;  %v3973_v10 = vsel %vm1009_vm5, %v3905_v14, %v3961_v12 }
 0x529   :  { %v3931_v63 = vmul.f32 %v6989_v56, %v3930_v7  ;;  %4804 = vmatpush.bf16.msrb.mxu0 %v6834_v39  ;;  %v4160_v57 = vmax.f32 %v4144_v33, 0.0  ;;  %v4161_v8 = vmax.f32 %v4145_v34, 0.0  ;;  %v4162_v16 = vmax.f32 %v4146_v41, 0.0 }
 0x52b   :  { %v3935_v35 = vsel %vm3934_vm11, %v6989_v56, %v3931_v63 }
 0x52c   :  { %v3963_v19 = vrot.slane %v3935_v35, 5 }
 0x52d   :  { %4805 = vmatpush.bf16.msrb.mxu0 %v6833_v17 }
 0x52e   :  { %v3974_v43 = vsel %vm1011_vm13, %v3962_v47, %v3963_v19 }
 0x52f   :  { %v3975_v45 = vsel %vm1013_vm14, %v3973_v10, %v3974_v43 }
 0x530   :  { %v3983_v30 = vmul.f32 %v3975_v45, %v9094_v52 }
 0x532   :  { %v4003_v27 = vperm.slane %v3983_v30, 3  ;;  %v4000_v36 = vperm.slane %v3983_v30, 0  ;;  %v4001_v40 = vperm.slane %v3983_v30, 1  ;;  %v4002_v32 = vperm.slane %v3983_v30, 2 }
 0x534   :  { %v4035_v22 = vmul.f32 %v4003_v27, %v9262_v1  ;;  %v4033_v48 = vmul.f32 %v4001_v40, %v9874_v38  ;;  %v4034_v24 = vmul.f32 %v4002_v32, %v9211_v51  ;;  %v4032_v5 = vmul.f32 %v4000_v36, %v9875_v26  ;;  %v9877_v1 = vld [vmem:[#allocation49_spill] sm:$0xff] }
 0x535   :  { %v4096_v58 = vmul.f32 %v4000_v36, %v9876_v21  ;;  %v4097_v29 = vmul.f32 %v4001_v40, %v9877_v1  ;;  %v4098_v62 = vmul.f32 %v4002_v32, %v9878_v3  ;;  %v4099_v51 = vmul.f32 %v4003_v27, %v9133_v61 }
 0x536   :  { %v4063_v49 = vrot.slane %v4035_v22, 5  ;;  %v4061_v59 = vrot.slane %v4033_v48, 7  ;;  %v4062_v25 = vrot.slane %v4034_v24, 6 }
 0x538   :  { %v4073_v56 = vsel %vm1009_vm5, %v4032_v5, %v4061_v59  ;;  %v4074_v52 = vsel %vm1011_vm13, %v4062_v25, %v4063_v49 }
 0x539   :  { %v4075_v20 = vsel %vm1013_vm14, %v4073_v56, %v4074_v52 }
 0x53a   :  { %v4083_v54 = vsub.f32 %v9153_v60, %v4075_v20  ;;  %v4163_v60 = vmax.f32 %v4147_v4, 0.0 }
 0x53c   :  { %v4116_v0 = vperm.slane %v4083_v54, 0  ;;  %v4117_v28 = vperm.slane %v4083_v54, 1  ;;  %v4118_v42 = vperm.slane %v4083_v54, 2  ;;  %v4119_v6 = vperm.slane %v4083_v54, 3 }
 0x53e   :  { %v4148_v9 = vadd.f32 %v4116_v0, %v4096_v58  ;;  %v4149_v23 = vadd.f32 %v4117_v28, %v4097_v29  ;;  %v4150_v53 = vadd.f32 %v4118_v42, %v4098_v62  ;;  %v4151_v2 = vadd.f32 %v4119_v6, %v4099_v51 }
 0x540   :  { %v4164_v11 = vmax.f32 %v4148_v9, 0.0  ;;  %v4165_v46 = vmax.f32 %v4149_v23, 0.0  ;;  %v4166_v37 = vmax.f32 %v4150_v53, 0.0  ;;  %v4167_v44 = vmax.f32 %v4151_v2, 0.0 }
 0x542   :  { %v4172_v15 = vpack.c.bf16 %v4164_v11, %v4160_v57  ;;  %v4173_v13 = vpack.c.bf16 %v4165_v46, %v4161_v8  ;;  %v4174_v7 = vpack.c.bf16 %v4166_v37, %v4162_v16  ;;  %v4175_v61 = vpack.c.bf16 %v4167_v44, %v4163_v60 }
 0x544   :  { %4445 = vmatmul.bf16.gmra.mxu0 %v4172_v15  ;;  %4464 = vmatmul.bf16.gmra.mxu1 %v4173_v13 }
 0x545   :  { %4483 = vmatmul.bf16.gmra.mxu2 %v4174_v7  ;;  %4502 = vmatmul.bf16.gmra.mxu3 %v4175_v61  ;;  %v9402_v61 = vld [vmem:[#allocation20 + $0x34] sm:$0x1] }
 0x554   :  { %4806 = vmatmul.bf16.vlgmr.msrb.gmra.mxu0 %v9879_v55 }
 0x564   :  { %4811 = vmatmul.bf16.gmra.mxu0 %v9880_v31 }
 0x597   :  { %v4441_v33 = vpop.f32.mrf.mxu0  ;;  %v4460_v34 = vpop.f32.mrf.mxu1 }
 0x598   :  { %v4461_v41 = vadd.f32 %v4460_v34, %v4441_v33 }
 0x59c   :  { %v4498_v18 = vpop.f32.mrf.mxu3 }
 0x59e   :  { %v4479_v4 = vpop.f32.mrf.mxu2 }
 0x59f   :  { %v4480_v63 = vadd.f32 %v4479_v4, %v4461_v41  ;;  %v4443_v39 = vpop.f32.mrf.mxu0  ;;  %v4462_v50 = vpop.f32.mrf.mxu1 }
 0x5a0   :  { %v4463_v10 = vadd.f32 %v4462_v50, %v4443_v39 }
 0x5a1   :  { %v9386_v12 = vadd.f32 %v4498_v18, %v4480_v63 }
 0x5a3   :  { %v4508_v35 = vrot.slane %v9386_v12, 4  ;;  %v4532_v47 = vmul.f32 %v9386_v12, %v9386_v12 }
 0x5a4   :  { %v4500_v27 = vpop.f32.mrf.mxu3 }
 0x5a5   :  { %v4509_v19 = vadd.f32 %v4508_v35, %v9386_v12  ;;  %v4536_v14 = vrot.slane %v4532_v47, 4  ;;  %v9407_v35 = vld [vmem:[#allocation20 + $0x35] sm:$0x1] }
 0x5a6   :  { %v4481_v43 = vpop.f32.mrf.mxu2 }
 0x5a7   :  { %v4510_v17 = vrot.slane %v4509_v19, 2  ;;  %v4537_v45 = vadd.f32 %v4536_v14, %v4532_v47  ;;  %v4482_v30 = vadd.f32 %v4481_v43, %v4463_v10 }
 0x5a9   :  { %v4511_v36 = vadd.f32 %v4510_v17, %v4509_v19  ;;  %v4538_v40 = vrot.slane %v4537_v45, 2  ;;  %v9392_v32 = vadd.f32 %v4500_v27, %v4482_v30 }
 0x5ab   :  { %v4512_v22 = vrot.slane %v4511_v36, 1  ;;  %v4539_v38 = vadd.f32 %v4538_v40, %v4537_v45  ;;  %v4514_v48 = vrot.slane %v9392_v32, 4  ;;  %v4533_v24 = vmul.f32 %v9392_v32, %v9392_v32 }
 0x5ad   :  { %v4513_v49 = vadd.f32 %v4512_v22, %v4511_v36  ;;  %v4540_v26 = vrot.slane %v4539_v38, 1  ;;  %v4515_v5 = vadd.f32 %v4514_v48, %v9392_v32  ;;  %v4542_v59 = vrot.slane %v4533_v24, 4 }
 0x5af   :  { %v4541_v25 = vadd.f32 %v4540_v26, %v4539_v38  ;;  %v4560_v56 = vmul.f32 0.125, %v4513_v49  ;;  %v4516_v52 = vrot.slane %v4515_v5, 2  ;;  %v4543_v20 = vadd.f32 %v4542_v59, %v4533_v24 }
 0x5b1   :  { %v4564_v54 = vmul.f32 0.125, %v4541_v25  ;;  %v4568_v21 = vmul.f32 %v4560_v56, %v4560_v56  ;;  %v4517_v58 = vadd.f32 %v4516_v52, %v4515_v5  ;;  %v4544_v1 = vrot.slane %v4543_v20, 2 }
 0x5b3   :  { %v4572_v29 = vsub.f32 %v4564_v54, %v4568_v21  ;;  %v4518_v3 = vrot.slane %v4517_v58, 1  ;;  %v4545_v62 = vadd.f32 %v4544_v1, %v4543_v20 }
 0x5b5   :  { %v4576_v51 = vmax.f32 %v4572_v29, 0.0  ;;  %v4519_v0 = vadd.f32 %v4518_v3, %v4517_v58  ;;  %v4546_v28 = vrot.slane %v4545_v62, 1 }
 0x5b7   :  { %v4582_v42 = vadd.f32 1e-05, %v4576_v51  ;;  %v4547_v6 = vadd.f32 %v4546_v28, %v4545_v62  ;;  %v9398_v9 = vmul.f32 0.125, %v4519_v0 }
 0x5b9   :  { %6990 = vrsqrt.f32 %v4582_v42  ;;  %v4565_v23 = vmul.f32 0.125, %v4547_v6  ;;  %v4569_v53 = vmul.f32 %v9398_v9, %v9398_v9  ;;  %vm4592_vm13 = vweird.f32 %v4582_v42 }
 0x5bb   :  { %v4573_v2 = vsub.f32 %v4565_v23, %v4569_v53 }
 0x5bd   :  { %v4577_v57 = vmax.f32 %v4573_v2, 0.0 }
 0x5bf   :  { %v6991_v8 = vpop.eup %6990  ;;  %v4583_v16 = vadd.f32 1e-05, %v4577_v57 }
 0x5c0   :  { %v4587_v60 = vmul.f32 %v6991_v8, %v4582_v42  ;;  %vm4593_vm5 = vweird.f32 %v6991_v8  ;;  %v6848_v42 = vld [vmem:[#allocation16 + $0x38] sm:$0xff] }
 0x5c1   :  { %6992 = vrsqrt.f32 %v4583_v16  ;;  %v4446_v11 = vpop.f32.mrf.mxu0  ;;  %v4465_v37 = vpop.f32.mrf.mxu1  ;;  %vm4594_vm14 = vmor %vm4592_vm13, %vm4593_vm5  ;;  %vm4602_vm1 = vweird.f32 %v4583_v16  ;;  %5033 = vmatpush.bf16.msrb.mxu1 %v6848_v42 }
 0x5c2   :  { %v4588_v46 = vmul.f32 %v6991_v8, %v4587_v60  ;;  %v4466_v7 = vadd.f32 %v4465_v37, %v4446_v11 }
 0x5c4   :  { %v4589_v44 = vmul.f32 0.5, %v4588_v46 }
 0x5c6   :  { %v4590_v15 = vsub.f32 1.5, %v4589_v44 }
 0x5c7   :  { %v6993_v13 = vpop.eup %6992 }
 0x5c8   :  { %v4591_v55 = vmul.f32 %v6991_v8, %v4590_v15  ;;  %v4597_v31 = vmul.f32 %v6993_v13, %v4583_v16  ;;  %v4484_v33 = vpop.f32.mrf.mxu2  ;;  %v4503_v41 = vpop.f32.mrf.mxu3  ;;  %vm4603_vm0 = vweird.f32 %v6993_v13 }
 0x5c9   :  { %v4485_v34 = vadd.f32 %v4484_v33, %v4466_v7  ;;  %v4448_v4 = vpop.f32.mrf.mxu0  ;;  %v4467_v19 = vpop.f32.mrf.mxu1  ;;  %vm4604_vm2 = vmor %vm4602_vm1, %vm4603_vm0  ;;  %v6847_v7 = vld [vmem:[#allocation16 + $0x30] sm:$0xff] }
 0x5ca   :  { %v4595_v18 = vsel %vm4594_vm14, %v6991_v8, %v4591_v55  ;;  %v4598_v63 = vmul.f32 %v6993_v13, %v4597_v31  ;;  %v4468_v40 = vadd.f32 %v4467_v19, %v4448_v4  ;;  %5034 = vmatpush.bf16.msrb.mxu1 %v6847_v7 }
 0x5cb   :  { %v4626_v39 = vmul.f32 %v4595_v18, %v9402_v61  ;;  %v9405_v50 = vadd.f32 %v4503_v41, %v4485_v34 }
 0x5cc   :  { %v4599_v47 = vmul.f32 0.5, %v4598_v63 }
 0x5cd   :  { %v4630_v14 = vmul.f32 %v4626_v39, %v4560_v56  ;;  %v4638_v10 = vperm.slane %v4626_v39, 0  ;;  %v4520_v43 = vrot.slane %v9405_v50, 4  ;;  %v4534_v17 = vmul.f32 %v9405_v50, %v9405_v50 }
 0x5ce   :  { %v4600_v45 = vsub.f32 1.5, %v4599_v47 }
 0x5cf   :  { %v4634_v30 = vsub.f32 %v9407_v35, %v4630_v14  ;;  %v4521_v27 = vadd.f32 %v4520_v43, %v9405_v50  ;;  %v4548_v36 = vrot.slane %v4534_v17, 4  ;;  %v4642_v22 = vmul.f32 %v4638_v10, %v9386_v12 }
 0x5d0   :  { %v4601_v38 = vmul.f32 %v6993_v13, %v4600_v45  ;;  %v4486_v48 = vpop.f32.mrf.mxu2  ;;  %v4505_v58 = vpop.f32.mrf.mxu3 }
 0x5d1   :  { %v4646_v24 = vperm.slane %v4634_v30, 0  ;;  %v4522_v49 = vrot.slane %v4521_v27, 2  ;;  %v4549_v26 = vadd.f32 %v4548_v36, %v4534_v17  ;;  %v4487_v5 = vadd.f32 %v4486_v48, %v4468_v40  ;;  %v9415_v59 = vpop.f32.mrf.mxu0  ;;  %v6846_v30 = vld [vmem:[#allocation16 + $0x28] sm:$0xff] }
 0x5d2   :  { %v4605_v25 = vsel %vm4604_vm2, %v6993_v13, %v4601_v38  ;;  %v4817_v56 = vrot.slane %v9415_v59, 4  ;;  %v4841_v52 = vmul.f32 %v9415_v59, %v9415_v59  ;;  %5035 = vmatpush.bf16.msrb.mxu1 %v6846_v30 }
 0x5d3   :  { %v4650_v20 = vadd.f32 %v4646_v24, %v4642_v22  ;;  %v4627_v54 = vmul.f32 %v4605_v25, %v9402_v61  ;;  %v4523_v12 = vadd.f32 %v4522_v49, %v4521_v27  ;;  %v4550_v21 = vrot.slane %v4549_v26, 2 }
 0x5d4   :  { %v9421_v1 = vadd.f32 %v4505_v58, %v4487_v5  ;;  %v4818_v29 = vadd.f32 %v4817_v56, %v9415_v59  ;;  %v4845_v3 = vrot.slane %v4841_v52, 4 }
 0x5d5   :  { %v6475_v62 = vmul.f32 -1.442695, %v4650_v20  ;;  %v4631_v51 = vmul.f32 %v4627_v54, %v9398_v9  ;;  %v4639_v0 = vperm.slane %v4627_v54, 0  ;;  %v4524_v28 = vrot.slane %v4523_v12, 1 }
 0x5d6   :  { %v4551_v6 = vadd.f32 %v4550_v21, %v4549_v26  ;;  %v4526_v23 = vrot.slane %v9421_v1, 4  ;;  %v4535_v53 = vmul.f32 %v9421_v1, %v9421_v1  ;;  %v4819_v2 = vrot.slane %v4818_v29, 2 }
 0x5d7   :  { %6994 = vpow2.f32 %v6475_v62  ;;  %v4635_v57 = vsub.f32 %v9407_v35, %v4631_v51  ;;  %v4525_v8 = vadd.f32 %v4524_v28, %v4523_v12  ;;  %v4643_v46 = vmul.f32 %v4639_v0, %v9392_v32  ;;  %v6845_v12 = vld [vmem:[#allocation16 + $0x20] sm:$0xff] }
 0x5d8   :  { %v4552_v16 = vrot.slane %v4551_v6, 1  ;;  %v4527_v60 = vadd.f32 %v4526_v23, %v9421_v1  ;;  %v4554_v11 = vrot.slane %v4535_v53, 4  ;;  %v4820_v9 = vadd.f32 %v4819_v2, %v4818_v29  ;;  %5036 = vmatpush.bf16.msrb.mxu1 %v6845_v12 }
 0x5d9   :  { %v4647_v37 = vperm.slane %v4635_v57, 0  ;;  %v9431_v44 = vmul.f32 0.125, %v4525_v8  ;;  %v4846_v15 = vadd.f32 %v4845_v3, %v4841_v52  ;;  %v9433_v13 = vpop.f32.mrf.mxu0 }
 0x5da   :  { %v4553_v55 = vadd.f32 %v4552_v16, %v4551_v6  ;;  %v4528_v31 = vrot.slane %v4527_v60, 2  ;;  %v4555_v33 = vadd.f32 %v4554_v11, %v4535_v53  ;;  %v4821_v34 = vrot.slane %v4820_v9, 1  ;;  %v6844_v16 = vld [vmem:[#allocation16 + $0x18] sm:$0xff] }
 0x5db   :  { %v4651_v41 = vadd.f32 %v4647_v37, %v4643_v46  ;;  %v4570_v4 = vmul.f32 %v9431_v44, %v9431_v44  ;;  %v4847_v18 = vrot.slane %v4846_v15, 2  ;;  %v4823_v63 = vrot.slane %v9433_v13, 4 }
 0x5dc   :  { %v4566_v32 = vmul.f32 0.125, %v4553_v55  ;;  %v4529_v39 = vadd.f32 %v4528_v31, %v4527_v60  ;;  %v4556_v47 = vrot.slane %v4555_v33, 2  ;;  %v4822_v19 = vadd.f32 %v4821_v34, %v4820_v9  ;;  %5037 = vmatpush.bf16.msrb.mxu1 %v6844_v16 }
 0x5dd   :  { %v6995_v14 = vpop.eup %6994  ;;  %v6476_v10 = vmul.f32 -1.442695, %v4651_v41  ;;  %v4848_v43 = vadd.f32 %v4847_v18, %v4846_v15  ;;  %v4824_v17 = vadd.f32 %v4823_v63, %v9433_v13  ;;  %v4842_v45 = vmul.f32 %v9433_v13, %v9433_v13  ;;  %v6843_v63 = vld [vmem:[#allocation16 + $0x10] sm:$0xff] }
 0x5de   :  { %v9441_v27 = vadd.f32 1.0, %v6995_v14  ;;  %v4574_v36 = vsub.f32 %v4566_v32, %v4570_v4  ;;  %v4530_v40 = vrot.slane %v4529_v39, 1  ;;  %v4557_v22 = vadd.f32 %v4556_v47, %v4555_v33 }
 0x5df   :  { %6996 = vpow2.f32 %v6476_v10  ;;  %v4849_v38 = vrot.slane %v4848_v43, 1  ;;  %v9443_v48 = vmul.f32 0.125, %v4822_v19  ;;  %v4825_v24 = vrot.slane %v4824_v17, 2 }
 0x5e0   :  { %6998 = vrcp.f32 %v9441_v27  ;;  %v4578_v49 = vmax.f32 %v4574_v36, 0.0  ;;  %v4531_v26 = vadd.f32 %v4530_v40, %v4529_v39  ;;  %v4558_v5 = vrot.slane %v4557_v22, 1  ;;  %5038 = vmatpush.bf16.msrb.mxu1 %v6843_v63 }
 0x5e1   :  { %v4850_v25 = vadd.f32 %v4849_v38, %v4848_v43  ;;  %v4877_v56 = vmul.f32 %v9443_v48, %v9443_v48  ;;  %v4826_v52 = vadd.f32 %v4825_v24, %v4824_v17  ;;  %v4851_v20 = vrot.slane %v4842_v45, 4  ;;  %v9448_v54 = vpop.f32.mrf.mxu0  ;;  %v6842_v24 = vld [vmem:[#allocation16 + $0x8] sm:$0xff] }
 0x5e2   :  { %v9450_v21 = vadd.f32 1e-05, %v4578_v49  ;;  %v4559_v58 = vadd.f32 %v4558_v5, %v4557_v22  ;;  %v9452_v29 = vmul.f32 0.125, %v4531_v26  ;;  %v4829_v3 = vrot.slane %v9448_v54, 4 }
 0x5e3   :  { %v4873_v62 = vmul.f32 0.125, %v4850_v25  ;;  %v4827_v51 = vrot.slane %v4826_v52, 1  ;;  %v4852_v0 = vadd.f32 %v4851_v20, %v4842_v45  ;;  %v4843_v28 = vmul.f32 %v9448_v54, %v9448_v54 }
 0x5e4   :  { %7000 = vrsqrt.f32 %v9450_v21  ;;  %v4567_v42 = vmul.f32 0.125, %v4559_v58  ;;  %v4571_v6 = vmul.f32 %v9452_v29, %v9452_v29  ;;  %v4830_v8 = vadd.f32 %v4829_v3, %v9448_v54  ;;  %5039 = vmatpush.bf16.msrb.mxu1 %v6842_v24 }
 0x5e5   :  { %v6997_v23 = vpop.eup %6996  ;;  %v4881_v53 = vsub.f32 %v4873_v62, %v4877_v56  ;;  %v4828_v2 = vadd.f32 %v4827_v51, %v4826_v52  ;;  %v4853_v57 = vrot.slane %v4852_v0, 2  ;;  %v4857_v9 = vrot.slane %v4843_v28, 4 }
 0x5e6   :  { %v9461_v60 = vpop.eup %6998  ;;  %v4575_v11 = vsub.f32 %v4567_v42, %v4571_v6  ;;  %v4831_v15 = vrot.slane %v4830_v8, 2  ;;  %v9465_v33 = vadd.f32 1.0, %v6997_v23  ;;  %vm4612_vm3 = vweird.f32 %v9450_v21  ;;  %v6841_v42 = vld [vmem:[#allocation16] sm:$0xff] }
 0x5e7   :  { %v4885_v46 = vmax.f32 %v4881_v53, 0.0  ;;  %v4854_v37 = vadd.f32 %v4853_v57, %v4852_v0  ;;  %v9463_v55 = vmul.f32 0.125, %v4828_v2  ;;  %v4858_v31 = vadd.f32 %v4857_v9, %v4843_v28 }
 0x5e8   :  { %v4579_v7 = vmax.f32 %v4575_v11, 0.0  ;;  %v4832_v4 = vadd.f32 %v4831_v15, %v4830_v8  ;;  %v4671_v43 = vmul.f32 %v9461_v60, %v9441_v27  ;;  %5040 = vmatpush.bf16.msrb.mxu1 %v6841_v42  ;;  %vm4676_vm8 = vweird.f32 %v9461_v60 }
 0x5e9   :  { %v9467_v34 = vadd.f32 1e-05, %v4885_v46  ;;  %v4855_v41 = vrot.slane %v4854_v37, 1  ;;  %v9469_v18 = vpop.f32.mrf.mxu0  ;;  %v4859_v47 = vrot.slane %v4858_v31, 2  ;;  %v4878_v45 = vmul.f32 %v9463_v55, %v9463_v55 }
 0x5ea   :  { %v7001_v32 = vpop.eup %7000  ;;  %v9471_v39 = vadd.f32 1e-05, %v4579_v7  ;;  %v4835_v19 = vrot.slane %v9469_v18, 4  ;;  %v4844_v14 = vmul.f32 %v9469_v18, %v9469_v18  ;;  %v4833_v30 = vrot.slane %v4832_v4, 1 }
 0x5eb   :  { %v4607_v10 = vmul.f32 %v7001_v32, %v9450_v21  ;;  %7002 = vrsqrt.f32 %v9467_v34  ;;  %v4856_v17 = vadd.f32 %v4855_v41, %v4854_v37  ;;  %v4860_v40 = vadd.f32 %v4859_v47, %v4858_v31 }
 0x5ec   :  { %7004 = vrsqrt.f32 %v9471_v39  ;;  %v4836_v22 = vadd.f32 %v4835_v19, %v9469_v18  ;;  %v4863_v38 = vrot.slane %v4844_v14, 4  ;;  %v4834_v26 = vadd.f32 %v4833_v30, %v4832_v4 }
 0x5ed   :  { %v4608_v36 = vmul.f32 %v7001_v32, %v4607_v10  ;;  %7006 = vrcp.f32 %v9465_v33  ;;  %v4874_v49 = vmul.f32 0.125, %v4856_v17  ;;  %v4861_v25 = vrot.slane %v4860_v40, 1 }
 0x5ee   :  { %v4837_v56 = vrot.slane %v4836_v22, 2  ;;  %v4864_v52 = vadd.f32 %v4863_v38, %v4844_v14  ;;  %vm4613_vm4 = vweird.f32 %v7001_v32  ;;  %v9486_v12 = vmul.f32 0.125, %v4834_v26  ;;  %v9512_v38 = vld [vmem:[#allocation20 + $0x38] sm:$0x1] }
 0x5ef   :  { %v4609_v5 = vmul.f32 0.5, %v4608_v36  ;;  %v4882_v20 = vsub.f32 %v4874_v49, %v4878_v45  ;;  %v4672_v58 = vsub.f32 1.0, %v4671_v43  ;;  %v4862_v51 = vadd.f32 %v4861_v25, %v4860_v40  ;;  %vm4614_vm9 = vmor %vm4612_vm3, %vm4613_vm4 }
 0x5f0   :  { %v4838_v0 = vadd.f32 %v4837_v56, %v4836_v22  ;;  %v4865_v28 = vrot.slane %v4864_v52, 2  ;;  %vm4901_vm6 = vweird.f32 %v9467_v34  ;;  %v4879_v2 = vmul.f32 %v9486_v12, %v9486_v12 }
 0x5f1   :  { %v7003_v3 = vpop.eup %7002  ;;  %v4610_v62 = vsub.f32 1.5, %v4609_v5  ;;  %v4886_v53 = vmax.f32 %v4882_v20, 0.0  ;;  %vm4622_vm7 = vweird.f32 %v9471_v39  ;;  %v4875_v16 = vmul.f32 0.125, %v4862_v51 }
 0x5f2   :  { %v7005_v6 = vpop.eup %7004  ;;  %v4896_v23 = vmul.f32 %v7003_v3, %v9467_v34  ;;  %v4839_v37 = vrot.slane %v4838_v0, 1  ;;  %v4866_v15 = vadd.f32 %v4865_v28, %v4864_v52  ;;  %vm4675_vm10 = vweird.f32 %v9441_v27 }
 0x5f3   :  { %v4611_v57 = vmul.f32 %v7001_v32, %v4610_v62  ;;  %v4617_v8 = vmul.f32 %v7005_v6, %v9471_v39  ;;  %v9495_v11 = vpop.eup %7006  ;;  %v9500_v46 = vadd.f32 1e-05, %v4886_v53  ;;  %v4883_v41 = vsub.f32 %v4875_v16, %v4879_v2  ;;  %vm9533_vm13 = vmor %vm4675_vm10, %vm4676_vm8 }
 0x5f4   :  { %v4897_v9 = vmul.f32 %v7003_v3, %v4896_v23  ;;  %v4673_v4 = vmul.f32 %v9461_v60, %v4672_v58  ;;  %vm4902_vm11 = vweird.f32 %v7003_v3  ;;  %v4840_v14 = vadd.f32 %v4839_v37, %v4838_v0 }
 0x5f5   :  { %v4615_v7 = vsel %vm4614_vm9, %v7001_v32, %v4611_v57  ;;  %v4618_v31 = vmul.f32 %v7005_v6, %v4617_v8  ;;  %7008 = vrsqrt.f32 %v9500_v46  ;;  %v4887_v19 = vmax.f32 %v4883_v41, 0.0  ;;  %vm4903_vm15 = vmor %vm4901_vm6, %vm4902_vm11 }
 0x5f6   :  { %v4628_v63 = vmul.f32 %v4615_v7, %v9402_v61  ;;  %v4898_v47 = vmul.f32 0.5, %v4897_v9  ;;  %v4867_v10 = vrot.slane %v4866_v15, 1  ;;  %vm4623_vm12 = vweird.f32 %v7005_v6 }
 0x5f7   :  { %v4619_v21 = vmul.f32 0.5, %v4618_v31  ;;  %v9507_v30 = vadd.f32 1e-05, %v4887_v19  ;;  %v9509_v40 = vmul.f32 0.125, %v4840_v14  ;;  %v4674_v49 = vadd.f32 %v9461_v60, %v4673_v4  ;;  %vm4624_vm5 = vmor %vm4622_vm7, %vm4623_vm12 }
 0x5f8   :  { %v4632_v43 = vmul.f32 %v4628_v63, %v9431_v44  ;;  %v4640_v17 = vperm.slane %v4628_v63, 0  ;;  %v4899_v45 = vsub.f32 1.5, %v4898_v47  ;;  %v4868_v36 = vadd.f32 %v4867_v10, %v4866_v15 }
 0x5f9   :  { %v4620_v32 = vsub.f32 1.5, %v4619_v21  ;;  %v4679_v26 = vand.u32 2147483647, %v9441_v27  ;;  %7010 = vrsqrt.f32 %v9507_v30  ;;  %v4880_v58 = vmul.f32 %v9509_v40, %v9509_v40 }
 0x5fa   :  { %v4636_v22 = vsub.f32 %v9407_v35, %v4632_v43  ;;  %v4900_v24 = vmul.f32 %v7003_v3, %v4899_v45  ;;  %v4644_v44 = vmul.f32 %v4640_v17, %v9405_v50  ;;  %v4876_v25 = vmul.f32 0.125, %v4868_v36 }
 0x5fb   :  { %v4621_v5 = vmul.f32 %v7005_v6, %v4620_v32  ;;  %v7009_v56 = vpop.eup %7008  ;;  %v4681_v50 = vand.u32 2147483648, %v9441_v27  ;;  %v4678_v42 = vsel %vm9533_vm13, %v9461_v60, %v4674_v49  ;;  %vm4680_vm14 = vcmp.eq.f32.partialorder %v4679_v26, 8.507059e+37  ;;  %v9546_v60 = vld [vmem:[#allocation20 + $0x39] sm:$0x1] }
 0x5fc   :  { %v4648_v52 = vperm.slane %v4636_v22, 0  ;;  %v4904_v20 = vsel %vm4903_vm15, %v7003_v3, %v4900_v24  ;;  %v4906_v34 = vmul.f32 %v7009_v56, %v9500_v46  ;;  %v4884_v28 = vsub.f32 %v4876_v25, %v4880_v58 }
 0x5fd   :  { %v4625_v62 = vsel %vm4624_vm5, %v7005_v6, %v4621_v5  ;;  %v4935_v51 = vmul.f32 %v4904_v20, %v9512_v38  ;;  %v4682_v23 = vor.u32 1.1754944e-38, %v4681_v50  ;;  %v4686_v53 = vmul.f32 %v9495_v11, %v9465_v33 }
 0x5fe   :  { %v4652_v39 = vadd.f32 %v4648_v52, %v4644_v44  ;;  %v4629_v3 = vmul.f32 %v4625_v62, %v9402_v61  ;;  %v4907_v6 = vmul.f32 %v7009_v56, %v4906_v34  ;;  %v4888_v8 = vmax.f32 %v4884_v28, 0.0 }
 0x5ff   :  { %v7011_v16 = vpop.eup %7010  ;;  %v4939_v9 = vmul.f32 %v4935_v51, %v9443_v48  ;;  %v4683_v37 = vsel %vm4680_vm14, %v4682_v23, %v4678_v42  ;;  %vm4911_vm0 = vweird.f32 %v9500_v46  ;;  %vm4912_vm1 = vweird.f32 %v7009_v56 }
 0x600   :  { %v6477_v2 = vmul.f32 -1.442695, %v4652_v39  ;;  %v4633_v27 = vmul.f32 %v4629_v3, %v9452_v29  ;;  %v4641_v57 = vperm.slane %v4629_v3, 0  ;;  %v4908_v61 = vmul.f32 0.5, %v4907_v6  ;;  %4730 = vst [vmem:[#allocation22] sm:$0xff] %v4683_v37  ;;  %vm4913_vm2 = vmor %vm4911_vm0, %vm4912_vm1 }
 0x601   :  { %v4916_v7 = vmul.f32 %v7011_v16, %v9507_v30  ;;  %v9550_v29 = vadd.f32 1e-05, %v4888_v8  ;;  %v4687_v63 = vsub.f32 1.0, %v4686_v53  ;;  %v4943_v47 = vsub.f32 %v9546_v60, %v4939_v9 }
 0x602   :  { %7012 = vpow2.f32 %v6477_v2  ;;  %v4637_v15 = vsub.f32 %v9407_v35, %v4633_v27  ;;  %v4909_v31 = vsub.f32 1.5, %v4908_v61  ;;  %v4645_v41 = vmul.f32 %v4641_v57, %v9421_v1 }
 0x603   :  { %v4917_v48 = vmul.f32 %v7011_v16, %v4916_v7  ;;  %v4947_v21 = vperm.slane %v4935_v51, 0  ;;  %7014 = vrsqrt.f32 %v9550_v29  ;;  %vm4922_vm3 = vweird.f32 %v7011_v16 }
 0x604   :  { %v4649_v4 = vperm.slane %v4637_v15, 0  ;;  %v4910_v35 = vmul.f32 %v7009_v56, %v4909_v31  ;;  %v4688_v46 = vmul.f32 %v9495_v11, %v4687_v63  ;;  %vm4691_vm4 = vweird.f32 %v9495_v11 }
 0x605   :  { %v4918_v14 = vmul.f32 0.5, %v4917_v48  ;;  %v4694_v1 = vand.u32 2147483647, %v9465_v33  ;;  %v4696_v43 = vand.u32 2147483648, %v9465_v33  ;;  %v4955_v49 = vperm.slane %v4943_v47, 0 }
 0x606   :  { %v4653_v19 = vadd.f32 %v4649_v4, %v4645_v41  ;;  %v4914_v10 = vsel %vm4913_vm2, %v7009_v56, %v4910_v35  ;;  %v4689_v22 = vadd.f32 %v9495_v11, %v4688_v46  ;;  %vm4921_vm6 = vweird.f32 %v9507_v30 }
 0x607   :  { %v4936_v32 = vmul.f32 %v4914_v10, %v9512_v38  ;;  %v4919_v36 = vsub.f32 1.5, %v4918_v14  ;;  %vm4690_vm7 = vweird.f32 %v9465_v33  ;;  %v4951_v56 = vmul.f32 %v4947_v21, %v9415_v59  ;;  %vm4923_vm9 = vmor %vm4921_vm6, %vm4922_vm3 }
 0x608   :  { %v7013_v17 = vpop.eup %7012  ;;  %v6478_v45 = vmul.f32 -1.442695, %v4653_v19  ;;  %vm4692_vm8 = vmor %vm4690_vm7, %vm4691_vm4  ;;  %v4697_v20 = vor.u32 1.1754944e-38, %v4696_v43  ;;  %vm4695_vm10 = vcmp.eq.f32.partialorder %v4694_v1, 8.507059e+37  ;;  %vm4931_vm12 = vweird.f32 %v9550_v29 }
 0x609   :  { %v4668_v24 = vadd.f32 1.0, %v7013_v17  ;;  %v4940_v26 = vmul.f32 %v4936_v32, %v9463_v55  ;;  %v4948_v44 = vperm.slane %v4936_v32, 0  ;;  %v4920_v5 = vmul.f32 %v7011_v16, %v4919_v36  ;;  %v7015_v25 = vpop.eup %7014 }
 0x60a   :  { %7016 = vpow2.f32 %v6478_v45  ;;  %v4693_v52 = vsel %vm4692_vm8, %v9495_v11, %v4689_v22  ;;  %v4926_v58 = vmul.f32 %v7015_v25, %v9550_v29  ;;  %v4959_v55 = vadd.f32 %v4955_v49, %v4951_v56  ;;  %v6855_v56 = vld [vmem:[#allocation17 + $0x30] sm:$0xff] }
 0x60b   :  { %7018 = vrcp.f32 %v4668_v24  ;;  %v4944_v30 = vsub.f32 %v9546_v60, %v4940_v26  ;;  %v4924_v33 = vsel %vm4923_vm9, %v7011_v16, %v4920_v5  ;;  %v4698_v62 = vsel %vm4695_vm10, %v4697_v20, %v4693_v52 }
 0x60c   :  { %v4937_v50 = vmul.f32 %v4924_v33, %v9512_v38  ;;  %v4952_v51 = vmul.f32 %v4948_v44, %v9433_v13  ;;  %v4927_v0 = vmul.f32 %v7015_v25, %v4926_v58  ;;  %4731 = vst [vmem:[#allocation22 + $0x8] sm:$0xff] %v4698_v62  ;;  %v4963_v42 = vmax.f32 %v4959_v55, 0.0  ;;  %v6854_v58 = vld [vmem:[#allocation17 + $0x28] sm:$0xff] }
 0x60d   :  { %v4956_v34 = vperm.slane %v4944_v30, 0  ;;  %vm4932_vm11 = vweird.f32 %v7015_v25  ;;  %v4711_v16 = vand.u32 2147483648, %v4668_v24  ;;  %v4709_v37 = vand.u32 2147483647, %v4668_v24 }
 0x60e   :  { %v4928_v3 = vmul.f32 0.5, %v4927_v0  ;;  %v4941_v6 = vmul.f32 %v4937_v50, %v9486_v12  ;;  %vm4933_vm15 = vmor %vm4931_vm12, %vm4932_vm11  ;;  %v4949_v12 = vperm.slane %v4937_v50, 0  ;;  %vm4705_vm13 = vweird.f32 %v4668_v24 }
 0x60f   :  { %v4960_v39 = vadd.f32 %v4956_v34, %v4952_v51  ;;  %v4712_v48 = vor.u32 1.1754944e-38, %v4711_v16  ;;  %vm4710_vm0 = vcmp.eq.f32.partialorder %v4709_v37, 8.507059e+37 }
 0x610   :  { %v7017_v59 = vpop.eup %7016  ;;  %v4929_v53 = vsub.f32 1.5, %v4928_v3  ;;  %v4945_v8 = vsub.f32 %v9546_v60, %v4941_v6  ;;  %v4953_v21 = vmul.f32 %v4949_v12, %v9448_v54 }
 0x611   :  { %v7019_v11 = vpop.eup %7018  ;;  %v4669_v28 = vadd.f32 1.0, %v7017_v59  ;;  %v4964_v23 = vmax.f32 %v4960_v39, 0.0 }
 0x612   :  { %v4701_v2 = vmul.f32 %v7019_v11, %v4668_v24  ;;  %v4930_v57 = vmul.f32 %v7015_v25, %v4929_v53  ;;  %vm4706_vm5 = vweird.f32 %v7019_v11  ;;  %v4957_v29 = vperm.slane %v4945_v8, 0 }
 0x613   :  { %7020 = vrcp.f32 %v4669_v28  ;;  %v4967_v27 = vpack.c.bf16 %v4964_v23, %v4963_v42  ;;  %vm4707_vm14 = vmor %vm4705_vm13, %vm4706_vm5  ;;  %v4726_v1 = vand.u32 2147483648, %v4669_v28  ;;  %v4724_v43 = vand.u32 2147483647, %v4669_v28 }
 0x614   :  { %v4702_v13 = vsub.f32 1.0, %v4701_v2  ;;  %v4934_v9 = vsel %vm4933_vm15, %v7015_v25, %v4930_v57  ;;  %v4961_v10 = vadd.f32 %v4957_v29, %v4953_v21  ;;  %vm4720_vm2 = vweird.f32 %v4669_v28 }
 0x615   :  { %5041 = vmatmul.bf16.vlgmr.msrb.gmra.mxu1 %v4967_v27  ;;  %v4938_v15 = vmul.f32 %v4934_v9, %v9512_v38  ;;  %v4727_v54 = vor.u32 1.1754944e-38, %v4726_v1  ;;  %vm4725_vm4 = vcmp.eq.f32.partialorder %v4724_v43, 8.507059e+37 }
 0x616   :  { %v4703_v61 = vmul.f32 %v7019_v11, %v4702_v13  ;;  %v4965_v32 = vmax.f32 %v4961_v10, 0.0  ;;  %v6852_v13 = vld [vmem:[#allocation17 + $0x18] sm:$0xff] }
 0x617   :  { %v4942_v41 = vmul.f32 %v4938_v15, %v9509_v40  ;;  %v4950_v4 = vperm.slane %v4938_v15, 0 }
 0x618   :  { %v4704_v7 = vadd.f32 %v7019_v11, %v4703_v61 }
 0x619   :  { %v7021_v31 = vpop.eup %7020  ;;  %v4946_v35 = vsub.f32 %v9546_v60, %v4942_v41  ;;  %v4954_v38 = vmul.f32 %v4950_v4, %v9469_v18  ;;  %v6856_v18 = vld [vmem:[#allocation17 + $0x38] sm:$0xff]  ;;  %v6851_v4 = vld [vmem:[#allocation17 + $0x10] sm:$0xff] }
 0x61a   :  { %v4708_v63 = vsel %vm4707_vm14, %v7019_v11, %v4704_v7  ;;  %v4716_v47 = vmul.f32 %v7021_v31, %v4669_v28  ;;  %vm4721_vm1 = vweird.f32 %v7021_v31  ;;  %5268 = vmatpush.bf16.msrb.mxu2 %v6856_v18  ;;  %v6853_v11 = vld [vmem:[#allocation17 + $0x20] sm:$0xff] }
 0x61b   :  { %v4713_v19 = vsel %vm4710_vm0, %v4712_v48, %v4708_v63  ;;  %v4958_v46 = vperm.slane %v4946_v35, 0  ;;  %vm4722_vm3 = vmor %vm4720_vm2, %vm4721_vm1 }
 0x61c   :  { %v4717_v14 = vsub.f32 1.0, %v4716_v47  ;;  %4732 = vst [vmem:[#allocation22 + $0x10] sm:$0xff] %v4713_v19 }
 0x61d   :  { %v4962_v17 = vadd.f32 %v4958_v46, %v4954_v38  ;;  %v6850_v38 = vld [vmem:[#allocation17 + $0x8] sm:$0xff] }
 0x61e   :  { %v4718_v40 = vmul.f32 %v7021_v31, %v4717_v14  ;;  %5269 = vmatpush.bf16.msrb.mxu2 %v6855_v56 }
 0x61f   :  { %v4966_v36 = vmax.f32 %v4962_v17, 0.0 }
 0x620   :  { %v4719_v45 = vadd.f32 %v7021_v31, %v4718_v40 }
 0x621   :  { %v4968_v60 = vpack.c.bf16 %v4966_v36, %v4965_v32 }
 0x622   :  { %v4723_v22 = vsel %vm4722_vm3, %v7021_v31, %v4719_v45  ;;  %5270 = vmatpush.bf16.msrb.mxu2 %v6854_v58 }
 0x623   :  { %v4728_v24 = vsel %vm4725_vm4, %v4727_v54, %v4723_v22 }
 0x624   :  { %4733 = vst [vmem:[#allocation22 + $0x18] sm:$0xff] %v4728_v24 }
 0x625   :  { %5046 = vmatmul.bf16.gmra.mxu1 %v4968_v60  ;;  %v6849_v60 = vld [vmem:[#allocation17] sm:$0xff]  ;;  %5540 = dma.vmem_to_hbm [thread:$0]  %s5533_s1, 512, %s5535_s3, [#allocation4], %s7404_s27, %s7404_s27, %s7405_s28  }
 0x626   :  { %5271 = vmatpush.bf16.msrb.mxu2 %v6853_v11 }
 0x62a   :  { %5272 = vmatpush.bf16.msrb.mxu2 %v6852_v13 }
 0x62e   :  { %5273 = vmatpush.bf16.msrb.mxu2 %v6851_v4  ;;  %v5125_v4 = vld [vmem:[#allocation20 + $0x3d] sm:$0x1] }
 0x632   :  { %5274 = vmatpush.bf16.msrb.mxu2 %v6850_v38 }
 0x636   :  { %5275 = vmatpush.bf16.msrb.mxu2 %v6849_v60 }
 0x692   :  { %v9581_v49 = vpop.f32.mrf.mxu1 }
 0x693   :  { %v5052_v26 = vrot.slane %v9581_v49, 4  ;;  %v5076_v44 = vmul.f32 %v9581_v49, %v9581_v49 }
 0x695   :  { %v5053_v5 = vadd.f32 %v5052_v26, %v9581_v49  ;;  %v5080_v25 = vrot.slane %v5076_v44, 4 }
 0x697   :  { %v5054_v52 = vrot.slane %v5053_v5, 2  ;;  %v5081_v20 = vadd.f32 %v5080_v25, %v5076_v44 }
 0x699   :  { %v5055_v30 = vadd.f32 %v5054_v52, %v5053_v5  ;;  %v5082_v33 = vrot.slane %v5081_v20, 2 }
 0x69a   :  { %v9587_v55 = vpop.f32.mrf.mxu1 }
 0x69b   :  { %v5056_v50 = vrot.slane %v5055_v30, 1  ;;  %v5083_v62 = vadd.f32 %v5082_v33, %v5081_v20  ;;  %v5058_v51 = vrot.slane %v9587_v55, 4  ;;  %v5077_v34 = vmul.f32 %v9587_v55, %v9587_v55 }
 0x69d   :  { %v5057_v0 = vadd.f32 %v5056_v50, %v5055_v30  ;;  %v5084_v59 = vrot.slane %v5083_v62, 1  ;;  %v5059_v39 = vadd.f32 %v5058_v51, %v9587_v55  ;;  %v5086_v3 = vrot.slane %v5077_v34, 4 }
 0x69f   :  { %v5085_v28 = vadd.f32 %v5084_v59, %v5083_v62  ;;  %v9593_v42 = vmul.f32 0.125, %v5057_v0  ;;  %v5060_v6 = vrot.slane %v5059_v39, 2  ;;  %v5087_v23 = vadd.f32 %v5086_v3, %v5077_v34 }
 0x6a1   :  { %v5108_v53 = vmul.f32 0.125, %v5085_v28  ;;  %v5112_v2 = vmul.f32 %v9593_v42, %v9593_v42  ;;  %v5061_v27 = vadd.f32 %v5060_v6, %v5059_v39  ;;  %v5088_v57 = vrot.slane %v5087_v23, 2 }
 0x6a2   :  { %v9597_v8 = vpop.f32.mrf.mxu1 }
 0x6a3   :  { %v5116_v16 = vsub.f32 %v5108_v53, %v5112_v2  ;;  %v5062_v9 = vrot.slane %v5061_v27, 1  ;;  %v5089_v61 = vadd.f32 %v5088_v57, %v5087_v23  ;;  %v5064_v37 = vrot.slane %v9597_v8, 4  ;;  %v9619_v2 = vld [vmem:[#allocation20 + $0x3c] sm:$0x1] }
 0x6a4   :  { %v5078_v12 = vmul.f32 %v9597_v8, %v9597_v8 }
 0x6a5   :  { %v5120_v15 = vmax.f32 %v5116_v16, 0.0  ;;  %v5063_v7 = vadd.f32 %v5062_v9, %v5061_v27  ;;  %v5090_v31 = vrot.slane %v5089_v61, 1  ;;  %v5065_v41 = vadd.f32 %v5064_v37, %v9597_v8 }
 0x6a6   :  { %v5092_v29 = vrot.slane %v5078_v12, 4 }
 0x6a7   :  { %v5126_v48 = vadd.f32 1e-05, %v5120_v15  ;;  %v5091_v63 = vadd.f32 %v5090_v31, %v5089_v61  ;;  %v9603_v47 = vmul.f32 0.125, %v5063_v7  ;;  %v5066_v21 = vrot.slane %v5065_v41, 2 }
 0x6a8   :  { %v5093_v35 = vadd.f32 %v5092_v29, %v5078_v12 }
 0x6a9   :  { %7022 = vrsqrt.f32 %v5126_v48  ;;  %v5109_v19 = vmul.f32 0.125, %v5091_v63  ;;  %v5113_v14 = vmul.f32 %v9603_v47, %v9603_v47  ;;  %v5067_v46 = vadd.f32 %v5066_v21, %v5065_v41 }
 0x6aa   :  { %v5094_v10 = vrot.slane %v5093_v35, 2  ;;  %v9607_v1 = vpop.f32.mrf.mxu1  ;;  %vm5136_vm7 = vweird.f32 %v5126_v48 }
 0x6ab   :  { %v5117_v40 = vsub.f32 %v5109_v19, %v5113_v14  ;;  %v5070_v43 = vrot.slane %v9607_v1, 4  ;;  %v5079_v17 = vmul.f32 %v9607_v1, %v9607_v1  ;;  %v5068_v45 = vrot.slane %v5067_v46, 1 }
 0x6ac   :  { %v5095_v32 = vadd.f32 %v5094_v10, %v5093_v35 }
 0x6ad   :  { %v5121_v36 = vmax.f32 %v5117_v40, 0.0  ;;  %v5071_v54 = vadd.f32 %v5070_v43, %v9607_v1  ;;  %v5098_v22 = vrot.slane %v5079_v17, 4  ;;  %v5069_v24 = vadd.f32 %v5068_v45, %v5067_v46 }
 0x6ae   :  { %v5096_v18 = vrot.slane %v5095_v32, 1 }
 0x6af   :  { %v7023_v26 = vpop.eup %7022  ;;  %v5127_v44 = vadd.f32 1e-05, %v5121_v36  ;;  %v5072_v5 = vrot.slane %v5071_v54, 2  ;;  %v5099_v25 = vadd.f32 %v5098_v22, %v5079_v17  ;;  %v9613_v20 = vmul.f32 0.125, %v5069_v24 }
 0x6b0   :  { %v5131_v56 = vmul.f32 %v7023_v26, %v5126_v48  ;;  %v5097_v52 = vadd.f32 %v5096_v18, %v5095_v32  ;;  %vm5137_vm6 = vweird.f32 %v7023_v26 }
 0x6b1   :  { %7024 = vrsqrt.f32 %v5127_v44  ;;  %v5073_v30 = vadd.f32 %v5072_v5, %v5071_v54  ;;  %v5100_v33 = vrot.slane %v5099_v25, 2  ;;  %v5114_v62 = vmul.f32 %v9613_v20, %v9613_v20  ;;  %vm5138_vm8 = vmor %vm5136_vm7, %vm5137_vm6 }
 0x6b2   :  { %v5132_v58 = vmul.f32 %v7023_v26, %v5131_v56  ;;  %v5110_v50 = vmul.f32 0.125, %v5097_v52  ;;  %vm5146_vm10 = vweird.f32 %v5127_v44 }
 0x6b3   :  { %v5074_v51 = vrot.slane %v5073_v30, 1  ;;  %v5101_v34 = vadd.f32 %v5100_v33, %v5099_v25 }
 0x6b4   :  { %v5133_v0 = vmul.f32 0.5, %v5132_v58  ;;  %v5118_v59 = vsub.f32 %v5110_v50, %v5114_v62 }
 0x6b5   :  { %v5075_v39 = vadd.f32 %v5074_v51, %v5073_v30  ;;  %v5102_v3 = vrot.slane %v5101_v34, 1 }
 0x6b6   :  { %v5134_v11 = vsub.f32 1.5, %v5133_v0  ;;  %v5122_v28 = vmax.f32 %v5118_v59, 0.0 }
 0x6b7   :  { %v7025_v6 = vpop.eup %7024  ;;  %v5103_v23 = vadd.f32 %v5102_v3, %v5101_v34  ;;  %v9617_v53 = vmul.f32 0.125, %v5075_v39 }
 0x6b8   :  { %v5135_v27 = vmul.f32 %v7023_v26, %v5134_v11  ;;  %v5141_v57 = vmul.f32 %v7025_v6, %v5127_v44  ;;  %v5128_v13 = vadd.f32 1e-05, %v5122_v28  ;;  %vm5147_vm9 = vweird.f32 %v7025_v6 }
 0x6b9   :  { %v5111_v16 = vmul.f32 0.125, %v5103_v23  ;;  %v5115_v9 = vmul.f32 %v9617_v53, %v9617_v53  ;;  %vm5148_vm11 = vmor %vm5146_vm10, %vm5147_vm9 }
 0x6ba   :  { %v5139_v61 = vsel %vm5138_vm8, %v7023_v26, %v5135_v27  ;;  %v5142_v37 = vmul.f32 %v7025_v6, %v5141_v57  ;;  %7026 = vrsqrt.f32 %v5128_v13  ;;  %vm5156_vm15 = vweird.f32 %v5128_v13 }
 0x6bb   :  { %v5170_v12 = vmul.f32 %v5139_v61, %v9619_v2  ;;  %v5119_v15 = vsub.f32 %v5111_v16, %v5115_v9  ;;  %v6864_v16 = vld [vmem:[#allocation19 + $0x38] sm:$0xff] }
 0x6bc   :  { %v5143_v7 = vmul.f32 0.5, %v5142_v37  ;;  %5505 = vmatpush.bf16.msrb.mxu3 %v6864_v16 }
 0x6bd   :  { %v5174_v31 = vmul.f32 %v5170_v12, %v9593_v42  ;;  %v5123_v41 = vmax.f32 %v5119_v15, 0.0  ;;  %v5182_v38 = vperm.slane %v5170_v12, 0 }
 0x6be   :  { %v5144_v29 = vsub.f32 1.5, %v5143_v7 }
 0x6bf   :  { %v5129_v48 = vadd.f32 1e-05, %v5123_v41  ;;  %v5178_v35 = vsub.f32 %v5125_v4, %v5174_v31  ;;  %v5186_v32 = vmul.f32 %v5182_v38, %v9581_v49  ;;  %v6862_v31 = vld [vmem:[#allocation19 + $0x28] sm:$0xff]  ;;  %v6861_v38 = vld [vmem:[#allocation19 + $0x20] sm:$0xff] }
 0x6c0   :  { %v7027_v63 = vpop.eup %7026  ;;  %v5145_v21 = vmul.f32 %v7025_v6, %v5144_v29 }
 0x6c1   :  { %v5151_v19 = vmul.f32 %v7027_v63, %v5128_v13  ;;  %7028 = vrsqrt.f32 %v5129_v48  ;;  %v5190_v40 = vperm.slane %v5178_v35, 0  ;;  %vm5157_vm12 = vweird.f32 %v7027_v63 }
 0x6c2   :  { %v5149_v14 = vsel %vm5148_vm11, %v7025_v6, %v5145_v21  ;;  %vm5158_vm5 = vmor %vm5156_vm15, %vm5157_vm12  ;;  %vm5166_vm14 = vweird.f32 %v5129_v48 }
 0x6c3   :  { %v5171_v46 = vmul.f32 %v5149_v14, %v9619_v2  ;;  %v5152_v10 = vmul.f32 %v7027_v63, %v5151_v19  ;;  %v5194_v60 = vadd.f32 %v5190_v40, %v5186_v32 }
 0x6c5   :  { %v5175_v42 = vmul.f32 %v5171_v46, %v9603_v47  ;;  %v5183_v43 = vperm.slane %v5171_v46, 0  ;;  %v5153_v17 = vmul.f32 0.5, %v5152_v10  ;;  %v5198_v52 = vmax.f32 %v5194_v60, 0.0 }
 0x6c7   :  { %v7029_v45 = vpop.eup %7028  ;;  %v5179_v36 = vsub.f32 %v5125_v4, %v5175_v42  ;;  %v5154_v54 = vsub.f32 1.5, %v5153_v17  ;;  %v5187_v24 = vmul.f32 %v5183_v43, %v9587_v55 }
 0x6c8   :  { %v5161_v22 = vmul.f32 %v7029_v45, %v5129_v48  ;;  %vm5167_vm13 = vweird.f32 %v7029_v45 }
 0x6c9   :  { %v5191_v18 = vperm.slane %v5179_v36, 0  ;;  %v5155_v26 = vmul.f32 %v7027_v63, %v5154_v54  ;;  %vm5168_vm0 = vmor %vm5166_vm14, %vm5167_vm13  ;;  %v6860_v36 = vld [vmem:[#allocation19 + $0x18] sm:$0xff] }
 0x6ca   :  { %v5162_v44 = vmul.f32 %v7029_v45, %v5161_v22 }
 0x6cb   :  { %v5195_v5 = vadd.f32 %v5191_v18, %v5187_v24  ;;  %v5159_v25 = vsel %vm5158_vm5, %v7027_v63, %v5155_v26 }
 0x6cc   :  { %v5172_v47 = vmul.f32 %v5159_v25, %v9619_v2  ;;  %v5163_v56 = vmul.f32 0.5, %v5162_v44 }
 0x6cd   :  { %v5199_v30 = vmax.f32 %v5195_v5, 0.0 }
 0x6ce   :  { %v5164_v49 = vsub.f32 1.5, %v5163_v56  ;;  %v5176_v33 = vmul.f32 %v5172_v47, %v9613_v20  ;;  %v5184_v51 = vperm.slane %v5172_v47, 0  ;;  %v6859_v56 = vld [vmem:[#allocation19 + $0x10] sm:$0xff] }
 0x6cf   :  { %v5202_v58 = vpack.c.bf16 %v5199_v30, %v5198_v52 }
 0x6d0   :  { %v5165_v50 = vmul.f32 %v7029_v45, %v5164_v49  ;;  %v5180_v55 = vsub.f32 %v5125_v4, %v5176_v33  ;;  %v5188_v3 = vmul.f32 %v5184_v51, %v9597_v8  ;;  %v6858_v51 = vld [vmem:[#allocation19 + $0x8] sm:$0xff] }
 0x6d1   :  { %5276 = vmatmul.bf16.vlgmr.msrb.gmra.mxu2 %v5202_v58 }
 0x6d2   :  { %v5169_v62 = vsel %vm5168_vm0, %v7029_v45, %v5165_v50  ;;  %v5192_v39 = vperm.slane %v5180_v55, 0 }
 0x6d3   :  { %v5173_v34 = vmul.f32 %v5169_v62, %v9619_v2 }
 0x6d4   :  { %v5196_v6 = vadd.f32 %v5192_v39, %v5188_v3 }
 0x6d5   :  { %v5177_v0 = vmul.f32 %v5173_v34, %v9617_v53  ;;  %v5185_v59 = vperm.slane %v5173_v34, 0 }
 0x6d6   :  { %v5200_v27 = vmax.f32 %v5196_v6, 0.0 }
 0x6d7   :  { %v5181_v11 = vsub.f32 %v5125_v4, %v5177_v0  ;;  %v5189_v28 = vmul.f32 %v5185_v59, %v9607_v1  ;;  %v6863_v1 = vld [vmem:[#allocation19 + $0x30] sm:$0xff] }
 0x6d8   :  { %5506 = vmatpush.bf16.msrb.mxu3 %v6863_v1 }
 0x6d9   :  { %v5193_v20 = vperm.slane %v5181_v11, 0 }
 0x6db   :  { %v5197_v23 = vadd.f32 %v5193_v20, %v5189_v28 }
 0x6dc   :  { %5507 = vmatpush.bf16.msrb.mxu3 %v6862_v31 }
 0x6dd   :  { %v5201_v57 = vmax.f32 %v5197_v23, 0.0 }
 0x6df   :  { %v5203_v13 = vpack.c.bf16 %v5201_v57, %v5200_v27  ;;  %v6857_v57 = vld [vmem:[#allocation19] sm:$0xff] }
 0x6e0   :  { %5508 = vmatpush.bf16.msrb.mxu3 %v6861_v38 }
 0x6e1   :  { %5281 = vmatmul.bf16.gmra.mxu2 %v5203_v13 }
 0x6e4   :  { %5509 = vmatpush.bf16.msrb.mxu3 %v6860_v36 }
 0x6e8   :  { %5510 = vmatpush.bf16.msrb.mxu3 %v6859_v56  ;;  %v5360_v56 = vld [vmem:[#allocation20 + $0x41] sm:$0x1] }
 0x6ec   :  { %5511 = vmatpush.bf16.msrb.mxu3 %v6858_v51 }
 0x6f0   :  { %5512 = vmatpush.bf16.msrb.mxu3 %v6857_v57 }
 0x754   :  { %v9635_v9 = vpop.f32.mrf.mxu2 }
 0x755   :  { %v5287_v2 = vrot.slane %v9635_v9, 4  ;;  %v5311_v53 = vmul.f32 %v9635_v9, %v9635_v9 }
 0x757   :  { %v5288_v8 = vadd.f32 %v5287_v2, %v9635_v9  ;;  %v5315_v61 = vrot.slane %v5311_v53, 4 }
 0x759   :  { %v5289_v37 = vrot.slane %v5288_v8, 2  ;;  %v5316_v12 = vadd.f32 %v5315_v61, %v5311_v53 }
 0x75b   :  { %v5290_v15 = vadd.f32 %v5289_v37, %v5288_v8  ;;  %v5317_v7 = vrot.slane %v5316_v12, 2 }
 0x75c   :  { %v9641_v41 = vpop.f32.mrf.mxu2 }
 0x75d   :  { %v5291_v4 = vrot.slane %v5290_v15, 1  ;;  %v5318_v29 = vadd.f32 %v5317_v7, %v5316_v12  ;;  %v5293_v48 = vrot.slane %v9641_v41, 4  ;;  %v5312_v63 = vmul.f32 %v9641_v41, %v9641_v41 }
 0x75f   :  { %v5292_v21 = vadd.f32 %v5291_v4, %v5290_v15  ;;  %v5319_v35 = vrot.slane %v5318_v29, 1  ;;  %v5294_v19 = vadd.f32 %v5293_v48, %v9641_v41  ;;  %v5321_v14 = vrot.slane %v5312_v63, 4 }
 0x761   :  { %v5320_v46 = vadd.f32 %v5319_v35, %v5318_v29  ;;  %v9647_v10 = vmul.f32 0.125, %v5292_v21  ;;  %v5295_v40 = vrot.slane %v5294_v19, 2  ;;  %v5322_v42 = vadd.f32 %v5321_v14, %v5312_v63 }
 0x763   :  { %v5343_v43 = vmul.f32 0.125, %v5320_v46  ;;  %v5347_v17 = vmul.f32 %v9647_v10, %v9647_v10  ;;  %v5296_v45 = vadd.f32 %v5295_v40, %v5294_v19  ;;  %v5323_v32 = vrot.slane %v5322_v42, 2 }
 0x764   :  { %v9651_v54 = vpop.f32.mrf.mxu2 }
 0x765   :  { %v5351_v22 = vsub.f32 %v5343_v43, %v5347_v17  ;;  %v5297_v60 = vrot.slane %v5296_v45, 1  ;;  %v5324_v24 = vadd.f32 %v5323_v32, %v5322_v42  ;;  %v5299_v18 = vrot.slane %v9651_v54, 4  ;;  %v9673_v17 = vld [vmem:[#allocation20 + $0x40] sm:$0x1] }
 0x766   :  { %v5313_v26 = vmul.f32 %v9651_v54, %v9651_v54 }
 0x767   :  { %v5355_v44 = vmax.f32 %v5351_v22, 0.0  ;;  %v5298_v5 = vadd.f32 %v5297_v60, %v5296_v45  ;;  %v5325_v25 = vrot.slane %v5324_v24, 1  ;;  %v5300_v47 = vadd.f32 %v5299_v18, %v9651_v54 }
 0x768   :  { %v5327_v52 = vrot.slane %v5313_v26, 4 }
 0x769   :  { %v5361_v30 = vadd.f32 1e-05, %v5355_v44  ;;  %v5326_v49 = vadd.f32 %v5325_v25, %v5324_v24  ;;  %v9657_v33 = vmul.f32 0.125, %v5298_v5  ;;  %v5301_v58 = vrot.slane %v5300_v47, 2 }
 0x76a   :  { %v5328_v50 = vadd.f32 %v5327_v52, %v5313_v26 }
 0x76b   :  { %7030 = vrsqrt.f32 %v5361_v30  ;;  %v5344_v55 = vmul.f32 0.125, %v5326_v49  ;;  %v5348_v62 = vmul.f32 %v9657_v33, %v9657_v33  ;;  %v5302_v34 = vadd.f32 %v5301_v58, %v5300_v47 }
 0x76c   :  { %v5329_v0 = vrot.slane %v5328_v50, 2  ;;  %v9661_v59 = vpop.f32.mrf.mxu2  ;;  %vm5371_vm2 = vweird.f32 %v5361_v30 }
 0x76d   :  { %v5352_v39 = vsub.f32 %v5344_v55, %v5348_v62  ;;  %v5305_v3 = vrot.slane %v9661_v59, 4  ;;  %v5314_v11 = vmul.f32 %v9661_v59, %v9661_v59  ;;  %v5303_v28 = vrot.slane %v5302_v34, 1 }
 0x76e   :  { %v5330_v20 = vadd.f32 %v5329_v0, %v5328_v50 }
 0x76f   :  { %v5356_v6 = vmax.f32 %v5352_v39, 0.0  ;;  %v5306_v23 = vadd.f32 %v5305_v3, %v9661_v59  ;;  %v5333_v27 = vrot.slane %v5314_v11, 4  ;;  %v5304_v13 = vadd.f32 %v5303_v28, %v5302_v34 }
 0x770   :  { %v5331_v16 = vrot.slane %v5330_v20, 1 }
 0x771   :  { %v7031_v2 = vpop.eup %7030  ;;  %v5362_v53 = vadd.f32 1e-05, %v5356_v6  ;;  %v5307_v8 = vrot.slane %v5306_v23, 2  ;;  %v5334_v61 = vadd.f32 %v5333_v27, %v5314_v11  ;;  %v9667_v12 = vmul.f32 0.125, %v5304_v13 }
 0x772   :  { %v5366_v1 = vmul.f32 %v7031_v2, %v5361_v30  ;;  %v5332_v37 = vadd.f32 %v5331_v16, %v5330_v20  ;;  %vm5372_vm1 = vweird.f32 %v7031_v2 }
 0x773   :  { %7032 = vrsqrt.f32 %v5362_v53  ;;  %v5308_v15 = vadd.f32 %v5307_v8, %v5306_v23  ;;  %v5335_v7 = vrot.slane %v5334_v61, 2  ;;  %v5349_v29 = vmul.f32 %v9667_v12, %v9667_v12  ;;  %vm5373_vm3 = vmor %vm5371_vm2, %vm5372_vm1 }
 0x774   :  { %v5367_v31 = vmul.f32 %v7031_v2, %v5366_v1  ;;  %v5345_v4 = vmul.f32 0.125, %v5332_v37  ;;  %vm5381_vm6 = vweird.f32 %v5362_v53 }
 0x775   :  { %v5309_v48 = vrot.slane %v5308_v15, 1  ;;  %v5336_v63 = vadd.f32 %v5335_v7, %v5334_v61 }
 0x776   :  { %v5368_v21 = vmul.f32 0.5, %v5367_v31  ;;  %v5353_v35 = vsub.f32 %v5345_v4, %v5349_v29 }
 0x777   :  { %v5310_v19 = vadd.f32 %v5309_v48, %v5308_v15  ;;  %v5337_v14 = vrot.slane %v5336_v63, 1 }
 0x778   :  { %v5369_v38 = vsub.f32 1.5, %v5368_v21  ;;  %v5357_v46 = vmax.f32 %v5353_v35, 0.0 }
 0x779   :  { %v7033_v40 = vpop.eup %7032  ;;  %v5338_v42 = vadd.f32 %v5337_v14, %v5336_v63  ;;  %v9671_v43 = vmul.f32 0.125, %v5310_v19 }
 0x77a   :  { %v5370_v45 = vmul.f32 %v7031_v2, %v5369_v38  ;;  %v5376_v32 = vmul.f32 %v7033_v40, %v5362_v53  ;;  %v5363_v36 = vadd.f32 1e-05, %v5357_v46  ;;  %vm5382_vm4 = vweird.f32 %v7033_v40 }
 0x77b   :  { %v5346_v22 = vmul.f32 0.125, %v5338_v42  ;;  %v5350_v60 = vmul.f32 %v9671_v43, %v9671_v43  ;;  %vm5383_vm7 = vmor %vm5381_vm6, %vm5382_vm4 }
 0x77c   :  { %v5374_v24 = vsel %vm5373_vm3, %v7031_v2, %v5370_v45  ;;  %v5377_v18 = vmul.f32 %v7033_v40, %v5376_v32  ;;  %7034 = vrsqrt.f32 %v5363_v36  ;;  %vm5391_vm9 = vweird.f32 %v5363_v36 }
 0x77d   :  { %v5405_v26 = vmul.f32 %v5374_v24, %v9673_v17  ;;  %v5354_v44 = vsub.f32 %v5346_v22, %v5350_v60 }
 0x77e   :  { %v5378_v5 = vmul.f32 0.5, %v5377_v18 }
 0x77f   :  { %v5409_v25 = vmul.f32 %v5405_v26, %v9647_v10  ;;  %v5358_v47 = vmax.f32 %v5354_v44, 0.0  ;;  %v5417_v51 = vperm.slane %v5405_v26, 0 }
 0x780   :  { %v5379_v52 = vsub.f32 1.5, %v5378_v5 }
 0x781   :  { %v5364_v30 = vadd.f32 1e-05, %v5358_v47  ;;  %v5413_v50 = vsub.f32 %v5360_v56, %v5409_v25  ;;  %v5421_v20 = vmul.f32 %v5417_v51, %v9635_v9 }
 0x782   :  { %v7035_v49 = vpop.eup %7034  ;;  %v5380_v58 = vmul.f32 %v7033_v40, %v5379_v52 }
 0x783   :  { %v5386_v55 = vmul.f32 %v7035_v49, %v5363_v36  ;;  %7036 = vrsqrt.f32 %v5364_v30  ;;  %v5425_v39 = vperm.slane %v5413_v50, 0  ;;  %vm5392_vm8 = vweird.f32 %v7035_v49 }
 0x784   :  { %v5384_v62 = vsel %vm5383_vm7, %v7033_v40, %v5380_v58  ;;  %vm5393_vm10 = vmor %vm5391_vm9, %vm5392_vm8  ;;  %vm5401_vm12 = vweird.f32 %v5364_v30 }
 0x785   :  { %v5406_v34 = vmul.f32 %v5384_v62, %v9673_v17  ;;  %v5387_v0 = vmul.f32 %v7035_v49, %v5386_v55  ;;  %v5429_v57 = vadd.f32 %v5425_v39, %v5421_v20 }
 0x787   :  { %v5410_v10 = vmul.f32 %v5406_v34, %v9657_v33  ;;  %v5418_v3 = vperm.slane %v5406_v34, 0  ;;  %v5388_v11 = vmul.f32 0.5, %v5387_v0  ;;  %v5433_v37 = vmax.f32 %v5429_v57, 0.0 }
 0x789   :  { %v7037_v28 = vpop.eup %7036  ;;  %v5414_v6 = vsub.f32 %v5360_v56, %v5410_v10  ;;  %v5389_v23 = vsub.f32 1.5, %v5388_v11  ;;  %v5422_v13 = vmul.f32 %v5418_v3, %v9641_v41 }
 0x78a   :  { %v5396_v27 = vmul.f32 %v7037_v28, %v5364_v30  ;;  %vm5402_vm11 = vweird.f32 %v7037_v28 }
 0x78b   :  { %v5426_v16 = vperm.slane %v5414_v6, 0  ;;  %v5390_v2 = vmul.f32 %v7035_v49, %v5389_v23  ;;  %vm5403_vm15 = vmor %vm5401_vm12, %vm5402_vm11 }
 0x78c   :  { %v5397_v53 = vmul.f32 %v7037_v28, %v5396_v27 }
 0x78d   :  { %v5430_v8 = vadd.f32 %v5426_v16, %v5422_v13  ;;  %v5394_v61 = vsel %vm5393_vm10, %v7035_v49, %v5390_v2 }
 0x78e   :  { %v5407_v33 = vmul.f32 %v5394_v61, %v9673_v17  ;;  %v5398_v1 = vmul.f32 0.5, %v5397_v53 }
 0x78f   :  { %v5434_v15 = vmax.f32 %v5430_v8, 0.0 }
 0x790   :  { %v5399_v9 = vsub.f32 1.5, %v5398_v1  ;;  %v5411_v7 = vmul.f32 %v5407_v33, %v9667_v12  ;;  %v5419_v48 = vperm.slane %v5407_v33, 0 }
 0x791   :  { %v5437_v31 = vpack.c.bf16 %v5434_v15, %v5433_v37 }
 0x792   :  { %v5400_v4 = vmul.f32 %v7037_v28, %v5399_v9  ;;  %v5415_v41 = vsub.f32 %v5360_v56, %v5411_v7  ;;  %v5423_v14 = vmul.f32 %v5419_v48, %v9651_v54  ;;  %v6885_v54 = vld [vmem:[#allocation20 + $0x2] ss:$0 sm:$0xff] }
 0x793   :  { %5513 = vmatmul.bf16.vlgmr.msrb.gmra.mxu3 %v5437_v31 }
 0x794   :  { %v5404_v29 = vsel %vm5403_vm15, %v7037_v28, %v5400_v4  ;;  %v5427_v19 = vperm.slane %v5415_v41, 0 }
 0x795   :  { %v5408_v63 = vmul.f32 %v5404_v29, %v9673_v17 }
 0x796   :  { %v5431_v40 = vadd.f32 %v5427_v19, %v5423_v14 }
 0x797   :  { %v5412_v21 = vmul.f32 %v5408_v63, %v9671_v43  ;;  %v5420_v35 = vperm.slane %v5408_v63, 0 }
 0x798   :  { %v5435_v45 = vmax.f32 %v5431_v40, 0.0 }
 0x799   :  { %v5416_v38 = vsub.f32 %v5360_v56, %v5412_v21  ;;  %v5424_v46 = vmul.f32 %v5420_v35, %v9661_v59 }
 0x79b   :  { %v5428_v12 = vperm.slane %v5416_v38, 0 }
 0x79d   :  { %v5432_v42 = vadd.f32 %v5428_v12, %v5424_v46 }
 0x79f   :  { %v5436_v32 = vmax.f32 %v5432_v42, 0.0 }
 0x7a1   :  { %v5438_v36 = vpack.c.bf16 %v5436_v32, %v5435_v45 }
 0x7a3   :  { %5518 = vmatmul.bf16.gmra.mxu3 %v5438_v36 }
 0x816   :  { %v5514_v59 = vpop.f32.mrf.mxu3 }
 0x817   :  { %v5515_v43 = vadd.f32 %v6885_v54, %v5514_v59 }
 0x819   :  { %5524 = vst [vmem:[#allocation23] sm:$0xff] %v5515_v43 }
 0x81e   :  { %v5516_v17 = vpop.f32.mrf.mxu3 }
 0x81f   :  { %v5517_v22 = vadd.f32 %v6885_v54, %v5516_v17 }
 0x821   :  { %5525 = vst [vmem:[#allocation23 + $0x8] sm:$0xff] %v5517_v22 }
 0x826   :  { %v5519_v60 = vpop.f32.mrf.mxu3 }
 0x827   :  { %v5520_v24 = vadd.f32 %v6885_v54, %v5519_v60 }
 0x829   :  { %5526 = vst [vmem:[#allocation23 + $0x10] sm:$0xff] %v5520_v24 }
 0x82e   :  { %v5521_v18 = vpop.f32.mrf.mxu3 }
 0x82f   :  { %v5522_v26 = vadd.f32 %v6885_v54, %v5521_v18 }
 0x831   :  { %5527 = vst [vmem:[#allocation23 + $0x18] sm:$0xff] %v5522_v26 }
 0x832   :  { %5553 = dma.vmem_to_hbm [thread:$0]  %s5546_s29, 512, %s5548_s15, [#allocation24], %s7404_s27, %s7404_s27, %s7405_s28  }
 0x833   :  { %7389 = dma.done.wait [#allocation4], 512  }
 0x834   :  { %7390 = vsyncadd [#allocation4], 4294966784 }
 0x835   :  { %7391 = dma.done.wait [#allocation24], 512  }
 0x836   :  { %7392 = vsyncadd [#allocation24], 4294966784 }
 0x837   :  { %5562 = vsyncpa [#allocation3], 1 }
 0x838   :  { %5563 = vsyncpa [#allocation6], 1 }
 0x839   :  { %5564 = vsyncpa [#allocation9], 1 }
 0x83a   :  { %5565 = vsyncpa [#allocation12], 1 }
 0x83b   :  { %5566 = vsyncpa [#allocation15], 1 }
 0x83c   :  { %5567 = vsyncpa [#allocation18], 1 }
 0x83d   :  { %5568 = vsyncpa [#allocation21], 1 }
 0x83e   :  { %5569 = vsyncpa [#allocation4], 1 }
 0x83f   :  { %5570 = vsyncpa [#allocation24], 1 }

</bundles_post_ra>
